<compile_context>
chip_gen: v7x
topology: tpu7x:2x2x1
jax: 0.10.0
libtpu: 0.0.40
codegen_flags: <defaults>
</compile_context>

<pallas_src>
import functools

import jax
import jax.numpy as jnp
from jax import lax
from jax.experimental import pallas as pl
from jax.experimental.pallas import tpu as pltpu

_WEACH = 10      # window width hard-coded in SCAM.forward (weach = 10)
_EPS = 1e-6      # LayerNorm2d eps
_MASK = -1e30    # additive mask for out-of-window attention scores


def _scam_kernel(xl_ref, xr_ref, vec_ref, mat_ref, fcp_ref, a_ref, b_ref, *,
                 scale, win):
    f32 = jnp.float32
    xl = xl_ref[...].astype(f32)          # (C, P)   P = H * W_used
    xr = xr_ref[...].astype(f32)
    vecs = vec_ref[...]                   # (C, 10 + 2K)  per-channel columns
    mats = mat_ref[...]                   # (4 + 2K, C, C) stacked (Cout,Cin) mats
    fcp = fcp_ref[...]                    # (2, K, C + K + 2) attention2d params

    c = xl.shape[0]
    p_len = xl.shape[1]
    k_dyn = fcp.shape[1]

    def col(i):                           # per-channel column -> (C, 1)
        return vecs[:, i:i + 1]

    # ---------- per-pixel channel ops in the lane-dense (C, P) layout --------
    def layer_norm(x, w, b):
        mu = jnp.mean(x, axis=0, keepdims=True)
        xc = x - mu
        var = jnp.mean(xc * xc, axis=0, keepdims=True)
        return xc * lax.rsqrt(var + _EPS) * w + b

    def conv1x1(x, w, b):
        # x: (Cin, L), w: (Cout, Cin), b: (Cout, 1) -> (Cout, L)
        # Unrolled per-channel VPU FMAs; contraction dim is tiny, keep off MXU.
        y = w[:, 0:1] * x[0:1, :]
        for i in range(1, x.shape[0]):
            y = y + w[:, i:i + 1] * x[i:i + 1, :]
        return y + b

    q_l = conv1x1(layer_norm(xl, col(0), col(1)), mats[0], col(4))
    q_r = conv1x1(layer_norm(xr, col(2), col(3)), mats[1], col(5))
    v_l = conv1x1(xl, mats[2], col(6))
    v_r = conv1x1(xr, mats[3], col(7))

    # ---------- per-row windowed cross attention (window = `win` lanes) ------
    # Flattened spatial axis is row-major, each row = R contiguous windows of
    # `win` lanes, so the key at in-window index j of query p's window sits at
    # lane p + (j - i) with i = p mod win.  Run over the 2*win-1 relative
    # shifts with static lane slices of a zero-padded K/V slab; mask shifts
    # that would leave the window.
    lane = lax.broadcasted_iota(jnp.int32, (1, p_len), 1).astype(f32)
    in_win = lane - jnp.floor(lane / float(win)) * float(win)   # p mod win
    shift_lo = -(win - 1)
    n_shift = 2 * win - 1
    shift_bias = []                       # hoisted: shared by both directions
    for d in range(shift_lo, win):
        valid = jnp.logical_and(in_win + d > -0.5, in_win + d < win - 0.5)
        shift_bias.append(jnp.where(valid, 0.0, _MASK))

    def win_attention(q, k, v):
        kv = jnp.concatenate([k, v], axis=0)                    # (2C, P)
        zp = jnp.zeros((kv.shape[0], win), f32)
        kvp = jnp.concatenate([zp, kv, zp], axis=1)             # (2C, P + 2*win)
        shifted, scores = [], []
        for idx in range(n_shift):
            d = shift_lo + idx
            sl = kvp[:, win + d: win + d + p_len]               # (2C, P)
            shifted.append(sl)
            s = jnp.sum(q * sl[:c], axis=0, keepdims=True)      # (1, P)
            scores.append(s * scale + shift_bias[idx])
        s_all = jnp.concatenate(scores, axis=0)                 # (2*win-1, P)
        m = jnp.max(s_all, axis=0, keepdims=True)
        p_all = jnp.exp(s_all - m)
        inv = pl.reciprocal(jnp.sum(p_all, axis=0, keepdims=True), approx=True)
        out = p_all[0:1, :] * shifted[0][c:]
        for idx in range(1, n_shift):
            out = out + p_all[idx:idx + 1, :] * shifted[idx][c:]
        return out * inv                                        # (C, P)

    f_r2l = win_attention(q_l, q_r, v_r) * col(8)               # * beta
    f_l2r = win_attention(q_r, q_l, v_l) * col(9)               # * gamma

    # ---------- Dynamic_conv2d: attention2d mixing + aggregated 1x1 conv -----
    def dyn_apply(side, x_for_pool, feat):
        fc = fcp[side]                                          # (K, C+K+2)
        fc1_w = fc[:, :c]                                       # (K, C)
        fc2_w = fc[:, c:c + k_dyn]                              # (K, K)
        fc1_b = fc[:, c + k_dyn:c + k_dyn + 1]                  # (K, 1)
        fc2_b = fc[:, c + k_dyn + 1:c + k_dyn + 2]              # (K, 1)
        pooled = jnp.mean(x_for_pool, axis=1, keepdims=True)    # (C, 1)
        h = jnp.maximum(conv1x1(pooled, fc1_w, fc1_b), 0.0)     # (K, 1)
        h = conv1x1(h, fc2_w, fc2_b)                            # (K, 1)
        h = h - jnp.max(h, axis=0, keepdims=True)
        e = jnp.exp(h)
        att = e / jnp.sum(e, axis=0, keepdims=True)             # (K, 1) softmax
        w_agg = att[0:1, :] * mats[4 + side * k_dyn]            # (C, C)
        b_agg = att[0:1, :] * col(10 + side * k_dyn)            # (C, 1)
        for kk in range(1, k_dyn):
            w_agg = w_agg + att[kk:kk + 1, :] * mats[4 + side * k_dyn + kk]
            b_agg = b_agg + att[kk:kk + 1, :] * col(10 + side * k_dyn + kk)
        return conv1x1(feat, w_agg, b_agg)                      # (C, P)

    a_ref[...] = (xl + dyn_apply(0, xl, f_r2l)).astype(a_ref.dtype)
    b_ref[...] = (xr + dyn_apply(1, xr, f_l2r)).astype(b_ref.dtype)


@jax.jit
def scam_forward(x_l, x_r, params):
    N, C, H, W = x_l.shape
    R = W // _WEACH
    w_used = R * _WEACH
    P = H * w_used
    scale = float(C) ** -0.5
    K = params['l_fc1_w'].shape[0]

    # NCHW -> (N, C, H*W_used): pure (free) reshape, no transpose / HBM pass.
    xl = x_l[:, :, :, :w_used].reshape(N, C, P)
    xr = x_r[:, :, :, :w_used].reshape(N, C, P)

    # ---- pack the tiny parameters into 3 arrays (few DMA descriptors) ------
    def m2(w):          # Conv2d 1x1 weight (Cout, Cin, 1, 1) -> (Cout, Cin)
        return w.reshape(w.shape[0], w.shape[1])

    def cvec(v):        # per-channel vector -> (C, 1) column
        return v.reshape(-1, 1)

    vecs = jnp.concatenate([
        cvec(params['ln_l_w']), cvec(params['ln_l_b']),
        cvec(params['ln_r_w']), cvec(params['ln_r_b']),
        cvec(params['l_proj1_b']), cvec(params['r_proj1_b']),
        cvec(params['l_proj2_b']), cvec(params['r_proj2_b']),
        params['beta'].reshape(C, 1), params['gamma'].reshape(C, 1),
        params['l_dyn_b'].T,                                     # (C, K)
        params['r_dyn_b'].T,                                     # (C, K)
    ], axis=1)                                                   # (C, 10 + 2K)

    mats = jnp.concatenate([
        m2(params['l_proj1_w'])[None], m2(params['r_proj1_w'])[None],
        m2(params['l_proj2_w'])[None], m2(params['r_proj2_w'])[None],
        params['l_dyn_w'].reshape(K, C, C),
        params['r_dyn_w'].reshape(K, C, C),
    ], axis=0)                                                   # (4 + 2K, C, C)

    fcp = jnp.stack([
        jnp.concatenate([m2(params['l_fc1_w']), m2(params['l_fc2_w']),
                         params['l_fc1_b'].reshape(K, 1),
                         params['l_fc2_b'].reshape(K, 1)], axis=1),
        jnp.concatenate([m2(params['r_fc1_w']), m2(params['r_fc2_w']),
                         params['r_fc1_b'].reshape(K, 1),
                         params['r_fc2_b'].reshape(K, 1)], axis=1),
    ], axis=0)                                                   # (2, K, C+K+2)

    x_spec = pl.BlockSpec((None, C, P), lambda n: (n, 0, 0))
    vec_spec = pl.BlockSpec(vecs.shape, lambda n: (0, 0))
    mat_spec = pl.BlockSpec(mats.shape, lambda n: (0, 0, 0))
    fcp_spec = pl.BlockSpec(fcp.shape, lambda n: (0, 0, 0))

    flops = int(N * P * (12 * C * C + 16 * _WEACH * C))
    cost = pl.CostEstimate(
        flops=flops,
        transcendentals=int(N * P * 2 * (2 * _WEACH - 1)),
        bytes_accessed=int(4 * (4 * N * C * P
                                + vecs.size + mats.size + fcp.size)))

    a_flat, b_flat = pl.pallas_call(
        functools.partial(_scam_kernel, scale=scale, win=_WEACH),
        out_shape=(jax.ShapeDtypeStruct((N, C, P), jnp.float32),
                   jax.ShapeDtypeStruct((N, C, P), jnp.float32)),
        grid=(N,),
        in_specs=[x_spec, x_spec, vec_spec, mat_spec, fcp_spec],
        out_specs=(x_spec, x_spec),
        compiler_params=pltpu.CompilerParams(
            dimension_semantics=("parallel",)),
        cost_estimate=cost,
    )(xl, xr, vecs, mats, fcp)

    # (N, C, H*W_used) -> NCHW: free reshape.
    a = a_flat.reshape(N, C, H, w_used)
    b = b_flat.reshape(N, C, H, w_used)
    return a, b


# --------------------------- pure-JAX reference ------------------------------
def _layer_norm_2d_ref(x, w, b, eps=_EPS):
    c = x.shape[1]
    mu = jnp.mean(x, axis=1, keepdims=True)
    var = jnp.mean((x - mu) ** 2, axis=1, keepdims=True)
    y = (x - mu) / jnp.sqrt(var + eps)
    return w.reshape(1, c, 1, 1) * y + b.reshape(1, c, 1, 1)


def _conv1x1_ref(x, w, b):
    y = jnp.einsum('nchw,oc->nohw', x, w.reshape(w.shape[0], w.shape[1]))
    return y + b.reshape(1, -1, 1, 1)


def _dynamic_conv2d_ref(x, y, fc1_w, fc1_b, fc2_w, fc2_b, dyn_w, dyn_b):
    k = fc1_w.shape[0]
    cout, cin = dyn_w.shape[1], dyn_w.shape[2]
    pooled = jnp.mean(y, axis=(2, 3))
    h1 = jax.nn.relu(pooled @ fc1_w.reshape(k, -1).T + fc1_b)
    att = jax.nn.softmax(h1 @ fc2_w.reshape(k, k).T + fc2_b, axis=1)
    w_agg = jnp.einsum('nk,koi->noi', att, dyn_w.reshape(k, cout, cin))
    b_agg = att @ dyn_b
    return jnp.einsum('nihw,noi->nohw', x, w_agg) + b_agg[:, :, None, None]


def _scam_reference(x_l, x_r, p):
    n, c, h, w = x_l.shape
    r = w // _WEACH
    scale = float(c) ** -0.5
    sl, sr, slr, srl = [], [], [], []
    for i in range(r):
        xl1 = x_l[:, :, :, i * _WEACH:(i + 1) * _WEACH]
        xr1 = x_r[:, :, :, i * _WEACH:(i + 1) * _WEACH]
        q_l = jnp.transpose(
            _conv1x1_ref(_layer_norm_2d_ref(xl1, p['ln_l_w'], p['ln_l_b']),
                         p['l_proj1_w'], p['l_proj1_b']), (0, 2, 3, 1))
        q_r_t = jnp.transpose(
            _conv1x1_ref(_layer_norm_2d_ref(xr1, p['ln_r_w'], p['ln_r_b']),
                         p['r_proj1_w'], p['r_proj1_b']), (0, 2, 1, 3))
        v_l = jnp.transpose(_conv1x1_ref(xl1, p['l_proj2_w'], p['l_proj2_b']),
                            (0, 2, 3, 1))
        v_r = jnp.transpose(_conv1x1_ref(xr1, p['r_proj2_w'], p['r_proj2_b']),
                            (0, 2, 3, 1))
        att = jnp.matmul(q_l, q_r_t) * scale
        f_r2l = jnp.matmul(jax.nn.softmax(att, axis=-1), v_r)
        att_t = jnp.transpose(att, (0, 1, 3, 2))
        f_l2r = jnp.matmul(jax.nn.softmax(att_t, axis=-1), v_l)
        f_r2l = jnp.transpose(f_r2l, (0, 3, 1, 2)) * p['beta']
        f_l2r = jnp.transpose(f_l2r, (0, 3, 1, 2)) * p['gamma']
        sl.append(xl1); sr.append(xr1); slr.append(f_l2r); srl.append(f_r2l)
    s_l = jnp.concatenate(sl, axis=3)
    s_r = jnp.concatenate(sr, axis=3)
    s_lr = jnp.concatenate(slr, axis=3)
    s_rl = jnp.concatenate(srl, axis=3)
    a = s_l + _dynamic_conv2d_ref(s_rl, s_l,
                                  p['l_fc1_w'], p['l_fc1_b'],
                                  p['l_fc2_w'], p['l_fc2_b'],
                                  p['l_dyn_w'], p['l_dyn_b'])
    b = s_r + _dynamic_conv2d_ref(s_lr, s_r,
                                  p['r_fc1_w'], p['r_fc1_b'],
                                  p['r_fc2_w'], p['r_fc2_b'],
                                  p['r_dyn_w'], p['r_dyn_b'])
    return a, b


if __name__ == "__main__":
    # Reference uses XLA matmuls; keep them in full f32 so the comparison is
    # tight (the kernel itself never touches the MXU).
    jax.config.update("jax_default_matmul_precision", "highest")

    # Small shapes consistent with SCAM(c=4); W must cover the weach=10 window.
    N, C, H, W = 2, 4, 16, 20
    K_DYN = 3

    key = jax.random.PRNGKey(0)
    keys = iter(jax.random.split(key, 40))

    def rnd(shape, s=0.3):
        return s * jax.random.normal(next(keys), shape, dtype=jnp.float32)

    x_l = jax.random.normal(next(keys), (N, C, H, W), dtype=jnp.float32)
    x_r = jax.random.normal(next(keys), (N, C, H, W), dtype=jnp.float32)

    params = {
        'ln_l_w': 1.0 + rnd((C,), 0.1), 'ln_l_b': rnd((C,), 0.1),
        'ln_r_w': 1.0 + rnd((C,), 0.1), 'ln_r_b': rnd((C,), 0.1),
        'l_proj1_w': rnd((C, C, 1, 1)), 'l_proj1_b': rnd((C,)),
        'r_proj1_w': rnd((C, C, 1, 1)), 'r_proj1_b': rnd((C,)),
        'l_proj2_w': rnd((C, C, 1, 1)), 'l_proj2_b': rnd((C,)),
        'r_proj2_w': rnd((C, C, 1, 1)), 'r_proj2_b': rnd((C,)),
        'beta': rnd((1, C, 1, 1)), 'gamma': rnd((1, C, 1, 1)),
        'l_fc1_w': rnd((K_DYN, C, 1, 1)), 'l_fc1_b': rnd((K_DYN,)),
        'l_fc2_w': rnd((K_DYN, K_DYN, 1, 1)), 'l_fc2_b': rnd((K_DYN,)),
        'l_dyn_w': rnd((K_DYN, C, C, 1, 1)), 'l_dyn_b': rnd((K_DYN, C)),
        'r_fc1_w': rnd((K_DYN, C, 1, 1)), 'r_fc1_b': rnd((K_DYN,)),
        'r_fc2_w': rnd((K_DYN, K_DYN, 1, 1)), 'r_fc2_b': rnd((K_DYN,)),
        'r_dyn_w': rnd((K_DYN, C, C, 1, 1)), 'r_dyn_b': rnd((K_DYN, C)),
    }

    a, b = scam_forward(x_l, x_r, params)
    a, b = jax.block_until_ready((a, b))

    a_ref, b_ref = _scam_reference(x_l, x_r, params)
    w_used = (W // _WEACH) * _WEACH
    assert a.shape == (N, C, H, w_used), a.shape
    assert b.shape == (N, C, H, w_used), b.shape
    err = max(float(jnp.max(jnp.abs(a - a_ref))),
              float(jnp.max(jnp.abs(b - b_ref))))
    # No MXU passes anywhere; remaining error is the approx softmax reciprocal.
    assert err < 5e-3, err

    print("KERNEL_OK")
</pallas_src>

<mosaic_0001>
module attributes {stable_mosaic.version = 11 : i64} {
  func.func @_scam_kernel(%arg0: i32, %arg1: memref<1x4x320xf32, #tpu.memory_space<vmem>>, %arg2: memref<1x4x320xf32, #tpu.memory_space<vmem>>, %arg3: memref<4x16xf32, #tpu.memory_space<vmem>>, %arg4: memref<10x4x4xf32, #tpu.memory_space<vmem>>, %arg5: memref<2x3x9xf32, #tpu.memory_space<vmem>>, %arg6: memref<1x4x320xf32, #tpu.memory_space<vmem>>, %arg7: memref<1x4x320xf32, #tpu.memory_space<vmem>>) attributes {dimension_semantics = [#tpu.dimension_semantics<parallel>], iteration_bounds = array<i64: 2>, scalar_prefetch = 0 : i64, scratch_operands = 0 : i64, tpu.core_type = #tpu.core_type<tc>, window_params = [{transform_indices = @transform_0, window_bounds = array<i64: 1, 4, 320>}, {transform_indices = @transform_1, window_bounds = array<i64: 1, 4, 320>}, {pipeline_mode = #tpu.pipeline_mode<synchronous>, transform_indices = @transform_2, window_bounds = array<i64: 4, 16>}, {pipeline_mode = #tpu.pipeline_mode<synchronous>, transform_indices = @transform_3, window_bounds = array<i64: 10, 4, 4>}, {pipeline_mode = #tpu.pipeline_mode<synchronous>, transform_indices = @transform_4, window_bounds = array<i64: 2, 3, 9>}, {transform_indices = @transform_5, window_bounds = array<i64: 1, 4, 320>}, {transform_indices = @transform_6, window_bounds = array<i64: 1, 4, 320>}]} {
    %c0 = arith.constant 0 : index
    %c0_0 = arith.constant 0 : index
    %c0_1 = arith.constant 0 : index
    %0 = vector.load %arg1[%c0, %c0_0, %c0_1] : memref<1x4x320xf32, #tpu.memory_space<vmem>>, vector<1x4x320xf32>
    %1 = vector.shape_cast %0 : vector<1x4x320xf32> to vector<4x320xf32>
    %c0_2 = arith.constant 0 : index
    %c0_3 = arith.constant 0 : index
    %c0_4 = arith.constant 0 : index
    %2 = vector.load %arg2[%c0_2, %c0_3, %c0_4] : memref<1x4x320xf32, #tpu.memory_space<vmem>>, vector<1x4x320xf32>
    %3 = vector.shape_cast %2 : vector<1x4x320xf32> to vector<4x320xf32>
    %c0_5 = arith.constant 0 : index
    %c0_6 = arith.constant 0 : index
    %4 = vector.load %arg3[%c0_5, %c0_6] : memref<4x16xf32, #tpu.memory_space<vmem>>, vector<4x16xf32>
    %c0_7 = arith.constant 0 : index
    %c0_8 = arith.constant 0 : index
    %c0_9 = arith.constant 0 : index
    %5 = vector.load %arg4[%c0_7, %c0_8, %c0_9] : memref<10x4x4xf32, #tpu.memory_space<vmem>>, vector<10x4x4xf32>
    %c0_10 = arith.constant 0 : index
    %c0_11 = arith.constant 0 : index
    %c0_12 = arith.constant 0 : index
    %6 = vector.load %arg5[%c0_10, %c0_11, %c0_12] : memref<2x3x9xf32, #tpu.memory_space<vmem>>, vector<2x3x9xf32>
    %7 = vector.extract_strided_slice %4 {offsets = [0, 0], sizes = [4, 1], strides = [1, 1]} : vector<4x16xf32> to vector<4x1xf32>
    %8 = vector.extract_strided_slice %4 {offsets = [0, 1], sizes = [4, 1], strides = [1, 1]} : vector<4x16xf32> to vector<4x1xf32>
    %cst = arith.constant dense<0.000000e+00> : vector<320xf32>
    %9 = vector.multi_reduction <add>, %1, %cst [0] : vector<4x320xf32> to vector<320xf32>
    %10 = vector.shape_cast %9 : vector<320xf32> to vector<1x320xf32>
    %cst_13 = arith.constant 4.000000e+00 : f32
    %11 = vector.broadcast %cst_13 : f32 to vector<1x320xf32>
    %12 = arith.divf %10, %11 : vector<1x320xf32>
    %13 = vector.broadcast %12 : vector<1x320xf32> to vector<4x320xf32>
    %14 = arith.subf %1, %13 : vector<4x320xf32>
    %15 = arith.mulf %14, %14 : vector<4x320xf32>
    %cst_14 = arith.constant dense<0.000000e+00> : vector<320xf32>
    %16 = vector.multi_reduction <add>, %15, %cst_14 [0] : vector<4x320xf32> to vector<320xf32>
    %17 = vector.shape_cast %16 : vector<320xf32> to vector<1x320xf32>
    %cst_15 = arith.constant 4.000000e+00 : f32
    %18 = vector.broadcast %cst_15 : f32 to vector<1x320xf32>
    %19 = arith.divf %17, %18 : vector<1x320xf32>
    %cst_16 = arith.constant 9.99999997E-7 : f32
    %20 = vector.broadcast %cst_16 : f32 to vector<1x320xf32>
    %21 = arith.addf %19, %20 : vector<1x320xf32>
    %22 = math.rsqrt %21 : vector<1x320xf32>
    %23 = vector.broadcast %22 : vector<1x320xf32> to vector<4x320xf32>
    %24 = arith.mulf %14, %23 : vector<4x320xf32>
    %25 = vector.broadcast %7 : vector<4x1xf32> to vector<4x320xf32>
    %26 = arith.mulf %24, %25 : vector<4x320xf32>
    %27 = vector.broadcast %8 : vector<4x1xf32> to vector<4x320xf32>
    %28 = arith.addf %26, %27 : vector<4x320xf32>
    %29 = vector.extract_strided_slice %5 {offsets = [0, 0, 0], sizes = [1, 4, 4], strides = [1, 1, 1]} : vector<10x4x4xf32> to vector<1x4x4xf32>
    %30 = vector.shape_cast %29 : vector<1x4x4xf32> to vector<4x4xf32>
    %31 = vector.extract_strided_slice %4 {offsets = [0, 4], sizes = [4, 1], strides = [1, 1]} : vector<4x16xf32> to vector<4x1xf32>
    %32 = vector.extract_strided_slice %30 {offsets = [0, 0], sizes = [4, 1], strides = [1, 1]} : vector<4x4xf32> to vector<4x1xf32>
    %33 = vector.extract_strided_slice %28 {offsets = [0, 0], sizes = [1, 320], strides = [1, 1]} : vector<4x320xf32> to vector<1x320xf32>
    %34 = vector.broadcast %32 : vector<4x1xf32> to vector<4x320xf32>
    %35 = vector.broadcast %33 : vector<1x320xf32> to vector<4x320xf32>
    %36 = arith.mulf %34, %35 : vector<4x320xf32>
    %37 = vector.extract_strided_slice %30 {offsets = [0, 1], sizes = [4, 1], strides = [1, 1]} : vector<4x4xf32> to vector<4x1xf32>
    %38 = vector.extract_strided_slice %28 {offsets = [1, 0], sizes = [1, 320], strides = [1, 1]} : vector<4x320xf32> to vector<1x320xf32>
    %39 = vector.broadcast %37 : vector<4x1xf32> to vector<4x320xf32>
    %40 = vector.broadcast %38 : vector<1x320xf32> to vector<4x320xf32>
    %41 = arith.mulf %39, %40 : vector<4x320xf32>
    %42 = arith.addf %36, %41 : vector<4x320xf32>
    %43 = vector.extract_strided_slice %30 {offsets = [0, 2], sizes = [4, 1], strides = [1, 1]} : vector<4x4xf32> to vector<4x1xf32>
    %44 = vector.extract_strided_slice %28 {offsets = [2, 0], sizes = [1, 320], strides = [1, 1]} : vector<4x320xf32> to vector<1x320xf32>
    %45 = vector.broadcast %43 : vector<4x1xf32> to vector<4x320xf32>
    %46 = vector.broadcast %44 : vector<1x320xf32> to vector<4x320xf32>
    %47 = arith.mulf %45, %46 : vector<4x320xf32>
    %48 = arith.addf %42, %47 : vector<4x320xf32>
    %49 = vector.extract_strided_slice %30 {offsets = [0, 3], sizes = [4, 1], strides = [1, 1]} : vector<4x4xf32> to vector<4x1xf32>
    %50 = vector.extract_strided_slice %28 {offsets = [3, 0], sizes = [1, 320], strides = [1, 1]} : vector<4x320xf32> to vector<1x320xf32>
    %51 = vector.broadcast %49 : vector<4x1xf32> to vector<4x320xf32>
    %52 = vector.broadcast %50 : vector<1x320xf32> to vector<4x320xf32>
    %53 = arith.mulf %51, %52 : vector<4x320xf32>
    %54 = arith.addf %48, %53 : vector<4x320xf32>
    %55 = vector.broadcast %31 : vector<4x1xf32> to vector<4x320xf32>
    %56 = arith.addf %54, %55 : vector<4x320xf32>
    %57 = vector.extract_strided_slice %4 {offsets = [0, 2], sizes = [4, 1], strides = [1, 1]} : vector<4x16xf32> to vector<4x1xf32>
    %58 = vector.extract_strided_slice %4 {offsets = [0, 3], sizes = [4, 1], strides = [1, 1]} : vector<4x16xf32> to vector<4x1xf32>
    %cst_17 = arith.constant dense<0.000000e+00> : vector<320xf32>
    %59 = vector.multi_reduction <add>, %3, %cst_17 [0] : vector<4x320xf32> to vector<320xf32>
    %60 = vector.shape_cast %59 : vector<320xf32> to vector<1x320xf32>
    %cst_18 = arith.constant 4.000000e+00 : f32
    %61 = vector.broadcast %cst_18 : f32 to vector<1x320xf32>
    %62 = arith.divf %60, %61 : vector<1x320xf32>
    %63 = vector.broadcast %62 : vector<1x320xf32> to vector<4x320xf32>
    %64 = arith.subf %3, %63 : vector<4x320xf32>
    %65 = arith.mulf %64, %64 : vector<4x320xf32>
    %cst_19 = arith.constant dense<0.000000e+00> : vector<320xf32>
    %66 = vector.multi_reduction <add>, %65, %cst_19 [0] : vector<4x320xf32> to vector<320xf32>
    %67 = vector.shape_cast %66 : vector<320xf32> to vector<1x320xf32>
    %cst_20 = arith.constant 4.000000e+00 : f32
    %68 = vector.broadcast %cst_20 : f32 to vector<1x320xf32>
    %69 = arith.divf %67, %68 : vector<1x320xf32>
    %cst_21 = arith.constant 9.99999997E-7 : f32
    %70 = vector.broadcast %cst_21 : f32 to vector<1x320xf32>
    %71 = arith.addf %69, %70 : vector<1x320xf32>
    %72 = math.rsqrt %71 : vector<1x320xf32>
    %73 = vector.broadcast %72 : vector<1x320xf32> to vector<4x320xf32>
    %74 = arith.mulf %64, %73 : vector<4x320xf32>
    %75 = vector.broadcast %57 : vector<4x1xf32> to vector<4x320xf32>
    %76 = arith.mulf %74, %75 : vector<4x320xf32>
    %77 = vector.broadcast %58 : vector<4x1xf32> to vector<4x320xf32>
    %78 = arith.addf %76, %77 : vector<4x320xf32>
    %79 = vector.extract_strided_slice %5 {offsets = [1, 0, 0], sizes = [1, 4, 4], strides = [1, 1, 1]} : vector<10x4x4xf32> to vector<1x4x4xf32>
    %80 = vector.shape_cast %79 : vector<1x4x4xf32> to vector<4x4xf32>
    %81 = vector.extract_strided_slice %4 {offsets = [0, 5], sizes = [4, 1], strides = [1, 1]} : vector<4x16xf32> to vector<4x1xf32>
    %82 = vector.extract_strided_slice %80 {offsets = [0, 0], sizes = [4, 1], strides = [1, 1]} : vector<4x4xf32> to vector<4x1xf32>
    %83 = vector.extract_strided_slice %78 {offsets = [0, 0], sizes = [1, 320], strides = [1, 1]} : vector<4x320xf32> to vector<1x320xf32>
    %84 = vector.broadcast %82 : vector<4x1xf32> to vector<4x320xf32>
    %85 = vector.broadcast %83 : vector<1x320xf32> to vector<4x320xf32>
    %86 = arith.mulf %84, %85 : vector<4x320xf32>
    %87 = vector.extract_strided_slice %80 {offsets = [0, 1], sizes = [4, 1], strides = [1, 1]} : vector<4x4xf32> to vector<4x1xf32>
    %88 = vector.extract_strided_slice %78 {offsets = [1, 0], sizes = [1, 320], strides = [1, 1]} : vector<4x320xf32> to vector<1x320xf32>
    %89 = vector.broadcast %87 : vector<4x1xf32> to vector<4x320xf32>
    %90 = vector.broadcast %88 : vector<1x320xf32> to vector<4x320xf32>
    %91 = arith.mulf %89, %90 : vector<4x320xf32>
    %92 = arith.addf %86, %91 : vector<4x320xf32>
    %93 = vector.extract_strided_slice %80 {offsets = [0, 2], sizes = [4, 1], strides = [1, 1]} : vector<4x4xf32> to vector<4x1xf32>
    %94 = vector.extract_strided_slice %78 {offsets = [2, 0], sizes = [1, 320], strides = [1, 1]} : vector<4x320xf32> to vector<1x320xf32>
    %95 = vector.broadcast %93 : vector<4x1xf32> to vector<4x320xf32>
    %96 = vector.broadcast %94 : vector<1x320xf32> to vector<4x320xf32>
    %97 = arith.mulf %95, %96 : vector<4x320xf32>
    %98 = arith.addf %92, %97 : vector<4x320xf32>
    %99 = vector.extract_strided_slice %80 {offsets = [0, 3], sizes = [4, 1], strides = [1, 1]} : vector<4x4xf32> to vector<4x1xf32>
    %100 = vector.extract_strided_slice %78 {offsets = [3, 0], sizes = [1, 320], strides = [1, 1]} : vector<4x320xf32> to vector<1x320xf32>
    %101 = vector.broadcast %99 : vector<4x1xf32> to vector<4x320xf32>
    %102 = vector.broadcast %100 : vector<1x320xf32> to vector<4x320xf32>
    %103 = arith.mulf %101, %102 : vector<4x320xf32>
    %104 = arith.addf %98, %103 : vector<4x320xf32>
    %105 = vector.broadcast %81 : vector<4x1xf32> to vector<4x320xf32>
    %106 = arith.addf %104, %105 : vector<4x320xf32>
    %107 = vector.extract_strided_slice %5 {offsets = [2, 0, 0], sizes = [1, 4, 4], strides = [1, 1, 1]} : vector<10x4x4xf32> to vector<1x4x4xf32>
    %108 = vector.shape_cast %107 : vector<1x4x4xf32> to vector<4x4xf32>
    %109 = vector.extract_strided_slice %4 {offsets = [0, 6], sizes = [4, 1], strides = [1, 1]} : vector<4x16xf32> to vector<4x1xf32>
    %110 = vector.extract_strided_slice %108 {offsets = [0, 0], sizes = [4, 1], strides = [1, 1]} : vector<4x4xf32> to vector<4x1xf32>
    %111 = vector.extract_strided_slice %1 {offsets = [0, 0], sizes = [1, 320], strides = [1, 1]} : vector<4x320xf32> to vector<1x320xf32>
    %112 = vector.broadcast %110 : vector<4x1xf32> to vector<4x320xf32>
    %113 = vector.broadcast %111 : vector<1x320xf32> to vector<4x320xf32>
    %114 = arith.mulf %112, %113 : vector<4x320xf32>
    %115 = vector.extract_strided_slice %108 {offsets = [0, 1], sizes = [4, 1], strides = [1, 1]} : vector<4x4xf32> to vector<4x1xf32>
    %116 = vector.extract_strided_slice %1 {offsets = [1, 0], sizes = [1, 320], strides = [1, 1]} : vector<4x320xf32> to vector<1x320xf32>
    %117 = vector.broadcast %115 : vector<4x1xf32> to vector<4x320xf32>
    %118 = vector.broadcast %116 : vector<1x320xf32> to vector<4x320xf32>
    %119 = arith.mulf %117, %118 : vector<4x320xf32>
    %120 = arith.addf %114, %119 : vector<4x320xf32>
    %121 = vector.extract_strided_slice %108 {offsets = [0, 2], sizes = [4, 1], strides = [1, 1]} : vector<4x4xf32> to vector<4x1xf32>
    %122 = vector.extract_strided_slice %1 {offsets = [2, 0], sizes = [1, 320], strides = [1, 1]} : vector<4x320xf32> to vector<1x320xf32>
    %123 = vector.broadcast %121 : vector<4x1xf32> to vector<4x320xf32>
    %124 = vector.broadcast %122 : vector<1x320xf32> to vector<4x320xf32>
    %125 = arith.mulf %123, %124 : vector<4x320xf32>
    %126 = arith.addf %120, %125 : vector<4x320xf32>
    %127 = vector.extract_strided_slice %108 {offsets = [0, 3], sizes = [4, 1], strides = [1, 1]} : vector<4x4xf32> to vector<4x1xf32>
    %128 = vector.extract_strided_slice %1 {offsets = [3, 0], sizes = [1, 320], strides = [1, 1]} : vector<4x320xf32> to vector<1x320xf32>
    %129 = vector.broadcast %127 : vector<4x1xf32> to vector<4x320xf32>
    %130 = vector.broadcast %128 : vector<1x320xf32> to vector<4x320xf32>
    %131 = arith.mulf %129, %130 : vector<4x320xf32>
    %132 = arith.addf %126, %131 : vector<4x320xf32>
    %133 = vector.broadcast %109 : vector<4x1xf32> to vector<4x320xf32>
    %134 = arith.addf %132, %133 : vector<4x320xf32>
    %135 = vector.extract_strided_slice %5 {offsets = [3, 0, 0], sizes = [1, 4, 4], strides = [1, 1, 1]} : vector<10x4x4xf32> to vector<1x4x4xf32>
    %136 = vector.shape_cast %135 : vector<1x4x4xf32> to vector<4x4xf32>
    %137 = vector.extract_strided_slice %4 {offsets = [0, 7], sizes = [4, 1], strides = [1, 1]} : vector<4x16xf32> to vector<4x1xf32>
    %138 = vector.extract_strided_slice %136 {offsets = [0, 0], sizes = [4, 1], strides = [1, 1]} : vector<4x4xf32> to vector<4x1xf32>
    %139 = vector.extract_strided_slice %3 {offsets = [0, 0], sizes = [1, 320], strides = [1, 1]} : vector<4x320xf32> to vector<1x320xf32>
    %140 = vector.broadcast %138 : vector<4x1xf32> to vector<4x320xf32>
    %141 = vector.broadcast %139 : vector<1x320xf32> to vector<4x320xf32>
    %142 = arith.mulf %140, %141 : vector<4x320xf32>
    %143 = vector.extract_strided_slice %136 {offsets = [0, 1], sizes = [4, 1], strides = [1, 1]} : vector<4x4xf32> to vector<4x1xf32>
    %144 = vector.extract_strided_slice %3 {offsets = [1, 0], sizes = [1, 320], strides = [1, 1]} : vector<4x320xf32> to vector<1x320xf32>
    %145 = vector.broadcast %143 : vector<4x1xf32> to vector<4x320xf32>
    %146 = vector.broadcast %144 : vector<1x320xf32> to vector<4x320xf32>
    %147 = arith.mulf %145, %146 : vector<4x320xf32>
    %148 = arith.addf %142, %147 : vector<4x320xf32>
    %149 = vector.extract_strided_slice %136 {offsets = [0, 2], sizes = [4, 1], strides = [1, 1]} : vector<4x4xf32> to vector<4x1xf32>
    %150 = vector.extract_strided_slice %3 {offsets = [2, 0], sizes = [1, 320], strides = [1, 1]} : vector<4x320xf32> to vector<1x320xf32>
    %151 = vector.broadcast %149 : vector<4x1xf32> to vector<4x320xf32>
    %152 = vector.broadcast %150 : vector<1x320xf32> to vector<4x320xf32>
    %153 = arith.mulf %151, %152 : vector<4x320xf32>
    %154 = arith.addf %148, %153 : vector<4x320xf32>
    %155 = vector.extract_strided_slice %136 {offsets = [0, 3], sizes = [4, 1], strides = [1, 1]} : vector<4x4xf32> to vector<4x1xf32>
    %156 = vector.extract_strided_slice %3 {offsets = [3, 0], sizes = [1, 320], strides = [1, 1]} : vector<4x320xf32> to vector<1x320xf32>
    %157 = vector.broadcast %155 : vector<4x1xf32> to vector<4x320xf32>
    %158 = vector.broadcast %156 : vector<1x320xf32> to vector<4x320xf32>
    %159 = arith.mulf %157, %158 : vector<4x320xf32>
    %160 = arith.addf %154, %159 : vector<4x320xf32>
    %161 = vector.broadcast %137 : vector<4x1xf32> to vector<4x320xf32>
    %162 = arith.addf %160, %161 : vector<4x320xf32>
    %163 = tpu.iota {dimensions = array<i32: 1>} : vector<1x320xi32>
    %164 = arith.sitofp %163 : vector<1x320xi32> to vector<1x320xf32>
    %cst_22 = arith.constant 1.000000e+01 : f32
    %165 = vector.broadcast %cst_22 : f32 to vector<1x320xf32>
    %166 = arith.divf %164, %165 : vector<1x320xf32>
    %167 = math.floor %166 : vector<1x320xf32>
    %cst_23 = arith.constant 1.000000e+01 : f32
    %168 = vector.broadcast %cst_23 : f32 to vector<1x320xf32>
    %169 = arith.mulf %167, %168 : vector<1x320xf32>
    %170 = arith.subf %164, %169 : vector<1x320xf32>
    %cst_24 = arith.constant -9.000000e+00 : f32
    %171 = vector.broadcast %cst_24 : f32 to vector<1x320xf32>
    %172 = arith.addf %170, %171 : vector<1x320xf32>
    %cst_25 = arith.constant -5.000000e-01 : f32
    %173 = vector.broadcast %cst_25 : f32 to vector<1x320xf32>
    %174 = arith.cmpf ogt, %172, %173 : vector<1x320xf32>
    %cst_26 = arith.constant -9.000000e+00 : f32
    %175 = vector.broadcast %cst_26 : f32 to vector<1x320xf32>
    %176 = arith.addf %170, %175 : vector<1x320xf32>
    %cst_27 = arith.constant 9.500000e+00 : f32
    %177 = vector.broadcast %cst_27 : f32 to vector<1x320xf32>
    %178 = arith.cmpf olt, %176, %177 : vector<1x320xf32>
    %179 = arith.andi %174, %178 : vector<1x320xi1>
    %cst_28 = arith.constant 0.000000e+00 : f32
    %cst_29 = arith.constant -1.000000e+30 : f32
    %180 = vector.broadcast %cst_28 : f32 to vector<1x320xf32>
    %181 = vector.broadcast %cst_29 : f32 to vector<1x320xf32>
    %182 = arith.select %179, %180, %181 : vector<1x320xi1>, vector<1x320xf32>
    %cst_30 = arith.constant -8.000000e+00 : f32
    %183 = vector.broadcast %cst_30 : f32 to vector<1x320xf32>
    %184 = arith.addf %170, %183 : vector<1x320xf32>
    %cst_31 = arith.constant -5.000000e-01 : f32
    %185 = vector.broadcast %cst_31 : f32 to vector<1x320xf32>
    %186 = arith.cmpf ogt, %184, %185 : vector<1x320xf32>
    %cst_32 = arith.constant -8.000000e+00 : f32
    %187 = vector.broadcast %cst_32 : f32 to vector<1x320xf32>
    %188 = arith.addf %170, %187 : vector<1x320xf32>
    %cst_33 = arith.constant 9.500000e+00 : f32
    %189 = vector.broadcast %cst_33 : f32 to vector<1x320xf32>
    %190 = arith.cmpf olt, %188, %189 : vector<1x320xf32>
    %191 = arith.andi %186, %190 : vector<1x320xi1>
    %cst_34 = arith.constant 0.000000e+00 : f32
    %cst_35 = arith.constant -1.000000e+30 : f32
    %192 = vector.broadcast %cst_34 : f32 to vector<1x320xf32>
    %193 = vector.broadcast %cst_35 : f32 to vector<1x320xf32>
    %194 = arith.select %191, %192, %193 : vector<1x320xi1>, vector<1x320xf32>
    %cst_36 = arith.constant -7.000000e+00 : f32
    %195 = vector.broadcast %cst_36 : f32 to vector<1x320xf32>
    %196 = arith.addf %170, %195 : vector<1x320xf32>
    %cst_37 = arith.constant -5.000000e-01 : f32
    %197 = vector.broadcast %cst_37 : f32 to vector<1x320xf32>
    %198 = arith.cmpf ogt, %196, %197 : vector<1x320xf32>
    %cst_38 = arith.constant -7.000000e+00 : f32
    %199 = vector.broadcast %cst_38 : f32 to vector<1x320xf32>
    %200 = arith.addf %170, %199 : vector<1x320xf32>
    %cst_39 = arith.constant 9.500000e+00 : f32
    %201 = vector.broadcast %cst_39 : f32 to vector<1x320xf32>
    %202 = arith.cmpf olt, %200, %201 : vector<1x320xf32>
    %203 = arith.andi %198, %202 : vector<1x320xi1>
    %cst_40 = arith.constant 0.000000e+00 : f32
    %cst_41 = arith.constant -1.000000e+30 : f32
    %204 = vector.broadcast %cst_40 : f32 to vector<1x320xf32>
    %205 = vector.broadcast %cst_41 : f32 to vector<1x320xf32>
    %206 = arith.select %203, %204, %205 : vector<1x320xi1>, vector<1x320xf32>
    %cst_42 = arith.constant -6.000000e+00 : f32
    %207 = vector.broadcast %cst_42 : f32 to vector<1x320xf32>
    %208 = arith.addf %170, %207 : vector<1x320xf32>
    %cst_43 = arith.constant -5.000000e-01 : f32
    %209 = vector.broadcast %cst_43 : f32 to vector<1x320xf32>
    %210 = arith.cmpf ogt, %208, %209 : vector<1x320xf32>
    %cst_44 = arith.constant -6.000000e+00 : f32
    %211 = vector.broadcast %cst_44 : f32 to vector<1x320xf32>
    %212 = arith.addf %170, %211 : vector<1x320xf32>
    %cst_45 = arith.constant 9.500000e+00 : f32
    %213 = vector.broadcast %cst_45 : f32 to vector<1x320xf32>
    %214 = arith.cmpf olt, %212, %213 : vector<1x320xf32>
    %215 = arith.andi %210, %214 : vector<1x320xi1>
    %cst_46 = arith.constant 0.000000e+00 : f32
    %cst_47 = arith.constant -1.000000e+30 : f32
    %216 = vector.broadcast %cst_46 : f32 to vector<1x320xf32>
    %217 = vector.broadcast %cst_47 : f32 to vector<1x320xf32>
    %218 = arith.select %215, %216, %217 : vector<1x320xi1>, vector<1x320xf32>
    %cst_48 = arith.constant -5.000000e+00 : f32
    %219 = vector.broadcast %cst_48 : f32 to vector<1x320xf32>
    %220 = arith.addf %170, %219 : vector<1x320xf32>
    %cst_49 = arith.constant -5.000000e-01 : f32
    %221 = vector.broadcast %cst_49 : f32 to vector<1x320xf32>
    %222 = arith.cmpf ogt, %220, %221 : vector<1x320xf32>
    %cst_50 = arith.constant -5.000000e+00 : f32
    %223 = vector.broadcast %cst_50 : f32 to vector<1x320xf32>
    %224 = arith.addf %170, %223 : vector<1x320xf32>
    %cst_51 = arith.constant 9.500000e+00 : f32
    %225 = vector.broadcast %cst_51 : f32 to vector<1x320xf32>
    %226 = arith.cmpf olt, %224, %225 : vector<1x320xf32>
    %227 = arith.andi %222, %226 : vector<1x320xi1>
    %cst_52 = arith.constant 0.000000e+00 : f32
    %cst_53 = arith.constant -1.000000e+30 : f32
    %228 = vector.broadcast %cst_52 : f32 to vector<1x320xf32>
    %229 = vector.broadcast %cst_53 : f32 to vector<1x320xf32>
    %230 = arith.select %227, %228, %229 : vector<1x320xi1>, vector<1x320xf32>
    %cst_54 = arith.constant -4.000000e+00 : f32
    %231 = vector.broadcast %cst_54 : f32 to vector<1x320xf32>
    %232 = arith.addf %170, %231 : vector<1x320xf32>
    %cst_55 = arith.constant -5.000000e-01 : f32
    %233 = vector.broadcast %cst_55 : f32 to vector<1x320xf32>
    %234 = arith.cmpf ogt, %232, %233 : vector<1x320xf32>
    %cst_56 = arith.constant -4.000000e+00 : f32
    %235 = vector.broadcast %cst_56 : f32 to vector<1x320xf32>
    %236 = arith.addf %170, %235 : vector<1x320xf32>
    %cst_57 = arith.constant 9.500000e+00 : f32
    %237 = vector.broadcast %cst_57 : f32 to vector<1x320xf32>
    %238 = arith.cmpf olt, %236, %237 : vector<1x320xf32>
    %239 = arith.andi %234, %238 : vector<1x320xi1>
    %cst_58 = arith.constant 0.000000e+00 : f32
    %cst_59 = arith.constant -1.000000e+30 : f32
    %240 = vector.broadcast %cst_58 : f32 to vector<1x320xf32>
    %241 = vector.broadcast %cst_59 : f32 to vector<1x320xf32>
    %242 = arith.select %239, %240, %241 : vector<1x320xi1>, vector<1x320xf32>
    %cst_60 = arith.constant -3.000000e+00 : f32
    %243 = vector.broadcast %cst_60 : f32 to vector<1x320xf32>
    %244 = arith.addf %170, %243 : vector<1x320xf32>
    %cst_61 = arith.constant -5.000000e-01 : f32
    %245 = vector.broadcast %cst_61 : f32 to vector<1x320xf32>
    %246 = arith.cmpf ogt, %244, %245 : vector<1x320xf32>
    %cst_62 = arith.constant -3.000000e+00 : f32
    %247 = vector.broadcast %cst_62 : f32 to vector<1x320xf32>
    %248 = arith.addf %170, %247 : vector<1x320xf32>
    %cst_63 = arith.constant 9.500000e+00 : f32
    %249 = vector.broadcast %cst_63 : f32 to vector<1x320xf32>
    %250 = arith.cmpf olt, %248, %249 : vector<1x320xf32>
    %251 = arith.andi %246, %250 : vector<1x320xi1>
    %cst_64 = arith.constant 0.000000e+00 : f32
    %cst_65 = arith.constant -1.000000e+30 : f32
    %252 = vector.broadcast %cst_64 : f32 to vector<1x320xf32>
    %253 = vector.broadcast %cst_65 : f32 to vector<1x320xf32>
    %254 = arith.select %251, %252, %253 : vector<1x320xi1>, vector<1x320xf32>
    %cst_66 = arith.constant -2.000000e+00 : f32
    %255 = vector.broadcast %cst_66 : f32 to vector<1x320xf32>
    %256 = arith.addf %170, %255 : vector<1x320xf32>
    %cst_67 = arith.constant -5.000000e-01 : f32
    %257 = vector.broadcast %cst_67 : f32 to vector<1x320xf32>
    %258 = arith.cmpf ogt, %256, %257 : vector<1x320xf32>
    %cst_68 = arith.constant -2.000000e+00 : f32
    %259 = vector.broadcast %cst_68 : f32 to vector<1x320xf32>
    %260 = arith.addf %170, %259 : vector<1x320xf32>
    %cst_69 = arith.constant 9.500000e+00 : f32
    %261 = vector.broadcast %cst_69 : f32 to vector<1x320xf32>
    %262 = arith.cmpf olt, %260, %261 : vector<1x320xf32>
    %263 = arith.andi %258, %262 : vector<1x320xi1>
    %cst_70 = arith.constant 0.000000e+00 : f32
    %cst_71 = arith.constant -1.000000e+30 : f32
    %264 = vector.broadcast %cst_70 : f32 to vector<1x320xf32>
    %265 = vector.broadcast %cst_71 : f32 to vector<1x320xf32>
    %266 = arith.select %263, %264, %265 : vector<1x320xi1>, vector<1x320xf32>
    %cst_72 = arith.constant -1.000000e+00 : f32
    %267 = vector.broadcast %cst_72 : f32 to vector<1x320xf32>
    %268 = arith.addf %170, %267 : vector<1x320xf32>
    %cst_73 = arith.constant -5.000000e-01 : f32
    %269 = vector.broadcast %cst_73 : f32 to vector<1x320xf32>
    %270 = arith.cmpf ogt, %268, %269 : vector<1x320xf32>
    %cst_74 = arith.constant -1.000000e+00 : f32
    %271 = vector.broadcast %cst_74 : f32 to vector<1x320xf32>
    %272 = arith.addf %170, %271 : vector<1x320xf32>
    %cst_75 = arith.constant 9.500000e+00 : f32
    %273 = vector.broadcast %cst_75 : f32 to vector<1x320xf32>
    %274 = arith.cmpf olt, %272, %273 : vector<1x320xf32>
    %275 = arith.andi %270, %274 : vector<1x320xi1>
    %cst_76 = arith.constant 0.000000e+00 : f32
    %cst_77 = arith.constant -1.000000e+30 : f32
    %276 = vector.broadcast %cst_76 : f32 to vector<1x320xf32>
    %277 = vector.broadcast %cst_77 : f32 to vector<1x320xf32>
    %278 = arith.select %275, %276, %277 : vector<1x320xi1>, vector<1x320xf32>
    %cst_78 = arith.constant 0.000000e+00 : f32
    %279 = vector.broadcast %cst_78 : f32 to vector<1x320xf32>
    %280 = arith.addf %170, %279 : vector<1x320xf32>
    %cst_79 = arith.constant -5.000000e-01 : f32
    %281 = vector.broadcast %cst_79 : f32 to vector<1x320xf32>
    %282 = arith.cmpf ogt, %280, %281 : vector<1x320xf32>
    %cst_80 = arith.constant 0.000000e+00 : f32
    %283 = vector.broadcast %cst_80 : f32 to vector<1x320xf32>
    %284 = arith.addf %170, %283 : vector<1x320xf32>
    %cst_81 = arith.constant 9.500000e+00 : f32
    %285 = vector.broadcast %cst_81 : f32 to vector<1x320xf32>
    %286 = arith.cmpf olt, %284, %285 : vector<1x320xf32>
    %287 = arith.andi %282, %286 : vector<1x320xi1>
    %cst_82 = arith.constant 0.000000e+00 : f32
    %cst_83 = arith.constant -1.000000e+30 : f32
    %288 = vector.broadcast %cst_82 : f32 to vector<1x320xf32>
    %289 = vector.broadcast %cst_83 : f32 to vector<1x320xf32>
    %290 = arith.select %287, %288, %289 : vector<1x320xi1>, vector<1x320xf32>
    %cst_84 = arith.constant 1.000000e+00 : f32
    %291 = vector.broadcast %cst_84 : f32 to vector<1x320xf32>
    %292 = arith.addf %170, %291 : vector<1x320xf32>
    %cst_85 = arith.constant -5.000000e-01 : f32
    %293 = vector.broadcast %cst_85 : f32 to vector<1x320xf32>
    %294 = arith.cmpf ogt, %292, %293 : vector<1x320xf32>
    %cst_86 = arith.constant 1.000000e+00 : f32
    %295 = vector.broadcast %cst_86 : f32 to vector<1x320xf32>
    %296 = arith.addf %170, %295 : vector<1x320xf32>
    %cst_87 = arith.constant 9.500000e+00 : f32
    %297 = vector.broadcast %cst_87 : f32 to vector<1x320xf32>
    %298 = arith.cmpf olt, %296, %297 : vector<1x320xf32>
    %299 = arith.andi %294, %298 : vector<1x320xi1>
    %cst_88 = arith.constant 0.000000e+00 : f32
    %cst_89 = arith.constant -1.000000e+30 : f32
    %300 = vector.broadcast %cst_88 : f32 to vector<1x320xf32>
    %301 = vector.broadcast %cst_89 : f32 to vector<1x320xf32>
    %302 = arith.select %299, %300, %301 : vector<1x320xi1>, vector<1x320xf32>
    %cst_90 = arith.constant 2.000000e+00 : f32
    %303 = vector.broadcast %cst_90 : f32 to vector<1x320xf32>
    %304 = arith.addf %170, %303 : vector<1x320xf32>
    %cst_91 = arith.constant -5.000000e-01 : f32
    %305 = vector.broadcast %cst_91 : f32 to vector<1x320xf32>
    %306 = arith.cmpf ogt, %304, %305 : vector<1x320xf32>
    %cst_92 = arith.constant 2.000000e+00 : f32
    %307 = vector.broadcast %cst_92 : f32 to vector<1x320xf32>
    %308 = arith.addf %170, %307 : vector<1x320xf32>
    %cst_93 = arith.constant 9.500000e+00 : f32
    %309 = vector.broadcast %cst_93 : f32 to vector<1x320xf32>
    %310 = arith.cmpf olt, %308, %309 : vector<1x320xf32>
    %311 = arith.andi %306, %310 : vector<1x320xi1>
    %cst_94 = arith.constant 0.000000e+00 : f32
    %cst_95 = arith.constant -1.000000e+30 : f32
    %312 = vector.broadcast %cst_94 : f32 to vector<1x320xf32>
    %313 = vector.broadcast %cst_95 : f32 to vector<1x320xf32>
    %314 = arith.select %311, %312, %313 : vector<1x320xi1>, vector<1x320xf32>
    %cst_96 = arith.constant 3.000000e+00 : f32
    %315 = vector.broadcast %cst_96 : f32 to vector<1x320xf32>
    %316 = arith.addf %170, %315 : vector<1x320xf32>
    %cst_97 = arith.constant -5.000000e-01 : f32
    %317 = vector.broadcast %cst_97 : f32 to vector<1x320xf32>
    %318 = arith.cmpf ogt, %316, %317 : vector<1x320xf32>
    %cst_98 = arith.constant 3.000000e+00 : f32
    %319 = vector.broadcast %cst_98 : f32 to vector<1x320xf32>
    %320 = arith.addf %170, %319 : vector<1x320xf32>
    %cst_99 = arith.constant 9.500000e+00 : f32
    %321 = vector.broadcast %cst_99 : f32 to vector<1x320xf32>
    %322 = arith.cmpf olt, %320, %321 : vector<1x320xf32>
    %323 = arith.andi %318, %322 : vector<1x320xi1>
    %cst_100 = arith.constant 0.000000e+00 : f32
    %cst_101 = arith.constant -1.000000e+30 : f32
    %324 = vector.broadcast %cst_100 : f32 to vector<1x320xf32>
    %325 = vector.broadcast %cst_101 : f32 to vector<1x320xf32>
    %326 = arith.select %323, %324, %325 : vector<1x320xi1>, vector<1x320xf32>
    %cst_102 = arith.constant 4.000000e+00 : f32
    %327 = vector.broadcast %cst_102 : f32 to vector<1x320xf32>
    %328 = arith.addf %170, %327 : vector<1x320xf32>
    %cst_103 = arith.constant -5.000000e-01 : f32
    %329 = vector.broadcast %cst_103 : f32 to vector<1x320xf32>
    %330 = arith.cmpf ogt, %328, %329 : vector<1x320xf32>
    %cst_104 = arith.constant 4.000000e+00 : f32
    %331 = vector.broadcast %cst_104 : f32 to vector<1x320xf32>
    %332 = arith.addf %170, %331 : vector<1x320xf32>
    %cst_105 = arith.constant 9.500000e+00 : f32
    %333 = vector.broadcast %cst_105 : f32 to vector<1x320xf32>
    %334 = arith.cmpf olt, %332, %333 : vector<1x320xf32>
    %335 = arith.andi %330, %334 : vector<1x320xi1>
    %cst_106 = arith.constant 0.000000e+00 : f32
    %cst_107 = arith.constant -1.000000e+30 : f32
    %336 = vector.broadcast %cst_106 : f32 to vector<1x320xf32>
    %337 = vector.broadcast %cst_107 : f32 to vector<1x320xf32>
    %338 = arith.select %335, %336, %337 : vector<1x320xi1>, vector<1x320xf32>
    %cst_108 = arith.constant 5.000000e+00 : f32
    %339 = vector.broadcast %cst_108 : f32 to vector<1x320xf32>
    %340 = arith.addf %170, %339 : vector<1x320xf32>
    %cst_109 = arith.constant -5.000000e-01 : f32
    %341 = vector.broadcast %cst_109 : f32 to vector<1x320xf32>
    %342 = arith.cmpf ogt, %340, %341 : vector<1x320xf32>
    %cst_110 = arith.constant 5.000000e+00 : f32
    %343 = vector.broadcast %cst_110 : f32 to vector<1x320xf32>
    %344 = arith.addf %170, %343 : vector<1x320xf32>
    %cst_111 = arith.constant 9.500000e+00 : f32
    %345 = vector.broadcast %cst_111 : f32 to vector<1x320xf32>
    %346 = arith.cmpf olt, %344, %345 : vector<1x320xf32>
    %347 = arith.andi %342, %346 : vector<1x320xi1>
    %cst_112 = arith.constant 0.000000e+00 : f32
    %cst_113 = arith.constant -1.000000e+30 : f32
    %348 = vector.broadcast %cst_112 : f32 to vector<1x320xf32>
    %349 = vector.broadcast %cst_113 : f32 to vector<1x320xf32>
    %350 = arith.select %347, %348, %349 : vector<1x320xi1>, vector<1x320xf32>
    %cst_114 = arith.constant 6.000000e+00 : f32
    %351 = vector.broadcast %cst_114 : f32 to vector<1x320xf32>
    %352 = arith.addf %170, %351 : vector<1x320xf32>
    %cst_115 = arith.constant -5.000000e-01 : f32
    %353 = vector.broadcast %cst_115 : f32 to vector<1x320xf32>
    %354 = arith.cmpf ogt, %352, %353 : vector<1x320xf32>
    %cst_116 = arith.constant 6.000000e+00 : f32
    %355 = vector.broadcast %cst_116 : f32 to vector<1x320xf32>
    %356 = arith.addf %170, %355 : vector<1x320xf32>
    %cst_117 = arith.constant 9.500000e+00 : f32
    %357 = vector.broadcast %cst_117 : f32 to vector<1x320xf32>
    %358 = arith.cmpf olt, %356, %357 : vector<1x320xf32>
    %359 = arith.andi %354, %358 : vector<1x320xi1>
    %cst_118 = arith.constant 0.000000e+00 : f32
    %cst_119 = arith.constant -1.000000e+30 : f32
    %360 = vector.broadcast %cst_118 : f32 to vector<1x320xf32>
    %361 = vector.broadcast %cst_119 : f32 to vector<1x320xf32>
    %362 = arith.select %359, %360, %361 : vector<1x320xi1>, vector<1x320xf32>
    %cst_120 = arith.constant 7.000000e+00 : f32
    %363 = vector.broadcast %cst_120 : f32 to vector<1x320xf32>
    %364 = arith.addf %170, %363 : vector<1x320xf32>
    %cst_121 = arith.constant -5.000000e-01 : f32
    %365 = vector.broadcast %cst_121 : f32 to vector<1x320xf32>
    %366 = arith.cmpf ogt, %364, %365 : vector<1x320xf32>
    %cst_122 = arith.constant 7.000000e+00 : f32
    %367 = vector.broadcast %cst_122 : f32 to vector<1x320xf32>
    %368 = arith.addf %170, %367 : vector<1x320xf32>
    %cst_123 = arith.constant 9.500000e+00 : f32
    %369 = vector.broadcast %cst_123 : f32 to vector<1x320xf32>
    %370 = arith.cmpf olt, %368, %369 : vector<1x320xf32>
    %371 = arith.andi %366, %370 : vector<1x320xi1>
    %cst_124 = arith.constant 0.000000e+00 : f32
    %cst_125 = arith.constant -1.000000e+30 : f32
    %372 = vector.broadcast %cst_124 : f32 to vector<1x320xf32>
    %373 = vector.broadcast %cst_125 : f32 to vector<1x320xf32>
    %374 = arith.select %371, %372, %373 : vector<1x320xi1>, vector<1x320xf32>
    %cst_126 = arith.constant 8.000000e+00 : f32
    %375 = vector.broadcast %cst_126 : f32 to vector<1x320xf32>
    %376 = arith.addf %170, %375 : vector<1x320xf32>
    %cst_127 = arith.constant -5.000000e-01 : f32
    %377 = vector.broadcast %cst_127 : f32 to vector<1x320xf32>
    %378 = arith.cmpf ogt, %376, %377 : vector<1x320xf32>
    %cst_128 = arith.constant 8.000000e+00 : f32
    %379 = vector.broadcast %cst_128 : f32 to vector<1x320xf32>
    %380 = arith.addf %170, %379 : vector<1x320xf32>
    %cst_129 = arith.constant 9.500000e+00 : f32
    %381 = vector.broadcast %cst_129 : f32 to vector<1x320xf32>
    %382 = arith.cmpf olt, %380, %381 : vector<1x320xf32>
    %383 = arith.andi %378, %382 : vector<1x320xi1>
    %cst_130 = arith.constant 0.000000e+00 : f32
    %cst_131 = arith.constant -1.000000e+30 : f32
    %384 = vector.broadcast %cst_130 : f32 to vector<1x320xf32>
    %385 = vector.broadcast %cst_131 : f32 to vector<1x320xf32>
    %386 = arith.select %383, %384, %385 : vector<1x320xi1>, vector<1x320xf32>
    %cst_132 = arith.constant 9.000000e+00 : f32
    %387 = vector.broadcast %cst_132 : f32 to vector<1x320xf32>
    %388 = arith.addf %170, %387 : vector<1x320xf32>
    %cst_133 = arith.constant -5.000000e-01 : f32
    %389 = vector.broadcast %cst_133 : f32 to vector<1x320xf32>
    %390 = arith.cmpf ogt, %388, %389 : vector<1x320xf32>
    %cst_134 = arith.constant 9.000000e+00 : f32
    %391 = vector.broadcast %cst_134 : f32 to vector<1x320xf32>
    %392 = arith.addf %170, %391 : vector<1x320xf32>
    %cst_135 = arith.constant 9.500000e+00 : f32
    %393 = vector.broadcast %cst_135 : f32 to vector<1x320xf32>
    %394 = arith.cmpf olt, %392, %393 : vector<1x320xf32>
    %395 = arith.andi %390, %394 : vector<1x320xi1>
    %cst_136 = arith.constant 0.000000e+00 : f32
    %cst_137 = arith.constant -1.000000e+30 : f32
    %396 = vector.broadcast %cst_136 : f32 to vector<1x320xf32>
    %397 = vector.broadcast %cst_137 : f32 to vector<1x320xf32>
    %398 = arith.select %395, %396, %397 : vector<1x320xi1>, vector<1x320xf32>
    %399 = tpu.concatenate %106, %162 in 0 : vector<4x320xf32>, vector<4x320xf32> -> vector<8x320xf32>
    %cst_138 = arith.constant 0.000000e+00 : f32
    %400 = vector.broadcast %cst_138 : f32 to vector<8x10xf32>
    %401 = tpu.concatenate %400, %399, %400 in 1 : vector<8x10xf32>, vector<8x320xf32>, vector<8x10xf32> -> vector<8x340xf32>
    %402 = vector.extract_strided_slice %401 {offsets = [0, 1], sizes = [8, 320], strides = [1, 1]} : vector<8x340xf32> to vector<8x320xf32>
    %403 = vector.extract_strided_slice %402 {offsets = [0, 0], sizes = [4, 320], strides = [1, 1]} : vector<8x320xf32> to vector<4x320xf32>
    %404 = arith.mulf %56, %403 : vector<4x320xf32>
    %cst_139 = arith.constant dense<0.000000e+00> : vector<320xf32>
    %405 = vector.multi_reduction <add>, %404, %cst_139 [0] : vector<4x320xf32> to vector<320xf32>
    %406 = vector.shape_cast %405 : vector<320xf32> to vector<1x320xf32>
    %cst_140 = arith.constant 5.000000e-01 : f32
    %407 = vector.broadcast %cst_140 : f32 to vector<1x320xf32>
    %408 = arith.mulf %406, %407 : vector<1x320xf32>
    %409 = arith.addf %408, %182 : vector<1x320xf32>
    %410 = vector.extract_strided_slice %401 {offsets = [0, 2], sizes = [8, 320], strides = [1, 1]} : vector<8x340xf32> to vector<8x320xf32>
    %411 = vector.extract_strided_slice %410 {offsets = [0, 0], sizes = [4, 320], strides = [1, 1]} : vector<8x320xf32> to vector<4x320xf32>
    %412 = arith.mulf %56, %411 : vector<4x320xf32>
    %cst_141 = arith.constant dense<0.000000e+00> : vector<320xf32>
    %413 = vector.multi_reduction <add>, %412, %cst_141 [0] : vector<4x320xf32> to vector<320xf32>
    %414 = vector.shape_cast %413 : vector<320xf32> to vector<1x320xf32>
    %cst_142 = arith.constant 5.000000e-01 : f32
    %415 = vector.broadcast %cst_142 : f32 to vector<1x320xf32>
    %416 = arith.mulf %414, %415 : vector<1x320xf32>
    %417 = arith.addf %416, %194 : vector<1x320xf32>
    %418 = vector.extract_strided_slice %401 {offsets = [0, 3], sizes = [8, 320], strides = [1, 1]} : vector<8x340xf32> to vector<8x320xf32>
    %419 = vector.extract_strided_slice %418 {offsets = [0, 0], sizes = [4, 320], strides = [1, 1]} : vector<8x320xf32> to vector<4x320xf32>
    %420 = arith.mulf %56, %419 : vector<4x320xf32>
    %cst_143 = arith.constant dense<0.000000e+00> : vector<320xf32>
    %421 = vector.multi_reduction <add>, %420, %cst_143 [0] : vector<4x320xf32> to vector<320xf32>
    %422 = vector.shape_cast %421 : vector<320xf32> to vector<1x320xf32>
    %cst_144 = arith.constant 5.000000e-01 : f32
    %423 = vector.broadcast %cst_144 : f32 to vector<1x320xf32>
    %424 = arith.mulf %422, %423 : vector<1x320xf32>
    %425 = arith.addf %424, %206 : vector<1x320xf32>
    %426 = vector.extract_strided_slice %401 {offsets = [0, 4], sizes = [8, 320], strides = [1, 1]} : vector<8x340xf32> to vector<8x320xf32>
    %427 = vector.extract_strided_slice %426 {offsets = [0, 0], sizes = [4, 320], strides = [1, 1]} : vector<8x320xf32> to vector<4x320xf32>
    %428 = arith.mulf %56, %427 : vector<4x320xf32>
    %cst_145 = arith.constant dense<0.000000e+00> : vector<320xf32>
    %429 = vector.multi_reduction <add>, %428, %cst_145 [0] : vector<4x320xf32> to vector<320xf32>
    %430 = vector.shape_cast %429 : vector<320xf32> to vector<1x320xf32>
    %cst_146 = arith.constant 5.000000e-01 : f32
    %431 = vector.broadcast %cst_146 : f32 to vector<1x320xf32>
    %432 = arith.mulf %430, %431 : vector<1x320xf32>
    %433 = arith.addf %432, %218 : vector<1x320xf32>
    %434 = vector.extract_strided_slice %401 {offsets = [0, 5], sizes = [8, 320], strides = [1, 1]} : vector<8x340xf32> to vector<8x320xf32>
    %435 = vector.extract_strided_slice %434 {offsets = [0, 0], sizes = [4, 320], strides = [1, 1]} : vector<8x320xf32> to vector<4x320xf32>
    %436 = arith.mulf %56, %435 : vector<4x320xf32>
    %cst_147 = arith.constant dense<0.000000e+00> : vector<320xf32>
    %437 = vector.multi_reduction <add>, %436, %cst_147 [0] : vector<4x320xf32> to vector<320xf32>
    %438 = vector.shape_cast %437 : vector<320xf32> to vector<1x320xf32>
    %cst_148 = arith.constant 5.000000e-01 : f32
    %439 = vector.broadcast %cst_148 : f32 to vector<1x320xf32>
    %440 = arith.mulf %438, %439 : vector<1x320xf32>
    %441 = arith.addf %440, %230 : vector<1x320xf32>
    %442 = vector.extract_strided_slice %401 {offsets = [0, 6], sizes = [8, 320], strides = [1, 1]} : vector<8x340xf32> to vector<8x320xf32>
    %443 = vector.extract_strided_slice %442 {offsets = [0, 0], sizes = [4, 320], strides = [1, 1]} : vector<8x320xf32> to vector<4x320xf32>
    %444 = arith.mulf %56, %443 : vector<4x320xf32>
    %cst_149 = arith.constant dense<0.000000e+00> : vector<320xf32>
    %445 = vector.multi_reduction <add>, %444, %cst_149 [0] : vector<4x320xf32> to vector<320xf32>
    %446 = vector.shape_cast %445 : vector<320xf32> to vector<1x320xf32>
    %cst_150 = arith.constant 5.000000e-01 : f32
    %447 = vector.broadcast %cst_150 : f32 to vector<1x320xf32>
    %448 = arith.mulf %446, %447 : vector<1x320xf32>
    %449 = arith.addf %448, %242 : vector<1x320xf32>
    %450 = vector.extract_strided_slice %401 {offsets = [0, 7], sizes = [8, 320], strides = [1, 1]} : vector<8x340xf32> to vector<8x320xf32>
    %451 = vector.extract_strided_slice %450 {offsets = [0, 0], sizes = [4, 320], strides = [1, 1]} : vector<8x320xf32> to vector<4x320xf32>
    %452 = arith.mulf %56, %451 : vector<4x320xf32>
    %cst_151 = arith.constant dense<0.000000e+00> : vector<320xf32>
    %453 = vector.multi_reduction <add>, %452, %cst_151 [0] : vector<4x320xf32> to vector<320xf32>
    %454 = vector.shape_cast %453 : vector<320xf32> to vector<1x320xf32>
    %cst_152 = arith.constant 5.000000e-01 : f32
    %455 = vector.broadcast %cst_152 : f32 to vector<1x320xf32>
    %456 = arith.mulf %454, %455 : vector<1x320xf32>
    %457 = arith.addf %456, %254 : vector<1x320xf32>
    %458 = vector.extract_strided_slice %401 {offsets = [0, 8], sizes = [8, 320], strides = [1, 1]} : vector<8x340xf32> to vector<8x320xf32>
    %459 = vector.extract_strided_slice %458 {offsets = [0, 0], sizes = [4, 320], strides = [1, 1]} : vector<8x320xf32> to vector<4x320xf32>
    %460 = arith.mulf %56, %459 : vector<4x320xf32>
    %cst_153 = arith.constant dense<0.000000e+00> : vector<320xf32>
    %461 = vector.multi_reduction <add>, %460, %cst_153 [0] : vector<4x320xf32> to vector<320xf32>
    %462 = vector.shape_cast %461 : vector<320xf32> to vector<1x320xf32>
    %cst_154 = arith.constant 5.000000e-01 : f32
    %463 = vector.broadcast %cst_154 : f32 to vector<1x320xf32>
    %464 = arith.mulf %462, %463 : vector<1x320xf32>
    %465 = arith.addf %464, %266 : vector<1x320xf32>
    %466 = vector.extract_strided_slice %401 {offsets = [0, 9], sizes = [8, 320], strides = [1, 1]} : vector<8x340xf32> to vector<8x320xf32>
    %467 = vector.extract_strided_slice %466 {offsets = [0, 0], sizes = [4, 320], strides = [1, 1]} : vector<8x320xf32> to vector<4x320xf32>
    %468 = arith.mulf %56, %467 : vector<4x320xf32>
    %cst_155 = arith.constant dense<0.000000e+00> : vector<320xf32>
    %469 = vector.multi_reduction <add>, %468, %cst_155 [0] : vector<4x320xf32> to vector<320xf32>
    %470 = vector.shape_cast %469 : vector<320xf32> to vector<1x320xf32>
    %cst_156 = arith.constant 5.000000e-01 : f32
    %471 = vector.broadcast %cst_156 : f32 to vector<1x320xf32>
    %472 = arith.mulf %470, %471 : vector<1x320xf32>
    %473 = arith.addf %472, %278 : vector<1x320xf32>
    %474 = vector.extract_strided_slice %401 {offsets = [0, 10], sizes = [8, 320], strides = [1, 1]} : vector<8x340xf32> to vector<8x320xf32>
    %475 = vector.extract_strided_slice %474 {offsets = [0, 0], sizes = [4, 320], strides = [1, 1]} : vector<8x320xf32> to vector<4x320xf32>
    %476 = arith.mulf %56, %475 : vector<4x320xf32>
    %cst_157 = arith.constant dense<0.000000e+00> : vector<320xf32>
    %477 = vector.multi_reduction <add>, %476, %cst_157 [0] : vector<4x320xf32> to vector<320xf32>
    %478 = vector.shape_cast %477 : vector<320xf32> to vector<1x320xf32>
    %cst_158 = arith.constant 5.000000e-01 : f32
    %479 = vector.broadcast %cst_158 : f32 to vector<1x320xf32>
    %480 = arith.mulf %478, %479 : vector<1x320xf32>
    %481 = arith.addf %480, %290 : vector<1x320xf32>
    %482 = vector.extract_strided_slice %401 {offsets = [0, 11], sizes = [8, 320], strides = [1, 1]} : vector<8x340xf32> to vector<8x320xf32>
    %483 = vector.extract_strided_slice %482 {offsets = [0, 0], sizes = [4, 320], strides = [1, 1]} : vector<8x320xf32> to vector<4x320xf32>
    %484 = arith.mulf %56, %483 : vector<4x320xf32>
    %cst_159 = arith.constant dense<0.000000e+00> : vector<320xf32>
    %485 = vector.multi_reduction <add>, %484, %cst_159 [0] : vector<4x320xf32> to vector<320xf32>
    %486 = vector.shape_cast %485 : vector<320xf32> to vector<1x320xf32>
    %cst_160 = arith.constant 5.000000e-01 : f32
    %487 = vector.broadcast %cst_160 : f32 to vector<1x320xf32>
    %488 = arith.mulf %486, %487 : vector<1x320xf32>
    %489 = arith.addf %488, %302 : vector<1x320xf32>
    %490 = vector.extract_strided_slice %401 {offsets = [0, 12], sizes = [8, 320], strides = [1, 1]} : vector<8x340xf32> to vector<8x320xf32>
    %491 = vector.extract_strided_slice %490 {offsets = [0, 0], sizes = [4, 320], strides = [1, 1]} : vector<8x320xf32> to vector<4x320xf32>
    %492 = arith.mulf %56, %491 : vector<4x320xf32>
    %cst_161 = arith.constant dense<0.000000e+00> : vector<320xf32>
    %493 = vector.multi_reduction <add>, %492, %cst_161 [0] : vector<4x320xf32> to vector<320xf32>
    %494 = vector.shape_cast %493 : vector<320xf32> to vector<1x320xf32>
    %cst_162 = arith.constant 5.000000e-01 : f32
    %495 = vector.broadcast %cst_162 : f32 to vector<1x320xf32>
    %496 = arith.mulf %494, %495 : vector<1x320xf32>
    %497 = arith.addf %496, %314 : vector<1x320xf32>
    %498 = vector.extract_strided_slice %401 {offsets = [0, 13], sizes = [8, 320], strides = [1, 1]} : vector<8x340xf32> to vector<8x320xf32>
    %499 = vector.extract_strided_slice %498 {offsets = [0, 0], sizes = [4, 320], strides = [1, 1]} : vector<8x320xf32> to vector<4x320xf32>
    %500 = arith.mulf %56, %499 : vector<4x320xf32>
    %cst_163 = arith.constant dense<0.000000e+00> : vector<320xf32>
    %501 = vector.multi_reduction <add>, %500, %cst_163 [0] : vector<4x320xf32> to vector<320xf32>
    %502 = vector.shape_cast %501 : vector<320xf32> to vector<1x320xf32>
    %cst_164 = arith.constant 5.000000e-01 : f32
    %503 = vector.broadcast %cst_164 : f32 to vector<1x320xf32>
    %504 = arith.mulf %502, %503 : vector<1x320xf32>
    %505 = arith.addf %504, %326 : vector<1x320xf32>
    %506 = vector.extract_strided_slice %401 {offsets = [0, 14], sizes = [8, 320], strides = [1, 1]} : vector<8x340xf32> to vector<8x320xf32>
    %507 = vector.extract_strided_slice %506 {offsets = [0, 0], sizes = [4, 320], strides = [1, 1]} : vector<8x320xf32> to vector<4x320xf32>
    %508 = arith.mulf %56, %507 : vector<4x320xf32>
    %cst_165 = arith.constant dense<0.000000e+00> : vector<320xf32>
    %509 = vector.multi_reduction <add>, %508, %cst_165 [0] : vector<4x320xf32> to vector<320xf32>
    %510 = vector.shape_cast %509 : vector<320xf32> to vector<1x320xf32>
    %cst_166 = arith.constant 5.000000e-01 : f32
    %511 = vector.broadcast %cst_166 : f32 to vector<1x320xf32>
    %512 = arith.mulf %510, %511 : vector<1x320xf32>
    %513 = arith.addf %512, %338 : vector<1x320xf32>
    %514 = vector.extract_strided_slice %401 {offsets = [0, 15], sizes = [8, 320], strides = [1, 1]} : vector<8x340xf32> to vector<8x320xf32>
    %515 = vector.extract_strided_slice %514 {offsets = [0, 0], sizes = [4, 320], strides = [1, 1]} : vector<8x320xf32> to vector<4x320xf32>
    %516 = arith.mulf %56, %515 : vector<4x320xf32>
    %cst_167 = arith.constant dense<0.000000e+00> : vector<320xf32>
    %517 = vector.multi_reduction <add>, %516, %cst_167 [0] : vector<4x320xf32> to vector<320xf32>
    %518 = vector.shape_cast %517 : vector<320xf32> to vector<1x320xf32>
    %cst_168 = arith.constant 5.000000e-01 : f32
    %519 = vector.broadcast %cst_168 : f32 to vector<1x320xf32>
    %520 = arith.mulf %518, %519 : vector<1x320xf32>
    %521 = arith.addf %520, %350 : vector<1x320xf32>
    %522 = vector.extract_strided_slice %401 {offsets = [0, 16], sizes = [8, 320], strides = [1, 1]} : vector<8x340xf32> to vector<8x320xf32>
    %523 = vector.extract_strided_slice %522 {offsets = [0, 0], sizes = [4, 320], strides = [1, 1]} : vector<8x320xf32> to vector<4x320xf32>
    %524 = arith.mulf %56, %523 : vector<4x320xf32>
    %cst_169 = arith.constant dense<0.000000e+00> : vector<320xf32>
    %525 = vector.multi_reduction <add>, %524, %cst_169 [0] : vector<4x320xf32> to vector<320xf32>
    %526 = vector.shape_cast %525 : vector<320xf32> to vector<1x320xf32>
    %cst_170 = arith.constant 5.000000e-01 : f32
    %527 = vector.broadcast %cst_170 : f32 to vector<1x320xf32>
    %528 = arith.mulf %526, %527 : vector<1x320xf32>
    %529 = arith.addf %528, %362 : vector<1x320xf32>
    %530 = vector.extract_strided_slice %401 {offsets = [0, 17], sizes = [8, 320], strides = [1, 1]} : vector<8x340xf32> to vector<8x320xf32>
    %531 = vector.extract_strided_slice %530 {offsets = [0, 0], sizes = [4, 320], strides = [1, 1]} : vector<8x320xf32> to vector<4x320xf32>
    %532 = arith.mulf %56, %531 : vector<4x320xf32>
    %cst_171 = arith.constant dense<0.000000e+00> : vector<320xf32>
    %533 = vector.multi_reduction <add>, %532, %cst_171 [0] : vector<4x320xf32> to vector<320xf32>
    %534 = vector.shape_cast %533 : vector<320xf32> to vector<1x320xf32>
    %cst_172 = arith.constant 5.000000e-01 : f32
    %535 = vector.broadcast %cst_172 : f32 to vector<1x320xf32>
    %536 = arith.mulf %534, %535 : vector<1x320xf32>
    %537 = arith.addf %536, %374 : vector<1x320xf32>
    %538 = vector.extract_strided_slice %401 {offsets = [0, 18], sizes = [8, 320], strides = [1, 1]} : vector<8x340xf32> to vector<8x320xf32>
    %539 = vector.extract_strided_slice %538 {offsets = [0, 0], sizes = [4, 320], strides = [1, 1]} : vector<8x320xf32> to vector<4x320xf32>
    %540 = arith.mulf %56, %539 : vector<4x320xf32>
    %cst_173 = arith.constant dense<0.000000e+00> : vector<320xf32>
    %541 = vector.multi_reduction <add>, %540, %cst_173 [0] : vector<4x320xf32> to vector<320xf32>
    %542 = vector.shape_cast %541 : vector<320xf32> to vector<1x320xf32>
    %cst_174 = arith.constant 5.000000e-01 : f32
    %543 = vector.broadcast %cst_174 : f32 to vector<1x320xf32>
    %544 = arith.mulf %542, %543 : vector<1x320xf32>
    %545 = arith.addf %544, %386 : vector<1x320xf32>
    %546 = vector.extract_strided_slice %401 {offsets = [0, 19], sizes = [8, 320], strides = [1, 1]} : vector<8x340xf32> to vector<8x320xf32>
    %547 = vector.extract_strided_slice %546 {offsets = [0, 0], sizes = [4, 320], strides = [1, 1]} : vector<8x320xf32> to vector<4x320xf32>
    %548 = arith.mulf %56, %547 : vector<4x320xf32>
    %cst_175 = arith.constant dense<0.000000e+00> : vector<320xf32>
    %549 = vector.multi_reduction <add>, %548, %cst_175 [0] : vector<4x320xf32> to vector<320xf32>
    %550 = vector.shape_cast %549 : vector<320xf32> to vector<1x320xf32>
    %cst_176 = arith.constant 5.000000e-01 : f32
    %551 = vector.broadcast %cst_176 : f32 to vector<1x320xf32>
    %552 = arith.mulf %550, %551 : vector<1x320xf32>
    %553 = arith.addf %552, %398 : vector<1x320xf32>
    %554 = tpu.concatenate %409, %417, %425, %433, %441, %449, %457, %465, %473, %481, %489, %497, %505, %513, %521, %529 in 0 : vector<1x320xf32>, vector<1x320xf32>, vector<1x320xf32>, vector<1x320xf32>, vector<1x320xf32>, vector<1x320xf32>, vector<1x320xf32>, vector<1x320xf32>, vector<1x320xf32>, vector<1x320xf32>, vector<1x320xf32>, vector<1x320xf32>, vector<1x320xf32>, vector<1x320xf32>, vector<1x320xf32>, vector<1x320xf32> -> vector<16x320xf32>
    %555 = tpu.concatenate %537, %545, %553 in 0 : vector<1x320xf32>, vector<1x320xf32>, vector<1x320xf32> -> vector<3x320xf32>
    %556 = tpu.concatenate %554, %555 in 0 : vector<16x320xf32>, vector<3x320xf32> -> vector<19x320xf32>
    %cst_177 = arith.constant dense<0xFF800000> : vector<320xf32>
    %557 = vector.multi_reduction <maximumf>, %556, %cst_177 [0] : vector<19x320xf32> to vector<320xf32>
    %558 = vector.shape_cast %557 : vector<320xf32> to vector<1x320xf32>
    %559 = vector.broadcast %558 : vector<1x320xf32> to vector<19x320xf32>
    %560 = arith.subf %556, %559 : vector<19x320xf32>
    %561 = math.exp %560 : vector<19x320xf32>
    %cst_178 = arith.constant dense<0.000000e+00> : vector<320xf32>
    %562 = vector.multi_reduction <add>, %561, %cst_178 [0] : vector<19x320xf32> to vector<320xf32>
    %563 = vector.shape_cast %562 : vector<320xf32> to vector<1x320xf32>
    %564 = tpu.reciprocal %563 {approx = true} : vector<1x320xf32> -> vector<1x320xf32>
    %565 = vector.extract_strided_slice %561 {offsets = [0, 0], sizes = [1, 320], strides = [1, 1]} : vector<19x320xf32> to vector<1x320xf32>
    %566 = vector.extract_strided_slice %402 {offsets = [4, 0], sizes = [4, 320], strides = [1, 1]} : vector<8x320xf32> to vector<4x320xf32>
    %567 = vector.broadcast %565 : vector<1x320xf32> to vector<4x320xf32>
    %568 = arith.mulf %567, %566 : vector<4x320xf32>
    %569 = vector.extract_strided_slice %561 {offsets = [1, 0], sizes = [1, 320], strides = [1, 1]} : vector<19x320xf32> to vector<1x320xf32>
    %570 = vector.extract_strided_slice %410 {offsets = [4, 0], sizes = [4, 320], strides = [1, 1]} : vector<8x320xf32> to vector<4x320xf32>
    %571 = vector.broadcast %569 : vector<1x320xf32> to vector<4x320xf32>
    %572 = arith.mulf %571, %570 : vector<4x320xf32>
    %573 = arith.addf %568, %572 : vector<4x320xf32>
    %574 = vector.extract_strided_slice %561 {offsets = [2, 0], sizes = [1, 320], strides = [1, 1]} : vector<19x320xf32> to vector<1x320xf32>
    %575 = vector.extract_strided_slice %418 {offsets = [4, 0], sizes = [4, 320], strides = [1, 1]} : vector<8x320xf32> to vector<4x320xf32>
    %576 = vector.broadcast %574 : vector<1x320xf32> to vector<4x320xf32>
    %577 = arith.mulf %576, %575 : vector<4x320xf32>
    %578 = arith.addf %573, %577 : vector<4x320xf32>
    %579 = vector.extract_strided_slice %561 {offsets = [3, 0], sizes = [1, 320], strides = [1, 1]} : vector<19x320xf32> to vector<1x320xf32>
    %580 = vector.extract_strided_slice %426 {offsets = [4, 0], sizes = [4, 320], strides = [1, 1]} : vector<8x320xf32> to vector<4x320xf32>
    %581 = vector.broadcast %579 : vector<1x320xf32> to vector<4x320xf32>
    %582 = arith.mulf %581, %580 : vector<4x320xf32>
    %583 = arith.addf %578, %582 : vector<4x320xf32>
    %584 = vector.extract_strided_slice %561 {offsets = [4, 0], sizes = [1, 320], strides = [1, 1]} : vector<19x320xf32> to vector<1x320xf32>
    %585 = vector.extract_strided_slice %434 {offsets = [4, 0], sizes = [4, 320], strides = [1, 1]} : vector<8x320xf32> to vector<4x320xf32>
    %586 = vector.broadcast %584 : vector<1x320xf32> to vector<4x320xf32>
    %587 = arith.mulf %586, %585 : vector<4x320xf32>
    %588 = arith.addf %583, %587 : vector<4x320xf32>
    %589 = vector.extract_strided_slice %561 {offsets = [5, 0], sizes = [1, 320], strides = [1, 1]} : vector<19x320xf32> to vector<1x320xf32>
    %590 = vector.extract_strided_slice %442 {offsets = [4, 0], sizes = [4, 320], strides = [1, 1]} : vector<8x320xf32> to vector<4x320xf32>
    %591 = vector.broadcast %589 : vector<1x320xf32> to vector<4x320xf32>
    %592 = arith.mulf %591, %590 : vector<4x320xf32>
    %593 = arith.addf %588, %592 : vector<4x320xf32>
    %594 = vector.extract_strided_slice %561 {offsets = [6, 0], sizes = [1, 320], strides = [1, 1]} : vector<19x320xf32> to vector<1x320xf32>
    %595 = vector.extract_strided_slice %450 {offsets = [4, 0], sizes = [4, 320], strides = [1, 1]} : vector<8x320xf32> to vector<4x320xf32>
    %596 = vector.broadcast %594 : vector<1x320xf32> to vector<4x320xf32>
    %597 = arith.mulf %596, %595 : vector<4x320xf32>
    %598 = arith.addf %593, %597 : vector<4x320xf32>
    %599 = vector.extract_strided_slice %561 {offsets = [7, 0], sizes = [1, 320], strides = [1, 1]} : vector<19x320xf32> to vector<1x320xf32>
    %600 = vector.extract_strided_slice %458 {offsets = [4, 0], sizes = [4, 320], strides = [1, 1]} : vector<8x320xf32> to vector<4x320xf32>
    %601 = vector.broadcast %599 : vector<1x320xf32> to vector<4x320xf32>
    %602 = arith.mulf %601, %600 : vector<4x320xf32>
    %603 = arith.addf %598, %602 : vector<4x320xf32>
    %604 = vector.extract_strided_slice %561 {offsets = [8, 0], sizes = [1, 320], strides = [1, 1]} : vector<19x320xf32> to vector<1x320xf32>
    %605 = vector.extract_strided_slice %466 {offsets = [4, 0], sizes = [4, 320], strides = [1, 1]} : vector<8x320xf32> to vector<4x320xf32>
    %606 = vector.broadcast %604 : vector<1x320xf32> to vector<4x320xf32>
    %607 = arith.mulf %606, %605 : vector<4x320xf32>
    %608 = arith.addf %603, %607 : vector<4x320xf32>
    %609 = vector.extract_strided_slice %561 {offsets = [9, 0], sizes = [1, 320], strides = [1, 1]} : vector<19x320xf32> to vector<1x320xf32>
    %610 = vector.extract_strided_slice %474 {offsets = [4, 0], sizes = [4, 320], strides = [1, 1]} : vector<8x320xf32> to vector<4x320xf32>
    %611 = vector.broadcast %609 : vector<1x320xf32> to vector<4x320xf32>
    %612 = arith.mulf %611, %610 : vector<4x320xf32>
    %613 = arith.addf %608, %612 : vector<4x320xf32>
    %614 = vector.extract_strided_slice %561 {offsets = [10, 0], sizes = [1, 320], strides = [1, 1]} : vector<19x320xf32> to vector<1x320xf32>
    %615 = vector.extract_strided_slice %482 {offsets = [4, 0], sizes = [4, 320], strides = [1, 1]} : vector<8x320xf32> to vector<4x320xf32>
    %616 = vector.broadcast %614 : vector<1x320xf32> to vector<4x320xf32>
    %617 = arith.mulf %616, %615 : vector<4x320xf32>
    %618 = arith.addf %613, %617 : vector<4x320xf32>
    %619 = vector.extract_strided_slice %561 {offsets = [11, 0], sizes = [1, 320], strides = [1, 1]} : vector<19x320xf32> to vector<1x320xf32>
    %620 = vector.extract_strided_slice %490 {offsets = [4, 0], sizes = [4, 320], strides = [1, 1]} : vector<8x320xf32> to vector<4x320xf32>
    %621 = vector.broadcast %619 : vector<1x320xf32> to vector<4x320xf32>
    %622 = arith.mulf %621, %620 : vector<4x320xf32>
    %623 = arith.addf %618, %622 : vector<4x320xf32>
    %624 = vector.extract_strided_slice %561 {offsets = [12, 0], sizes = [1, 320], strides = [1, 1]} : vector<19x320xf32> to vector<1x320xf32>
    %625 = vector.extract_strided_slice %498 {offsets = [4, 0], sizes = [4, 320], strides = [1, 1]} : vector<8x320xf32> to vector<4x320xf32>
    %626 = vector.broadcast %624 : vector<1x320xf32> to vector<4x320xf32>
    %627 = arith.mulf %626, %625 : vector<4x320xf32>
    %628 = arith.addf %623, %627 : vector<4x320xf32>
    %629 = vector.extract_strided_slice %561 {offsets = [13, 0], sizes = [1, 320], strides = [1, 1]} : vector<19x320xf32> to vector<1x320xf32>
    %630 = vector.extract_strided_slice %506 {offsets = [4, 0], sizes = [4, 320], strides = [1, 1]} : vector<8x320xf32> to vector<4x320xf32>
    %631 = vector.broadcast %629 : vector<1x320xf32> to vector<4x320xf32>
    %632 = arith.mulf %631, %630 : vector<4x320xf32>
    %633 = arith.addf %628, %632 : vector<4x320xf32>
    %634 = vector.extract_strided_slice %561 {offsets = [14, 0], sizes = [1, 320], strides = [1, 1]} : vector<19x320xf32> to vector<1x320xf32>
    %635 = vector.extract_strided_slice %514 {offsets = [4, 0], sizes = [4, 320], strides = [1, 1]} : vector<8x320xf32> to vector<4x320xf32>
    %636 = vector.broadcast %634 : vector<1x320xf32> to vector<4x320xf32>
    %637 = arith.mulf %636, %635 : vector<4x320xf32>
    %638 = arith.addf %633, %637 : vector<4x320xf32>
    %639 = vector.extract_strided_slice %561 {offsets = [15, 0], sizes = [1, 320], strides = [1, 1]} : vector<19x320xf32> to vector<1x320xf32>
    %640 = vector.extract_strided_slice %522 {offsets = [4, 0], sizes = [4, 320], strides = [1, 1]} : vector<8x320xf32> to vector<4x320xf32>
    %641 = vector.broadcast %639 : vector<1x320xf32> to vector<4x320xf32>
    %642 = arith.mulf %641, %640 : vector<4x320xf32>
    %643 = arith.addf %638, %642 : vector<4x320xf32>
    %644 = vector.extract_strided_slice %561 {offsets = [16, 0], sizes = [1, 320], strides = [1, 1]} : vector<19x320xf32> to vector<1x320xf32>
    %645 = vector.extract_strided_slice %530 {offsets = [4, 0], sizes = [4, 320], strides = [1, 1]} : vector<8x320xf32> to vector<4x320xf32>
    %646 = vector.broadcast %644 : vector<1x320xf32> to vector<4x320xf32>
    %647 = arith.mulf %646, %645 : vector<4x320xf32>
    %648 = arith.addf %643, %647 : vector<4x320xf32>
    %649 = vector.extract_strided_slice %561 {offsets = [17, 0], sizes = [1, 320], strides = [1, 1]} : vector<19x320xf32> to vector<1x320xf32>
    %650 = vector.extract_strided_slice %538 {offsets = [4, 0], sizes = [4, 320], strides = [1, 1]} : vector<8x320xf32> to vector<4x320xf32>
    %651 = vector.broadcast %649 : vector<1x320xf32> to vector<4x320xf32>
    %652 = arith.mulf %651, %650 : vector<4x320xf32>
    %653 = arith.addf %648, %652 : vector<4x320xf32>
    %654 = vector.extract_strided_slice %561 {offsets = [18, 0], sizes = [1, 320], strides = [1, 1]} : vector<19x320xf32> to vector<1x320xf32>
    %655 = vector.extract_strided_slice %546 {offsets = [4, 0], sizes = [4, 320], strides = [1, 1]} : vector<8x320xf32> to vector<4x320xf32>
    %656 = vector.broadcast %654 : vector<1x320xf32> to vector<4x320xf32>
    %657 = arith.mulf %656, %655 : vector<4x320xf32>
    %658 = arith.addf %653, %657 : vector<4x320xf32>
    %659 = vector.broadcast %564 : vector<1x320xf32> to vector<4x320xf32>
    %660 = arith.mulf %658, %659 : vector<4x320xf32>
    %661 = vector.extract_strided_slice %4 {offsets = [0, 8], sizes = [4, 1], strides = [1, 1]} : vector<4x16xf32> to vector<4x1xf32>
    %662 = vector.broadcast %661 : vector<4x1xf32> to vector<4x320xf32>
    %663 = arith.mulf %660, %662 : vector<4x320xf32>
    %664 = tpu.concatenate %56, %134 in 0 : vector<4x320xf32>, vector<4x320xf32> -> vector<8x320xf32>
    %cst_179 = arith.constant 0.000000e+00 : f32
    %665 = vector.broadcast %cst_179 : f32 to vector<8x10xf32>
    %666 = tpu.concatenate %665, %664, %665 in 1 : vector<8x10xf32>, vector<8x320xf32>, vector<8x10xf32> -> vector<8x340xf32>
    %667 = vector.extract_strided_slice %666 {offsets = [0, 1], sizes = [8, 320], strides = [1, 1]} : vector<8x340xf32> to vector<8x320xf32>
    %668 = vector.extract_strided_slice %667 {offsets = [0, 0], sizes = [4, 320], strides = [1, 1]} : vector<8x320xf32> to vector<4x320xf32>
    %669 = arith.mulf %106, %668 : vector<4x320xf32>
    %cst_180 = arith.constant dense<0.000000e+00> : vector<320xf32>
    %670 = vector.multi_reduction <add>, %669, %cst_180 [0] : vector<4x320xf32> to vector<320xf32>
    %671 = vector.shape_cast %670 : vector<320xf32> to vector<1x320xf32>
    %cst_181 = arith.constant 5.000000e-01 : f32
    %672 = vector.broadcast %cst_181 : f32 to vector<1x320xf32>
    %673 = arith.mulf %671, %672 : vector<1x320xf32>
    %674 = arith.addf %673, %182 : vector<1x320xf32>
    %675 = vector.extract_strided_slice %666 {offsets = [0, 2], sizes = [8, 320], strides = [1, 1]} : vector<8x340xf32> to vector<8x320xf32>
    %676 = vector.extract_strided_slice %675 {offsets = [0, 0], sizes = [4, 320], strides = [1, 1]} : vector<8x320xf32> to vector<4x320xf32>
    %677 = arith.mulf %106, %676 : vector<4x320xf32>
    %cst_182 = arith.constant dense<0.000000e+00> : vector<320xf32>
    %678 = vector.multi_reduction <add>, %677, %cst_182 [0] : vector<4x320xf32> to vector<320xf32>
    %679 = vector.shape_cast %678 : vector<320xf32> to vector<1x320xf32>
    %cst_183 = arith.constant 5.000000e-01 : f32
    %680 = vector.broadcast %cst_183 : f32 to vector<1x320xf32>
    %681 = arith.mulf %679, %680 : vector<1x320xf32>
    %682 = arith.addf %681, %194 : vector<1x320xf32>
    %683 = vector.extract_strided_slice %666 {offsets = [0, 3], sizes = [8, 320], strides = [1, 1]} : vector<8x340xf32> to vector<8x320xf32>
    %684 = vector.extract_strided_slice %683 {offsets = [0, 0], sizes = [4, 320], strides = [1, 1]} : vector<8x320xf32> to vector<4x320xf32>
    %685 = arith.mulf %106, %684 : vector<4x320xf32>
    %cst_184 = arith.constant dense<0.000000e+00> : vector<320xf32>
    %686 = vector.multi_reduction <add>, %685, %cst_184 [0] : vector<4x320xf32> to vector<320xf32>
    %687 = vector.shape_cast %686 : vector<320xf32> to vector<1x320xf32>
    %cst_185 = arith.constant 5.000000e-01 : f32
    %688 = vector.broadcast %cst_185 : f32 to vector<1x320xf32>
    %689 = arith.mulf %687, %688 : vector<1x320xf32>
    %690 = arith.addf %689, %206 : vector<1x320xf32>
    %691 = vector.extract_strided_slice %666 {offsets = [0, 4], sizes = [8, 320], strides = [1, 1]} : vector<8x340xf32> to vector<8x320xf32>
    %692 = vector.extract_strided_slice %691 {offsets = [0, 0], sizes = [4, 320], strides = [1, 1]} : vector<8x320xf32> to vector<4x320xf32>
    %693 = arith.mulf %106, %692 : vector<4x320xf32>
    %cst_186 = arith.constant dense<0.000000e+00> : vector<320xf32>
    %694 = vector.multi_reduction <add>, %693, %cst_186 [0] : vector<4x320xf32> to vector<320xf32>
    %695 = vector.shape_cast %694 : vector<320xf32> to vector<1x320xf32>
    %cst_187 = arith.constant 5.000000e-01 : f32
    %696 = vector.broadcast %cst_187 : f32 to vector<1x320xf32>
    %697 = arith.mulf %695, %696 : vector<1x320xf32>
    %698 = arith.addf %697, %218 : vector<1x320xf32>
    %699 = vector.extract_strided_slice %666 {offsets = [0, 5], sizes = [8, 320], strides = [1, 1]} : vector<8x340xf32> to vector<8x320xf32>
    %700 = vector.extract_strided_slice %699 {offsets = [0, 0], sizes = [4, 320], strides = [1, 1]} : vector<8x320xf32> to vector<4x320xf32>
    %701 = arith.mulf %106, %700 : vector<4x320xf32>
    %cst_188 = arith.constant dense<0.000000e+00> : vector<320xf32>
    %702 = vector.multi_reduction <add>, %701, %cst_188 [0] : vector<4x320xf32> to vector<320xf32>
    %703 = vector.shape_cast %702 : vector<320xf32> to vector<1x320xf32>
    %cst_189 = arith.constant 5.000000e-01 : f32
    %704 = vector.broadcast %cst_189 : f32 to vector<1x320xf32>
    %705 = arith.mulf %703, %704 : vector<1x320xf32>
    %706 = arith.addf %705, %230 : vector<1x320xf32>
    %707 = vector.extract_strided_slice %666 {offsets = [0, 6], sizes = [8, 320], strides = [1, 1]} : vector<8x340xf32> to vector<8x320xf32>
    %708 = vector.extract_strided_slice %707 {offsets = [0, 0], sizes = [4, 320], strides = [1, 1]} : vector<8x320xf32> to vector<4x320xf32>
    %709 = arith.mulf %106, %708 : vector<4x320xf32>
    %cst_190 = arith.constant dense<0.000000e+00> : vector<320xf32>
    %710 = vector.multi_reduction <add>, %709, %cst_190 [0] : vector<4x320xf32> to vector<320xf32>
    %711 = vector.shape_cast %710 : vector<320xf32> to vector<1x320xf32>
    %cst_191 = arith.constant 5.000000e-01 : f32
    %712 = vector.broadcast %cst_191 : f32 to vector<1x320xf32>
    %713 = arith.mulf %711, %712 : vector<1x320xf32>
    %714 = arith.addf %713, %242 : vector<1x320xf32>
    %715 = vector.extract_strided_slice %666 {offsets = [0, 7], sizes = [8, 320], strides = [1, 1]} : vector<8x340xf32> to vector<8x320xf32>
    %716 = vector.extract_strided_slice %715 {offsets = [0, 0], sizes = [4, 320], strides = [1, 1]} : vector<8x320xf32> to vector<4x320xf32>
    %717 = arith.mulf %106, %716 : vector<4x320xf32>
    %cst_192 = arith.constant dense<0.000000e+00> : vector<320xf32>
    %718 = vector.multi_reduction <add>, %717, %cst_192 [0] : vector<4x320xf32> to vector<320xf32>
    %719 = vector.shape_cast %718 : vector<320xf32> to vector<1x320xf32>
    %cst_193 = arith.constant 5.000000e-01 : f32
    %720 = vector.broadcast %cst_193 : f32 to vector<1x320xf32>
    %721 = arith.mulf %719, %720 : vector<1x320xf32>
    %722 = arith.addf %721, %254 : vector<1x320xf32>
    %723 = vector.extract_strided_slice %666 {offsets = [0, 8], sizes = [8, 320], strides = [1, 1]} : vector<8x340xf32> to vector<8x320xf32>
    %724 = vector.extract_strided_slice %723 {offsets = [0, 0], sizes = [4, 320], strides = [1, 1]} : vector<8x320xf32> to vector<4x320xf32>
    %725 = arith.mulf %106, %724 : vector<4x320xf32>
    %cst_194 = arith.constant dense<0.000000e+00> : vector<320xf32>
    %726 = vector.multi_reduction <add>, %725, %cst_194 [0] : vector<4x320xf32> to vector<320xf32>
    %727 = vector.shape_cast %726 : vector<320xf32> to vector<1x320xf32>
    %cst_195 = arith.constant 5.000000e-01 : f32
    %728 = vector.broadcast %cst_195 : f32 to vector<1x320xf32>
    %729 = arith.mulf %727, %728 : vector<1x320xf32>
    %730 = arith.addf %729, %266 : vector<1x320xf32>
    %731 = vector.extract_strided_slice %666 {offsets = [0, 9], sizes = [8, 320], strides = [1, 1]} : vector<8x340xf32> to vector<8x320xf32>
    %732 = vector.extract_strided_slice %731 {offsets = [0, 0], sizes = [4, 320], strides = [1, 1]} : vector<8x320xf32> to vector<4x320xf32>
    %733 = arith.mulf %106, %732 : vector<4x320xf32>
    %cst_196 = arith.constant dense<0.000000e+00> : vector<320xf32>
    %734 = vector.multi_reduction <add>, %733, %cst_196 [0] : vector<4x320xf32> to vector<320xf32>
    %735 = vector.shape_cast %734 : vector<320xf32> to vector<1x320xf32>
    %cst_197 = arith.constant 5.000000e-01 : f32
    %736 = vector.broadcast %cst_197 : f32 to vector<1x320xf32>
    %737 = arith.mulf %735, %736 : vector<1x320xf32>
    %738 = arith.addf %737, %278 : vector<1x320xf32>
    %739 = vector.extract_strided_slice %666 {offsets = [0, 10], sizes = [8, 320], strides = [1, 1]} : vector<8x340xf32> to vector<8x320xf32>
    %740 = vector.extract_strided_slice %739 {offsets = [0, 0], sizes = [4, 320], strides = [1, 1]} : vector<8x320xf32> to vector<4x320xf32>
    %741 = arith.mulf %106, %740 : vector<4x320xf32>
    %cst_198 = arith.constant dense<0.000000e+00> : vector<320xf32>
    %742 = vector.multi_reduction <add>, %741, %cst_198 [0] : vector<4x320xf32> to vector<320xf32>
    %743 = vector.shape_cast %742 : vector<320xf32> to vector<1x320xf32>
    %cst_199 = arith.constant 5.000000e-01 : f32
    %744 = vector.broadcast %cst_199 : f32 to vector<1x320xf32>
    %745 = arith.mulf %743, %744 : vector<1x320xf32>
    %746 = arith.addf %745, %290 : vector<1x320xf32>
    %747 = vector.extract_strided_slice %666 {offsets = [0, 11], sizes = [8, 320], strides = [1, 1]} : vector<8x340xf32> to vector<8x320xf32>
    %748 = vector.extract_strided_slice %747 {offsets = [0, 0], sizes = [4, 320], strides = [1, 1]} : vector<8x320xf32> to vector<4x320xf32>
    %749 = arith.mulf %106, %748 : vector<4x320xf32>
    %cst_200 = arith.constant dense<0.000000e+00> : vector<320xf32>
    %750 = vector.multi_reduction <add>, %749, %cst_200 [0] : vector<4x320xf32> to vector<320xf32>
    %751 = vector.shape_cast %750 : vector<320xf32> to vector<1x320xf32>
    %cst_201 = arith.constant 5.000000e-01 : f32
    %752 = vector.broadcast %cst_201 : f32 to vector<1x320xf32>
    %753 = arith.mulf %751, %752 : vector<1x320xf32>
    %754 = arith.addf %753, %302 : vector<1x320xf32>
    %755 = vector.extract_strided_slice %666 {offsets = [0, 12], sizes = [8, 320], strides = [1, 1]} : vector<8x340xf32> to vector<8x320xf32>
    %756 = vector.extract_strided_slice %755 {offsets = [0, 0], sizes = [4, 320], strides = [1, 1]} : vector<8x320xf32> to vector<4x320xf32>
    %757 = arith.mulf %106, %756 : vector<4x320xf32>
    %cst_202 = arith.constant dense<0.000000e+00> : vector<320xf32>
    %758 = vector.multi_reduction <add>, %757, %cst_202 [0] : vector<4x320xf32> to vector<320xf32>
    %759 = vector.shape_cast %758 : vector<320xf32> to vector<1x320xf32>
    %cst_203 = arith.constant 5.000000e-01 : f32
    %760 = vector.broadcast %cst_203 : f32 to vector<1x320xf32>
    %761 = arith.mulf %759, %760 : vector<1x320xf32>
    %762 = arith.addf %761, %314 : vector<1x320xf32>
    %763 = vector.extract_strided_slice %666 {offsets = [0, 13], sizes = [8, 320], strides = [1, 1]} : vector<8x340xf32> to vector<8x320xf32>
    %764 = vector.extract_strided_slice %763 {offsets = [0, 0], sizes = [4, 320], strides = [1, 1]} : vector<8x320xf32> to vector<4x320xf32>
    %765 = arith.mulf %106, %764 : vector<4x320xf32>
    %cst_204 = arith.constant dense<0.000000e+00> : vector<320xf32>
    %766 = vector.multi_reduction <add>, %765, %cst_204 [0] : vector<4x320xf32> to vector<320xf32>
    %767 = vector.shape_cast %766 : vector<320xf32> to vector<1x320xf32>
    %cst_205 = arith.constant 5.000000e-01 : f32
    %768 = vector.broadcast %cst_205 : f32 to vector<1x320xf32>
    %769 = arith.mulf %767, %768 : vector<1x320xf32>
    %770 = arith.addf %769, %326 : vector<1x320xf32>
    %771 = vector.extract_strided_slice %666 {offsets = [0, 14], sizes = [8, 320], strides = [1, 1]} : vector<8x340xf32> to vector<8x320xf32>
    %772 = vector.extract_strided_slice %771 {offsets = [0, 0], sizes = [4, 320], strides = [1, 1]} : vector<8x320xf32> to vector<4x320xf32>
    %773 = arith.mulf %106, %772 : vector<4x320xf32>
    %cst_206 = arith.constant dense<0.000000e+00> : vector<320xf32>
    %774 = vector.multi_reduction <add>, %773, %cst_206 [0] : vector<4x320xf32> to vector<320xf32>
    %775 = vector.shape_cast %774 : vector<320xf32> to vector<1x320xf32>
    %cst_207 = arith.constant 5.000000e-01 : f32
    %776 = vector.broadcast %cst_207 : f32 to vector<1x320xf32>
    %777 = arith.mulf %775, %776 : vector<1x320xf32>
    %778 = arith.addf %777, %338 : vector<1x320xf32>
    %779 = vector.extract_strided_slice %666 {offsets = [0, 15], sizes = [8, 320], strides = [1, 1]} : vector<8x340xf32> to vector<8x320xf32>
    %780 = vector.extract_strided_slice %779 {offsets = [0, 0], sizes = [4, 320], strides = [1, 1]} : vector<8x320xf32> to vector<4x320xf32>
    %781 = arith.mulf %106, %780 : vector<4x320xf32>
    %cst_208 = arith.constant dense<0.000000e+00> : vector<320xf32>
    %782 = vector.multi_reduction <add>, %781, %cst_208 [0] : vector<4x320xf32> to vector<320xf32>
    %783 = vector.shape_cast %782 : vector<320xf32> to vector<1x320xf32>
    %cst_209 = arith.constant 5.000000e-01 : f32
    %784 = vector.broadcast %cst_209 : f32 to vector<1x320xf32>
    %785 = arith.mulf %783, %784 : vector<1x320xf32>
    %786 = arith.addf %785, %350 : vector<1x320xf32>
    %787 = vector.extract_strided_slice %666 {offsets = [0, 16], sizes = [8, 320], strides = [1, 1]} : vector<8x340xf32> to vector<8x320xf32>
    %788 = vector.extract_strided_slice %787 {offsets = [0, 0], sizes = [4, 320], strides = [1, 1]} : vector<8x320xf32> to vector<4x320xf32>
    %789 = arith.mulf %106, %788 : vector<4x320xf32>
    %cst_210 = arith.constant dense<0.000000e+00> : vector<320xf32>
    %790 = vector.multi_reduction <add>, %789, %cst_210 [0] : vector<4x320xf32> to vector<320xf32>
    %791 = vector.shape_cast %790 : vector<320xf32> to vector<1x320xf32>
    %cst_211 = arith.constant 5.000000e-01 : f32
    %792 = vector.broadcast %cst_211 : f32 to vector<1x320xf32>
    %793 = arith.mulf %791, %792 : vector<1x320xf32>
    %794 = arith.addf %793, %362 : vector<1x320xf32>
    %795 = vector.extract_strided_slice %666 {offsets = [0, 17], sizes = [8, 320], strides = [1, 1]} : vector<8x340xf32> to vector<8x320xf32>
    %796 = vector.extract_strided_slice %795 {offsets = [0, 0], sizes = [4, 320], strides = [1, 1]} : vector<8x320xf32> to vector<4x320xf32>
    %797 = arith.mulf %106, %796 : vector<4x320xf32>
    %cst_212 = arith.constant dense<0.000000e+00> : vector<320xf32>
    %798 = vector.multi_reduction <add>, %797, %cst_212 [0] : vector<4x320xf32> to vector<320xf32>
    %799 = vector.shape_cast %798 : vector<320xf32> to vector<1x320xf32>
    %cst_213 = arith.constant 5.000000e-01 : f32
    %800 = vector.broadcast %cst_213 : f32 to vector<1x320xf32>
    %801 = arith.mulf %799, %800 : vector<1x320xf32>
    %802 = arith.addf %801, %374 : vector<1x320xf32>
    %803 = vector.extract_strided_slice %666 {offsets = [0, 18], sizes = [8, 320], strides = [1, 1]} : vector<8x340xf32> to vector<8x320xf32>
    %804 = vector.extract_strided_slice %803 {offsets = [0, 0], sizes = [4, 320], strides = [1, 1]} : vector<8x320xf32> to vector<4x320xf32>
    %805 = arith.mulf %106, %804 : vector<4x320xf32>
    %cst_214 = arith.constant dense<0.000000e+00> : vector<320xf32>
    %806 = vector.multi_reduction <add>, %805, %cst_214 [0] : vector<4x320xf32> to vector<320xf32>
    %807 = vector.shape_cast %806 : vector<320xf32> to vector<1x320xf32>
    %cst_215 = arith.constant 5.000000e-01 : f32
    %808 = vector.broadcast %cst_215 : f32 to vector<1x320xf32>
    %809 = arith.mulf %807, %808 : vector<1x320xf32>
    %810 = arith.addf %809, %386 : vector<1x320xf32>
    %811 = vector.extract_strided_slice %666 {offsets = [0, 19], sizes = [8, 320], strides = [1, 1]} : vector<8x340xf32> to vector<8x320xf32>
    %812 = vector.extract_strided_slice %811 {offsets = [0, 0], sizes = [4, 320], strides = [1, 1]} : vector<8x320xf32> to vector<4x320xf32>
    %813 = arith.mulf %106, %812 : vector<4x320xf32>
    %cst_216 = arith.constant dense<0.000000e+00> : vector<320xf32>
    %814 = vector.multi_reduction <add>, %813, %cst_216 [0] : vector<4x320xf32> to vector<320xf32>
    %815 = vector.shape_cast %814 : vector<320xf32> to vector<1x320xf32>
    %cst_217 = arith.constant 5.000000e-01 : f32
    %816 = vector.broadcast %cst_217 : f32 to vector<1x320xf32>
    %817 = arith.mulf %815, %816 : vector<1x320xf32>
    %818 = arith.addf %817, %398 : vector<1x320xf32>
    %819 = tpu.concatenate %674, %682, %690, %698, %706, %714, %722, %730, %738, %746, %754, %762, %770, %778, %786, %794 in 0 : vector<1x320xf32>, vector<1x320xf32>, vector<1x320xf32>, vector<1x320xf32>, vector<1x320xf32>, vector<1x320xf32>, vector<1x320xf32>, vector<1x320xf32>, vector<1x320xf32>, vector<1x320xf32>, vector<1x320xf32>, vector<1x320xf32>, vector<1x320xf32>, vector<1x320xf32>, vector<1x320xf32>, vector<1x320xf32> -> vector<16x320xf32>
    %820 = tpu.concatenate %802, %810, %818 in 0 : vector<1x320xf32>, vector<1x320xf32>, vector<1x320xf32> -> vector<3x320xf32>
    %821 = tpu.concatenate %819, %820 in 0 : vector<16x320xf32>, vector<3x320xf32> -> vector<19x320xf32>
    %cst_218 = arith.constant dense<0xFF800000> : vector<320xf32>
    %822 = vector.multi_reduction <maximumf>, %821, %cst_218 [0] : vector<19x320xf32> to vector<320xf32>
    %823 = vector.shape_cast %822 : vector<320xf32> to vector<1x320xf32>
    %824 = vector.broadcast %823 : vector<1x320xf32> to vector<19x320xf32>
    %825 = arith.subf %821, %824 : vector<19x320xf32>
    %826 = math.exp %825 : vector<19x320xf32>
    %cst_219 = arith.constant dense<0.000000e+00> : vector<320xf32>
    %827 = vector.multi_reduction <add>, %826, %cst_219 [0] : vector<19x320xf32> to vector<320xf32>
    %828 = vector.shape_cast %827 : vector<320xf32> to vector<1x320xf32>
    %829 = tpu.reciprocal %828 {approx = true} : vector<1x320xf32> -> vector<1x320xf32>
    %830 = vector.extract_strided_slice %826 {offsets = [0, 0], sizes = [1, 320], strides = [1, 1]} : vector<19x320xf32> to vector<1x320xf32>
    %831 = vector.extract_strided_slice %667 {offsets = [4, 0], sizes = [4, 320], strides = [1, 1]} : vector<8x320xf32> to vector<4x320xf32>
    %832 = vector.broadcast %830 : vector<1x320xf32> to vector<4x320xf32>
    %833 = arith.mulf %832, %831 : vector<4x320xf32>
    %834 = vector.extract_strided_slice %826 {offsets = [1, 0], sizes = [1, 320], strides = [1, 1]} : vector<19x320xf32> to vector<1x320xf32>
    %835 = vector.extract_strided_slice %675 {offsets = [4, 0], sizes = [4, 320], strides = [1, 1]} : vector<8x320xf32> to vector<4x320xf32>
    %836 = vector.broadcast %834 : vector<1x320xf32> to vector<4x320xf32>
    %837 = arith.mulf %836, %835 : vector<4x320xf32>
    %838 = arith.addf %833, %837 : vector<4x320xf32>
    %839 = vector.extract_strided_slice %826 {offsets = [2, 0], sizes = [1, 320], strides = [1, 1]} : vector<19x320xf32> to vector<1x320xf32>
    %840 = vector.extract_strided_slice %683 {offsets = [4, 0], sizes = [4, 320], strides = [1, 1]} : vector<8x320xf32> to vector<4x320xf32>
    %841 = vector.broadcast %839 : vector<1x320xf32> to vector<4x320xf32>
    %842 = arith.mulf %841, %840 : vector<4x320xf32>
    %843 = arith.addf %838, %842 : vector<4x320xf32>
    %844 = vector.extract_strided_slice %826 {offsets = [3, 0], sizes = [1, 320], strides = [1, 1]} : vector<19x320xf32> to vector<1x320xf32>
    %845 = vector.extract_strided_slice %691 {offsets = [4, 0], sizes = [4, 320], strides = [1, 1]} : vector<8x320xf32> to vector<4x320xf32>
    %846 = vector.broadcast %844 : vector<1x320xf32> to vector<4x320xf32>
    %847 = arith.mulf %846, %845 : vector<4x320xf32>
    %848 = arith.addf %843, %847 : vector<4x320xf32>
    %849 = vector.extract_strided_slice %826 {offsets = [4, 0], sizes = [1, 320], strides = [1, 1]} : vector<19x320xf32> to vector<1x320xf32>
    %850 = vector.extract_strided_slice %699 {offsets = [4, 0], sizes = [4, 320], strides = [1, 1]} : vector<8x320xf32> to vector<4x320xf32>
    %851 = vector.broadcast %849 : vector<1x320xf32> to vector<4x320xf32>
    %852 = arith.mulf %851, %850 : vector<4x320xf32>
    %853 = arith.addf %848, %852 : vector<4x320xf32>
    %854 = vector.extract_strided_slice %826 {offsets = [5, 0], sizes = [1, 320], strides = [1, 1]} : vector<19x320xf32> to vector<1x320xf32>
    %855 = vector.extract_strided_slice %707 {offsets = [4, 0], sizes = [4, 320], strides = [1, 1]} : vector<8x320xf32> to vector<4x320xf32>
    %856 = vector.broadcast %854 : vector<1x320xf32> to vector<4x320xf32>
    %857 = arith.mulf %856, %855 : vector<4x320xf32>
    %858 = arith.addf %853, %857 : vector<4x320xf32>
    %859 = vector.extract_strided_slice %826 {offsets = [6, 0], sizes = [1, 320], strides = [1, 1]} : vector<19x320xf32> to vector<1x320xf32>
    %860 = vector.extract_strided_slice %715 {offsets = [4, 0], sizes = [4, 320], strides = [1, 1]} : vector<8x320xf32> to vector<4x320xf32>
    %861 = vector.broadcast %859 : vector<1x320xf32> to vector<4x320xf32>
    %862 = arith.mulf %861, %860 : vector<4x320xf32>
    %863 = arith.addf %858, %862 : vector<4x320xf32>
    %864 = vector.extract_strided_slice %826 {offsets = [7, 0], sizes = [1, 320], strides = [1, 1]} : vector<19x320xf32> to vector<1x320xf32>
    %865 = vector.extract_strided_slice %723 {offsets = [4, 0], sizes = [4, 320], strides = [1, 1]} : vector<8x320xf32> to vector<4x320xf32>
    %866 = vector.broadcast %864 : vector<1x320xf32> to vector<4x320xf32>
    %867 = arith.mulf %866, %865 : vector<4x320xf32>
    %868 = arith.addf %863, %867 : vector<4x320xf32>
    %869 = vector.extract_strided_slice %826 {offsets = [8, 0], sizes = [1, 320], strides = [1, 1]} : vector<19x320xf32> to vector<1x320xf32>
    %870 = vector.extract_strided_slice %731 {offsets = [4, 0], sizes = [4, 320], strides = [1, 1]} : vector<8x320xf32> to vector<4x320xf32>
    %871 = vector.broadcast %869 : vector<1x320xf32> to vector<4x320xf32>
    %872 = arith.mulf %871, %870 : vector<4x320xf32>
    %873 = arith.addf %868, %872 : vector<4x320xf32>
    %874 = vector.extract_strided_slice %826 {offsets = [9, 0], sizes = [1, 320], strides = [1, 1]} : vector<19x320xf32> to vector<1x320xf32>
    %875 = vector.extract_strided_slice %739 {offsets = [4, 0], sizes = [4, 320], strides = [1, 1]} : vector<8x320xf32> to vector<4x320xf32>
    %876 = vector.broadcast %874 : vector<1x320xf32> to vector<4x320xf32>
    %877 = arith.mulf %876, %875 : vector<4x320xf32>
    %878 = arith.addf %873, %877 : vector<4x320xf32>
    %879 = vector.extract_strided_slice %826 {offsets = [10, 0], sizes = [1, 320], strides = [1, 1]} : vector<19x320xf32> to vector<1x320xf32>
    %880 = vector.extract_strided_slice %747 {offsets = [4, 0], sizes = [4, 320], strides = [1, 1]} : vector<8x320xf32> to vector<4x320xf32>
    %881 = vector.broadcast %879 : vector<1x320xf32> to vector<4x320xf32>
    %882 = arith.mulf %881, %880 : vector<4x320xf32>
    %883 = arith.addf %878, %882 : vector<4x320xf32>
    %884 = vector.extract_strided_slice %826 {offsets = [11, 0], sizes = [1, 320], strides = [1, 1]} : vector<19x320xf32> to vector<1x320xf32>
    %885 = vector.extract_strided_slice %755 {offsets = [4, 0], sizes = [4, 320], strides = [1, 1]} : vector<8x320xf32> to vector<4x320xf32>
    %886 = vector.broadcast %884 : vector<1x320xf32> to vector<4x320xf32>
    %887 = arith.mulf %886, %885 : vector<4x320xf32>
    %888 = arith.addf %883, %887 : vector<4x320xf32>
    %889 = vector.extract_strided_slice %826 {offsets = [12, 0], sizes = [1, 320], strides = [1, 1]} : vector<19x320xf32> to vector<1x320xf32>
    %890 = vector.extract_strided_slice %763 {offsets = [4, 0], sizes = [4, 320], strides = [1, 1]} : vector<8x320xf32> to vector<4x320xf32>
    %891 = vector.broadcast %889 : vector<1x320xf32> to vector<4x320xf32>
    %892 = arith.mulf %891, %890 : vector<4x320xf32>
    %893 = arith.addf %888, %892 : vector<4x320xf32>
    %894 = vector.extract_strided_slice %826 {offsets = [13, 0], sizes = [1, 320], strides = [1, 1]} : vector<19x320xf32> to vector<1x320xf32>
    %895 = vector.extract_strided_slice %771 {offsets = [4, 0], sizes = [4, 320], strides = [1, 1]} : vector<8x320xf32> to vector<4x320xf32>
    %896 = vector.broadcast %894 : vector<1x320xf32> to vector<4x320xf32>
    %897 = arith.mulf %896, %895 : vector<4x320xf32>
    %898 = arith.addf %893, %897 : vector<4x320xf32>
    %899 = vector.extract_strided_slice %826 {offsets = [14, 0], sizes = [1, 320], strides = [1, 1]} : vector<19x320xf32> to vector<1x320xf32>
    %900 = vector.extract_strided_slice %779 {offsets = [4, 0], sizes = [4, 320], strides = [1, 1]} : vector<8x320xf32> to vector<4x320xf32>
    %901 = vector.broadcast %899 : vector<1x320xf32> to vector<4x320xf32>
    %902 = arith.mulf %901, %900 : vector<4x320xf32>
    %903 = arith.addf %898, %902 : vector<4x320xf32>
    %904 = vector.extract_strided_slice %826 {offsets = [15, 0], sizes = [1, 320], strides = [1, 1]} : vector<19x320xf32> to vector<1x320xf32>
    %905 = vector.extract_strided_slice %787 {offsets = [4, 0], sizes = [4, 320], strides = [1, 1]} : vector<8x320xf32> to vector<4x320xf32>
    %906 = vector.broadcast %904 : vector<1x320xf32> to vector<4x320xf32>
    %907 = arith.mulf %906, %905 : vector<4x320xf32>
    %908 = arith.addf %903, %907 : vector<4x320xf32>
    %909 = vector.extract_strided_slice %826 {offsets = [16, 0], sizes = [1, 320], strides = [1, 1]} : vector<19x320xf32> to vector<1x320xf32>
    %910 = vector.extract_strided_slice %795 {offsets = [4, 0], sizes = [4, 320], strides = [1, 1]} : vector<8x320xf32> to vector<4x320xf32>
    %911 = vector.broadcast %909 : vector<1x320xf32> to vector<4x320xf32>
    %912 = arith.mulf %911, %910 : vector<4x320xf32>
    %913 = arith.addf %908, %912 : vector<4x320xf32>
    %914 = vector.extract_strided_slice %826 {offsets = [17, 0], sizes = [1, 320], strides = [1, 1]} : vector<19x320xf32> to vector<1x320xf32>
    %915 = vector.extract_strided_slice %803 {offsets = [4, 0], sizes = [4, 320], strides = [1, 1]} : vector<8x320xf32> to vector<4x320xf32>
    %916 = vector.broadcast %914 : vector<1x320xf32> to vector<4x320xf32>
    %917 = arith.mulf %916, %915 : vector<4x320xf32>
    %918 = arith.addf %913, %917 : vector<4x320xf32>
    %919 = vector.extract_strided_slice %826 {offsets = [18, 0], sizes = [1, 320], strides = [1, 1]} : vector<19x320xf32> to vector<1x320xf32>
    %920 = vector.extract_strided_slice %811 {offsets = [4, 0], sizes = [4, 320], strides = [1, 1]} : vector<8x320xf32> to vector<4x320xf32>
    %921 = vector.broadcast %919 : vector<1x320xf32> to vector<4x320xf32>
    %922 = arith.mulf %921, %920 : vector<4x320xf32>
    %923 = arith.addf %918, %922 : vector<4x320xf32>
    %924 = vector.broadcast %829 : vector<1x320xf32> to vector<4x320xf32>
    %925 = arith.mulf %923, %924 : vector<4x320xf32>
    %926 = vector.extract_strided_slice %4 {offsets = [0, 9], sizes = [4, 1], strides = [1, 1]} : vector<4x16xf32> to vector<4x1xf32>
    %927 = vector.broadcast %926 : vector<4x1xf32> to vector<4x320xf32>
    %928 = arith.mulf %925, %927 : vector<4x320xf32>
    %929 = vector.extract_strided_slice %6 {offsets = [0, 0, 0], sizes = [1, 3, 9], strides = [1, 1, 1]} : vector<2x3x9xf32> to vector<1x3x9xf32>
    %930 = vector.shape_cast %929 : vector<1x3x9xf32> to vector<3x9xf32>
    %931 = vector.extract_strided_slice %930 {offsets = [0, 0], sizes = [3, 4], strides = [1, 1]} : vector<3x9xf32> to vector<3x4xf32>
    %932 = vector.extract_strided_slice %930 {offsets = [0, 4], sizes = [3, 3], strides = [1, 1]} : vector<3x9xf32> to vector<3x3xf32>
    %933 = vector.extract_strided_slice %930 {offsets = [0, 7], sizes = [3, 1], strides = [1, 1]} : vector<3x9xf32> to vector<3x1xf32>
    %934 = vector.extract_strided_slice %930 {offsets = [0, 8], sizes = [3, 1], strides = [1, 1]} : vector<3x9xf32> to vector<3x1xf32>
    %cst_220 = arith.constant dense<0.000000e+00> : vector<4xf32>
    %935 = vector.multi_reduction <add>, %1, %cst_220 [1] : vector<4x320xf32> to vector<4xf32>
    %936 = vector.shape_cast %935 : vector<4xf32> to vector<4x1xf32>
    %cst_221 = arith.constant 3.200000e+02 : f32
    %937 = vector.broadcast %cst_221 : f32 to vector<4x1xf32>
    %938 = arith.divf %936, %937 : vector<4x1xf32>
    %939 = vector.extract_strided_slice %931 {offsets = [0, 0], sizes = [3, 1], strides = [1, 1]} : vector<3x4xf32> to vector<3x1xf32>
    %940 = vector.extract_strided_slice %938 {offsets = [0, 0], sizes = [1, 1], strides = [1, 1]} : vector<4x1xf32> to vector<1x1xf32>
    %941 = vector.broadcast %940 : vector<1x1xf32> to vector<3x1xf32>
    %942 = arith.mulf %939, %941 : vector<3x1xf32>
    %943 = vector.extract_strided_slice %931 {offsets = [0, 1], sizes = [3, 1], strides = [1, 1]} : vector<3x4xf32> to vector<3x1xf32>
    %944 = vector.extract_strided_slice %938 {offsets = [1, 0], sizes = [1, 1], strides = [1, 1]} : vector<4x1xf32> to vector<1x1xf32>
    %945 = vector.broadcast %944 : vector<1x1xf32> to vector<3x1xf32>
    %946 = arith.mulf %943, %945 : vector<3x1xf32>
    %947 = arith.addf %942, %946 : vector<3x1xf32>
    %948 = vector.extract_strided_slice %931 {offsets = [0, 2], sizes = [3, 1], strides = [1, 1]} : vector<3x4xf32> to vector<3x1xf32>
    %949 = vector.extract_strided_slice %938 {offsets = [2, 0], sizes = [1, 1], strides = [1, 1]} : vector<4x1xf32> to vector<1x1xf32>
    %950 = vector.broadcast %949 : vector<1x1xf32> to vector<3x1xf32>
    %951 = arith.mulf %948, %950 : vector<3x1xf32>
    %952 = arith.addf %947, %951 : vector<3x1xf32>
    %953 = vector.extract_strided_slice %931 {offsets = [0, 3], sizes = [3, 1], strides = [1, 1]} : vector<3x4xf32> to vector<3x1xf32>
    %954 = vector.extract_strided_slice %938 {offsets = [3, 0], sizes = [1, 1], strides = [1, 1]} : vector<4x1xf32> to vector<1x1xf32>
    %955 = vector.broadcast %954 : vector<1x1xf32> to vector<3x1xf32>
    %956 = arith.mulf %953, %955 : vector<3x1xf32>
    %957 = arith.addf %952, %956 : vector<3x1xf32>
    %958 = arith.addf %957, %933 : vector<3x1xf32>
    %cst_222 = arith.constant 0.000000e+00 : f32
    %959 = vector.broadcast %cst_222 : f32 to vector<3x1xf32>
    %960 = arith.maximumf %958, %959 : vector<3x1xf32>
    %961 = vector.extract_strided_slice %932 {offsets = [0, 0], sizes = [3, 1], strides = [1, 1]} : vector<3x3xf32> to vector<3x1xf32>
    %962 = vector.extract_strided_slice %960 {offsets = [0, 0], sizes = [1, 1], strides = [1, 1]} : vector<3x1xf32> to vector<1x1xf32>
    %963 = vector.broadcast %962 : vector<1x1xf32> to vector<3x1xf32>
    %964 = arith.mulf %961, %963 : vector<3x1xf32>
    %965 = vector.extract_strided_slice %932 {offsets = [0, 1], sizes = [3, 1], strides = [1, 1]} : vector<3x3xf32> to vector<3x1xf32>
    %966 = vector.extract_strided_slice %960 {offsets = [1, 0], sizes = [1, 1], strides = [1, 1]} : vector<3x1xf32> to vector<1x1xf32>
    %967 = vector.broadcast %966 : vector<1x1xf32> to vector<3x1xf32>
    %968 = arith.mulf %965, %967 : vector<3x1xf32>
    %969 = arith.addf %964, %968 : vector<3x1xf32>
    %970 = vector.extract_strided_slice %932 {offsets = [0, 2], sizes = [3, 1], strides = [1, 1]} : vector<3x3xf32> to vector<3x1xf32>
    %971 = vector.extract_strided_slice %960 {offsets = [2, 0], sizes = [1, 1], strides = [1, 1]} : vector<3x1xf32> to vector<1x1xf32>
    %972 = vector.broadcast %971 : vector<1x1xf32> to vector<3x1xf32>
    %973 = arith.mulf %970, %972 : vector<3x1xf32>
    %974 = arith.addf %969, %973 : vector<3x1xf32>
    %975 = arith.addf %974, %934 : vector<3x1xf32>
    %cst_223 = arith.constant dense<0xFF800000> : vector<1xf32>
    %976 = vector.multi_reduction <maximumf>, %975, %cst_223 [0] : vector<3x1xf32> to vector<1xf32>
    %977 = vector.shape_cast %976 : vector<1xf32> to vector<1x1xf32>
    %978 = vector.broadcast %977 : vector<1x1xf32> to vector<3x1xf32>
    %979 = arith.subf %975, %978 : vector<3x1xf32>
    %980 = math.exp %979 : vector<3x1xf32>
    %cst_224 = arith.constant dense<0.000000e+00> : vector<1xf32>
    %981 = vector.multi_reduction <add>, %980, %cst_224 [0] : vector<3x1xf32> to vector<1xf32>
    %982 = vector.shape_cast %981 : vector<1xf32> to vector<1x1xf32>
    %983 = vector.broadcast %982 : vector<1x1xf32> to vector<3x1xf32>
    %984 = arith.divf %980, %983 : vector<3x1xf32>
    %985 = vector.extract_strided_slice %984 {offsets = [0, 0], sizes = [1, 1], strides = [1, 1]} : vector<3x1xf32> to vector<1x1xf32>
    %986 = vector.extract_strided_slice %5 {offsets = [4, 0, 0], sizes = [1, 4, 4], strides = [1, 1, 1]} : vector<10x4x4xf32> to vector<1x4x4xf32>
    %987 = vector.shape_cast %986 : vector<1x4x4xf32> to vector<4x4xf32>
    %988 = vector.broadcast %985 : vector<1x1xf32> to vector<4x4xf32>
    %989 = arith.mulf %988, %987 : vector<4x4xf32>
    %990 = vector.extract_strided_slice %984 {offsets = [0, 0], sizes = [1, 1], strides = [1, 1]} : vector<3x1xf32> to vector<1x1xf32>
    %991 = vector.extract_strided_slice %4 {offsets = [0, 10], sizes = [4, 1], strides = [1, 1]} : vector<4x16xf32> to vector<4x1xf32>
    %992 = vector.broadcast %990 : vector<1x1xf32> to vector<4x1xf32>
    %993 = arith.mulf %992, %991 : vector<4x1xf32>
    %994 = vector.extract_strided_slice %984 {offsets = [1, 0], sizes = [1, 1], strides = [1, 1]} : vector<3x1xf32> to vector<1x1xf32>
    %995 = vector.extract_strided_slice %5 {offsets = [5, 0, 0], sizes = [1, 4, 4], strides = [1, 1, 1]} : vector<10x4x4xf32> to vector<1x4x4xf32>
    %996 = vector.shape_cast %995 : vector<1x4x4xf32> to vector<4x4xf32>
    %997 = vector.broadcast %994 : vector<1x1xf32> to vector<4x4xf32>
    %998 = arith.mulf %997, %996 : vector<4x4xf32>
    %999 = arith.addf %989, %998 : vector<4x4xf32>
    %1000 = vector.extract_strided_slice %984 {offsets = [1, 0], sizes = [1, 1], strides = [1, 1]} : vector<3x1xf32> to vector<1x1xf32>
    %1001 = vector.extract_strided_slice %4 {offsets = [0, 11], sizes = [4, 1], strides = [1, 1]} : vector<4x16xf32> to vector<4x1xf32>
    %1002 = vector.broadcast %1000 : vector<1x1xf32> to vector<4x1xf32>
    %1003 = arith.mulf %1002, %1001 : vector<4x1xf32>
    %1004 = arith.addf %993, %1003 : vector<4x1xf32>
    %1005 = vector.extract_strided_slice %984 {offsets = [2, 0], sizes = [1, 1], strides = [1, 1]} : vector<3x1xf32> to vector<1x1xf32>
    %1006 = vector.extract_strided_slice %5 {offsets = [6, 0, 0], sizes = [1, 4, 4], strides = [1, 1, 1]} : vector<10x4x4xf32> to vector<1x4x4xf32>
    %1007 = vector.shape_cast %1006 : vector<1x4x4xf32> to vector<4x4xf32>
    %1008 = vector.broadcast %1005 : vector<1x1xf32> to vector<4x4xf32>
    %1009 = arith.mulf %1008, %1007 : vector<4x4xf32>
    %1010 = arith.addf %999, %1009 : vector<4x4xf32>
    %1011 = vector.extract_strided_slice %984 {offsets = [2, 0], sizes = [1, 1], strides = [1, 1]} : vector<3x1xf32> to vector<1x1xf32>
    %1012 = vector.extract_strided_slice %4 {offsets = [0, 12], sizes = [4, 1], strides = [1, 1]} : vector<4x16xf32> to vector<4x1xf32>
    %1013 = vector.broadcast %1011 : vector<1x1xf32> to vector<4x1xf32>
    %1014 = arith.mulf %1013, %1012 : vector<4x1xf32>
    %1015 = arith.addf %1004, %1014 : vector<4x1xf32>
    %1016 = vector.extract_strided_slice %1010 {offsets = [0, 0], sizes = [4, 1], strides = [1, 1]} : vector<4x4xf32> to vector<4x1xf32>
    %1017 = vector.extract_strided_slice %663 {offsets = [0, 0], sizes = [1, 320], strides = [1, 1]} : vector<4x320xf32> to vector<1x320xf32>
    %1018 = vector.broadcast %1016 : vector<4x1xf32> to vector<4x320xf32>
    %1019 = vector.broadcast %1017 : vector<1x320xf32> to vector<4x320xf32>
    %1020 = arith.mulf %1018, %1019 : vector<4x320xf32>
    %1021 = vector.extract_strided_slice %1010 {offsets = [0, 1], sizes = [4, 1], strides = [1, 1]} : vector<4x4xf32> to vector<4x1xf32>
    %1022 = vector.extract_strided_slice %663 {offsets = [1, 0], sizes = [1, 320], strides = [1, 1]} : vector<4x320xf32> to vector<1x320xf32>
    %1023 = vector.broadcast %1021 : vector<4x1xf32> to vector<4x320xf32>
    %1024 = vector.broadcast %1022 : vector<1x320xf32> to vector<4x320xf32>
    %1025 = arith.mulf %1023, %1024 : vector<4x320xf32>
    %1026 = arith.addf %1020, %1025 : vector<4x320xf32>
    %1027 = vector.extract_strided_slice %1010 {offsets = [0, 2], sizes = [4, 1], strides = [1, 1]} : vector<4x4xf32> to vector<4x1xf32>
    %1028 = vector.extract_strided_slice %663 {offsets = [2, 0], sizes = [1, 320], strides = [1, 1]} : vector<4x320xf32> to vector<1x320xf32>
    %1029 = vector.broadcast %1027 : vector<4x1xf32> to vector<4x320xf32>
    %1030 = vector.broadcast %1028 : vector<1x320xf32> to vector<4x320xf32>
    %1031 = arith.mulf %1029, %1030 : vector<4x320xf32>
    %1032 = arith.addf %1026, %1031 : vector<4x320xf32>
    %1033 = vector.extract_strided_slice %1010 {offsets = [0, 3], sizes = [4, 1], strides = [1, 1]} : vector<4x4xf32> to vector<4x1xf32>
    %1034 = vector.extract_strided_slice %663 {offsets = [3, 0], sizes = [1, 320], strides = [1, 1]} : vector<4x320xf32> to vector<1x320xf32>
    %1035 = vector.broadcast %1033 : vector<4x1xf32> to vector<4x320xf32>
    %1036 = vector.broadcast %1034 : vector<1x320xf32> to vector<4x320xf32>
    %1037 = arith.mulf %1035, %1036 : vector<4x320xf32>
    %1038 = arith.addf %1032, %1037 : vector<4x320xf32>
    %1039 = vector.broadcast %1015 : vector<4x1xf32> to vector<4x320xf32>
    %1040 = arith.addf %1038, %1039 : vector<4x320xf32>
    %1041 = arith.addf %1, %1040 : vector<4x320xf32>
    %c0_225 = arith.constant 0 : index
    %c0_226 = arith.constant 0 : index
    %c0_227 = arith.constant 0 : index
    %1042 = vector.load %arg6[%c0_225, %c0_226, %c0_227] : memref<1x4x320xf32, #tpu.memory_space<vmem>>, vector<1x4x320xf32>
    %1043 = vector.shape_cast %1042 : vector<1x4x320xf32> to vector<4x320xf32>
    %1044 = vector.shape_cast %1041 : vector<4x320xf32> to vector<1x4x320xf32>
    tpu.vector_store %arg6[%c0_225, %c0_226, %c0_227], %1044 {strides = array<i32>} : memref<1x4x320xf32, #tpu.memory_space<vmem>>, vector<1x4x320xf32>,
    %1045 = vector.extract_strided_slice %6 {offsets = [1, 0, 0], sizes = [1, 3, 9], strides = [1, 1, 1]} : vector<2x3x9xf32> to vector<1x3x9xf32>
    %1046 = vector.shape_cast %1045 : vector<1x3x9xf32> to vector<3x9xf32>
    %1047 = vector.extract_strided_slice %1046 {offsets = [0, 0], sizes = [3, 4], strides = [1, 1]} : vector<3x9xf32> to vector<3x4xf32>
    %1048 = vector.extract_strided_slice %1046 {offsets = [0, 4], sizes = [3, 3], strides = [1, 1]} : vector<3x9xf32> to vector<3x3xf32>
    %1049 = vector.extract_strided_slice %1046 {offsets = [0, 7], sizes = [3, 1], strides = [1, 1]} : vector<3x9xf32> to vector<3x1xf32>
    %1050 = vector.extract_strided_slice %1046 {offsets = [0, 8], sizes = [3, 1], strides = [1, 1]} : vector<3x9xf32> to vector<3x1xf32>
    %cst_228 = arith.constant dense<0.000000e+00> : vector<4xf32>
    %1051 = vector.multi_reduction <add>, %3, %cst_228 [1] : vector<4x320xf32> to vector<4xf32>
    %1052 = vector.shape_cast %1051 : vector<4xf32> to vector<4x1xf32>
    %cst_229 = arith.constant 3.200000e+02 : f32
    %1053 = vector.broadcast %cst_229 : f32 to vector<4x1xf32>
    %1054 = arith.divf %1052, %1053 : vector<4x1xf32>
    %1055 = vector.extract_strided_slice %1047 {offsets = [0, 0], sizes = [3, 1], strides = [1, 1]} : vector<3x4xf32> to vector<3x1xf32>
    %1056 = vector.extract_strided_slice %1054 {offsets = [0, 0], sizes = [1, 1], strides = [1, 1]} : vector<4x1xf32> to vector<1x1xf32>
    %1057 = vector.broadcast %1056 : vector<1x1xf32> to vector<3x1xf32>
    %1058 = arith.mulf %1055, %1057 : vector<3x1xf32>
    %1059 = vector.extract_strided_slice %1047 {offsets = [0, 1], sizes = [3, 1], strides = [1, 1]} : vector<3x4xf32> to vector<3x1xf32>
    %1060 = vector.extract_strided_slice %1054 {offsets = [1, 0], sizes = [1, 1], strides = [1, 1]} : vector<4x1xf32> to vector<1x1xf32>
    %1061 = vector.broadcast %1060 : vector<1x1xf32> to vector<3x1xf32>
    %1062 = arith.mulf %1059, %1061 : vector<3x1xf32>
    %1063 = arith.addf %1058, %1062 : vector<3x1xf32>
    %1064 = vector.extract_strided_slice %1047 {offsets = [0, 2], sizes = [3, 1], strides = [1, 1]} : vector<3x4xf32> to vector<3x1xf32>
    %1065 = vector.extract_strided_slice %1054 {offsets = [2, 0], sizes = [1, 1], strides = [1, 1]} : vector<4x1xf32> to vector<1x1xf32>
    %1066 = vector.broadcast %1065 : vector<1x1xf32> to vector<3x1xf32>
    %1067 = arith.mulf %1064, %1066 : vector<3x1xf32>
    %1068 = arith.addf %1063, %1067 : vector<3x1xf32>
    %1069 = vector.extract_strided_slice %1047 {offsets = [0, 3], sizes = [3, 1], strides = [1, 1]} : vector<3x4xf32> to vector<3x1xf32>
    %1070 = vector.extract_strided_slice %1054 {offsets = [3, 0], sizes = [1, 1], strides = [1, 1]} : vector<4x1xf32> to vector<1x1xf32>
    %1071 = vector.broadcast %1070 : vector<1x1xf32> to vector<3x1xf32>
    %1072 = arith.mulf %1069, %1071 : vector<3x1xf32>
    %1073 = arith.addf %1068, %1072 : vector<3x1xf32>
    %1074 = arith.addf %1073, %1049 : vector<3x1xf32>
    %cst_230 = arith.constant 0.000000e+00 : f32
    %1075 = vector.broadcast %cst_230 : f32 to vector<3x1xf32>
    %1076 = arith.maximumf %1074, %1075 : vector<3x1xf32>
    %1077 = vector.extract_strided_slice %1048 {offsets = [0, 0], sizes = [3, 1], strides = [1, 1]} : vector<3x3xf32> to vector<3x1xf32>
    %1078 = vector.extract_strided_slice %1076 {offsets = [0, 0], sizes = [1, 1], strides = [1, 1]} : vector<3x1xf32> to vector<1x1xf32>
    %1079 = vector.broadcast %1078 : vector<1x1xf32> to vector<3x1xf32>
    %1080 = arith.mulf %1077, %1079 : vector<3x1xf32>
    %1081 = vector.extract_strided_slice %1048 {offsets = [0, 1], sizes = [3, 1], strides = [1, 1]} : vector<3x3xf32> to vector<3x1xf32>
    %1082 = vector.extract_strided_slice %1076 {offsets = [1, 0], sizes = [1, 1], strides = [1, 1]} : vector<3x1xf32> to vector<1x1xf32>
    %1083 = vector.broadcast %1082 : vector<1x1xf32> to vector<3x1xf32>
    %1084 = arith.mulf %1081, %1083 : vector<3x1xf32>
    %1085 = arith.addf %1080, %1084 : vector<3x1xf32>
    %1086 = vector.extract_strided_slice %1048 {offsets = [0, 2], sizes = [3, 1], strides = [1, 1]} : vector<3x3xf32> to vector<3x1xf32>
    %1087 = vector.extract_strided_slice %1076 {offsets = [2, 0], sizes = [1, 1], strides = [1, 1]} : vector<3x1xf32> to vector<1x1xf32>
    %1088 = vector.broadcast %1087 : vector<1x1xf32> to vector<3x1xf32>
    %1089 = arith.mulf %1086, %1088 : vector<3x1xf32>
    %1090 = arith.addf %1085, %1089 : vector<3x1xf32>
    %1091 = arith.addf %1090, %1050 : vector<3x1xf32>
    %cst_231 = arith.constant dense<0xFF800000> : vector<1xf32>
    %1092 = vector.multi_reduction <maximumf>, %1091, %cst_231 [0] : vector<3x1xf32> to vector<1xf32>
    %1093 = vector.shape_cast %1092 : vector<1xf32> to vector<1x1xf32>
    %1094 = vector.broadcast %1093 : vector<1x1xf32> to vector<3x1xf32>
    %1095 = arith.subf %1091, %1094 : vector<3x1xf32>
    %1096 = math.exp %1095 : vector<3x1xf32>
    %cst_232 = arith.constant dense<0.000000e+00> : vector<1xf32>
    %1097 = vector.multi_reduction <add>, %1096, %cst_232 [0] : vector<3x1xf32> to vector<1xf32>
    %1098 = vector.shape_cast %1097 : vector<1xf32> to vector<1x1xf32>
    %1099 = vector.broadcast %1098 : vector<1x1xf32> to vector<3x1xf32>
    %1100 = arith.divf %1096, %1099 : vector<3x1xf32>
    %1101 = vector.extract_strided_slice %1100 {offsets = [0, 0], sizes = [1, 1], strides = [1, 1]} : vector<3x1xf32> to vector<1x1xf32>
    %1102 = vector.extract_strided_slice %5 {offsets = [7, 0, 0], sizes = [1, 4, 4], strides = [1, 1, 1]} : vector<10x4x4xf32> to vector<1x4x4xf32>
    %1103 = vector.shape_cast %1102 : vector<1x4x4xf32> to vector<4x4xf32>
    %1104 = vector.broadcast %1101 : vector<1x1xf32> to vector<4x4xf32>
    %1105 = arith.mulf %1104, %1103 : vector<4x4xf32>
    %1106 = vector.extract_strided_slice %1100 {offsets = [0, 0], sizes = [1, 1], strides = [1, 1]} : vector<3x1xf32> to vector<1x1xf32>
    %1107 = vector.extract_strided_slice %4 {offsets = [0, 13], sizes = [4, 1], strides = [1, 1]} : vector<4x16xf32> to vector<4x1xf32>
    %1108 = vector.broadcast %1106 : vector<1x1xf32> to vector<4x1xf32>
    %1109 = arith.mulf %1108, %1107 : vector<4x1xf32>
    %1110 = vector.extract_strided_slice %1100 {offsets = [1, 0], sizes = [1, 1], strides = [1, 1]} : vector<3x1xf32> to vector<1x1xf32>
    %1111 = vector.extract_strided_slice %5 {offsets = [8, 0, 0], sizes = [1, 4, 4], strides = [1, 1, 1]} : vector<10x4x4xf32> to vector<1x4x4xf32>
    %1112 = vector.shape_cast %1111 : vector<1x4x4xf32> to vector<4x4xf32>
    %1113 = vector.broadcast %1110 : vector<1x1xf32> to vector<4x4xf32>
    %1114 = arith.mulf %1113, %1112 : vector<4x4xf32>
    %1115 = arith.addf %1105, %1114 : vector<4x4xf32>
    %1116 = vector.extract_strided_slice %1100 {offsets = [1, 0], sizes = [1, 1], strides = [1, 1]} : vector<3x1xf32> to vector<1x1xf32>
    %1117 = vector.extract_strided_slice %4 {offsets = [0, 14], sizes = [4, 1], strides = [1, 1]} : vector<4x16xf32> to vector<4x1xf32>
    %1118 = vector.broadcast %1116 : vector<1x1xf32> to vector<4x1xf32>
    %1119 = arith.mulf %1118, %1117 : vector<4x1xf32>
    %1120 = arith.addf %1109, %1119 : vector<4x1xf32>
    %1121 = vector.extract_strided_slice %1100 {offsets = [2, 0], sizes = [1, 1], strides = [1, 1]} : vector<3x1xf32> to vector<1x1xf32>
    %1122 = vector.extract_strided_slice %5 {offsets = [9, 0, 0], sizes = [1, 4, 4], strides = [1, 1, 1]} : vector<10x4x4xf32> to vector<1x4x4xf32>
    %1123 = vector.shape_cast %1122 : vector<1x4x4xf32> to vector<4x4xf32>
    %1124 = vector.broadcast %1121 : vector<1x1xf32> to vector<4x4xf32>
    %1125 = arith.mulf %1124, %1123 : vector<4x4xf32>
    %1126 = arith.addf %1115, %1125 : vector<4x4xf32>
    %1127 = vector.extract_strided_slice %1100 {offsets = [2, 0], sizes = [1, 1], strides = [1, 1]} : vector<3x1xf32> to vector<1x1xf32>
    %1128 = vector.extract_strided_slice %4 {offsets = [0, 15], sizes = [4, 1], strides = [1, 1]} : vector<4x16xf32> to vector<4x1xf32>
    %1129 = vector.broadcast %1127 : vector<1x1xf32> to vector<4x1xf32>
    %1130 = arith.mulf %1129, %1128 : vector<4x1xf32>
    %1131 = arith.addf %1120, %1130 : vector<4x1xf32>
    %1132 = vector.extract_strided_slice %1126 {offsets = [0, 0], sizes = [4, 1], strides = [1, 1]} : vector<4x4xf32> to vector<4x1xf32>
    %1133 = vector.extract_strided_slice %928 {offsets = [0, 0], sizes = [1, 320], strides = [1, 1]} : vector<4x320xf32> to vector<1x320xf32>
    %1134 = vector.broadcast %1132 : vector<4x1xf32> to vector<4x320xf32>
    %1135 = vector.broadcast %1133 : vector<1x320xf32> to vector<4x320xf32>
    %1136 = arith.mulf %1134, %1135 : vector<4x320xf32>
    %1137 = vector.extract_strided_slice %1126 {offsets = [0, 1], sizes = [4, 1], strides = [1, 1]} : vector<4x4xf32> to vector<4x1xf32>
    %1138 = vector.extract_strided_slice %928 {offsets = [1, 0], sizes = [1, 320], strides = [1, 1]} : vector<4x320xf32> to vector<1x320xf32>
    %1139 = vector.broadcast %1137 : vector<4x1xf32> to vector<4x320xf32>
    %1140 = vector.broadcast %1138 : vector<1x320xf32> to vector<4x320xf32>
    %1141 = arith.mulf %1139, %1140 : vector<4x320xf32>
    %1142 = arith.addf %1136, %1141 : vector<4x320xf32>
    %1143 = vector.extract_strided_slice %1126 {offsets = [0, 2], sizes = [4, 1], strides = [1, 1]} : vector<4x4xf32> to vector<4x1xf32>
    %1144 = vector.extract_strided_slice %928 {offsets = [2, 0], sizes = [1, 320], strides = [1, 1]} : vector<4x320xf32> to vector<1x320xf32>
    %1145 = vector.broadcast %1143 : vector<4x1xf32> to vector<4x320xf32>
    %1146 = vector.broadcast %1144 : vector<1x320xf32> to vector<4x320xf32>
    %1147 = arith.mulf %1145, %1146 : vector<4x320xf32>
    %1148 = arith.addf %1142, %1147 : vector<4x320xf32>
    %1149 = vector.extract_strided_slice %1126 {offsets = [0, 3], sizes = [4, 1], strides = [1, 1]} : vector<4x4xf32> to vector<4x1xf32>
    %1150 = vector.extract_strided_slice %928 {offsets = [3, 0], sizes = [1, 320], strides = [1, 1]} : vector<4x320xf32> to vector<1x320xf32>
    %1151 = vector.broadcast %1149 : vector<4x1xf32> to vector<4x320xf32>
    %1152 = vector.broadcast %1150 : vector<1x320xf32> to vector<4x320xf32>
    %1153 = arith.mulf %1151, %1152 : vector<4x320xf32>
    %1154 = arith.addf %1148, %1153 : vector<4x320xf32>
    %1155 = vector.broadcast %1131 : vector<4x1xf32> to vector<4x320xf32>
    %1156 = arith.addf %1154, %1155 : vector<4x320xf32>
    %1157 = arith.addf %3, %1156 : vector<4x320xf32>
    %c0_233 = arith.constant 0 : index
    %c0_234 = arith.constant 0 : index
    %c0_235 = arith.constant 0 : index
    %1158 = vector.load %arg7[%c0_233, %c0_234, %c0_235] : memref<1x4x320xf32, #tpu.memory_space<vmem>>, vector<1x4x320xf32>
    %1159 = vector.shape_cast %1158 : vector<1x4x320xf32> to vector<4x320xf32>
    %1160 = vector.shape_cast %1157 : vector<4x320xf32> to vector<1x4x320xf32>
    tpu.vector_store %arg7[%c0_233, %c0_234, %c0_235], %1160 {strides = array<i32>} : memref<1x4x320xf32, #tpu.memory_space<vmem>>, vector<1x4x320xf32>,
    return
  }
  func.func @transform_0(%arg0: i32) -> (i32, i32, i32) {
    %c0_i32 = arith.constant 0 : i32
    %c0_i32_0 = arith.constant 0 : i32
    %c0_i32_1 = arith.constant 0 : i32
    return %arg0, %c0_i32, %c0_i32_0 : i32, i32, i32
  }
  func.func @transform_1(%arg0: i32) -> (i32, i32, i32) {
    %c0_i32 = arith.constant 0 : i32
    %c0_i32_0 = arith.constant 0 : i32
    %c0_i32_1 = arith.constant 0 : i32
    return %arg0, %c0_i32, %c0_i32_0 : i32, i32, i32
  }
  func.func @transform_2(%arg0: i32) -> (i32, i32) {
    %c0_i32 = arith.constant 0 : i32
    %c0_i32_0 = arith.constant 0 : i32
    %c0_i32_1 = arith.constant 0 : i32
    return %c0_i32, %c0_i32_0 : i32, i32
  }
  func.func @transform_3(%arg0: i32) -> (i32, i32, i32) {
    %c0_i32 = arith.constant 0 : i32
    %c0_i32_0 = arith.constant 0 : i32
    %c0_i32_1 = arith.constant 0 : i32
    %c0_i32_2 = arith.constant 0 : i32
    return %c0_i32, %c0_i32_0, %c0_i32_1 : i32, i32, i32
  }
  func.func @transform_4(%arg0: i32) -> (i32, i32, i32) {
    %c0_i32 = arith.constant 0 : i32
    %c0_i32_0 = arith.constant 0 : i32
    %c0_i32_1 = arith.constant 0 : i32
    %c0_i32_2 = arith.constant 0 : i32
    return %c0_i32, %c0_i32_0, %c0_i32_1 : i32, i32, i32
  }
  func.func @transform_5(%arg0: i32) -> (i32, i32, i32) {
    %c0_i32 = arith.constant 0 : i32
    %c0_i32_0 = arith.constant 0 : i32
    %c0_i32_1 = arith.constant 0 : i32
    return %arg0, %c0_i32, %c0_i32_0 : i32, i32, i32
  }
  func.func @transform_6(%arg0: i32) -> (i32, i32, i32) {
    %c0_i32 = arith.constant 0 : i32
    %c0_i32_0 = arith.constant 0 : i32
    %c0_i32_1 = arith.constant 0 : i32
    return %arg0, %c0_i32, %c0_i32_0 : i32, i32, i32
  }
}

</mosaic_0001>

<bundles_post_ra>
// kernel: scam_forward.1
= control target key start
LH: loop header
LB: loop body
LE: loop exit
PB: predicated region body
PF: predicated region fallthrough
CT: control target
= control target key end

     0   :  { %s5340_s21 = smov 0   ;;  %s9059_s0 = inlined_call_operand.vmem [shape: f32[2,4,320], index: 0, kind: input, shape index: {}]   ;;  %s9060_s1 = inlined_call_operand.vmem [shape: f32[2,4,320], index: 1, kind: input, shape index: {}]   ;;  %s9061_s2 = inlined_call_operand.vmem [shape: f32[4,16], index: 2, kind: input, shape index: {}]   ;;  %s9062_s3 = inlined_call_operand.vmem [shape: f32[10,4,4], index: 3, kind: input, shape index: {}]   ;;  %s9063_s4 = inlined_call_operand.vmem [shape: f32[2,3,9], index: 4, kind: input, shape index: {}]   ;;  %s9064_s5 = inlined_call_operand.vmem [shape: f32[2,4,320], index: 5, kind: output, shape index: {0}]   ;;  %s9065_s6 = inlined_call_operand.vmem [shape: f32[2,4,320], index: 6, kind: output, shape index: {1}]  }
   0x1 LB: > { %s5084_s22 = sadd.s32 4294967295, %s5268_s21   ;;  %p5088_p0 = scmp.ge.s32.totalorder %s5268_s21, 1  ;;  %s5268_s21 = sphi %s5340_s21, %s17_s21  }
   0x2   : > { %p225_p1 = scmp.lt.s32.totalorder %s5268_s21, 3 }
   0x4   : > { %p226_p2 = pnand %p5088_p0, %p225_p1 }
   0x6   : > { %229 = sbr.rel (%p226_p2) target bundleno = 1421 (0x58d), region = 40 }
   0xd   : > { %v5351_v0 = vld [vmem:[%s9062_s3] sm:$0xf]  ;;  %v9071_v2 = vmov 1   ;;  %v9073_v3 = vmov 0   ;;  %v5365_v4 = vld [vmem:[%s9062_s3 + $0x4] sm:$0xf] }
   0xe   : > { %v5356_v1 = vld [vmem:[%s9061_s2] sm:$0xf]  ;;  %5151 = vset.pattern.permute.xlu0 %v9071_v2  ;;  %5152 = vset.pattern.permute.xlu1 %v9073_v3  ;;  %p265_p3 = scmp.lt.s32.totalorder %s5084_s22, 1  ;;  %vm9113_vm0 = vcmask 1043456   ;;  %v5272_v5 = vmov 5   ;;  %v9068_v7 = vmov 2  }
   0xf   : > { %409 = vperm.xlu1 %5152, %v5351_v0   ;;  %395 = vperm.xlu0 %5151, %v5356_v1   ;;  %v292_v11 = vld [vmem:[%s9062_s3 + $0x8] sm:$0xf]  ;;  %v9066_v17 = vmov 4   ;;  %v293_v28 = vld [vmem:[%s9062_s3 + $0xc] sm:$0xf]  ;;  %v9069_v42 = vmov 3  }
  0x10   : > { %s10222_s22 = smov (!%p265_p3, %s5084_s22), 1  ;;  %v5276_v49 = vmov 6   ;;  %vm9102_vm1 = vcmask 519168   ;;  %v5277_v58 = vmov 7   ;;  %s5279_s16 = smov 10   ;;  %vm9104_vm2 = vcmask 80896  }
  0x11   : > { %s5370_s29 = smul.u32 12, %s10222_s22  ;;  %s5280_s19 = smov 127   ;;  %vm9103_vm3 = vcmask 605184   ;;  %vm9105_vm4 = vcmask 1031168   ;;  %vm9107_vm5 = vcmask 1039360   ;;  %vm9106_vm10 = vcmask 1022976  }
  0x12   : > { %s5281_s20 = smov 126   ;;  %s5282_s22 = smov 125  }
  0x13   : > { %5153 = vset.pattern.permute.xlu1 %v9071_v2  ;;  %701 = vperm.xlu0 %5151, %v5365_v4   ;;  %s5376_s8 = scalar_lea.vmem %s9059_s0, %s5370_s29  ;;  %s5385_s11 = scalar_lea.vmem %s9060_s1, %s5370_s29 }
  0x14   : > { %445 = vperm.xlu1 %5153, %v5351_v0   ;;  %v5379_v6 = vld [vmem:[%s5376_s8] sm:$0xff]  ;;  %v5442_v50 = vld [vmem:[%s5376_s8 + $0x8] sm:$0xf]  ;;  %s9090_s23 = smov 124   ;;  %s9088_s24 = smov 123  }
  0x15   : > { %v304_v8 = vcombine.high %v5379_v6, %v5379_v6  ;;  %v5393_v9 = vsel %vm9113_vm0, %v5379_v6, 0.0  ;;  %v5404_v13 = vld [vmem:[%s5385_s11] sm:$0xff]  ;;  %9304 = vst [vmem:[#allocation2_spill] sm:$0xff] %v5442_v50  ;;  %v322_v51 = vsel %vm9102_vm1, %v5442_v50, 0.0  ;;  %v5448_v52 = vld [vmem:[%s5385_s11 + $0x8] sm:$0xf] }
  0x16   : > { %v308_v10 = vrot.slane %v5393_v9, 4  ;;  %v5410_v16 = vsel %vm9113_vm0, %v5404_v13, 0.0  ;;  %v564_v20 = vcombine.high %v5404_v13, %v5404_v13  ;;  %v323_v54 = vrot.slane %v322_v51, 4  ;;  %s5285_s25 = smov 122   ;;  %s5286_s26 = smov 121  }
  0x17   : > { %5160 = vset.pattern.permute.xlu0 %v5272_v5  ;;  %v5401_v12 = vsel %vm9113_vm0, %v304_v8, 0.0  ;;  %v567_v21 = vrot.slane %v5410_v16, 4  ;;  %v580_v55 = vsel %vm9102_vm1, %v5448_v52, 0.0  ;;  %s5287_s27 = smov 120   ;;  %s5288_s28 = smov 119  }
  0x18   : > { %5154 = vset.pattern.permute.xlu1 %v9068_v7  ;;  %812 = vperm.xlu0 %5160, %v5356_v1   ;;  %v309_v14 = vadd.f32 %v308_v10, %v5393_v9  ;;  %v315_v15 = vrot.slane %v5401_v12, 4  ;;  %v573_v27 = vsel %vm9113_vm0, %v564_v20, 0.0  ;;  %v324_v57 = vadd.f32 %v323_v54, %v322_v51  ;;  %s5289_s30 = smov 118   ;;  %s5290_s7 = smov 117  }
  0x19   : > { %482 = vperm.xlu1 %5154, %v5351_v0   ;;  %v568_v26 = vadd.f32 %v567_v21, %v5410_v16  ;;  %v574_v31 = vrot.slane %v573_v27, 4  ;;  %v4727_v53 = vadd.f32 %v573_v27, %v5410_v16  ;;  %v581_v5 = vrot.slane %v580_v55, 4  ;;  %s5291_s9 = smov 116   ;;  %s5292_s10 = smov 115  }
  0x1a   : > { %v310_v18 = vrot.slane %v309_v14, 2  ;;  %v316_v19 = vadd.f32 %v315_v15, %v5401_v12  ;;  %v325_v59 = vrot.slane %v324_v57, 2  ;;  %v4468_v21 = vadd.f32 %v5401_v12, %v5393_v9  ;;  %s5293_s12 = smov 114   ;;  %s5294_s13 = smov 113  }
  0x1b   : > { %v569_v32 = vrot.slane %v568_v26, 2  ;;  %v575_v35 = vadd.f32 %v574_v31, %v573_v27  ;;  %v4728_v56 = vadd.f32 %v4727_v53, %v580_v55  ;;  %s5295_s14 = smov 112   ;;  %s9251_s15 = smov 111  }
  0x1c   : > { %5163 = vset.pattern.permute.xlu0 %v9068_v7  ;;  %v311_v22 = vadd.f32 %v310_v18, %v309_v14  ;;  %v317_v23 = vrot.slane %v316_v19, 2  ;;  %v326_v60 = vadd.f32 %v325_v59, %v324_v57  ;;  %s9249_s17 = smov 110   ;;  %s9247_s18 = smov 109  }
  0x1d   : > { %5155 = vset.pattern.permute.xlu1 %v9066_v17  ;;  %891 = vperm.xlu0 %5163, %v292_v11   ;;  %v570_v36 = vadd.f32 %v569_v32, %v568_v26  ;;  %v576_v38 = vrot.slane %v575_v35, 2  ;;  %v4469_v26 = vadd.f32 %v4468_v21, %v322_v51  ;;  %v9075_v21 = vlaneseq }
  0x1e   : > { %556 = vperm.xlu1 %5155, %v5356_v1   ;;  %v312_v24 = vrot.slane %v311_v22, 1  ;;  %v318_v25 = vadd.f32 %v317_v23, %v316_v19  ;;  %v327_v61 = vrot.slane %v326_v60, 1 }
  0x1f   : > { %v571_v39 = vrot.slane %v570_v36, 1  ;;  %v577_v41 = vadd.f32 %v576_v38, %v575_v35 }
  0x20   : > { %v313_v29 = vadd.f32 %v312_v24, %v311_v22  ;;  %v319_v30 = vrot.slane %v318_v25, 1  ;;  %v328_v62 = vadd.f32 %v327_v61, %v326_v60 }
  0x21   : > { %5164 = vset.pattern.permute.xlu0 %v9073_v3  ;;  %v572_v43 = vadd.f32 %v571_v39, %v570_v36  ;;  %v578_v44 = vrot.slane %v577_v41, 1 }
  0x22   : > { %5156 = vset.pattern.permute.xlu1 %v9068_v7  ;;  %382 = vperm.xlu0 %5164, %v5356_v1   ;;  %v320_v33 = vadd.f32 %v319_v30, %v318_v25  ;;  %v330_v34 = vmul.f32 0.25, %v313_v29 }
  0x23   : > { %638 = vperm.xlu1 %5156, %v5356_v1   ;;  %v579_v45 = vadd.f32 %v578_v44, %v577_v41  ;;  %v587_v46 = vmul.f32 0.25, %v572_v43 }
  0x24   : > { %v331_v37 = vmul.f32 0.25, %v320_v33 }
  0x25   : > { %v588_v47 = vmul.f32 0.25, %v579_v45 }
  0x26   : > { %973 = vperm.xlu0 %5164, %v293_v28   ;;  %v335_v40 = vcombine.low %v330_v34, %v331_v37 }
  0x27   : > { %5157 = vset.pattern.permute.xlu1 %v9073_v3  ;;  %v592_v48 = vcombine.low %v587_v46, %v588_v47 }
  0x28   : > { %665 = vperm.xlu1 %5157, %v5365_v4   ;;  %v5456_v63 = vsub.f32 %v5379_v6, %v335_v40 }
  0x29   : > { %v5471_v27 = vsub.f32 %v5404_v13, %v592_v48 }
  0x2a   : > { %5167 = vset.pattern.permute.xlu0 %v9069_v42 }
  0x2b   : > { %519 = vperm.xlu0 %5167, %v5351_v0   ;;  %v332_v0 = vmul.f32 0.25, %v328_v62  ;;  %v596_v32 = vmul.f32 %v5471_v27, %v5471_v27 }
  0x2c   : > { %5158 = vset.pattern.permute.xlu1 %v9068_v7 }
  0x2d   : > { %738 = vperm.xlu1 %5158, %v5365_v4   ;;  %v5461_v8 = vsub.f32 %v5442_v50, %v332_v0  ;;  %v599_v12 = vcombine.high %v596_v32, %v596_v32  ;;  %v601_v40 = vsel %vm9113_vm0, %v596_v32, 0.0 }
  0x2e   : > { %v602_v46 = vrot.slane %v601_v40, 4 }
  0x2f   : > { %651 = vperm.xlu0 %5167, %v5356_v1   ;;  %v608_v41 = vsel %vm9113_vm0, %v599_v12, 0.0 }
  0x30   : > { %v609_v48 = vrot.slane %v608_v41, 4  ;;  %v603_v54 = vadd.f32 %v602_v46, %v601_v40 }
  0x31   : > { %5159 = vset.pattern.permute.xlu1 %v9069_v42 }
  0x32   : > { %775 = vperm.xlu1 %5159, %v5365_v4   ;;  %v339_v4 = vmul.f32 %v5456_v63, %v5456_v63  ;;  %v604_v60 = vrot.slane %v603_v54, 2 }
  0x33   : > { %1081 = vperm.xlu0 %5167, %v293_v28  }
  0x34   : > { %v342_v10 = vcombine.high %v339_v4, %v339_v4  ;;  %v344_v14 = vsel %vm9113_vm0, %v339_v4, 0.0 }
  0x35   : > { %v345_v6 = vrot.slane %v344_v14, 4 }
  0x36   : > { %5161 = vset.pattern.permute.xlu1 %v9073_v3  ;;  %v351_v15 = vsel %vm9113_vm0, %v342_v10, 0.0  ;;  %v605_v10 = vadd.f32 %v604_v60, %v603_v54 }
  0x37   : > { %820 = vperm.xlu1 %5161, %v292_v11   ;;  %v352_v18 = vrot.slane %v351_v15, 4  ;;  %v346_v22 = vadd.f32 %v345_v6, %v344_v14 }
  0x39   : > { %v353_v23 = vadd.f32 %v352_v18, %v351_v15 }
  0x3b   : > { %5162 = vset.pattern.permute.xlu1 %v9071_v2  ;;  %v354_v29 = vrot.slane %v353_v23, 2 }
  0x3c   : > { %854 = vperm.xlu1 %5162, %v292_v11  }
  0x3d   : > { %v355_v34 = vadd.f32 %v354_v29, %v353_v23 }
  0x3f   : > { %v356_v37 = vrot.slane %v355_v34, 1 }
  0x40   : > { %5165 = vset.pattern.permute.xlu1 %v9069_v42 }
  0x41   : > { %928 = vperm.xlu1 %5165, %v292_v11   ;;  %v582_v11 = vadd.f32 %v581_v5, %v580_v55  ;;  %v357_v44 = vadd.f32 %v356_v37, %v355_v34  ;;  %v610_v55 = vadd.f32 %v609_v48, %v608_v41 }
  0x43   : > { %v583_v16 = vrot.slane %v582_v11, 2  ;;  %v366_v53 = vmul.f32 0.25, %v357_v44  ;;  %v611_v62 = vrot.slane %v610_v55, 2 }
  0x45   : > { %5166 = vset.pattern.permute.xlu1 %v5276_v49  ;;  %v584_v20 = vadd.f32 %v583_v16, %v582_v11  ;;  %v369_v59 = vadd.f32 1e-06, %v366_v53  ;;  %v612_v14 = vadd.f32 %v611_v62, %v610_v55  ;;  %v606_v16 = vrot.slane %v605_v10, 1 }
  0x46   : > { %965 = vperm.xlu1 %5166, %v5356_v1  }
  0x47   : > { %v585_v25 = vrot.slane %v584_v20, 1  ;;  %v613_v18 = vrot.slane %v612_v14, 1  ;;  %v607_v23 = vadd.f32 %v606_v16, %v605_v10 }
  0x49   : > { %v586_v31 = vadd.f32 %v585_v25, %v584_v20 }
  0x4a   : > { %5168 = vset.pattern.permute.xlu1 %v9071_v2 }
  0x4b   : > { %1007 = vperm.xlu1 %5168, %v293_v28   ;;  %v589_v9 = vmul.f32 0.25, %v586_v31  ;;  %v388_v31 = vshrl.u32 %v9075_v21, 7 }
  0x4d   : > { %v5476_v39 = vsub.f32 %v5448_v52, %v589_v9 }
  0x4f   : > { %5169 = vset.pattern.permute.xlu1 %v9068_v7  ;;  %v597_v47 = vmul.f32 %v5476_v39, %v5476_v39 }
  0x50   : > { %1044 = vperm.xlu1 %5169, %v293_v28   ;;  %v347_v28 = vrot.slane %v346_v22, 2 }
  0x52   : > { %4729 = vadd.xlane.f32.xlu0 %v4728_v56  ;;  %v348_v33 = vadd.f32 %v347_v28, %v346_v22  ;;  %v615_v56 = vsel %vm9102_vm1, %v597_v47, 0.0  ;;  %v614_v28 = vadd.f32 %v613_v18, %v612_v14 }
  0x53   : > { %v616_v61 = vrot.slane %v615_v56, 4 }
  0x54   : > { %5170 = vset.pattern.permute.xlu1 %v5277_v58  ;;  %v349_v36 = vrot.slane %v348_v33, 1  ;;  %v623_v9 = vmul.f32 0.25, %v614_v28  ;;  %v5528_v28 = vsub.s32 1, %v388_v31 }
  0x55   : > { %1118 = vperm.xlu1 %5170, %v5356_v1   ;;  %v340_v1 = vmul.f32 %v5461_v8, %v5461_v8  ;;  %v617_v11 = vadd.f32 %v616_v61, %v615_v56 }
  0x56   : > { %v350_v43 = vadd.f32 %v349_v36, %v348_v33  ;;  %v622_v33 = vmul.f32 0.25, %v607_v23  ;;  %v626_v44 = vadd.f32 1e-06, %v623_v9  ;;  %v5522_v23 = vsub.s32 3, %v388_v31  ;;  %9317 = vst [vmem:[#allocation15_spill] sm:$0xff] %v5528_v28 }
  0x57   : > { %v358_v19 = vsel %vm9102_vm1, %v340_v1, 0.0  ;;  %v618_v6 = vrot.slane %v617_v11, 2 }
  0x58   : > { %v359_v24 = vrot.slane %v358_v19, 4  ;;  %v365_v49 = vmul.f32 0.25, %v350_v43  ;;  %v625_v40 = vadd.f32 1e-06, %v622_v33  ;;  %9315 = vst [vmem:[#allocation13_spill] sm:$0xff] %v5522_v23  ;;  %v1087_v33 = vrot.slane %v5404_v13, %v5522_v23 }
  0x5a   : > { %v360_v30 = vadd.f32 %v359_v24, %v358_v19  ;;  %v368_v57 = vadd.f32 1e-06, %v365_v49  ;;  %v5278_v19 = vmov 839922192   ;;  %v619_v24 = vadd.f32 %v618_v6, %v617_v11 }
  0x5b   : > { %v385_v20 = vunpack.c.l.s4 %v5278_v19  ;;  %v5518_v19 = vsub.s32 0, %v388_v31 }
  0x5c   : > { %v361_v35 = vrot.slane %v360_v30, 2  ;;  %5184 = vrsqrt.f32 %v368_v57  ;;  %v620_v32 = vrot.slane %v619_v24, 1 }
  0x5d   : > { %5186 = vrsqrt.f32 %v369_v59  ;;  %9313 = vst [vmem:[#allocation11_spill] sm:$0xff] %v5518_v19 }
  0x5e   : > { %v362_v38 = vadd.f32 %v361_v35, %v360_v30  ;;  %v386_v30 = vunpack.c.0.s8 %v385_v20  ;;  %v5520_v20 = vsub.s32 4, %v388_v31 }
  0x60   : > { %v363_v45 = vrot.slane %v362_v38, 1  ;;  %v389_v37 = vsub.s32 %v386_v30, %v388_v31  ;;  %9314 = vst [vmem:[#allocation12_spill] sm:$0xff] %v5520_v20  ;;  %v5532_v30 = vsub.s32 5, %v388_v31 }
  0x62   : > { %v364_v51 = vadd.f32 %v363_v45, %v362_v38  ;;  %v621_v38 = vadd.f32 %v620_v32, %v619_v24  ;;  %9318 = vst [vmem:[#allocation16_spill] sm:$0xff] %v5532_v30  ;;  %v987_v32 = vrot.slane %v5448_v52, %v5518_v19 }
  0x64   : > { %v367_v58 = vmul.f32 0.25, %v364_v51  ;;  %v624_v49 = vmul.f32 0.25, %v621_v38 }
  0x66   : > { %v370_v5 = vadd.f32 1e-06, %v367_v58  ;;  %v5185_v25 = vpop.eup %5184  ;;  %v627_v56 = vadd.f32 1e-06, %v624_v49  ;;  %v1095_v49 = vrot.slane %v5448_v52, %v5522_v23 }
  0x67   : > { %v5187_v29 = vpop.eup %5186 }
  0x68   : > { %5188 = vrsqrt.f32 %v370_v5  ;;  %v376_v35 = vcombine.low %v5185_v25, %v5187_v29  ;;  %v979_v29 = vrot.slane %v5404_v13, %v5518_v19 }
  0x69   : > { %5190 = vrsqrt.f32 %v625_v40 }
  0x6a   : > { %v378_v41 = vmul.f32 %v376_v35, %v5456_v63  ;;  %5192 = vrsqrt.f32 %v626_v44  ;;  %v5540_v35 = vsub.s32 7, %v388_v31  ;;  %v994_v44 = vrot.slane %v979_v29, %v5518_v19 }
  0x6b   : > { %5194 = vrsqrt.f32 %v627_v56  ;;  %v1013_v56 = vrot.slane %v5404_v13, %v5528_v28  ;;  %v1110_v29 = vrot.slane %v1095_v49, %v5522_v23 }
  0x6c   : > { %9319 = vst [vmem:[#allocation17_spill] sm:$0xff] %v5540_v35 }
  0x72   : > { %v5189_v12 = vpop.eup %5188 }
  0x73   : > { %v379_v43 = vmul.f32 %v5189_v12, %v5461_v8  ;;  %v5191_v58 = vpop.eup %5190 }
  0x74   : > { %v5193_v59 = vpop.eup %5192 }
  0x75   : > { %v633_v61 = vcombine.low %v5191_v58, %v5193_v59  ;;  %v5195_v5 = vpop.eup %5194  ;;  %v1017_v58 = vrot.slane %v5404_v13, %v5532_v30 }
  0x76   : > { %v636_v6 = vmul.f32 %v5195_v5, %v5476_v39  ;;  %v983_v39 = vrot.slane %v5404_v13, %v5520_v20 }
  0x77   : > { %v635_v10 = vmul.f32 %v633_v61, %v5471_v27 }
  0x79   : > { %4470 = vadd.xlane.f32.xlu1 %v4469_v26 }
  0x8e   : > { %v5483_v0 = vpop.permute.xlu1 %409  ;;  %v396_v4 = vpop.permute.xlu0 %395 }
  0x8f   : > { %9305 = vst [vmem:[#allocation3_spill] sm:$0xff] %v5483_v0  ;;  %v403_v46 = vrot.slane %v396_v4, %v389_v37 }
  0x92   : > { %v5485_v1 = vpop.permute.xlu0 %701 }
  0x93   : > { %v5487_v15 = vpop.permute.xlu1 %445 }
  0x94   : > { %9306 = vst [vmem:[#allocation4_spill] sm:$0xff] %v5487_v15 }
  0x97   : > { %v5489_v22 = vpop.permute.xlu0 %812 }
  0x98   : > { %v5491_v26 = vpop.permute.xlu1 %482 }
  0x99   : > { %9307 = vst [vmem:[#allocation5_spill] sm:$0xff] %v5491_v26 }
  0x9c   : > { %v5494_v34 = vpop.permute.xlu0 %891 }
  0x9d   : > { %9308 = vst [vmem:[#allocation6_spill] sm:$0xff] %v5494_v34  ;;  %v5496_v36 = vpop.permute.xlu1 %556 }
  0x9e   : > { %9309 = vst [vmem:[#allocation7_spill] sm:$0xff] %v5496_v36 }
  0xa1   : > { %v383_v45 = vpop.permute.xlu0 %382 }
  0xa2   : > { %v390_v47 = vrot.slane %v383_v45, %v389_v37  ;;  %v639_v48 = vpop.permute.xlu1 %638 }
  0xa3   : > { %v646_v11 = vrot.slane %v639_v48, %v389_v37  ;;  %v1002_v48 = vrot.slane %v987_v32, %v5518_v19 }
  0xa4   : > { %v392_v51 = vmul.f32 %v390_v47, %v378_v41  ;;  %v393_v53 = vmul.f32 %v390_v47, %v379_v43  ;;  %v5552_v41 = vsub.s32 2, %v388_v31  ;;  %v5554_v43 = vsub.s32 6, %v388_v31 }
  0xa5   : > { %v5506_v63 = vpop.permute.xlu0 %973  ;;  %v648_v18 = vmul.f32 %v646_v11, %v635_v10  ;;  %v649_v27 = vmul.f32 %v646_v11, %v636_v6  ;;  %v998_v47 = vrot.slane %v983_v39, %v5518_v19  ;;  %v1021_v11 = vrot.slane %v5448_v52, %v5528_v28 }
  0xa6   : > { %v5500_v54 = vadd.f32 %v403_v46, %v392_v51  ;;  %v5502_v55 = vadd.f32 %v403_v46, %v393_v53  ;;  %9320 = vst [vmem:[#allocation18_spill] sm:$0xff] %v5552_v41  ;;  %9321 = vst [vmem:[#allocation19_spill] sm:$0xff] %v5554_v43  ;;  %v1091_v46 = vrot.slane %v5404_v13, %v5540_v35 }
  0xa7   : > { %v5504_v57 = vpop.permute.xlu1 %665  ;;  %v1102_v51 = vrot.slane %v1087_v33, %v5522_v23  ;;  %v1054_v6 = vrot.slane %v5404_v13, %v5554_v43  ;;  %v1058_v32 = vrot.slane %v5448_v52, %v5552_v41  ;;  %v1036_v52 = vrot.slane %v1021_v11, %v5528_v28 }
  0xa8   : > { %9310 = vst [vmem:[#allocation8_spill] sm:$0xff] %v5502_v55  ;;  %v1106_v10 = vrot.slane %v1091_v46, %v5522_v23  ;;  %v1005_v3 = vmul.f32 %v1002_v48, %v5506_v63 }
  0xaa   : > { %v5510_v60 = vpop.permute.xlu0 %519 }
  0xab   : > { %9311 = vst [vmem:[#allocation9_spill] sm:$0xff] %v5510_v60 }
  0xac   : > { %v5508_v8 = vpop.permute.xlu1 %738 }
  0xae   : > { %v652_v4 = vpop.permute.xlu0 %651 }
  0xaf   : > { %v659_v16 = vrot.slane %v652_v4, %v389_v37 }
  0xb1   : > { %v5512_v62 = vpop.permute.xlu1 %775  ;;  %v5524_v24 = vadd.f32 %v659_v16, %v648_v18  ;;  %v5542_v9 = vadd.f32 %v659_v16, %v649_v27  ;;  %v1050_v16 = vrot.slane %v5404_v13, %v5552_v41  ;;  %v1032_v13 = vrot.slane %v1017_v58, %v5528_v28 }
  0xb3   : > { %v673_v12 = vrot.slane %v5524_v24, %v5518_v19  ;;  %v677_v37 = vrot.slane %v5524_v24, %v5520_v20  ;;  %v707_v38 = vrot.slane %v5524_v24, %v5528_v28  ;;  %v711_v40 = vrot.slane %v5524_v24, %v5532_v30 }
  0xb4   : > { %v681_v31 = vrot.slane %v5542_v9, %v5518_v19  ;;  %v715_v53 = vrot.slane %v5542_v9, %v5528_v28  ;;  %v744_v18 = vrot.slane %v5524_v24, %v5552_v41  ;;  %v748_v27 = vrot.slane %v5524_v24, %v5554_v43 }
  0xb5   : > { %v688_v59 = vrot.slane %v673_v12, %v5518_v19  ;;  %v692_v61 = vrot.slane %v677_v37, %v5518_v19  ;;  %v722_v4 = vrot.slane %v707_v38, %v5528_v28  ;;  %v726_v5 = vrot.slane %v711_v40, %v5528_v28 }
  0xb6   : > { %v5515_v14 = vpop.permute.xlu1 %820  ;;  %v696_v33 = vrot.slane %v681_v31, %v5518_v19  ;;  %v730_v12 = vrot.slane %v715_v53, %v5528_v28  ;;  %v1028_v37 = vrot.slane %v1013_v56, %v5528_v28  ;;  %v752_v17 = vrot.slane %v5542_v9, %v5552_v41 }
  0xb7   : > { %9312 = vst [vmem:[#allocation10_spill] sm:$0xff] %v5515_v14  ;;  %v697_v38 = vmul.f32 %v688_v59, %v5504_v57  ;;  %v698_v40 = vmul.f32 %v692_v61, %v5504_v57  ;;  %v731_v46 = vmul.f32 %v722_v4, %v5485_v1  ;;  %v732_v49 = vmul.f32 %v726_v5, %v5485_v1  ;;  %v5910_v14 = vld [vmem:[%s5376_s8] sm:$0xff] }
  0xb8   : > { %v1065_v31 = vrot.slane %v1050_v16, %v5552_v41  ;;  %v1069_v53 = vrot.slane %v1054_v6, %v5552_v41  ;;  %v759_v56 = vrot.slane %v744_v18, %v5552_v41  ;;  %v763_v58 = vrot.slane %v748_v27, %v5552_v41  ;;  %v1082_v27 = vpop.permute.xlu0 %1081  ;;  %9342 = vst [vmem:[#allocation39_spill] sm:$0xff] %v5910_v14 }
  0xb9   : > { %v781_v59 = vrot.slane %v5524_v24, %v5522_v23  ;;  %v1073_v61 = vrot.slane %v1058_v32, %v5552_v41  ;;  %v1003_v4 = vmul.f32 %v994_v44, %v5506_v63  ;;  %v699_v5 = vmul.f32 %v696_v33, %v5504_v57 }
  0xba   : > { %v733_v7 = vmul.f32 %v730_v12, %v5485_v1  ;;  %v785_v11 = vrot.slane %v5524_v24, %v5540_v35  ;;  %v1004_v6 = vmul.f32 %v998_v47, %v5506_v63  ;;  %v734_v18 = vadd.f32 %v731_v46, %v697_v38 }
  0xbb   : > { %v5526_v25 = vpop.permute.xlu1 %854  ;;  %v735_v42 = vadd.f32 %v732_v49, %v698_v40  ;;  %v767_v32 = vrot.slane %v752_v17, %v5552_v41  ;;  %v768_v57 = vmul.f32 %v759_v56, %v5508_v8  ;;  %v769_v1 = vmul.f32 %v763_v58, %v5508_v8 }
  0xbc   : > { %9316 = vst [vmem:[#allocation14_spill] sm:$0xff] %v5526_v25  ;;  %v789_v24 = vrot.slane %v5542_v9, %v5522_v23  ;;  %v796_v33 = vrot.slane %v781_v59, %v5522_v23  ;;  %v736_v47 = vadd.f32 %v733_v7, %v699_v5  ;;  %v800_v12 = vrot.slane %v785_v11, %v5522_v23 }
  0xbd   : > { %v1111_v38 = vmul.f32 %v1102_v51, %v1082_v27  ;;  %v771_v40 = vadd.f32 %v768_v57, %v734_v18  ;;  %v772_v63 = vadd.f32 %v769_v1, %v735_v42  ;;  %v770_v58 = vmul.f32 %v767_v32, %v5508_v8 }
  0xbe   : > { %v804_v9 = vrot.slane %v789_v24, %v5522_v23  ;;  %v805_v59 = vmul.f32 %v796_v33, %v5512_v62  ;;  %v1113_v7 = vmul.f32 %v1110_v29, %v1082_v27  ;;  %v806_v5 = vmul.f32 %v800_v12, %v5512_v62 }
  0xbf   : > { %v773_v42 = vadd.f32 %v770_v58, %v736_v47  ;;  %v901_v25 = vrot.slane %v5910_v14, %v5554_v43 }
  0xc0   : > { %v5557_v45 = vpop.permute.xlu1 %928 }
  0xc1   : > { %9322 = vst [vmem:[#allocation20_spill] sm:$0xff] %v5557_v45 }
  0xc5   : > { %v5590_v39 = vpop.permute.xlu1 %965 }
  0xc6   : > { %9323 = vst [vmem:[#allocation21_spill] sm:$0xff] %v5590_v39 }
  0xca   : > { %v1008_v16 = vpop.permute.xlu1 %1007 }
  0xcb   : > { %v1037_v2 = vmul.f32 %v1028_v37, %v1008_v16  ;;  %v1038_v21 = vmul.f32 %v1032_v13, %v1008_v16  ;;  %v1039_v44 = vmul.f32 %v1036_v52, %v1008_v16  ;;  %v1112_v37 = vmul.f32 %v1106_v10, %v1082_v27 }
  0xcd   : > { %v1040_v48 = vadd.f32 %v1037_v2, %v1003_v4  ;;  %v1041_v17 = vadd.f32 %v1038_v21, %v1004_v6  ;;  %v1042_v46 = vadd.f32 %v1039_v44, %v1005_v3  ;;  %v808_v2 = vadd.f32 %v805_v59, %v771_v40 }
  0xce   : > { %v809_v21 = vadd.f32 %v806_v5, %v772_v63 }
  0xcf   : > { %v1045_v13 = vpop.permute.xlu1 %1044  ;;  %v5632_v29 = vadd.f32 %v5489_v22, %v808_v2 }
  0xd0   : > { %v1074_v49 = vmul.f32 %v1065_v31, %v1045_v13  ;;  %v1075_v52 = vmul.f32 %v1069_v53, %v1045_v13  ;;  %v1076_v56 = vmul.f32 %v1073_v61, %v1045_v13  ;;  %v807_v61 = vmul.f32 %v804_v9, %v5512_v62 }
  0xd1   : > { %9324 = vst [vmem:[#allocation22_spill] sm:$0xff] %v5632_v29  ;;  %v5635_v27 = vadd.f32 %v5489_v22, %v809_v21 }
  0xd2   : > { %v1077_v51 = vadd.f32 %v1074_v49, %v1040_v48  ;;  %v1078_v10 = vadd.f32 %v1075_v52, %v1041_v17  ;;  %v1079_v11 = vadd.f32 %v1076_v56, %v1042_v46  ;;  %v810_v18 = vadd.f32 %v807_v61, %v773_v42 }
  0xd3   : > { %9325 = vst [vmem:[#allocation23_spill] sm:$0xff] %v5635_v27 }
  0xd4   : > { %v1119_v4 = vpop.permute.xlu1 %1118  ;;  %v1114_v3 = vadd.f32 %v1111_v38, %v1077_v51  ;;  %v1115_v31 = vadd.f32 %v1112_v37, %v1078_v10  ;;  %v1116_v53 = vadd.f32 %v1113_v7, %v1079_v11  ;;  %v5644_v62 = vadd.f32 %v5489_v22, %v810_v18  ;;  %v5654_v38 = vld [vmem:[%s9063_s4] sm:$0x7] }
  0xd6   : > { %v1121_v8 = vadd.f32 %v1119_v4, %v1114_v3  ;;  %v1122_v16 = vadd.f32 %v1119_v4, %v1115_v31  ;;  %v1123_v6 = vadd.f32 %v1119_v4, %v1116_v53  ;;  %9326 = vst [vmem:[#allocation24_spill] sm:$0xff] %v5644_v62  ;;  %v9334_v3 = vlaneseq }
  0xd8   : > { %v1433_v32 = vrot.slane %v1122_v16, 4  ;;  %v1432_v44 = vrot.slane %v1121_v8, 4  ;;  %v1434_v24 = vrot.slane %v1123_v6, 4  ;;  %v5816_v31 = vand.u32 127, %v9334_v3 }
  0xd9   : > { %v417_v16 = vrot.slane %v5500_v54, %v5518_v19  ;;  %v451_v6 = vrot.slane %v5500_v54, %v5528_v28 }
  0xda   : > { %v1439_v57 = vsel %vm9113_vm0, %v5635_v27, %v1433_v32  ;;  %v1438_v1 = vsel %vm9113_vm0, %v5632_v29, %v1432_v44  ;;  %v1440_v33 = vsel %vm9113_vm0, %v5644_v62, %v1434_v24  ;;  %9335 = vst [vmem:[#allocation32_spill] sm:$0xff] %v5816_v31  ;;  %v5823_v8 = vadd.s32 128, %v5816_v31 }
  0xdb   : > { %1446 = vrot.lane.b32.xlu0 %v1439_v57, %s5279_s16  ;;  %1444 = vrot.lane.b32.xlu1 %v1438_v1, %s5279_s16  ;;  %v421_v57 = vrot.slane %v5500_v54, %v5520_v20  ;;  %v455_v1 = vrot.slane %v5500_v54, %v5532_v30  ;;  %v9077_v24 = vcvt.s32.f32 %v5816_v31  ;;  %v529_v62 = vrot.slane %v5500_v54, %v5540_v35 }
  0xdc   : > { %v9375_v30 = vmov 0 }
  0xdf   : > { %1448 = vrot.lane.b32.xlu1 %v1440_v33, %s5279_s16  ;;  %v5660_v22 = vpop.xlane.xlu0 %4729  ;;  %v9076_v33 = vcvt.s32.f32 %v5823_v8 }
 0x106   : > { %v4471_v47 = vpop.xlane.xlu1 %4470 }
 0x107   : > { %v5649_v12 = vmul.f32 0.003125, %v4471_v47  ;;  %v432_v47 = vrot.slane %v417_v16, %v5518_v19  ;;  %v492_v16 = vrot.slane %v5500_v54, %v5554_v43 }
 0x109   : > { %v4482_v37 = vrot.slane %v5649_v12, %v5528_v28  ;;  %v507_v45 = vrot.slane %v492_v16, %v5552_v41 }
 0x10b   : > { %v4483_v40 = vmul.f32 %v4482_v37, %v5654_v38  ;;  %v466_v37 = vrot.slane %v451_v6, %v5528_v28  ;;  %v525_v6 = vrot.slane %v5500_v54, %v5522_v23 }
 0x10d   : > { %4485 = vrot.lane.b32.xlu1 %v4483_v40, %s5280_s19  ;;  %v475_v3 = vmul.f32 %v466_v37, %v5487_v15 }
 0x14d   : > { %v1447_v63 = vpop.permute.xlu0 %1446  ;;  %v1445_v48 = vpop.permute.xlu1 %1444 }
 0x14e   : > { %v5663_v17 = vsel %vm9104_vm2, %v1445_v48, %v1447_v63  ;;  %v5666_v13 = vsel %vm9104_vm2, 0.0, %v1445_v48  ;;  %v436_v48 = vrot.slane %v421_v57, %v5518_v19  ;;  %v5874_v57 = vmul.f32 0.003125, %v5660_v22 }
 0x14f   : > { %1460 = vrot.lane.b32.xlu0 %v5666_v13, %s5280_s19  ;;  %1462 = vrot.lane.b32.xlu1 %v5663_v17, %s5280_s19  ;;  %v5765_v56 = vrot.slane %v5666_v13, 4  ;;  %v5773_v9 = vrot.slane %v5663_v17, 4 }
 0x151   : > { %v1449_v46 = vpop.permute.xlu1 %1448  ;;  %9327 = vst [vmem:[#allocation25_spill] sm:$0xff] %v5765_v56  ;;  %9328 = vst [vmem:[#allocation26_spill] sm:$0xff] %v5773_v9 }
 0x152   : > { %v1452_v49 = vsel %vm9104_vm2, %v1447_v63, %v1449_v46  ;;  %v1132_v46 = vmul.f32 0.1, %v9077_v24  ;;  %v4492_v24 = vrot.slane %v5649_v12, %v5552_v41 }
 0x153   : > { %1504 = vrot.lane.b32.xlu0 %v5663_v17, %s5281_s20  ;;  %1502 = vrot.lane.b32.xlu1 %v5666_v13, %s5281_s20  ;;  %v1457_v52 = vsel %vm9103_vm3, %v1452_v49, 0.0  ;;  %v1133_v49 = vmul.f32 0.1, %v9076_v33 }
 0x154   : > { %v5833_v18 = vrot.slane %v1457_v52, 4  ;;  %v1135_v29 = vfloor.f32 %v1132_v46  ;;  %v4740_v46 = vrot.slane %v5874_v57, %v5528_v28 }
 0x155   : > { %v1136_v39 = vfloor.f32 %v1133_v49  ;;  %v4502_v49 = vrot.slane %v5649_v12, %v5522_v23 }
 0x156   : > { %9337 = vst [vmem:[#allocation34_spill] sm:$0xff] %v5833_v18  ;;  %v1138_v16 = vmul.f32 10.0, %v1135_v29 }
 0x157   : > { %1544 = vrot.lane.b32.xlu0 %v5666_v13, %s5282_s22  ;;  %1546 = vrot.lane.b32.xlu1 %v5663_v17, %s5282_s22  ;;  %v4503_v43 = vmul.f32 %v4502_v49, %v5654_v38  ;;  %v5952_v49 = vrot.slane %v901_v25, %v5552_v41  ;;  %v4760_v25 = vrot.slane %v5874_v57, %v5522_v23 }
 0x159   : > { %9348 = vst [vmem:[#allocation43_spill] sm:$0xff] %v5952_v49 }
 0x15b   : > { %1588 = vrot.lane.b32.xlu0 %v5663_v17, %s9090_s23  ;;  %1586 = vrot.lane.b32.xlu1 %v5666_v13, %s9090_s23 }
 0x15f   : > { %1628 = vrot.lane.b32.xlu0 %v5666_v13, %s9088_s24  ;;  %1630 = vrot.lane.b32.xlu1 %v5663_v17, %s9088_s24 }
 0x163   : > { %1672 = vrot.lane.b32.xlu0 %v5663_v17, %s5285_s25  ;;  %1670 = vrot.lane.b32.xlu1 %v5666_v13, %s5285_s25 }
 0x167   : > { %1712 = vrot.lane.b32.xlu0 %v5666_v13, %s5286_s26  ;;  %1714 = vrot.lane.b32.xlu1 %v5663_v17, %s5286_s26 }
 0x16b   : > { %1756 = vrot.lane.b32.xlu0 %v5663_v17, %s5287_s27  ;;  %1754 = vrot.lane.b32.xlu1 %v5666_v13, %s5287_s27 }
 0x16f   : > { %1796 = vrot.lane.b32.xlu0 %v5666_v13, %s5288_s28  ;;  %1798 = vrot.lane.b32.xlu1 %v5663_v17, %s5288_s28 }
 0x173   : > { %1840 = vrot.lane.b32.xlu0 %v5663_v17, %s5289_s30  ;;  %1838 = vrot.lane.b32.xlu1 %v5666_v13, %s5289_s30 }
 0x177   : > { %1880 = vrot.lane.b32.xlu0 %v5666_v13, %s5290_s7  ;;  %1882 = vrot.lane.b32.xlu1 %v5663_v17, %s5290_s7 }
 0x17b   : > { %1924 = vrot.lane.b32.xlu0 %v5663_v17, %s5291_s9  ;;  %1922 = vrot.lane.b32.xlu1 %v5666_v13, %s5291_s9 }
 0x17f   : > { %1964 = vrot.lane.b32.xlu0 %v5666_v13, %s5292_s10  ;;  %1966 = vrot.lane.b32.xlu1 %v5663_v17, %s5292_s10  ;;  %v5767_v58 = vpop.permute.xlu1 %4485 }
 0x183   : > { %2008 = vrot.lane.b32.xlu0 %v5663_v17, %s5293_s12  ;;  %2006 = vrot.lane.b32.xlu1 %v5666_v13, %s5293_s12 }
 0x187   : > { %2048 = vrot.lane.b32.xlu0 %v5666_v13, %s5294_s13  ;;  %2050 = vrot.lane.b32.xlu1 %v5663_v17, %s5294_s13 }
 0x18b   : > { %2092 = vrot.lane.b32.xlu0 %v5663_v17, %s5295_s14  ;;  %2090 = vrot.lane.b32.xlu1 %v5666_v13, %s5295_s14 }
 0x18f   : > { %2132 = vrot.lane.b32.xlu0 %v5666_v13, %s9251_s15  ;;  %2134 = vrot.lane.b32.xlu1 %v5663_v17, %s9251_s15 }
 0x193   : > { %2174 = vrot.lane.b32.xlu0 %v5666_v13, %s9249_s17  ;;  %2176 = vrot.lane.b32.xlu1 %v5663_v17, %s9249_s17 }
 0x197   : > { %2216 = vrot.lane.b32.xlu0 %v5666_v13, %s9247_s18  ;;  %2218 = vrot.lane.b32.xlu1 %v5663_v17, %s9247_s18  ;;  %v470_v17 = vrot.slane %v455_v1, %v5528_v28  ;;  %v488_v13 = vrot.slane %v5500_v54, %v5552_v41  ;;  %v4493_v54 = vmul.f32 %v4492_v24, %v5654_v38 }
 0x198   : > { %v897_v24 = vrot.slane %v5910_v14, %v5552_v41 }
 0x199   : > { %v476_v37 = vmul.f32 %v470_v17, %v5487_v15  ;;  %v503_v27 = vrot.slane %v488_v13, %v5552_v41 }
 0x19b   : > { %1506 = vrot.lane.b32.xlu1 %v1457_v52, %s5281_s20  ;;  %1464 = vrot.lane.b32.xlu0 %v1457_v52, %s5280_s19 }
 0x19f   : > { %1590 = vrot.lane.b32.xlu1 %v1457_v52, %s9090_s23  ;;  %1548 = vrot.lane.b32.xlu0 %v1457_v52, %s5282_s22 }
 0x1a3   : > { %1674 = vrot.lane.b32.xlu1 %v1457_v52, %s5285_s25  ;;  %1632 = vrot.lane.b32.xlu0 %v1457_v52, %s9088_s24 }
 0x1a7   : > { %1758 = vrot.lane.b32.xlu1 %v1457_v52, %s5287_s27  ;;  %1716 = vrot.lane.b32.xlu0 %v1457_v52, %s5286_s26 }
 0x1ab   : > { %1842 = vrot.lane.b32.xlu1 %v1457_v52, %s5289_s30  ;;  %1800 = vrot.lane.b32.xlu0 %v1457_v52, %s5288_s28 }
 0x1af   : > { %1926 = vrot.lane.b32.xlu1 %v1457_v52, %s5291_s9  ;;  %1884 = vrot.lane.b32.xlu0 %v1457_v52, %s5290_s7 }
 0x1b3   : > { %2010 = vrot.lane.b32.xlu1 %v1457_v52, %s5293_s12  ;;  %1968 = vrot.lane.b32.xlu0 %v1457_v52, %s5292_s10 }
 0x1b7   : > { %2094 = vrot.lane.b32.xlu1 %v1457_v52, %s5295_s14  ;;  %2052 = vrot.lane.b32.xlu0 %v1457_v52, %s5294_s13 }
 0x1bb   : > { %2178 = vrot.lane.b32.xlu1 %v1457_v52, %s9249_s17  ;;  %2136 = vrot.lane.b32.xlu0 %v1457_v52, %s9251_s15 }
 0x1bf   : > { %2417 = vrot.lane.b32.xlu1 %v5765_v56, %s5280_s19  ;;  %2220 = vrot.lane.b32.xlu0 %v1457_v52, %s9247_s18  ;;  %v441_v52 = vmul.f32 %v432_v47, %v5483_v0  ;;  %v442_v47 = vmul.f32 %v436_v48, %v5483_v0  ;;  %v540_v48 = vrot.slane %v525_v6, %v5522_v23  ;;  %v1139_v6 = vmul.f32 10.0, %v1136_v39 }
 0x1c0   : > { %v512_v0 = vmul.f32 %v503_v27, %v5491_v26  ;;  %v905_v27 = vrot.slane %v5442_v50, %v5552_v41  ;;  %v826_v39 = vrot.slane %v5910_v14, %v5518_v19 }
 0x1c1   : > { %v5775_v59 = vpop.permute.xlu0 %1460  ;;  %v5777_v7 = vpop.permute.xlu1 %1462  ;;  %v478_v22 = vadd.f32 %v475_v3, %v441_v52  ;;  %v479_v15 = vadd.f32 %v476_v37, %v442_v47  ;;  %v544_v52 = vrot.slane %v529_v62, %v5522_v23  ;;  %v5907_v3 = vld [vmem:[%s9063_s4 + $0x4] sm:$0x7]  ;;  %v513_v62 = vmul.f32 %v507_v45, %v5491_v26 }
 0x1c2   : > { %9329 = vst [vmem:[#allocation27_spill] sm:$0xff] %v5777_v7  ;;  %v549_v47 = vmul.f32 %v540_v48, %v5510_v60  ;;  %v4741_v34 = vmul.f32 %v4740_v46, %v5907_v3  ;;  %v9345_v48 = vcvt.s32.f32 %v5816_v31  ;;  %v9346_v46 = vcvt.s32.f32 %v5823_v8 }
 0x1c3   : > { %2445 = vrot.lane.b32.xlu1 %v5773_v9, %s5281_s20  ;;  %2419 = vrot.lane.b32.xlu0 %v5773_v9, %s5280_s19  ;;  %v515_v29 = vadd.f32 %v512_v0, %v478_v22  ;;  %v550_v45 = vmul.f32 %v544_v52, %v5510_v60  ;;  %v830_v0 = vrot.slane %v5910_v14, %v5520_v20 }
 0x1c4   : > { %v834_v22 = vrot.slane %v5442_v50, %v5518_v19  ;;  %v5940_v26 = vsub.f32 %v9345_v48, %v1138_v16  ;;  %v5955_v52 = vrot.slane %v905_v27, %v5552_v41  ;;  %v860_v16 = vrot.slane %v5910_v14, %v5528_v28 }
 0x1c5   : > { %v5783_v5 = vpop.permute.xlu0 %1504  ;;  %v5785_v51 = vpop.permute.xlu1 %1502  ;;  %v5960_v8 = vrot.slane %v826_v39, %v5518_v19  ;;  %v5970_v27 = vrot.slane %v830_v0, %v5518_v19 }
 0x1c6   : > { %9330 = vst [vmem:[#allocation28_spill] sm:$0xff] %v5783_v5  ;;  %9349 = vst [vmem:[#allocation44_spill] sm:$0xff] %v5955_v52  ;;  %v5973_v48 = vrot.slane %v834_v22, %v5518_v19  ;;  %v1159_v0 = vadd.f32 -8.0, %v5940_v26  ;;  %v1204_v31 = vadd.f32 -5.0, %v5940_v26  ;;  %v1219_v60 = vadd.f32 -4.0, %v5940_v26 }
 0x1c7   : > { %2472 = vrot.lane.b32.xlu1 %v5765_v56, %s5282_s22  ;;  %2443 = vrot.lane.b32.xlu0 %v5765_v56, %s5281_s20  ;;  %9350 = vst [vmem:[#allocation45_spill] sm:$0xff] %v5960_v8  ;;  %9352 = vst [vmem:[#allocation47_spill] sm:$0xff] %v5970_v27  ;;  %v1264_v27 = vadd.f32 -1.0, %v5940_v26 }
 0x1c8   : > { %9353 = vst [vmem:[#allocation48_spill] sm:$0xff] %v5973_v48  ;;  %vm1162_vm8 = vcmp.gt.f32.partialorder %v1159_v0, -0.5  ;;  %vm1165_vm9 = vcmp.lt.f32.partialorder %v1159_v0, 9.5  ;;  %vm1207_vm3 = vcmp.gt.f32.partialorder %v1204_v31, -0.5  ;;  %vm1210_vm2 = vcmp.lt.f32.partialorder %v1204_v31, 9.5 }
 0x1c9   : > { %v5791_v10 = vpop.permute.xlu0 %1544  ;;  %v5793_v11 = vpop.permute.xlu1 %1546  ;;  %vm6034_vm1 = vmand %vm1162_vm8, %vm1165_vm9  ;;  %v1324_v31 = vadd.f32 3.0, %v5940_v26 }
 0x1ca   : > { %9331 = vst [vmem:[#allocation29_spill] sm:$0xff] %v5793_v11  ;;  %v1551_v0 = vsel %vm9106_vm10, %v5791_v10, %v5793_v11 }
 0x1cb   : > { %2503 = vrot.lane.b32.xlu1 %v5773_v9, %s9090_s23  ;;  %2474 = vrot.lane.b32.xlu0 %v5773_v9, %s5282_s22 }
 0x1cd   : > { %v5799_v42 = vpop.permute.xlu0 %1588  ;;  %v5801_v2 = vpop.permute.xlu1 %1586 }
 0x1ce   : > { %9332 = vst [vmem:[#allocation30_spill] sm:$0xff] %v5799_v42 }
 0x1cf   : > { %2530 = vrot.lane.b32.xlu1 %v5765_v56, %s9088_s24  ;;  %2501 = vrot.lane.b32.xlu0 %v5765_v56, %s9090_s23 }
 0x1d1   : > { %v5807_v21 = vpop.permute.xlu0 %1628  ;;  %v5809_v4 = vpop.permute.xlu1 %1630 }
 0x1d2   : > { %9333 = vst [vmem:[#allocation31_spill] sm:$0xff] %v5809_v4 }
 0x1d3   : > { %2561 = vrot.lane.b32.xlu1 %v5773_v9, %s5285_s25  ;;  %2532 = vrot.lane.b32.xlu0 %v5773_v9, %s9088_s24 }
 0x1d5   : > { %v5818_v53 = vpop.permute.xlu0 %1672  ;;  %v5820_v61 = vpop.permute.xlu1 %1670 }
 0x1d6   : > { %9336 = vst [vmem:[#allocation33_spill] sm:$0xff] %v5818_v53 }
 0x1d7   : > { %2588 = vrot.lane.b32.xlu1 %v5765_v56, %s5286_s26  ;;  %2559 = vrot.lane.b32.xlu0 %v5765_v56, %s5285_s25 }
 0x1d9   : > { %v5835_v32 = vpop.permute.xlu0 %1712  ;;  %v5837_v44 = vpop.permute.xlu1 %1714 }
 0x1da   : > { %9338 = vst [vmem:[#allocation35_spill] sm:$0xff] %v5837_v44 }
 0x1db   : > { %2590 = vrot.lane.b32.xlu0 %v5773_v9, %s5286_s26  ;;  %2421 = vrot.lane.b32.xlu1 %v5833_v18, %s5280_s19 }
 0x1dd   : > { %v5851_v40 = vpop.permute.xlu0 %1756  ;;  %v5853_v63 = vpop.permute.xlu1 %1754 }
 0x1de   : > { %9339 = vst [vmem:[#allocation36_spill] sm:$0xff] %v5851_v40  ;;  %9340 = vst [vmem:[#allocation37_spill] sm:$0xff] %v5853_v63  ;;  %v516_v63 = vadd.f32 %v513_v62, %v479_v15  ;;  %v5949_v15 = vrot.slane %v897_v24, %v5552_v41  ;;  %v552_v62 = vadd.f32 %v549_v47, %v515_v29  ;;  %v1144_v47 = vadd.f32 -9.0, %v5940_v26 }
 0x1df   : > { %2447 = vrot.lane.b32.xlu0 %v5833_v18, %s5281_s20  ;;  %2476 = vrot.lane.b32.xlu1 %v5833_v18, %s5282_s22 }
 0x1e0   : > { %9347 = vst [vmem:[#allocation42_spill] sm:$0xff] %v5949_v15  ;;  %v553_v24 = vadd.f32 %v550_v45, %v516_v63  ;;  %v5984_v63 = vrot.slane %v860_v16, %v5528_v28  ;;  %v5992_v22 = vadd.f32 %v5496_v36, %v552_v62  ;;  %v4477_v45 = vrot.slane %v5649_v12, %v5518_v19 }
 0x1e1   : > { %v5876_v1 = vpop.permute.xlu0 %1796  ;;  %v5878_v33 = vpop.permute.xlu1 %1798  ;;  %v1467_v62 = vsel %vm9107_vm5, %v5775_v59, %v5777_v7  ;;  %vm1147_vm6 = vcmp.gt.f32.partialorder %v1144_v47, -0.5  ;;  %vm1150_vm7 = vcmp.lt.f32.partialorder %v1144_v47, 9.5  ;;  %v1339_v15 = vadd.f32 4.0, %v5940_v26 }
 0x1e2   : > { %9354 = vst [vmem:[#allocation49_spill] sm:$0xff] %v5984_v63  ;;  %9355 = vst [vmem:[#allocation50_spill] sm:$0xff] %v5992_v22  ;;  %v6004_v29 = vadd.f32 %v5496_v36, %v553_v24  ;;  %v1472_v59 = vmul.f32 %v1467_v62, %v5992_v22  ;;  %v4735_v62 = vrot.slane %v5874_v57, %v5518_v19  ;;  %v1369_v28 = vadd.f32 6.0, %v5940_v26 }
 0x1e3   : > { %2505 = vrot.lane.b32.xlu0 %v5833_v18, %s9090_s23  ;;  %2534 = vrot.lane.b32.xlu1 %v5833_v18, %s9088_s24  ;;  %vm6026_vm13 = vmand %vm1147_vm6, %vm1150_vm7  ;;  %vm1225_vm7 = vcmp.lt.f32.partialorder %v1219_v60, 9.5  ;;  %v1556_v52 = vmul.f32 %v1551_v0, %v5992_v22  ;;  %v4478_v50 = vmul.f32 %v4477_v45, %v5654_v38  ;;  %v9129_v0 = vmov -1e+30   ;;  %s5300_s23 = smov 5   ;;  %s5302_s24 = smov 6  }
 0x1e4   : > { %9357 = vst [vmem:[#allocation52_spill] sm:$0xff] %v6004_v29  ;;  %v1475_v48 = vsel %vm9113_vm0, %v1472_v59, 0.0  ;;  %v6096_v35 = vsel %vm6026_vm13, 0.0, %v9129_v0  ;;  %vm1330_vm13 = vcmp.lt.f32.partialorder %v1324_v31, 9.5 }
 0x1e5   : > { %v5893_v17 = vpop.permute.xlu0 %1840  ;;  %v5895_v13 = vpop.permute.xlu1 %1838  ;;  %v1476_v14 = vrot.slane %v1475_v48, 4  ;;  %9374 = vst [vmem:[#allocation55_spill] sm:$0xff] %v6096_v35 }
 0x1e6   : > { %9341 = vst [vmem:[#allocation38_spill] sm:$0xff] %v5893_v17 }
 0x1e7   : > { %2563 = vrot.lane.b32.xlu0 %v5833_v18, %s5285_s25  ;;  %4495 = vrot.lane.b32.xlu1 %v4493_v54, %s5281_s20  ;;  %v4750_v54 = vrot.slane %v5874_v57, %v5552_v41  ;;  %v1414_v57 = vadd.f32 9.0, %v5940_v26 }
 0x1e9   : > { %v5925_v37 = vpop.permute.xlu0 %1880  ;;  %v5927_v55 = vpop.permute.xlu1 %1882 }
 0x1ea   : > { %9343 = vst [vmem:[#allocation40_spill] sm:$0xff] %v5925_v37  ;;  %9344 = vst [vmem:[#allocation41_spill] sm:$0xff] %v5927_v55  ;;  %v5944_v37 = vsub.f32 %v9346_v46, %v1139_v6  ;;  %v1509_v46 = vsel %vm9105_vm4, %v5785_v51, %v5783_v5  ;;  %v1189_v51 = vadd.f32 -6.0, %v5940_v26  ;;  %vm1222_vm4 = vcmp.gt.f32.partialorder %v1219_v60, -0.5 }
 0x1eb   : > { %4743 = vrot.lane.b32.xlu0 %v4741_v34, %s5280_s19  ;;  %4505 = vrot.lane.b32.xlu1 %v4503_v43, %s5282_s22  ;;  %v4751_v43 = vmul.f32 %v4750_v54, %v5907_v3  ;;  %v4761_v54 = vmul.f32 %v4760_v25, %v5907_v3  ;;  %v1514_v12 = vmul.f32 %v1509_v46, %v5992_v22  ;;  %v1234_v25 = vadd.f32 -3.0, %v5940_v26 }
 0x1ec   : > { %vm1192_vm14 = vcmp.gt.f32.partialorder %v1189_v51, -0.5  ;;  %vm1195_vm15 = vcmp.lt.f32.partialorder %v1189_v51, 9.5  ;;  %v1249_v46 = vadd.f32 -2.0, %v5940_v26  ;;  %v1309_v51 = vadd.f32 2.0, %v5940_v26 }
 0x1ed   : > { %v5962_v6 = vpop.permute.xlu0 %1924  ;;  %v5964_v34 = vpop.permute.xlu1 %1922  ;;  %v1517_v47 = vsel %vm9113_vm0, %v1514_v12, 0.0  ;;  %vm6056_vm8 = vmand %vm1192_vm14, %vm1195_vm15  ;;  %vm1237_vm9 = vcmp.gt.f32.partialorder %v1234_v25, -0.5  ;;  %v9423_v5 = vmov 0 }
 0x1ee   : > { %9351 = vst [vmem:[#allocation46_spill] sm:$0xff] %v5962_v6  ;;  %vm1252_vm10 = vcmp.gt.f32.partialorder %v1249_v46, -0.5  ;;  %vm1255_vm5 = vcmp.lt.f32.partialorder %v1249_v46, 9.5  ;;  %v1518_v59 = vrot.slane %v1517_v47, 4  ;;  %vm6076_vm15 = vmand %vm1222_vm4, %vm1225_vm7  ;;  %vm1267_vm4 = vcmp.gt.f32.partialorder %v1264_v27, -0.5 }
 0x1ef   : > { %4753 = vrot.lane.b32.xlu0 %v4751_v43, %s5281_s20  ;;  %4510 = vrot.lane.b32.xlu1 %v5654_v38, %s5286_s26  ;;  %v1174_v43 = vadd.f32 -7.0, %v5940_v26  ;;  %vm1270_vm7 = vcmp.lt.f32.partialorder %v1264_v27, 9.5  ;;  %vm6100_vm0 = vmand %vm1252_vm10, %vm1255_vm5  ;;  %vm9380_vm5 = vcmp.lt.f32.partialorder %v5940_v26, 9.5  ;;  %vm9381_vm10 = vcmp.gt.f32.partialorder %v5940_v26, -0.5 }
 0x1f0   : > { %v9376_v30 = vsel %vm6100_vm0, 4294967295, %v9375_v30  ;;  %vm1315_vm14 = vcmp.lt.f32.partialorder %v1309_v51, 9.5  ;;  %v1519_v20 = vadd.f32 %v1518_v59, %v1517_v47  ;;  %vm6127_vm0 = vmand %vm1267_vm4, %vm1270_vm7  ;;  %v1384_v59 = vadd.f32 7.0, %v5940_v26 }
 0x1f1   : > { %v5998_v39 = vpop.permute.xlu0 %1964  ;;  %v6000_v16 = vpop.permute.xlu1 %1966  ;;  %vm1177_vm11 = vcmp.gt.f32.partialorder %v1174_v43, -0.5  ;;  %vm1180_vm12 = vcmp.lt.f32.partialorder %v1174_v43, 9.5  ;;  %v1294_v43 = vadd.f32 1.0, %v5940_v26 }
 0x1f2   : > { %9356 = vst [vmem:[#allocation51_spill] sm:$0xff] %v6000_v16  ;;  %vm6045_vm6 = vmand %vm1177_vm11, %vm1180_vm12  ;;  %vm1240_vm11 = vcmp.lt.f32.partialorder %v1234_v25, 9.5  ;;  %v6109_v25 = vmul.f32 %v4735_v62, %v5907_v3  ;;  %v1477_v62 = vadd.f32 %v1476_v14, %v1475_v48  ;;  %v6159_v14 = vsel %vm6076_vm15, 0.0, %v9129_v0 }
 0x1f3   : > { %4763 = vrot.lane.b32.xlu0 %v4761_v54, %s5282_s22  ;;  %2592 = vrot.lane.b32.xlu1 %v5833_v18, %s5286_s26  ;;  %vm6067_vm12 = vmand %vm1207_vm3, %vm1210_vm2  ;;  %v6114_v54 = vsel %vm6034_vm1, 0.0, %v9129_v0  ;;  %vm9384_vm2 = vcmask 1043456   ;;  %vm1327_vm1 = vcmp.gt.f32.partialorder %v1324_v31, -0.5  ;;  %v6138_v47 = vsel %vm6045_vm6, 0.0, %v9129_v0  ;;  %9394 = vst [vmem:[#allocation62_spill] sm:$0xff] %v6159_v14 }
 0x1f4   : > { %vm6089_vm3 = vmand %vm1237_vm9, %vm1240_vm11  ;;  %9378 = vst [vmem:[#allocation57_spill] sm:$0xff] %v6109_v25  ;;  %vm1312_vm11 = vcmp.gt.f32.partialorder %v1309_v51, -0.5  ;;  %v6148_v27 = vsel %vm6067_vm12, 0.0, %v9129_v0  ;;  %vm9391_vm4 = vcmp.gt.f32.partialorder %v1294_v43, -0.5  ;;  %vm9396_vm6 = vnez %v9376_v30 }
 0x1f5   : > { %v6020_v24 = vpop.permute.xlu0 %2008  ;;  %v6022_v36 = vpop.permute.xlu1 %2006  ;;  %9379 = vst [vmem:[#allocation58_spill] sm:$0xff] %v6114_v54  ;;  %vm6120_vm9 = vmand %vm9381_vm10, %vm9380_vm5  ;;  %vm9138_vm5 = vcmask 1006592   ;;  %v6164_v8 = vsel %vm6089_vm3, 0.0, %v9129_v0  ;;  %v6169_v48 = vsel %vm9396_vm6, 0.0, %v9129_v0  ;;  %v6185_v25 = vsel %vm6127_vm0, 0.0, %v9129_v0 }
 0x1f6   : > { %9358 = vst [vmem:[#allocation53_spill] sm:$0xff] %v6020_v24  ;;  %9387 = vst [vmem:[#allocation59_spill] sm:$0xff] %v6138_v47  ;;  %v6190_v30 = vsel %vm6120_vm9, 0.0, %v9129_v0  ;;  %v1354_v51 = vadd.f32 5.0, %v5940_v26  ;;  %v1520_v23 = vrot.slane %v1519_v20, 2  ;;  %v6209_v31 = vadd.f32 %v5767_v58, %v4478_v50 }
 0x1f7   : > { %4768 = vrot.lane.b32.xlu0 %v5907_v3, %s5286_s26  ;;  %2619 = vrot.lane.b32.xlu1 %v5773_v9, %s5287_s27  ;;  %v1559_v3 = vsel %vm9384_vm2, %v1556_v52, 0.0  ;;  %v6143_v52 = vsel %vm6056_vm8, 0.0, %v9129_v0  ;;  %9389 = vst [vmem:[#allocation61_spill] sm:$0xff] %v6148_v27  ;;  %vm9390_vm2 = vcmp.lt.f32.partialorder %v1294_v43, 9.5  ;;  %9395 = vst [vmem:[#allocation63_spill] sm:$0xff] %v6164_v8  ;;  %v1478_v46 = vrot.slane %v1477_v62, 2 }
 0x1f8   : > { %9388 = vst [vmem:[#allocation60_spill] sm:$0xff] %v6143_v52  ;;  %vm6152_vm7 = vmand %vm9391_vm4, %vm9390_vm2  ;;  %v1560_v60 = vrot.slane %v1559_v3, 4  ;;  %vm9144_vm0 = vcmask 998400   ;;  %vm1342_vm15 = vcmp.gt.f32.partialorder %v1339_v15, -0.5  ;;  %vm1345_vm3 = vcmp.lt.f32.partialorder %v1339_v15, 9.5 }
 0x1f9   : > { %v6061_v12 = vpop.permute.xlu0 %2048  ;;  %v6063_v63 = vpop.permute.xlu1 %2050  ;;  %9397 = vst [vmem:[#allocation64_spill] sm:$0xff] %v6169_v48  ;;  %vm6173_vm8 = vmand %vm1312_vm11, %vm1315_vm14  ;;  %vm9403_vm14 = vcmask 1014784   ;;  %v6201_v49 = vsel %vm6152_vm7, 0.0, %v9129_v0  ;;  %v1399_v48 = vadd.f32 8.0, %v5940_v26  ;;  %vm1360_vm10 = vcmp.lt.f32.partialorder %v1354_v51, 9.5 }
 0x1fa   : > { %9367 = vst [vmem:[#allocation54_spill] sm:$0xff] %v6063_v63  ;;  %9401 = vst [vmem:[#allocation66_spill] sm:$0xff] %v6185_v25  ;;  %v1593_v41 = vsel %vm9403_vm14, %v5801_v2, %v5799_v42  ;;  %v6214_v2 = vsel %vm6173_vm8, 0.0, %v9129_v0  ;;  %v1561_v58 = vadd.f32 %v1560_v60, %v1559_v3  ;;  %vm1372_vm9 = vcmp.gt.f32.partialorder %v1369_v28, -0.5 }
 0x1fb   : > { %2617 = vrot.lane.b32.xlu0 %v5765_v56, %s5287_s27  ;;  %2646 = vrot.lane.b32.xlu1 %v5765_v56, %s5288_s28  ;;  %9402 = vst [vmem:[#allocation67_spill] sm:$0xff] %v6190_v30  ;;  %vm1333_vm12 = vmand %vm1327_vm1, %vm1330_vm13  ;;  %vm1357_vm13 = vcmp.gt.f32.partialorder %v1354_v51, -0.5  ;;  %vm1375_vm11 = vcmp.lt.f32.partialorder %v1369_v28, 9.5  ;;  %vm1387_vm1 = vcmp.gt.f32.partialorder %v1384_v59, -0.5  ;;  %v1160_v3 = vadd.f32 -8.0, %v5944_v37 }
 0x1fc   : > { %9404 = vst [vmem:[#allocation68_spill] sm:$0xff] %v6201_v49  ;;  %9405 = vst [vmem:[#allocation69_spill] sm:$0xff] %v6209_v31  ;;  %v6218_v19 = vsel %vm1333_vm12, 0.0, %v9129_v0  ;;  %v1598_v31 = vmul.f32 %v1593_v41, %v5992_v22  ;;  %v1145_v0 = vadd.f32 -9.0, %v5944_v37  ;;  %vm1390_vm4 = vcmp.lt.f32.partialorder %v1384_v59, 9.5 }
 0x1fd   : > { %v6104_v38 = vpop.permute.xlu0 %2092  ;;  %v6106_v45 = vpop.permute.xlu1 %2090  ;;  %9406 = vst [vmem:[#allocation70_spill] sm:$0xff] %v6214_v2  ;;  %9407 = vst [vmem:[#allocation71_spill] sm:$0xff] %v6218_v19  ;;  %v1521_v2 = vadd.f32 %v1520_v23, %v1519_v20  ;;  %v1479_v19 = vadd.f32 %v1478_v46, %v1477_v62  ;;  %vm1402_vm7 = vcmp.gt.f32.partialorder %v1399_v48, -0.5  ;;  %vm1405_vm6 = vcmp.lt.f32.partialorder %v1399_v48, 9.5 }
 0x1fe   : > { %9377 = vst [vmem:[#allocation56_spill] sm:$0xff] %v6104_v38  ;;  %vm6235_vm2 = vmand %vm1342_vm15, %vm1345_vm3  ;;  %v1175_v41 = vadd.f32 -7.0, %v5944_v37  ;;  %v1562_v62 = vrot.slane %v1561_v58, 2  ;;  %vm9412_vm8 = vcmask 1043456   ;;  %vm1417_vm14 = vcmp.gt.f32.partialorder %v1414_v57, -0.5 }
 0x1ff   : > { %2621 = vrot.lane.b32.xlu0 %v5833_v18, %s5287_s27  ;;  %2650 = vrot.lane.b32.xlu1 %v5833_v18, %s5288_s28  ;;  %v1601_v60 = vsel %vm9412_vm8, %v1598_v31, 0.0  ;;  %vm6247_vm12 = vmand %vm1357_vm13, %vm1360_vm10  ;;  %v1190_v46 = vadd.f32 -6.0, %v5944_v37  ;;  %v1522_v49 = vrot.slane %v1521_v2, 1  ;;  %vm1420_vm3 = vcmp.lt.f32.partialorder %v1414_v57, 9.5 }
 0x200   : > { %vm6254_vm15 = vmand %vm1372_vm9, %vm1375_vm11  ;;  %vm1151_vm10 = vcmp.lt.f32.partialorder %v1145_v0, 9.5  ;;  %v1480_v51 = vrot.slane %v1479_v19, 1  ;;  %v1635_v31 = vsel %vm9138_vm5, %v5807_v21, %v5809_v4  ;;  %v1205_v25 = vadd.f32 -5.0, %v5944_v37 }
 0x201   : > { %v6178_v43 = vpop.permute.xlu0 %2132  ;;  %v6180_v10 = vpop.permute.xlu1 %2134  ;;  %vm6267_vm9 = vmand %vm1387_vm1, %vm1390_vm4  ;;  %v1602_v8 = vrot.slane %v1601_v60, 4  ;;  %v1220_v59 = vadd.f32 -4.0, %v5944_v37  ;;  %v1563_v4 = vadd.f32 %v1562_v62, %v1561_v58  ;;  %v1235_v48 = vadd.f32 -3.0, %v5944_v37 }
 0x202   : > { %9400 = vst [vmem:[#allocation65_spill] sm:$0xff] %v6180_v10  ;;  %vm6274_vm8 = vmand %vm1402_vm7, %vm1405_vm6  ;;  %v1523_v7 = vadd.f32 %v1522_v49, %v1521_v2  ;;  %vm9425_vm1 = vcmp.gt.f32.partialorder %v1145_v0, -0.5  ;;  %v9426_v58 = vmov 0  ;;  %v1481_v49 = vadd.f32 %v1480_v51, %v1479_v19 }
 0x203   : > { %2648 = vrot.lane.b32.xlu0 %v5773_v9, %s5288_s28  ;;  %2677 = vrot.lane.b32.xlu1 %v5773_v9, %s5289_s30  ;;  %vm6285_vm4 = vmand %vm1417_vm14, %vm1420_vm3  ;;  %v9428_v2 = vmov -1e+30   ;;  %vm1211_vm5 = vcmp.lt.f32.partialorder %v1205_v25, 9.5  ;;  %v1603_v57 = vadd.f32 %v1602_v8, %v1601_v60  ;;  %vm9435_vm3 = vcmp.gt.f32.partialorder %v1175_v41, -0.5 }
 0x204   : > { %v9424_v5 = vsel %vm6285_vm4, 4294967295, %v9423_v5  ;;  %vm6296_vm13 = vmand %vm9425_vm1, %vm1151_vm10  ;;  %vm9431_vm10 = vcmp.gt.f32.partialorder %v1160_v3, -0.5  ;;  %vm9434_vm4 = vcmp.lt.f32.partialorder %v1175_v41, 9.5  ;;  %vm9440_vm11 = vcmp.lt.f32.partialorder %v1190_v46, 9.5 }
 0x205   : > { %v6220_v42 = vpop.permute.xlu0 %2174  ;;  %v6223_v50 = vpop.permute.xlu1 %2176  ;;  %v9427_v58 = vsel %vm6296_vm13, 4294967295, %v9426_v58  ;;  %vm6317_vm6 = vmand %vm9435_vm3, %vm9434_vm4  ;;  %vm9441_vm7 = vcmp.gt.f32.partialorder %v1190_v46, -0.5  ;;  %vm1238_vm4 = vcmp.gt.f32.partialorder %v1235_v48, -0.5  ;;  %vm1241_vm3 = vcmp.lt.f32.partialorder %v1235_v48, 9.5 }
 0x206   : > { %9408 = vst [vmem:[#allocation72_spill] sm:$0xff] %v6223_v50  ;;  %vm6328_vm13 = vmand %vm9441_vm7, %vm9440_vm11  ;;  %v1538_v41 = vmul.f32 0.5, %v1523_v7  ;;  %vm9444_vm14 = vcmask 1043456   ;;  %vm9446_vm11 = vcmp.gt.f32.partialorder %v1205_v25, -0.5  ;;  %v1496_v7 = vmul.f32 0.5, %v1481_v49 }
 0x207   : > { %2675 = vrot.lane.b32.xlu0 %v5765_v56, %s5289_s30  ;;  %2704 = vrot.lane.b32.xlu1 %v5765_v56, %s5290_s7  ;;  %vm6344_vm7 = vmand %vm9446_vm11, %vm1211_vm5  ;;  %v6356_v15 = vsel %vm6267_vm9, 0.0, %v9428_v2  ;;  %v6361_v25 = vsel %vm6274_vm8, 0.0, %v9428_v2  ;;  %vm9452_vm5 = vcmp.gt.f32.partialorder %v1220_v59, -0.5  ;;  %v1604_v49 = vrot.slane %v1603_v57, 2 }
 0x208   : > { %9450 = vst [vmem:[#allocation81_spill] sm:$0xff] %v6356_v15  ;;  %9451 = vst [vmem:[#allocation82_spill] sm:$0xff] %v6361_v25  ;;  %vm9192_vm11 = vcmask 932864   ;;  %vm9457_vm9 = vnez %v9427_v58  ;;  %v6394_v58 = vsel %vm6317_vm6, 0.0, %v9428_v2  ;;  %v1541_v0 = vadd.f32 %v1538_v41, %v6114_v54 }
 0x209   : > { %v6239_v20 = vpop.permute.xlu0 %2216  ;;  %v6241_v23 = vpop.permute.xlu1 %2218  ;;  %v6377_v28 = vsel %vm9457_vm9, 0.0, %v9428_v2  ;;  %vm1244_vm8 = vmand %vm1238_vm4, %vm1241_vm3  ;;  %9463 = vst [vmem:[#allocation88_spill] sm:$0xff] %v6394_v58  ;;  %v1499_v19 = vadd.f32 %v1496_v7, %v6096_v35  ;;  %v6424_v8 = vadd.f32 -2.0, %v5944_v37  ;;  %v1605_v41 = vadd.f32 %v1604_v49, %v1603_v57 }
 0x20a   : > { %9411 = vst [vmem:[#allocation73_spill] sm:$0xff] %v6241_v23  ;;  %9458 = vst [vmem:[#allocation84_spill] sm:$0xff] %v6377_v28  ;;  %vm9469_vm6 = vcmask 990208   ;;  %vm9472_vm4 = vcmask 973824   ;;  %vm9473_vm3 = vcmask 908288   ;;  %vm9479_vm9 = vcmask 957440  }
 0x20b   : > { %2679 = vrot.lane.b32.xlu0 %v5833_v18, %s5289_s30  ;;  %2708 = vrot.lane.b32.xlu1 %v5833_v18, %s5290_s7  ;;  %v1803_v57 = vsel %vm9472_vm4, %v5876_v1, %v5878_v33  ;;  %v2139_v49 = vsel %vm9473_vm3, %v6178_v43, %v6180_v10  ;;  %v6456_v1 = vadd.f32 -1.0, %v5944_v37 }
 0x20d   : > { %v6278_v11 = vpop.permute.xlu0 %1464  ;;  %v6280_v21 = vpop.permute.xlu1 %1506 }
 0x20e   : > { %9421 = vst [vmem:[#allocation74_spill] sm:$0xff] %v6278_v11  ;;  %9422 = vst [vmem:[#allocation75_spill] sm:$0xff] %v6280_v21  ;;  %v1640_v11 = vmul.f32 %v1635_v31, %v5992_v22  ;;  %v1677_v21 = vsel %vm9144_vm0, %v5820_v61, %v5818_v53  ;;  %v6307_v61 = vsel %vm6235_vm2, 0.0, %v9428_v2  ;;  %vm9430_vm0 = vcmp.lt.f32.partialorder %v1160_v3, 9.5 }
 0x20f   : > { %2706 = vrot.lane.b32.xlu0 %v5773_v9, %s5290_s7  ;;  %2735 = vrot.lane.b32.xlu1 %v5773_v9, %s5291_s9  ;;  %9429 = vst [vmem:[#allocation76_spill] sm:$0xff] %v6307_v61  ;;  %vm6311_vm1 = vmand %vm9431_vm10, %vm9430_vm0  ;;  %vm1226_vm2 = vcmp.lt.f32.partialorder %v1220_v59, 9.5  ;;  %v1564_v3 = vrot.slane %v1563_v4, 1  ;;  %v1682_v51 = vmul.f32 %v1677_v21, %v5992_v22  ;;  %vm9253_vm10 = vcmask 949248  }
 0x210   : > { %v1643_v60 = vsel %vm9444_vm14, %v1640_v11, 0.0  ;;  %v6336_v31 = vsel %vm6247_vm12, 0.0, %v9428_v2  ;;  %vm9189_vm0 = vcmask 891904   ;;  %vm9193_vm14 = vcmask 941056   ;;  %vm6365_vm12 = vmand %vm9452_vm5, %vm1226_vm2 }
 0x211   : > { %v6321_v26 = vpop.permute.xlu0 %1548  ;;  %v6323_v62 = vpop.permute.xlu1 %1590  ;;  %9445 = vst [vmem:[#allocation79_spill] sm:$0xff] %v6336_v31  ;;  %v6351_v11 = vsel %vm6254_vm15, 0.0, %v9428_v2  ;;  %vm9455_vm15 = vnez %v9424_v5  ;;  %v6382_v29 = vsel %vm6311_vm1, 0.0, %v9428_v2  ;;  %v1565_v5 = vadd.f32 %v1564_v3, %v1563_v4 }
 0x212   : > { %9438 = vst [vmem:[#allocation77_spill] sm:$0xff] %v6321_v26  ;;  %9439 = vst [vmem:[#allocation78_spill] sm:$0xff] %v6323_v62  ;;  %v6372_v30 = vsel %vm9455_vm15, 0.0, %v9428_v2  ;;  %v1644_v62 = vrot.slane %v1643_v60, 4  ;;  %vm9462_vm2 = vcmask 1043456   ;;  %vm9191_vm5 = vcmask 924672  }
 0x213   : > { %2733 = vrot.lane.b32.xlu0 %v5765_v56, %s5291_s9  ;;  %2762 = vrot.lane.b32.xlu1 %v5765_v56, %s5292_s10  ;;  %9449 = vst [vmem:[#allocation80_spill] sm:$0xff] %v6351_v11  ;;  %9456 = vst [vmem:[#allocation83_spill] sm:$0xff] %v6372_v30  ;;  %v1685_v11 = vsel %vm9462_vm2, %v1682_v51, 0.0  ;;  %vm9190_vm1 = vcmask 916480   ;;  %v6405_v4 = vsel %vm6344_vm7, 0.0, %v9428_v2  ;;  %v6410_v48 = vsel %vm6365_vm12, 0.0, %v9428_v2 }
 0x214   : > { %9459 = vst [vmem:[#allocation85_spill] sm:$0xff] %v6382_v29  ;;  %v6400_v29 = vsel %vm6328_vm13, 0.0, %v9428_v2  ;;  %9465 = vst [vmem:[#allocation90_spill] sm:$0xff] %v6405_v4  ;;  %vm9467_vm13 = vcmask 900096   ;;  %v6421_v51 = vsel %vm1244_vm8, 0.0, %v9428_v2  ;;  %v1686_v46 = vrot.slane %v1685_v11, 4 }
 0x215   : > { %v6384_v59 = vpop.permute.xlu0 %1632  ;;  %v6386_v53 = vpop.permute.xlu1 %1674  ;;  %9464 = vst [vmem:[#allocation89_spill] sm:$0xff] %v6400_v29  ;;  %9466 = vst [vmem:[#allocation91_spill] sm:$0xff] %v6410_v48  ;;  %v2181_v3 = vsel %vm9467_vm13, %v6220_v42, %v6223_v50  ;;  %v1719_v21 = vsel %vm9469_vm6, %v5835_v32, %v5837_v44  ;;  %v2223_v7 = vsel %vm9189_vm0, %v6239_v20, %v6241_v23  ;;  %v1580_v42 = vmul.f32 0.5, %v1565_v5  ;;  %v9478_v5 = vld [vmem:[#allocation40_spill] sm:$0xff] }
 0x216   : > { %9460 = vst [vmem:[#allocation86_spill] sm:$0xff] %v6384_v59  ;;  %9461 = vst [vmem:[#allocation87_spill] sm:$0xff] %v6386_v53  ;;  %v6436_v48 = vadd.f32 %v1644_v62, %v1643_v60  ;;  %vm9474_vm7 = vcmask 1040384   ;;  %vm9475_vm12 = vcmask 965632   ;;  %v2186_v23 = vmul.f32 %v2181_v3, %v5992_v22  ;;  %v9476_v62 = vld [vmem:[#allocation37_spill] sm:$0xff] }
 0x217   : > { %2737 = vrot.lane.b32.xlu0 %v5833_v18, %s5291_s9  ;;  %2766 = vrot.lane.b32.xlu1 %v5833_v18, %s5292_s10  ;;  %9468 = vst [vmem:[#allocation92_spill] sm:$0xff] %v6421_v51  ;;  %v6445_v32 = vsel %vm9474_vm7, %v1499_v19, %v1541_v0  ;;  %v1845_v20 = vsel %vm9475_vm12, %v5895_v13, %v5893_v17  ;;  %vm9477_vm15 = vcmask 982016   ;;  %v1606_v29 = vrot.slane %v1605_v41, 1  ;;  %vm9482_vm8 = vmmov %vm9462_vm2 }
 0x218   : > { %v1724_v43 = vmul.f32 %v1719_v21, %v5992_v22  ;;  %v1761_v60 = vsel %vm9477_vm15, %v9476_v62, %v5851_v40  ;;  %v1887_v13 = vsel %vm9479_vm9, %v9478_v5, %v5927_v55  ;;  %v2228_v0 = vmul.f32 %v2223_v7, %v5992_v22  ;;  %vm9483_vm13 = vmmov %vm9482_vm8 }
 0x219   : > { %v6432_v54 = vpop.permute.xlu0 %1716  ;;  %v6434_v35 = vpop.permute.xlu1 %1758  ;;  %v1687_v19 = vadd.f32 %v1686_v46, %v1685_v11  ;;  %v1808_v3 = vmul.f32 %v1803_v57, %v5992_v22  ;;  %v1929_v51 = vsel %vm9253_vm10, %v5964_v34, %v5962_v6  ;;  %v2144_v4 = vmul.f32 %v2139_v49, %v5992_v22  ;;  %vm9484_vm6 = vmmov %vm9482_vm8 }
 0x21a   : > { %9470 = vst [vmem:[#allocation93_spill] sm:$0xff] %v6432_v54  ;;  %9471 = vst [vmem:[#allocation94_spill] sm:$0xff] %v6434_v35  ;;  %v6476_v62 = vadd.f32 %v1580_v42, %v6138_v47  ;;  %v1646_v5 = vrot.slane %v6436_v48, 2  ;;  %v1850_v11 = vmul.f32 %v1845_v20, %v5992_v22  ;;  %v1766_v46 = vmul.f32 %v1761_v60, %v5992_v22 }
 0x21b   : > { %2764 = vrot.lane.b32.xlu0 %v5773_v9, %s5292_s10  ;;  %2793 = vrot.lane.b32.xlu1 %v5773_v9, %s5293_s12  ;;  %v1892_v7 = vmul.f32 %v1887_v13, %v5992_v22  ;;  %v1971_v34 = vsel %vm9193_vm14, %v5998_v39, %v6000_v16  ;;  %v2189_v57 = vsel %vm9482_vm8, %v2186_v23, 0.0  ;;  %vm9254_vm2 = vcmask 1041408   ;;  %vm9485_vm4 = vmmov %vm9484_vm6 }
 0x21c   : > { %v1727_v42 = vsel %vm9483_vm13, %v1724_v43, 0.0  ;;  %v1934_v49 = vmul.f32 %v1929_v51, %v5992_v22  ;;  %v2013_v20 = vsel %vm9192_vm11, %v6022_v36, %v6020_v24  ;;  %v2231_v60 = vsel %vm9484_vm6, %v2228_v0, 0.0  ;;  %vm9486_vm3 = vmmov %vm9485_vm4 }
 0x21d   : > { %v6471_v21 = vpop.permute.xlu0 %1800  ;;  %v6473_v50 = vpop.permute.xlu1 %1842  ;;  %v1688_v39 = vrot.slane %v1687_v19, 2  ;;  %v1811_v23 = vsel %vm9485_vm4, %v1808_v3, 0.0  ;;  %v2055_v13 = vsel %vm9191_vm5, %v6061_v12, %v6063_v63  ;;  %v2147_v47 = vsel %vm9486_vm3, %v2144_v4, 0.0  ;;  %vm9489_vm7 = vmmov %vm9486_vm3 }
 0x21e   : > { %9480 = vst [vmem:[#allocation37_spill] sm:$0xff] %v6471_v21  ;;  %9481 = vst [vmem:[#allocation40_spill] sm:$0xff] %v6473_v50  ;;  %v1853_v51 = vsel %vm9489_vm7, %v1850_v11, 0.0  ;;  %v1976_v58 = vmul.f32 %v1971_v34, %v5992_v22  ;;  %v2097_v36 = vsel %vm9190_vm1, %v6106_v45, %v6104_v38  ;;  %v2190_v0 = vrot.slane %v2189_v57, 4 }
 0x21f   : > { %2791 = vrot.lane.b32.xlu0 %v5765_v56, %s5293_s12  ;;  %2820 = vrot.lane.b32.xlu1 %v5765_v56, %s5294_s13  ;;  %vm9490_vm12 = vmmov %vm9486_vm3  ;;  %v2018_v12 = vmul.f32 %v2013_v20, %v5992_v22  ;;  %v2232_v4 = vrot.slane %v2231_v60, 4  ;;  %v1728_v11 = vrot.slane %v1727_v42, 4  ;;  %v2060_v63 = vmul.f32 %v2055_v13, %v5992_v22 }
 0x220   : > { %v1769_v3 = vsel %vm9490_vm12, %v1766_v46, 0.0  ;;  %vm9491_vm15 = vmmov %vm9486_vm3  ;;  %v2148_v45 = vrot.slane %v2147_v47, 4  ;;  %v1607_v38 = vadd.f32 %v1606_v29, %v1605_v41  ;;  %v1812_v24 = vrot.slane %v1811_v23, 4 }
 0x221   : > { %v6501_v10 = vpop.permute.xlu0 %1884  ;;  %v6503_v43 = vpop.permute.xlu1 %1926  ;;  %v1895_v28 = vsel %vm9491_vm15, %v1892_v7, 0.0  ;;  %vm9492_vm9 = vmmov %vm9486_vm3  ;;  %v1854_v46 = vrot.slane %v1853_v51, 4  ;;  %v2102_v7 = vmul.f32 %v2097_v36, %v5992_v22  ;;  %v1770_v35 = vrot.slane %v1769_v3, 4 }
 0x222   : > { %9487 = vst [vmem:[#allocation95_spill] sm:$0xff] %v6501_v10  ;;  %9488 = vst [vmem:[#allocation96_spill] sm:$0xff] %v6503_v43  ;;  %v1937_v34 = vsel %vm9492_vm9, %v1934_v49, 0.0  ;;  %v1896_v16 = vrot.slane %v1895_v28, 4  ;;  %v1647_v54 = vadd.f32 %v1646_v5, %v6436_v48  ;;  %v2233_v53 = vadd.f32 %v2232_v4, %v2231_v60 }
 0x223   : > { %2795 = vrot.lane.b32.xlu0 %v5833_v18, %s5293_s12  ;;  %2824 = vrot.lane.b32.xlu1 %v5833_v18, %s5294_s13  ;;  %vm9495_vm8 = vmmov %vm9486_vm3  ;;  %v2191_v18 = vadd.f32 %v2190_v0, %v2189_v57  ;;  %v1938_v49 = vrot.slane %v1937_v34, 4  ;;  %v1689_v29 = vadd.f32 %v1688_v39, %v1687_v19  ;;  %v1729_v41 = vadd.f32 %v1728_v11, %v1727_v42 }
 0x224   : > { %v1979_v44 = vsel %vm9495_vm8, %v1976_v58, 0.0  ;;  %vm9496_vm13 = vmmov %vm9486_vm3  ;;  %v2149_v22 = vadd.f32 %v2148_v45, %v2147_v47  ;;  %v1855_v58 = vadd.f32 %v1854_v46, %v1853_v51  ;;  %v1771_v60 = vadd.f32 %v1770_v35, %v1769_v3 }
 0x225   : > { %v6520_v40 = vpop.permute.xlu0 %1968  ;;  %v6522_v20 = vpop.permute.xlu1 %2010  ;;  %v2021_v13 = vsel %vm9496_vm13, %v2018_v12, 0.0  ;;  %vm9497_vm6 = vmmov %vm9486_vm3  ;;  %v1980_v57 = vrot.slane %v1979_v44, 4  ;;  %v1897_v12 = vadd.f32 %v1896_v16, %v1895_v28  ;;  %v2263_v19 = vsel %vm9254_vm2, %v6445_v32, %v6476_v62 }
 0x226   : > { %9493 = vst [vmem:[#allocation97_spill] sm:$0xff] %v6520_v40  ;;  %9494 = vst [vmem:[#allocation98_spill] sm:$0xff] %v6522_v20  ;;  %v2063_v36 = vsel %vm9497_vm6, %v2060_v63, 0.0  ;;  %v1813_v20 = vadd.f32 %v1812_v24, %v1811_v23  ;;  %v2022_v4 = vrot.slane %v2021_v13, 4  ;;  %v2192_v40 = vrot.slane %v2191_v18, 2 }
 0x227   : > { %2822 = vrot.lane.b32.xlu0 %v5773_v9, %s5294_s13  ;;  %2851 = vrot.lane.b32.xlu1 %v5773_v9, %s5295_s14  ;;  %vm9498_vm4 = vmmov %vm9486_vm3  ;;  %v1939_v42 = vadd.f32 %v1938_v49, %v1937_v34  ;;  %v2064_v63 = vrot.slane %v2063_v36, 4  ;;  %v2234_v47 = vrot.slane %v2233_v53, 2  ;;  %vm9198_vm3 = vcmask 1042432  }
 0x228   : > { %v2105_v48 = vsel %vm9498_vm4, %v2102_v7, 0.0  ;;  %v1648_v24 = vrot.slane %v1647_v54, 1  ;;  %v1690_v39 = vrot.slane %v1689_v29, 1  ;;  %v2150_v51 = vrot.slane %v2149_v22, 2 }
 0x229   : > { %v6533_v5 = vpop.permute.xlu0 %2052  ;;  %v6535_v0 = vpop.permute.xlu1 %2094  ;;  %v2106_v23 = vrot.slane %v2105_v48, 4  ;;  %v1730_v11 = vrot.slane %v1729_v41, 2  ;;  %v1814_v35 = vrot.slane %v1813_v20, 2  ;;  %v1856_v16 = vrot.slane %v1855_v58, 2 }
 0x22a   : > { %9499 = vst [vmem:[#allocation99_spill] sm:$0xff] %v6533_v5  ;;  %9500 = vst [vmem:[#allocation100_spill] sm:$0xff] %v6535_v0  ;;  %v1981_v28 = vadd.f32 %v1980_v57, %v1979_v44  ;;  %v1772_v32 = vrot.slane %v1771_v60, 2  ;;  %v1898_v62 = vrot.slane %v1897_v12, 2  ;;  %v2023_v34 = vadd.f32 %v2022_v4, %v2021_v13 }
 0x22b   : > { %2849 = vrot.lane.b32.xlu0 %v5765_v56, %s5295_s14  ;;  %v2193_v46 = vadd.f32 %v2192_v40, %v2191_v18  ;;  %v1622_v7 = vmul.f32 0.5, %v1607_v38  ;;  %v1940_v49 = vrot.slane %v1939_v42, 2  ;;  %v2065_v9 = vadd.f32 %v2064_v63, %v2063_v36 }
 0x22c   : > { %v2235_v56 = vadd.f32 %v2234_v47, %v2233_v53  ;;  %v1649_v0 = vadd.f32 %v1648_v24, %v1647_v54  ;;  %v1691_v5 = vadd.f32 %v1690_v39, %v1689_v29  ;;  %v2107_v6 = vadd.f32 %v2106_v23, %v2105_v48 }
 0x22d   : > { %v6542_v3 = vpop.permute.xlu0 %2136  ;;  %v6544_v45 = vpop.permute.xlu1 %2178  ;;  %v2151_v43 = vadd.f32 %v2150_v51, %v2149_v22  ;;  %v1731_v59 = vadd.f32 %v1730_v11, %v1729_v41  ;;  %v1815_v55 = vadd.f32 %v1814_v35, %v1813_v20  ;;  %v1857_v10 = vadd.f32 %v1856_v16, %v1855_v58 }
 0x22e   : > { %9501 = vst [vmem:[#allocation101_spill] sm:$0xff] %v6542_v3  ;;  %9502 = vst [vmem:[#allocation102_spill] sm:$0xff] %v6544_v45  ;;  %v1982_v44 = vrot.slane %v1981_v28, 2  ;;  %v1773_v45 = vadd.f32 %v1772_v32, %v1771_v60  ;;  %v1899_v17 = vadd.f32 %v1898_v62, %v1897_v12  ;;  %v2024_v13 = vrot.slane %v2023_v34, 2 }
 0x22f   : > { %v2194_v18 = vrot.slane %v2193_v46, 1  ;;  %v1625_v40 = vadd.f32 %v1622_v7, %v6143_v52  ;;  %v1941_v38 = vadd.f32 %v1940_v49, %v1939_v42  ;;  %v2066_v53 = vrot.slane %v2065_v9, 2 }
 0x230   : > { %v2236_v54 = vrot.slane %v2235_v56, 1  ;;  %v1664_v29 = vmul.f32 0.5, %v1649_v0  ;;  %v1706_v36 = vmul.f32 0.5, %v1691_v5  ;;  %v2108_v22 = vrot.slane %v2107_v6, 2 }
 0x231   : > { %v6546_v57 = vpop.permute.xlu0 %2220  ;;  %v6548_v3 = vpop.permute.xlu1 %2417  ;;  %v2152_v41 = vrot.slane %v2151_v43, 1  ;;  %v1732_v20 = vrot.slane %v1731_v59, 1  ;;  %v1816_v58 = vrot.slane %v1815_v55, 1  ;;  %v1858_v48 = vrot.slane %v1857_v10, 1 }
 0x232   : > { %9503 = vst [vmem:[#allocation103_spill] sm:$0xff] %v6546_v57  ;;  %v1983_v4 = vadd.f32 %v1982_v44, %v1981_v28  ;;  %v1774_v60 = vrot.slane %v1773_v45, 1  ;;  %v1900_v12 = vrot.slane %v1899_v17, 1  ;;  %v2025_v24 = vadd.f32 %v2024_v13, %v2023_v34 }
 0x233   : > { %v2195_v39 = vadd.f32 %v2194_v18, %v2193_v46  ;;  %v6556_v42 = vsel %vm9198_vm3, %v2263_v19, %v1625_v40  ;;  %v1942_v23 = vrot.slane %v1941_v38, 1  ;;  %v2067_v0 = vadd.f32 %v2066_v53, %v2065_v9  ;;  %v9504_v40 = vld [vmem:[#allocation74_spill] sm:$0xff]  ;;  %v9505_v53 = vld [vmem:[#allocation27_spill] sm:$0xff] }
 0x234   : > { %v2237_v5 = vadd.f32 %v2236_v54, %v2235_v56  ;;  %v6559_v51 = vadd.f32 %v1664_v29, %v6148_v27  ;;  %v6562_v11 = vadd.f32 %v1706_v36, %v6159_v14  ;;  %v2109_v35 = vadd.f32 %v2108_v22, %v2107_v6  ;;  %v9510_v29 = vld [vmem:[#allocation29_spill] sm:$0xff] }
 0x235   : > { %v6551_v63 = vpop.permute.xlu0 %2419  ;;  %v6553_v47 = vpop.permute.xlu1 %2445  ;;  %v2153_v16 = vadd.f32 %v2152_v41, %v2151_v43  ;;  %v1733_v28 = vadd.f32 %v1732_v20, %v1731_v59  ;;  %v1817_v32 = vadd.f32 %v1816_v58, %v1815_v55  ;;  %v1859_v62 = vadd.f32 %v1858_v48, %v1857_v10  ;;  %v9507_v59 = vld [vmem:[#allocation75_spill] sm:$0xff]  ;;  %v9508_v43 = vld [vmem:[#allocation28_spill] sm:$0xff] }
 0x236   : > { %v1984_v7 = vrot.slane %v1983_v4, 1  ;;  %vm9197_vm7 = vcmask 1044480   ;;  %v1775_v19 = vadd.f32 %v1774_v60, %v1773_v45  ;;  %v1901_v9 = vadd.f32 %v1900_v12, %v1899_v17  ;;  %v9512_v12 = vld [vmem:[#allocation52_spill] sm:$0xff] }
 0x237   : > { %v2026_v56 = vrot.slane %v2025_v24, 1  ;;  %v2210_v49 = vmul.f32 0.5, %v2195_v39  ;;  %v1943_v44 = vadd.f32 %v1942_v23, %v1941_v38  ;;  %v2068_v13 = vrot.slane %v2067_v0, 1 }
 0x238   : > { %v2252_v18 = vmul.f32 0.5, %v2237_v5  ;;  %vm9506_vm12 = vcmask 1039360   ;;  %vm9195_vm15 = vcmask 1045504   ;;  %v2110_v55 = vrot.slane %v2109_v35, 1 }
 0x239   : > { %v6564_v34 = vpop.permute.xlu0 %2443  ;;  %v6566_v46 = vpop.permute.xlu1 %2472  ;;  %v1468_v6 = vsel %vm9506_vm12, %v9505_v53, %v9504_v40  ;;  %v2168_v10 = vmul.f32 0.5, %v2153_v16  ;;  %vm9509_vm9 = vcmask 1031168   ;;  %vm9511_vm8 = vcmask 1022976  }
 0x23a   : > { %v1510_v54 = vsel %vm9509_vm9, %v9508_v43, %v9507_v59  ;;  %v1552_v17 = vsel %vm9511_vm8, %v9510_v29, %v6321_v26  ;;  %v1748_v45 = vmul.f32 0.5, %v1733_v28  ;;  %vm9196_vm13 = vcmask 1046528  }
 0x23b   : > { %v1832_v38 = vmul.f32 0.5, %v1817_v32  ;;  %v1874_v36 = vmul.f32 0.5, %v1859_v62  ;;  %v1985_v22 = vadd.f32 %v1984_v7, %v1983_v4  ;;  %v1916_v58 = vmul.f32 0.5, %v1901_v9 }
 0x23c   : > { %v2027_v48 = vadd.f32 %v2026_v56, %v2025_v24  ;;  %v2213_v60 = vadd.f32 %v2210_v49, %v6361_v25  ;;  %v1473_v39 = vmul.f32 %v1468_v6, %v9512_v12  ;;  %v2069_v23 = vadd.f32 %v2068_v13, %v2067_v0  ;;  %v9513_v24 = vld [vmem:[#allocation63_spill] sm:$0xff]  ;;  %v9514_v56 = vld [vmem:[#allocation66_spill] sm:$0xff] }
 0x23d   : > { %v6577_v41 = vpop.permute.xlu0 %2474  ;;  %v6579_v20 = vpop.permute.xlu1 %2503  ;;  %v2255_v5 = vadd.f32 %v2252_v18, %v6372_v30  ;;  %v1515_v16 = vmul.f32 %v1510_v54, %v9512_v12  ;;  %v1557_v28 = vmul.f32 %v1552_v17, %v9512_v12  ;;  %v1790_v32 = vmul.f32 0.5, %v1775_v19  ;;  %v9515_v0 = vld [vmem:[#allocation67_spill] sm:$0xff] }
 0x23e   : > { %v1958_v62 = vmul.f32 0.5, %v1943_v44  ;;  %v2111_v4 = vadd.f32 %v2110_v55, %v2109_v35  ;;  %v2171_v7 = vadd.f32 %v2168_v10, %v6356_v15  ;;  %vm1253_vm6 = vcmp.gt.f32.partialorder %v6424_v8, -0.5  ;;  %v9516_v44 = vld [vmem:[#allocation68_spill] sm:$0xff]  ;;  %v9555_v25 = vld [vmem:[#allocation95_spill] sm:$0xff]  ;;  %v9556_v15 = vld [vmem:[#allocation41_spill] sm:$0xff] }
 0x23f   : > { %vm1256_vm4 = vcmp.lt.f32.partialorder %v6424_v8, 9.5  ;;  %v1751_v9 = vadd.f32 %v1748_v45, %v9513_v24  ;;  %v1835_v49 = vadd.f32 %v1832_v38, %v9514_v56  ;;  %v1877_v13 = vadd.f32 %v1874_v36, %v9515_v0  ;;  %v9523_v38 = vld [vmem:[#allocation64_spill] sm:$0xff]  ;;  %v9586_v24 = vld [vmem:[#allocation97_spill] sm:$0xff] }
 0x240   : > { %v2000_v18 = vmul.f32 0.5, %v1985_v22  ;;  %vm1268_vm12 = vcmp.gt.f32.partialorder %v6456_v1, -0.5  ;;  %vm1271_vm9 = vcmp.lt.f32.partialorder %v6456_v1, 9.5  ;;  %v1919_v53 = vadd.f32 %v1916_v58, %v9516_v44  ;;  %v9524_v22 = vld [vmem:[#allocation70_spill] sm:$0xff] }
 0x241   : > { %v6594_v19 = vpop.permute.xlu0 %2501  ;;  %v6596_v35 = vpop.permute.xlu1 %2530  ;;  %v2042_v6 = vmul.f32 0.5, %v2027_v48  ;;  %vm9517_vm8 = vcmask 1040384   ;;  %vm9518_vm0 = vcmask 1043456   ;;  %v2084_v43 = vmul.f32 0.5, %v2069_v23  ;;  %v9526_v23 = vld [vmem:[#allocation71_spill] sm:$0xff] }
 0x242   : > { %v2306_v55 = vsel %vm9517_vm8, %v2171_v7, %v2213_v60  ;;  %v1482_v10 = vsel %vm9518_vm0, %v1473_v39, 0.0  ;;  %vm9520_vm1 = vmmov %vm9518_vm0  ;;  %vm1283_vm11 = vcmp.gt.f32.partialorder %v5944_v37, -0.5  ;;  %v1793_v36 = vadd.f32 %v1790_v32, %v9523_v38 }
 0x243   : > { %v6602_v54 = vsel %vm9254_vm2, %v2306_v55, %v2255_v5  ;;  %v1524_v29 = vsel %vm9520_vm1, %v1515_v16, 0.0  ;;  %vm9521_vm5 = vmmov %vm9518_vm0  ;;  %v1961_v58 = vadd.f32 %v1958_v62, %v9524_v22  ;;  %v2126_v48 = vmul.f32 0.5, %v2111_v4 }
 0x244   : > { %9519 = vst [vmem:[#allocation27_spill] sm:$0xff] %v6602_v54  ;;  %v1566_v17 = vsel %vm9521_vm5, %v1557_v28, 0.0  ;;  %vm9522_vm14 = vmmov %vm9518_vm0  ;;  %v2003_v5 = vadd.f32 %v2000_v18, %v9526_v23  ;;  %v1483_v16 = vrot.slane %v1482_v10, 4  ;;  %v2045_v55 = vadd.f32 %v2042_v6, %v6307_v61  ;;  %v9576_v61 = vld [vmem:[#allocation33_spill] sm:$0xff] }
 0x245   : > { %v2270_v45 = vsel %vm9522_vm14, %v6556_v42, %v6559_v51  ;;  %vm9525_vm0 = vmmov %vm9517_vm8  ;;  %v6616_v28 = vpop.permute.xlu0 %2532  ;;  %v6618_v7 = vpop.permute.xlu1 %2561  ;;  %v2312_v42 = vsel %vm9198_vm3, %v6602_v54, -inf  ;;  %v1525_v51 = vrot.slane %v1524_v29, 4  ;;  %v1567_v32 = vrot.slane %v1566_v17, 4 }
 0x246   : > { %v2274_v60 = vsel %vm9197_vm7, %v2270_v45, %v6562_v11  ;;  %v2285_v39 = vsel %vm9525_vm0, %v1835_v49, %v1877_v13  ;;  %v2087_v4 = vadd.f32 %v2084_v43, %v6336_v31  ;;  %v1295_v49 = vadd.f32 1.0, %v5944_v37  ;;  %v9527_v45 = vld [vmem:[#allocation80_spill] sm:$0xff]  ;;  %vm9528_vm14 = vmmov %vm9520_vm1 }
 0x247   : > { %v2278_v62 = vsel %vm9195_vm15, %v2274_v60, %v1751_v9  ;;  %v2288_v11 = vsel %vm9254_vm2, %v2285_v39, %v1919_v53  ;;  %v2129_v6 = vadd.f32 %v2126_v48, %v9527_v45  ;;  %v1310_v26 = vadd.f32 2.0, %v5944_v37  ;;  %vm6647_vm1 = vmand %vm1253_vm6, %vm1256_vm4  ;;  %v9559_v45 = vld [vmem:[#allocation31_spill] sm:$0xff] }
 0x248   : > { %v6628_v13 = vsel %vm9196_vm13, %v2278_v62, %v1793_v36  ;;  %v2291_v18 = vsel %vm9198_vm3, %v2288_v11, %v1961_v58  ;;  %v1484_v9 = vadd.f32 %v1483_v16, %v1482_v10  ;;  %vm1286_vm5 = vcmp.lt.f32.partialorder %v5944_v37, 9.5 }
 0x249   : > { %v2294_v59 = vsel %vm9528_vm14, %v2291_v18, %v2003_v5  ;;  %v2313_v40 = vmax.f32 %v6628_v13, %v2312_v42  ;;  %v6636_v53 = vpop.permute.xlu0 %2559  ;;  %v6638_v43 = vpop.permute.xlu1 %2588  ;;  %v1526_v60 = vadd.f32 %v1525_v51, %v1524_v29  ;;  %v1568_v39 = vadd.f32 %v1567_v32, %v1566_v17  ;;  %vm6659_vm14 = vmand %vm1268_vm12, %vm1271_vm9  ;;  %v9536_v42 = vld [vmem:[#allocation30_spill] sm:$0xff] }
 0x24a   : > { %9529 = vst [vmem:[#allocation28_spill] sm:$0xff] %v6636_v53  ;;  %9530 = vst [vmem:[#allocation29_spill] sm:$0xff] %v6638_v43  ;;  %v2297_v36 = vsel %vm9197_vm7, %v2294_v59, %v2045_v55  ;;  %v1325_v58 = vadd.f32 3.0, %v5944_v37  ;;  %vm1298_vm8 = vcmp.gt.f32.partialorder %v1295_v49, -0.5  ;;  %vm1301_vm0 = vcmp.lt.f32.partialorder %v1295_v49, 9.5  ;;  %v9535_v55 = vld [vmem:[#allocation78_spill] sm:$0xff] }
 0x24b   : > { %v2300_v48 = vsel %vm9195_vm15, %v2297_v36, %v2087_v4  ;;  %v1340_v5 = vadd.f32 4.0, %v5944_v37  ;;  %vm1313_vm15 = vcmp.gt.f32.partialorder %v1310_v26, -0.5  ;;  %vm1316_vm6 = vcmp.lt.f32.partialorder %v1310_v26, 9.5  ;;  %vm6677_vm12 = vmand %vm1283_vm11, %vm1286_vm5 }
 0x24c   : > { %v6653_v59 = vsel %vm9196_vm13, %v2300_v48, %v2129_v6  ;;  %v1355_v8 = vadd.f32 5.0, %v5944_v37  ;;  %v1485_v16 = vrot.slane %v1484_v9, 2  ;;  %vm9537_vm4 = vcmask 1014784  }
 0x24d   : > { %v2314_v17 = vmax.f32 %v2313_v40, %v6653_v59  ;;  %v1594_v51 = vsel %vm9537_vm4, %v9536_v42, %v9535_v55  ;;  %v1370_v32 = vadd.f32 6.0, %v5944_v37  ;;  %v6669_v62 = vpop.permute.xlu0 %2590  ;;  %v6671_v1 = vpop.permute.xlu1 %2421  ;;  %v1527_v11 = vrot.slane %v1526_v60, 2  ;;  %vm6693_vm4 = vmand %vm1298_vm8, %vm1301_vm0  ;;  %v9549_v55 = vld [vmem:[#allocation38_spill] sm:$0xff] }
 0x24e   : > { %9538 = vst [vmem:[#allocation52_spill] sm:$0xff] %v6669_v62  ;;  %9539 = vst [vmem:[#allocation30_spill] sm:$0xff] %v6671_v1  ;;  %v1569_v4 = vrot.slane %v1568_v39, 2  ;;  %vm1328_vm9 = vcmp.gt.f32.partialorder %v1325_v58, -0.5  ;;  %vm1331_vm13 = vcmp.lt.f32.partialorder %v1325_v58, 9.5  ;;  %v6684_v40 = vsel %vm6647_vm1, 0.0, %v9428_v2 }
 0x24f   : > { %9542 = vst [vmem:[#allocation104_spill] sm:$0xff] %v6684_v40  ;;  %v6689_v6 = vsel %vm6659_vm14, 0.0, %v9428_v2  ;;  %vm1343_vm11 = vcmp.gt.f32.partialorder %v1340_v5, -0.5  ;;  %vm1346_vm5 = vcmp.lt.f32.partialorder %v1340_v5, 9.5  ;;  %v1599_v48 = vmul.f32 %v1594_v51, %v9512_v12  ;;  %vm6703_vm1 = vmand %vm1313_vm15, %vm1316_vm6  ;;  %v9615_v62 = vld [vmem:[#allocation54_spill] sm:$0xff] }
 0x250   : > { %9543 = vst [vmem:[#allocation105_spill] sm:$0xff] %v6689_v6  ;;  %vm9546_vm7 = vcmask 973824   ;;  %vm1358_vm14 = vcmp.gt.f32.partialorder %v1355_v8, -0.5  ;;  %vm1361_vm3 = vcmp.lt.f32.partialorder %v1355_v8, 9.5  ;;  %v2315_v49 = vrot.slane %v2314_v17, 4  ;;  %vm6711_vm0 = vmand %vm1328_vm9, %vm1331_vm13 }
 0x251   : > { %v1804_v10 = vsel %vm9546_vm7, %v5878_v33, %v6471_v21  ;;  %v1486_v42 = vadd.f32 %v1485_v16, %v1484_v9  ;;  %vm9550_vm8 = vcmask 965632   ;;  %vm1373_vm7 = vcmp.gt.f32.partialorder %v1370_v32, -0.5  ;;  %v6715_v33 = vpop.permute.xlu0 %2447  ;;  %v6717_v26 = vpop.permute.xlu1 %2476  ;;  %v9558_v16 = vld [vmem:[#allocation86_spill] sm:$0xff]  ;;  %vm6738_vm13 = vmand %vm1343_vm11, %vm1346_vm5 }
 0x252   : > { %v1846_v30 = vsel %vm9550_vm8, %v9549_v55, %v6473_v50  ;;  %9553 = vst [vmem:[#allocation38_spill] sm:$0xff] %v6715_v33  ;;  %9554 = vst [vmem:[#allocation106_spill] sm:$0xff] %v6717_v26  ;;  %v1528_v21 = vadd.f32 %v1527_v11, %v1526_v60  ;;  %v1570_v38 = vadd.f32 %v1569_v4, %v1568_v39  ;;  %vm9557_vm15 = vcmask 957440  }
 0x253   : > { %v1888_v9 = vsel %vm9557_vm15, %v9556_v15, %v9555_v25  ;;  %vm1376_vm6 = vcmp.lt.f32.partialorder %v1370_v32, 9.5  ;;  %vm9560_vm8 = vcmask 1006592   ;;  %v1809_v55 = vmul.f32 %v1804_v10, %v9512_v12  ;;  %v9571_v10 = vld [vmem:[#allocation46_spill] sm:$0xff]  ;;  %v9578_v32 = vld [vmem:[#allocation93_spill] sm:$0xff] }
 0x254   : > { %v1636_v58 = vsel %vm9560_vm8, %v9559_v45, %v9558_v16  ;;  %v6729_v50 = vsel %vm6677_vm12, 0.0, %v9428_v2  ;;  %v6734_v60 = vsel %vm6693_vm4, 0.0, %v9428_v2  ;;  %vm9565_vm9 = vcmask 1043456   ;;  %vm6756_vm12 = vmand %vm1358_vm14, %vm1361_vm3 }
 0x255   : > { %9561 = vst [vmem:[#allocation41_spill] sm:$0xff] %v6729_v50  ;;  %9562 = vst [vmem:[#allocation31_spill] sm:$0xff] %v6734_v60  ;;  %v1608_v45 = vsel %vm9565_vm9, %v1599_v48, 0.0  ;;  %v1851_v39 = vmul.f32 %v1846_v30, %v9512_v12  ;;  %v6747_v11 = vsel %vm6703_vm1, 0.0, %v9428_v2  ;;  %v6752_v4 = vsel %vm6711_vm0, 0.0, %v9428_v2  ;;  %v9570_v48 = vld [vmem:[#allocation96_spill] sm:$0xff]  ;;  %v6766_v51 = vpop.permute.xlu0 %2505  ;;  %v6768_v25 = vpop.permute.xlu1 %2534 }
 0x256   : > { %9566 = vst [vmem:[#allocation107_spill] sm:$0xff] %v6747_v11  ;;  %9567 = vst [vmem:[#allocation108_spill] sm:$0xff] %v6752_v4  ;;  %v2316_v18 = vmax.f32 %v2314_v17, %v2315_v49  ;;  %v1487_v36 = vrot.slane %v1486_v42, 1  ;;  %v1893_v30 = vmul.f32 %v1888_v9, %v9512_v12  ;;  %v1930_v29 = vsel %vm9253_vm10, %v9571_v10, %v9570_v48  ;;  %v9575_v9 = vld [vmem:[#allocation87_spill] sm:$0xff] }
 0x257   : > { %vm1379_vm4 = vmand %vm1373_vm7, %vm1376_vm6  ;;  %9572 = vst [vmem:[#allocation46_spill] sm:$0xff] %v6766_v51  ;;  %v1529_v8 = vrot.slane %v1528_v21, 1  ;;  %v1571_v16 = vrot.slane %v1570_v38, 1  ;;  %v1641_v31 = vmul.f32 %v1636_v58, %v9512_v12  ;;  %v6774_v17 = vsel %vm6738_vm13, 0.0, %v9428_v2  ;;  %v9579_v48 = vld [vmem:[#allocation35_spill] sm:$0xff] }
 0x258   : > { %9573 = vst [vmem:[#allocation109_spill] sm:$0xff] %v6768_v25  ;;  %9574 = vst [vmem:[#allocation110_spill] sm:$0xff] %v6774_v17  ;;  %v1609_v49 = vrot.slane %v1608_v45, 4  ;;  %vm9577_vm3 = vcmask 998400   ;;  %vm9580_vm11 = vcmask 990208   ;;  %v1935_v58 = vmul.f32 %v1930_v29, %v9512_v12  ;;  %v9593_v25 = vld [vmem:[#allocation36_spill] sm:$0xff] }
 0x259   : > { %v1678_v10 = vsel %vm9577_vm3, %v9576_v61, %v9575_v9  ;;  %v1720_v23 = vsel %vm9580_vm11, %v9579_v48, %v9578_v32  ;;  %vm9581_vm5 = vmmov %vm9565_vm9  ;;  %v6788_v15 = vsel %vm6756_vm12, 0.0, %v9428_v2  ;;  %v6791_v0 = vsel %vm1379_vm4, 0.0, %v9428_v2  ;;  %v9587_v48 = vld [vmem:[#allocation51_spill] sm:$0xff]  ;;  %v6797_v32 = vpop.permute.xlu0 %2563 }
 0x25a   : > { %v1818_v22 = vsel %vm9581_vm5, %v1809_v55, 0.0  ;;  %vm9582_vm1 = vmmov %vm9581_vm5  ;;  %9583 = vst [vmem:[#allocation33_spill] sm:$0xff] %v6788_v15  ;;  %v2317_v56 = vrot.slane %v2316_v18, 2  ;;  %v1488_v61 = vadd.f32 %v1487_v36, %v1486_v42  ;;  %vm9588_vm0 = vcmask 941056  }
 0x25b   : > { %v1860_v44 = vsel %vm9582_vm1, %v1851_v39, 0.0  ;;  %9584 = vst [vmem:[#allocation35_spill] sm:$0xff] %v6791_v0  ;;  %vm9585_vm14 = vmmov %vm9582_vm1  ;;  %v1972_v55 = vsel %vm9588_vm0, %v9587_v48, %v9586_v24  ;;  %v6799_v39 = vpop.permute.xlu1 %4495  ;;  %v1683_v5 = vmul.f32 %v1678_v10, %v9512_v12  ;;  %v1725_v14 = vmul.f32 %v1720_v23, %v9512_v12 }
 0x25c   : > { %v1902_v9 = vsel %vm9585_vm14, %v1893_v30, 0.0  ;;  %9589 = vst [vmem:[#allocation51_spill] sm:$0xff] %v6797_v32  ;;  %9590 = vst [vmem:[#allocation111_spill] sm:$0xff] %v6799_v39  ;;  %v1819_v27 = vrot.slane %v1818_v22, 4  ;;  %v1530_v52 = vadd.f32 %v1529_v8, %v1528_v21  ;;  %v1572_v54 = vadd.f32 %v1571_v16, %v1570_v38  ;;  %v9592_v30 = vld [vmem:[#allocation94_spill] sm:$0xff]  ;;  %v9601_v8 = vld [vmem:[#allocation53_spill] sm:$0xff] }
 0x25d   : > { %vm9591_vm7 = vmmov %vm9582_vm1  ;;  %v1610_v42 = vadd.f32 %v1609_v49, %v1608_v45  ;;  %v1861_v36 = vrot.slane %v1860_v44, 4  ;;  %vm9594_vm15 = vcmask 982016   ;;  %v1903_v48 = vrot.slane %v1902_v9, 4  ;;  %v6812_v23 = vpop.permute.xlu0 %4743  ;;  %v9600_v45 = vld [vmem:[#allocation98_spill] sm:$0xff] }
 0x25e   : > { %v1650_v29 = vsel %vm9591_vm7, %v1641_v31, 0.0  ;;  %v1762_v51 = vsel %vm9594_vm15, %v9593_v25, %v9592_v30  ;;  %vm9595_vm6 = vmmov %vm9582_vm1  ;;  %v1977_v32 = vmul.f32 %v1972_v55, %v9512_v12  ;;  %v2318_v26 = vmax.f32 %v2316_v18, %v2317_v56  ;;  %9596 = vst [vmem:[#allocation36_spill] sm:$0xff] %v6812_v23 }
 0x25f   : > { %v1944_v24 = vsel %vm9595_vm6, %v1935_v58, 0.0  ;;  %v1497_v31 = vmul.f32 0.5, %v1488_v61  ;;  %v1651_v33 = vrot.slane %v1650_v29, 4  ;;  %v6810_v10 = vadd.f32 7.0, %v5944_v37  ;;  %v6814_v21 = vpop.permute.xlu1 %4505  ;;  %vm9598_vm8 = vmmov %vm9582_vm1 }
 0x260   : > { %9597 = vst [vmem:[#allocation112_spill] sm:$0xff] %v6814_v21  ;;  %v1692_v38 = vsel %vm9598_vm8, %v1683_v5, 0.0  ;;  %vm9599_vm13 = vmmov %vm9582_vm1  ;;  %v1820_v25 = vadd.f32 %v1819_v27, %v1818_v22  ;;  %vm9602_vm9 = vcmask 932864   ;;  %v1539_v58 = vmul.f32 0.5, %v1530_v52  ;;  %v9606_v52 = vld [vmem:[#allocation84_spill] sm:$0xff] }
 0x261   : > { %v1734_v16 = vsel %vm9599_vm13, %v1725_v14, 0.0  ;;  %v2014_v49 = vsel %vm9602_vm9, %v9601_v8, %v9600_v45  ;;  %v1767_v56 = vmul.f32 %v1762_v51, %v9512_v12  ;;  %v1862_v18 = vadd.f32 %v1861_v36, %v1860_v44  ;;  %vm9603_vm12 = vmmov %vm9582_vm1  ;;  %v6824_v27 = vpop.permute.xlu0 %4753 }
 0x262   : > { %v1945_v61 = vrot.slane %v1944_v24, 4  ;;  %v1581_v55 = vmul.f32 0.5, %v1572_v54  ;;  %v1611_v30 = vrot.slane %v1610_v42, 2  ;;  %v1904_v1 = vadd.f32 %v1903_v48, %v1902_v9  ;;  %9604 = vst [vmem:[#allocation53_spill] sm:$0xff] %v6824_v27  ;;  %vm9607_vm4 = vmmov %vm9582_vm1  ;;  %v9609_v48 = vld [vmem:[#allocation88_spill] sm:$0xff] }
 0x263   : > { %v1986_v0 = vsel %vm9603_vm12, %v1977_v32, 0.0  ;;  %v1652_v21 = vadd.f32 %v1651_v33, %v1650_v29  ;;  %v1693_v23 = vrot.slane %v1692_v38, 4  ;;  %v1735_v5 = vrot.slane %v1734_v16, 4  ;;  %v6826_v22 = vpop.permute.xlu1 %4510  ;;  %v9608_v29 = vld [vmem:[#allocation85_spill] sm:$0xff]  ;;  %vm9610_vm3 = vmmov %vm9582_vm1 }
 0x264   : > { %v2019_v14 = vmul.f32 %v2014_v49, %v9512_v12  ;;  %9605 = vst [vmem:[#allocation113_spill] sm:$0xff] %v6826_v22  ;;  %v2319_v8 = vrot.slane %v2318_v26, 1  ;;  %v1500_v45 = vadd.f32 %v1497_v31, %v9606_v52  ;;  %v1821_v51 = vrot.slane %v1820_v25, 2  ;;  %vm9626_vm0 = vmmov %vm9610_vm3 }
 0x265   : > { %v6830_v44 = vadd.f32 8.0, %v5944_v37  ;;  %v1776_v54 = vsel %vm9607_vm4, %v1767_v56, 0.0  ;;  %v1863_v9 = vrot.slane %v1862_v18, 2  ;;  %v1946_v32 = vadd.f32 %v1945_v61, %v1944_v24  ;;  %v6836_v52 = vpop.permute.xlu0 %4763  ;;  %v9614_v61 = vld [vmem:[#allocation99_spill] sm:$0xff]  ;;  %vm9629_vm7 = vmmov %vm9626_vm0 }
 0x266   : > { %v1987_v33 = vrot.slane %v1986_v0, 4  ;;  %v1542_v36 = vadd.f32 %v1539_v58, %v9608_v29  ;;  %v1584_v49 = vadd.f32 %v1581_v55, %v9609_v48  ;;  %v1612_v39 = vadd.f32 %v1611_v30, %v1610_v42  ;;  %9611 = vst [vmem:[#allocation114_spill] sm:$0xff] %v6836_v52  ;;  %v9617_v48 = vld [vmem:[#allocation100_spill] sm:$0xff]  ;;  %vm9630_vm15 = vmmov %vm9626_vm0 }
 0x267   : > { %v1905_v27 = vrot.slane %v1904_v1, 2  ;;  %v1653_v15 = vrot.slane %v1652_v21, 2  ;;  %v1694_v22 = vadd.f32 %v1693_v23, %v1692_v38  ;;  %v1736_v40 = vadd.f32 %v1735_v5, %v1734_v16  ;;  %v6838_v17 = vpop.permute.xlu1 %2592  ;;  %v9618_v23 = vld [vmem:[#allocation56_spill] sm:$0xff]  ;;  %vm9640_vm4 = vmmov %vm9626_vm0 }
 0x268   : > { %v2028_v31 = vsel %vm9610_vm3, %v2019_v14, 0.0  ;;  %9612 = vst [vmem:[#allocation115_spill] sm:$0xff] %v6838_v17  ;;  %v6840_v43 = vmax.f32 %v2318_v26, %v2319_v8  ;;  %v1777_v56 = vrot.slane %v1776_v54, 4  ;;  %v1822_v24 = vadd.f32 %v1821_v51, %v1820_v25 }
 0x269   : > { %vm9616_vm11 = vcmask 924672   ;;  %v1864_v55 = vadd.f32 %v1863_v9, %v1862_v18  ;;  %v1947_v42 = vrot.slane %v1946_v32, 2  ;;  %v1988_v30 = vadd.f32 %v1987_v33, %v1986_v0  ;;  %v6850_v51 = vpop.permute.xlu0 %4768 }
 0x26a   : > { %9613 = vst [vmem:[#allocation116_spill] sm:$0xff] %v6840_v43  ;;  %v2056_v58 = vsel %vm9616_vm11, %v9615_v62, %v9614_v61  ;;  %vm9619_vm5 = vcmask 916480   ;;  %vm9620_vm1 = vcmask 1040384   ;;  %v1613_v5 = vrot.slane %v1612_v39, 1  ;;  %9621 = vst [vmem:[#allocation54_spill] sm:$0xff] %v6850_v51 }
 0x26b   : > { %v2098_v38 = vsel %vm9619_vm5, %v9618_v23, %v9617_v48  ;;  %v2260_v16 = vsel %vm9620_vm1, %v1500_v45, %v1542_v36  ;;  %v1906_v14 = vadd.f32 %v1905_v27, %v1904_v1  ;;  %v2029_v29 = vrot.slane %v2028_v31, 4  ;;  %v6852_v62 = vpop.permute.xlu1 %2619  ;;  %v9623_v23 = vld [vmem:[#allocation101_spill] sm:$0xff]  ;;  %vm9639_vm12 = vmmov %vm9620_vm1 }
 0x26c   : > { %v1654_v26 = vadd.f32 %v1653_v15, %v1652_v21  ;;  %v1695_v8 = vrot.slane %v1694_v22, 2  ;;  %v1737_v17 = vrot.slane %v1736_v40, 2  ;;  %v2061_v25 = vmul.f32 %v2056_v58, %v9512_v12  ;;  %9622 = vst [vmem:[#allocation56_spill] sm:$0xff] %v6852_v62  ;;  %v9624_v48 = vld [vmem:[#allocation65_spill] sm:$0xff]  ;;  %vm9641_vm11 = vmmov %vm9626_vm0 }
 0x26d   : > { %v6855_v0 = vsel %vm9254_vm2, %v2260_v16, %v1584_v49  ;;  %v1778_v18 = vadd.f32 %v1777_v56, %v1776_v54  ;;  %v1823_v9 = vrot.slane %v1822_v24, 1  ;;  %v2103_v33 = vmul.f32 %v2098_v38, %v9512_v12  ;;  %v6864_v56 = vpop.permute.xlu0 %2617 }
 0x26e   : > { %v2343_v1 = vsub.f32 %v6628_v13, %v6840_v43  ;;  %v1865_v45 = vrot.slane %v1864_v55, 1  ;;  %v1948_v15 = vadd.f32 %v1947_v42, %v1946_v32  ;;  %v1989_v21 = vrot.slane %v1988_v30, 2  ;;  %9627 = vst [vmem:[#allocation65_spill] sm:$0xff] %v6864_v56 }
 0x26f   : > { %v1614_v27 = vadd.f32 %v1613_v5, %v1612_v39  ;;  %v1907_v36 = vrot.slane %v1906_v14, 1  ;;  %v2030_v58 = vadd.f32 %v2029_v29, %v2028_v31  ;;  %vm9625_vm14 = vcmask 908288   ;;  %v6866_v38 = vpop.permute.xlu1 %2646 }
 0x270   : > { %v2140_v61 = vsel %vm9625_vm14, %v9624_v48, %v9623_v23  ;;  %v1655_v51 = vrot.slane %v1654_v26, 1  ;;  %v1696_v49 = vadd.f32 %v1695_v8, %v1694_v22  ;;  %v1738_v16 = vadd.f32 %v1737_v17, %v1736_v40  ;;  %9628 = vst [vmem:[#allocation117_spill] sm:$0xff] %v6866_v38 }
 0x271   : > { %v2070_v54 = vsel %vm9626_vm0, %v2061_v25, 0.0  ;;  %v1779_v13 = vrot.slane %v1778_v18, 2  ;;  %v1824_v52 = vadd.f32 %v1823_v9, %v1822_v24  ;;  %v2112_v32 = vsel %vm9629_vm7, %v2103_v33, 0.0  ;;  %v6873_v9 = vpop.permute.xlu0 %2621 }
 0x272   : > { %v2145_v39 = vmul.f32 %v2140_v61, %v9512_v12  ;;  %v2352_v29 = vmul.f32 1.442695, %v2343_v1  ;;  %v1866_v31 = vadd.f32 %v1865_v45, %v1864_v55  ;;  %v1949_v42 = vrot.slane %v1948_v15, 1  ;;  %9631 = vst [vmem:[#allocation118_spill] sm:$0xff] %v6873_v9 }
 0x273   : > { %v1990_v5 = vadd.f32 %v1989_v21, %v1988_v30  ;;  %v1908_v48 = vadd.f32 %v1907_v36, %v1906_v14  ;;  %v2031_v23 = vrot.slane %v2030_v58, 2  ;;  %v2071_v22 = vrot.slane %v2070_v54, 4  ;;  %v6875_v61 = vpop.permute.xlu1 %2650 }
 0x274   : > { %v2154_v40 = vsel %vm9630_vm15, %v2145_v39, 0.0  ;;  %v1623_v17 = vmul.f32 0.5, %v1614_v27  ;;  %v1656_v8 = vadd.f32 %v1655_v51, %v1654_v26  ;;  %v2113_v25 = vrot.slane %v2112_v32, 4  ;;  %9632 = vst [vmem:[#allocation119_spill] sm:$0xff] %v6875_v61  ;;  %v9633_v39 = vld [vmem:[#allocation89_spill] sm:$0xff] }
 0x275   : > { %vm1388_vm6 = vcmp.gt.f32.partialorder %v6810_v10, -0.5  ;;  %vm1391_vm8 = vcmp.lt.f32.partialorder %v6810_v10, 9.5  ;;  %v2155_v24 = vrot.slane %v2154_v40, 4  ;;  %v1697_v55 = vrot.slane %v1696_v49, 1  ;;  %v6880_v61 = vpop.permute.xlu0 %2648 }
 0x276   : > { %v1739_v33 = vrot.slane %v1738_v16, 1  ;;  %v1780_v30 = vadd.f32 %v1779_v13, %v1778_v18  ;;  %v1833_v14 = vmul.f32 0.5, %v1824_v52  ;;  %v2346_v1 = vsub.f32 %v6653_v59, %v6840_v43  ;;  %vm1394_vm3 = vmand %vm1388_vm6, %vm1391_vm8 }
 0x277   : > { %v1875_v45 = vmul.f32 0.5, %v1866_v31  ;;  %v1950_v21 = vadd.f32 %v1949_v42, %v1948_v15  ;;  %v1991_v26 = vrot.slane %v1990_v5, 1  ;;  %5196 = vpow2.f32 %v2352_v29  ;;  %v6882_v53 = vpop.permute.xlu1 %2677 }
 0x278   : > { %v1917_v51 = vmul.f32 0.5, %v1908_v48  ;;  %v2032_v27 = vadd.f32 %v2031_v23, %v2030_v58  ;;  %v2072_v36 = vadd.f32 %v2071_v22, %v2070_v54  ;;  %v1626_v38 = vadd.f32 %v1623_v17, %v9633_v39  ;;  %v9634_v58 = vld [vmem:[#allocation102_spill] sm:$0xff]  ;;  %v9635_v23 = vld [vmem:[#allocation72_spill] sm:$0xff] }
 0x279   : > { %v1665_v56 = vmul.f32 0.5, %v1656_v8  ;;  %v2114_v9 = vadd.f32 %v2113_v25, %v2112_v32  ;;  %v2156_v62 = vadd.f32 %v2155_v24, %v2154_v40  ;;  %v1698_v52 = vadd.f32 %v1697_v55, %v1696_v49  ;;  %v9637_v40 = vld [vmem:[#allocation90_spill] sm:$0xff]  ;;  %v6892_v25 = vpop.permute.xlu0 %2675 }
 0x27a   : > { %v1740_v18 = vadd.f32 %v1739_v33, %v1738_v16  ;;  %v1781_v13 = vrot.slane %v1780_v30, 1  ;;  %v1836_v59 = vadd.f32 %v1833_v14, %v6689_v6  ;;  %v1878_v15 = vadd.f32 %v1875_v45, %v6729_v50 }
 0x27b   : > { %v1959_v29 = vmul.f32 0.5, %v1950_v21  ;;  %v1992_v31 = vadd.f32 %v1991_v26, %v1990_v5  ;;  %vm9636_vm13 = vcmask 900096   ;;  %v2358_v42 = vmul.f32 1.442695, %v2346_v1  ;;  %v6894_v24 = vpop.permute.xlu1 %2704 }
 0x27c   : > { %v2182_v54 = vsel %vm9636_vm13, %v9635_v23, %v9634_v58  ;;  %v1920_v32 = vadd.f32 %v1917_v51, %v6734_v60  ;;  %v2033_v48 = vrot.slane %v2032_v27, 1  ;;  %v2073_v22 = vrot.slane %v2072_v36, 2 }
 0x27d   : > { %v1668_v17 = vadd.f32 %v1665_v56, %v9637_v40  ;;  %v2115_v49 = vrot.slane %v2114_v9, 2  ;;  %v2157_v16 = vrot.slane %v2156_v62, 2  ;;  %v2187_v8 = vmul.f32 %v2182_v54, %v9512_v12 }
 0x27e   : > { %vm9638_vm9 = vcmask 1042432   ;;  %v1707_v55 = vmul.f32 0.5, %v1698_v52  ;;  %v1749_v33 = vmul.f32 0.5, %v1740_v18  ;;  %v1782_v14 = vadd.f32 %v1781_v13, %v1780_v30  ;;  %v6909_v18 = vpop.permute.xlu0 %2679 }
 0x27f   : > { %v2268_v5 = vsel %vm9638_vm9, %v6855_v0, %v1626_v38  ;;  %v2286_v1 = vsel %vm9639_vm12, %v1836_v59, %v1878_v15  ;;  %v1962_v45 = vadd.f32 %v1959_v29, %v6747_v11  ;;  %v2001_v21 = vmul.f32 0.5, %v1992_v31  ;;  %9642 = vst [vmem:[#allocation72_spill] sm:$0xff] %v6909_v18  ;;  %v6911_v13 = vpop.permute.xlu1 %2708  ;;  %v9646_v15 = vld [vmem:[#allocation92_spill] sm:$0xff]  ;;  %vm9647_vm5 = vmmov %vm9638_vm9 }
 0x280   : > { %v2196_v56 = vsel %vm9640_vm4, %v2187_v8, 0.0  ;;  %v2289_v26 = vsel %vm9254_vm2, %v2286_v1, %v1920_v32  ;;  %v2034_v51 = vadd.f32 %v2033_v48, %v2032_v27  ;;  %v2074_v23 = vadd.f32 %v2073_v22, %v2072_v36  ;;  %9643 = vst [vmem:[#allocation120_spill] sm:$0xff] %v6911_v13  ;;  %v9645_v27 = vld [vmem:[#allocation91_spill] sm:$0xff] }
 0x281   : > { %v2197_v0 = vrot.slane %v2196_v56, 4  ;;  %5198 = vpow2.f32 %v2358_v42  ;;  %v6907_v38 = vsel %vm9641_vm11, %v2268_v5, %v1668_v17  ;;  %v2116_v30 = vadd.f32 %v2115_v49, %v2114_v9  ;;  %v6913_v59 = vpop.eup %5196  ;;  %v9649_v42 = vld [vmem:[#allocation73_spill] sm:$0xff]  ;;  %v9651_v5 = vld [vmem:[#allocation11_spill] sm:$0xff] }
 0x282   : > { %v2158_v52 = vadd.f32 %v2157_v16, %v2156_v62  ;;  %9644 = vst [vmem:[#allocation121_spill] sm:$0xff] %v6913_v59  ;;  %v6916_v36 = vadd.f32 %v1707_v55, %v9645_v27  ;;  %v6919_v29 = vadd.f32 %v1749_v33, %v9646_v15  ;;  %v6921_v10 = vmul.f32 0.5, %v1782_v14  ;;  %v9652_v33 = vld [vmem:[#allocation15_spill] sm:$0xff]  ;;  %v6936_v1 = vpop.permute.xlu0 %2706  ;;  %v9655_v15 = vld [vmem:[#allocation18_spill] sm:$0xff] }
 0x283   : > { %v2198_v31 = vadd.f32 %v2197_v0, %v2196_v56  ;;  %v2292_v54 = vsel %vm9647_vm5, %v2289_v26, %v1962_v45  ;;  %v2004_v9 = vadd.f32 %v2001_v21, %v6752_v4  ;;  %v6926_v62 = vsel %vm1394_vm3, 0.0, %v9428_v2  ;;  %v6938_v45 = vpop.permute.xlu1 %2735 }
 0x284   : > { %9648 = vst [vmem:[#allocation122_spill] sm:$0xff] %v6926_v62  ;;  %vm9650_vm1 = vcmask 891904   ;;  %v2043_v48 = vmul.f32 0.5, %v2034_v51  ;;  %v2075_v22 = vrot.slane %v2074_v23, 1  ;;  %v2117_v16 = vrot.slane %v2116_v30, 1 }
 0x285   : > { %v2224_v32 = vsel %vm9650_vm1, %v9649_v42, %v6546_v57  ;;  %v2199_v17 = vrot.slane %v2198_v31, 2  ;;  %v2159_v8 = vrot.slane %v2158_v52, 1  ;;  %v2405_v55 = vrot.slane %v6913_v59, %v9651_v5  ;;  %vm9668_vm1 = vmmov %vm9626_vm0 }
 0x286   : > { %v2229_v49 = vmul.f32 %v2224_v32, %v9512_v12  ;;  %v2434_v14 = vrot.slane %v6913_v59, %v9652_v33  ;;  %vm1403_vm14 = vcmp.gt.f32.partialorder %v6830_v44, -0.5  ;;  %vm9653_vm7 = vcmask 1039360  }
 0x287   : > { %v2200_v21 = vadd.f32 %v2199_v17, %v2198_v31  ;;  %v2423_v26 = vsel %vm9653_vm7, %v6548_v3, %v6551_v63  ;;  %v1415_v51 = vadd.f32 9.0, %v5944_v37  ;;  %vm9654_vm15 = vcmask 1031168   ;;  %v9657_v37 = vld [vmem:[#allocation13_spill] sm:$0xff]  ;;  %v6959_v4 = vpop.permute.xlu1 %2762 }
 0x288   : > { %v2238_v56 = vsel %vm9626_vm0, %v2229_v49, 0.0  ;;  %v2428_v42 = vmul.f32 %v2423_v26, %v2405_v55  ;;  %v2449_v32 = vsel %vm9654_vm15, %v6564_v34, %v6553_v47  ;;  %vm1406_vm6 = vcmp.lt.f32.partialorder %v6830_v44, 9.5  ;;  %v6957_v26 = vpop.permute.xlu0 %2733 }
 0x289   : > { %v2239_v0 = vrot.slane %v2238_v56, 4  ;;  %v2201_v57 = vrot.slane %v2200_v21, 1  ;;  %v2454_v58 = vmul.f32 %v2449_v32, %v2434_v14  ;;  %v2463_v31 = vrot.slane %v6913_v59, %v9655_v15  ;;  %vm1409_vm4 = vmand %vm1403_vm14, %vm1406_vm6 }
 0x28a   : > { %v2160_v17 = vadd.f32 %v2159_v8, %v2158_v52  ;;  %vm9656_vm8 = vcmask 1022976   ;;  %v2492_v55 = vrot.slane %v6913_v59, %v9657_v37  ;;  %vm9658_vm13 = vcmask 1014784  }
 0x28b   : > { %v2240_v49 = vadd.f32 %v2239_v0, %v2238_v56  ;;  %v2478_v3 = vsel %vm9656_vm8, %v6566_v46, %v6577_v41  ;;  %v2202_v34 = vadd.f32 %v2201_v57, %v2200_v21  ;;  %v2457_v11 = vadd.f32 %v2454_v58, %v2428_v42  ;;  %v6964_v52 = vpop.eup %5198  ;;  %v9660_v57 = vld [vmem:[#allocation12_spill] sm:$0xff] }
 0x28c   : > { %v2483_v60 = vmul.f32 %v2478_v3, %v2463_v31  ;;  %v2507_v14 = vsel %vm9658_vm13, %v6594_v19, %v6579_v20  ;;  %9659 = vst [vmem:[#allocation73_spill] sm:$0xff] %v6964_v52  ;;  %v2076_v8 = vadd.f32 %v2075_v22, %v2074_v23  ;;  %vm1418_vm9 = vcmp.gt.f32.partialorder %v1415_v51, -0.5  ;;  %v9662_v22 = vld [vmem:[#allocation16_spill] sm:$0xff]  ;;  %v6977_v31 = vpop.permute.xlu0 %2737 }
 0x28d   : > { %vm1421_vm12 = vcmp.lt.f32.partialorder %v1415_v51, 9.5  ;;  %v2241_v46 = vrot.slane %v2240_v49, 2  ;;  %v2512_v0 = vmul.f32 %v2507_v14, %v2492_v55  ;;  %v2521_v58 = vrot.slane %v6913_v59, %v9660_v57  ;;  %9663 = vst [vmem:[#allocation123_spill] sm:$0xff] %v6977_v31 }
 0x28e   : > { %v2486_v56 = vadd.f32 %v2483_v60, %v2457_v11  ;;  %vm9661_vm3 = vcmask 1006592   ;;  %v2118_v21 = vadd.f32 %v2117_v16, %v2116_v30  ;;  %v2169_v42 = vmul.f32 0.5, %v2160_v17  ;;  %v9664_v60 = vld [vmem:[#allocation28_spill] sm:$0xff]  ;;  %vm1424_vm5 = vmand %vm1418_vm9, %vm1421_vm12  ;;  %v6987_v16 = vpop.permute.xlu1 %2766 }
 0x28f   : > { %v2536_v19 = vsel %vm9661_vm3, %v6596_v35, %v6616_v28  ;;  %v2242_v23 = vadd.f32 %v2241_v46, %v2240_v49  ;;  %v2550_v32 = vrot.slane %v6913_v59, %v9662_v22  ;;  %v2211_v3 = vmul.f32 0.5, %v2202_v34  ;;  %9667 = vst [vmem:[#allocation124_spill] sm:$0xff] %v6987_v16  ;;  %v9669_v34 = vld [vmem:[#allocation19_spill] sm:$0xff] }
 0x290   : > { %v2515_v44 = vadd.f32 %v2512_v0, %v2486_v56  ;;  %v2541_v50 = vmul.f32 %v2536_v19, %v2521_v58  ;;  %vm9665_vm11 = vcmask 998400   ;;  %v2085_v55 = vmul.f32 0.5, %v2076_v8  ;;  %v9670_v56 = vld [vmem:[#allocation52_spill] sm:$0xff]  ;;  %v9671_v0 = vld [vmem:[#allocation29_spill] sm:$0xff]  ;;  %v9673_v58 = vld [vmem:[#allocation110_spill] sm:$0xff]  ;;  %v6997_v27 = vpop.permute.xlu0 %2764 }
 0x291   : > { %v2565_v11 = vsel %vm9665_vm11, %v9664_v60, %v6618_v7  ;;  %v6983_v14 = vsel %vm1409_vm4, 0.0, %v9428_v2  ;;  %v2243_v35 = vrot.slane %v2242_v23, 1  ;;  %v2295_v17 = vsel %vm9668_vm1, %v2292_v54, %v2004_v9  ;;  %9674 = vst [vmem:[#allocation52_spill] sm:$0xff] %v6997_v27 }
 0x292   : > { %9666 = vst [vmem:[#allocation28_spill] sm:$0xff] %v6983_v14  ;;  %v2570_v30 = vmul.f32 %v2565_v11, %v2550_v32  ;;  %v2544_v49 = vadd.f32 %v2541_v50, %v2515_v44  ;;  %v2579_v46 = vrot.slane %v6913_v59, %v9669_v34  ;;  %vm9672_vm14 = vcmask 990208   ;;  %v9677_v11 = vld [vmem:[#allocation104_spill] sm:$0xff] }
 0x293   : > { %v2594_v8 = vsel %vm9672_vm14, %v9671_v0, %v9670_v56  ;;  %v2046_v19 = vadd.f32 %v2043_v48, %v9673_v58  ;;  %v2127_v60 = vmul.f32 0.5, %v2118_v21  ;;  %v2172_v51 = vadd.f32 %v2169_v42, %v6926_v62  ;;  %v9678_v21 = vld [vmem:[#allocation33_spill] sm:$0xff] }
 0x294   : > { %v2244_v6 = vadd.f32 %v2243_v35, %v2242_v23  ;;  %v2214_v32 = vadd.f32 %v2211_v3, %v6983_v14  ;;  %v7001_v54 = vsel %vm1424_vm5, 0.0, %v9428_v2  ;;  %v2573_v50 = vadd.f32 %v2570_v30, %v2544_v49  ;;  %v9680_v3 = vld [vmem:[#allocation69_spill] sm:$0xff]  ;;  %v9681_v14 = vld [vmem:[#allocation111_spill] sm:$0xff]  ;;  %v9683_v30 = vld [vmem:[#allocation36_spill] sm:$0xff] }
 0x295   : > { %9675 = vst [vmem:[#allocation29_spill] sm:$0xff] %v7001_v54  ;;  %v2599_v9 = vmul.f32 %v2594_v8, %v2579_v46  ;;  %vm9676_vm0 = vcmask 1044480   ;;  %v1794_v48 = vadd.f32 %v6921_v10, %v9677_v11  ;;  %v2088_v0 = vadd.f32 %v2085_v55, %v9678_v21  ;;  %v9682_v58 = vld [vmem:[#allocation57_spill] sm:$0xff]  ;;  %v9685_v8 = vld [vmem:[#allocation35_spill] sm:$0xff]  ;;  %v7020_v55 = vpop.permute.xlu1 %2793  ;;  %v9714_v21 = vld [vmem:[#allocation42_spill] sm:$0xff] }
 0x296   : > { %v2275_v44 = vsel %vm9676_vm0, %v6907_v38, %v6916_v36  ;;  %v2253_v42 = vmul.f32 0.5, %v2244_v6  ;;  %vm9679_vm7 = vcmask 1045504   ;;  %v4498_v62 = vadd.f32 %v9681_v14, %v9680_v3  ;;  %vm9684_vm15 = vmmov %vm9676_vm0  ;;  %v9686_v10 = vld [vmem:[#allocation17_spill] sm:$0xff]  ;;  %v9688_v14 = vld [vmem:[#allocation112_spill] sm:$0xff] }
 0x297   : > { %v2279_v23 = vsel %vm9679_vm7, %v2275_v44, %v6919_v29  ;;  %v2602_v35 = vadd.f32 %v2599_v9, %v2573_v50  ;;  %v4746_v49 = vadd.f32 %v9683_v30, %v9682_v58  ;;  %v2298_v46 = vsel %vm9684_vm15, %v2295_v17, %v2046_v19  ;;  %v7022_v29 = vpop.permute.xlu0 %2791  ;;  %v9689_v44 = vld [vmem:[#allocation53_spill] sm:$0xff]  ;;  %v9690_v3 = vld [vmem:[#allocation56_spill] sm:$0xff]  ;;  %vm9694_vm9 = vmmov %vm9679_vm7 }
 0x298   : > { %v2130_v38 = vadd.f32 %v2127_v60, %v9685_v8  ;;  %v2256_v36 = vadd.f32 %v2253_v42, %v7001_v54  ;;  %v2608_v6 = vrot.slane %v6913_v59, %v9686_v10  ;;  %vm9687_vm6 = vcmask 1040384   ;;  %v9691_v17 = vld [vmem:[#allocation65_spill] sm:$0xff]  ;;  %v9713_v8 = vld [vmem:[#allocation6_spill] sm:$0xff] }
 0x299   : > { %v2307_v50 = vsel %vm9687_vm6, %v2172_v51, %v2214_v32  ;;  %v4508_v9 = vadd.f32 %v9688_v14, %v4498_v62  ;;  %v4756_v58 = vadd.f32 %v9689_v44, %v4746_v49  ;;  %vm9692_vm8 = vcmask 982016   ;;  %v9697_v32 = vld [vmem:[#allocation113_spill] sm:$0xff]  ;;  %v9698_v14 = vld [vmem:[#allocation114_spill] sm:$0xff] }
 0x29a   : > { %v2623_v19 = vsel %vm9692_vm8, %v9691_v17, %v9690_v3  ;;  %vm9693_vm13 = vcmask 1046528   ;;  %v2301_v42 = vsel %vm9694_vm9, %v2298_v46, %v2088_v0  ;;  %v7035_v30 = vsel %vm9254_vm2, %v2307_v50, %v2256_v36  ;;  %v5253_v17 = vld [vmem:[%s5376_s8 + $0x8] sm:$0xf]  ;;  %v9699_v46 = vld [vmem:[#allocation117_spill] sm:$0xff] }
 0x29b   : > { %v7031_v60 = vsel %vm9693_vm13, %v2279_v23, %v1794_v48  ;;  %9695 = vst [vmem:[#allocation69_spill] sm:$0xff] %v7035_v30  ;;  %v2628_v54 = vmul.f32 %v2623_v19, %v2608_v6  ;;  %vm9696_vm12 = vcmask 1042432   ;;  %v4513_v62 = vadd.f32 %v9697_v32, %v4508_v9  ;;  %v7049_v6 = vpop.permute.xlu0 %2795  ;;  %vm9702_vm3 = vmmov %vm9693_vm13 }
 0x29c   : > { %v2321_v51 = vsel %vm9696_vm12, %v7035_v30, -inf  ;;  %v4766_v49 = vadd.f32 %v9698_v14, %v4756_v58  ;;  %v2637_v44 = vrot.slane %v6964_v52, %v9651_v5  ;;  %v942_v48 = vrot.slane %v5253_v17, %v9657_v37  ;;  %9701 = vst [vmem:[#allocation111_spill] sm:$0xff] %v7049_v6  ;;  %v9704_v58 = vld [vmem:[#allocation54_spill] sm:$0xff]  ;;  %v9705_v14 = vld [vmem:[#allocation39_spill] sm:$0xff] }
 0x29d   : > { %v2322_v23 = vmax.f32 %v7031_v60, %v2321_v51  ;;  %v2631_v0 = vadd.f32 %v2628_v54, %v2602_v35  ;;  %vm9700_vm4 = vcmask 973824   ;;  %v7052_v50 = vsel %vm9702_vm3, %v2301_v42, %v2130_v38  ;;  %v2821_v42 = vpop.permute.xlu1 %2820 }
 0x29e   : > { %v2652_v36 = vsel %vm9700_vm4, %v9699_v46, %v6880_v61  ;;  %v7054_v9 = vmax.f32 %v4513_v62, 0.0  ;;  %v4771_v19 = vadd.f32 %v9704_v58, %v4766_v49  ;;  %v9706_v17 = vrot.slane %v9705_v14, %v9662_v22  ;;  %v9708_v62 = vld [vmem:[#allocation2_spill] sm:$0xff] }
 0x29f   : > { %v2657_v32 = vmul.f32 %v2652_v36, %v2637_v44  ;;  %v2323_v54 = vmax.f32 %v2322_v23, %v7052_v50  ;;  %v2666_v35 = vrot.slane %v6964_v52, %v9652_v33  ;;  %vm9707_vm11 = vcmask 965632  }
 0x2a0   : > { %9703 = vst [vmem:[#allocation57_spill] sm:$0xff] %v7054_v9  ;;  %v879_v51 = vrot.slane %v9706_v17, %v9652_v33  ;;  %v2681_v38 = vsel %vm9707_vm11, %v6892_v25, %v6882_v53  ;;  %v9709_v49 = vrot.slane %v9708_v62, %v9652_v33  ;;  %v9710_v46 = vrot.slane %v9705_v14, %v9657_v37 }
 0x2a1   : > { %v4527_v23 = vrot.slane %v7054_v9, %v9652_v33  ;;  %v7079_v58 = vmax.f32 %v4771_v19, 0.0  ;;  %v9712_v25 = vrot.slane %v9705_v14, %v9686_v10  ;;  %v2324_v11 = vrot.slane %v2323_v54, 4 }
 0x2a2   : > { %v883_v44 = vrot.slane %v9709_v49, %v9652_v33  ;;  %v7075_v36 = vrot.slane %v9710_v46, %v9657_v37  ;;  %v2660_v62 = vadd.f32 %v2657_v32, %v2631_v0  ;;  %v2686_v49 = vmul.f32 %v2681_v38, %v2666_v35  ;;  %v9715_v46 = vld [vmem:[#allocation8_spill] sm:$0xff]  ;;  %v7102_v35 = vpop.permute.xlu0 %2822 }
 0x2a3   : > { %9711 = vst [vmem:[#allocation36_spill] sm:$0xff] %v7079_v58  ;;  %v7085_v17 = vrot.slane %v9712_v25, %v9657_v37  ;;  %v7089_v40 = vmul.f32 %v9714_v21, %v9713_v8  ;;  %v425_v39 = vrot.slane %v9715_v46, %v9651_v5  ;;  %v7094_v2 = vrot.slane %v942_v48, %v9657_v37  ;;  %v9718_v25 = vld [vmem:[#allocation44_spill] sm:$0xff] }
 0x2a4   : > { %4529 = vrot.lane.b32.xlu0 %v4527_v23, %s5300_s23  ;;  %v4785_v19 = vrot.slane %v7079_v58, %v9652_v33  ;;  %v459_v14 = vrot.slane %v9715_v46, %v9652_v33  ;;  %v2325_v0 = vmax.f32 %v2323_v54, %v2324_v11  ;;  %v2689_v32 = vadd.f32 %v2686_v49, %v2660_v62 }
 0x2a5   : > { %v2695_v21 = vrot.slane %v6964_v52, %v9655_v15  ;;  %9716 = vst [vmem:[#allocation112_spill] sm:$0xff] %v7102_v35  ;;  %v4541_v38 = vrot.slane %v7054_v9, %v9655_v15  ;;  %vm9717_vm5 = vcmask 957440   ;;  %v2724_v23 = vrot.slane %v6964_v52, %v9657_v37  ;;  %v7116_v9 = vpop.permute.xlu1 %2824 }
 0x2a6   : > { %4787 = vrot.lane.b32.xlu1 %v4785_v19, %s5300_s23  ;;  %v2710_v48 = vsel %vm9717_vm5, %v6894_v24, %v6936_v1  ;;  %v923_v11 = vmul.f32 %v9718_v25, %v9713_v8  ;;  %v2326_v54 = vrot.slane %v2325_v0, 2  ;;  %v5301_v49 = vmov 8   ;;  %9719 = vst [vmem:[#allocation53_spill] sm:$0xff] %v7116_v9  ;;  %v9721_v25 = vld [vmem:[#allocation14_spill] sm:$0xff]  ;;  %s5303_s23 = smov 4  }
 0x2a7   : > { %v2715_v62 = vmul.f32 %v2710_v48, %v2695_v21  ;;  %5171 = vset.pattern.permute.xlu0 %v5301_v49  ;;  %v2739_v59 = vsel %vm9253_vm10, %v6957_v26, %v6938_v45  ;;  %v4799_v19 = vrot.slane %v7079_v58, %v9655_v15  ;;  %v2753_v30 = vrot.slane %v6964_v52, %v9660_v57  ;;  %v9722_v49 = vld [vmem:[#allocation49_spill] sm:$0xff] }
 0x2a8   : > { %4543 = vrot.lane.b32.xlu0 %v4541_v38, %s5302_s24  ;;  %v2744_v24 = vmul.f32 %v2739_v59, %v2724_v23  ;;  %vm9720_vm1 = vcmask 941056   ;;  %v440_v48 = vrot.slane %v425_v39, %v9651_v5  ;;  %v884_v26 = vmul.f32 %v9722_v49, %v9721_v25  ;;  %v9724_v23 = vld [vmem:[#allocation10_spill] sm:$0xff] }
 0x2a9   : > { %v2768_v21 = vsel %vm9720_vm1, %v6959_v4, %v6997_v27  ;;  %v2327_v43 = vmax.f32 %v2325_v0, %v2326_v54  ;;  %v2718_v9 = vadd.f32 %v2715_v62, %v2689_v32  ;;  %v474_v6 = vrot.slane %v459_v14, %v9652_v33  ;;  %v9725_v4 = vld [vmem:[#allocation45_spill] sm:$0xff]  ;;  %v2850_v0 = vpop.permute.xlu0 %2849  ;;  %v9726_v32 = vld [vmem:[#allocation48_spill] sm:$0xff] }
 0x2aa   : > { %4801 = vrot.lane.b32.xlu1 %v4799_v19, %s5302_s24  ;;  %v2773_v58 = vmul.f32 %v2768_v21, %v2753_v30  ;;  %v2782_v59 = vrot.slane %v6964_v52, %v9662_v22  ;;  %vm9723_vm14 = vcmask 932864   ;;  %v850_v27 = vmul.f32 %v9725_v4, %v9724_v23  ;;  %v9727_v30 = vld [vmem:[#allocation34_spill] sm:$0xff] }
 0x2ab   : > { %v2797_v38 = vsel %vm9723_vm14, %v7022_v29, %v7020_v55  ;;  %v886_v39 = vmul.f32 %v883_v44, %v9721_v25  ;;  %v2328_v16 = vrot.slane %v2327_v43, 1  ;;  %v2747_v49 = vadd.f32 %v2744_v24, %v2718_v9  ;;  %v7148_v24 = vpop.permute.xlu1 %2851 }
 0x2ac   : > { %v852_v14 = vmul.f32 %v9726_v32, %v9724_v23  ;;  %2853 = vrot.lane.b32.xlu0 %v9727_v30, %s5295_s14  ;;  %v2802_v54 = vmul.f32 %v2797_v38, %v2782_v59  ;;  %v2811_v62 = vrot.slane %v6964_v52, %v9669_v34  ;;  %vm9728_vm0 = vcmask 924672   ;;  %9729 = vst [vmem:[#allocation56_spill] sm:$0xff] %v7148_v24  ;;  %v9730_v32 = vld [vmem:[#allocation25_spill] sm:$0xff] }
 0x2ad   : > { %v2826_v29 = vsel %vm9728_vm0, %v2821_v42, %v7102_v35  ;;  %v885_v19 = vmul.f32 %v879_v51, %v9721_v25  ;;  %v887_v21 = vadd.f32 %v884_v26, %v850_v27  ;;  %v7146_v44 = vmax.f32 %v2327_v43, %v2328_v16  ;;  %v9732_v51 = vld [vmem:[#allocation3_spill] sm:$0xff]  ;;  %v9734_v26 = vld [vmem:[#allocation4_spill] sm:$0xff] }
 0x2ae   : > { %v2776_v9 = vadd.f32 %v2773_v58, %v2747_v49  ;;  %v496_v4 = vrot.slane %v9715_v46, %v9655_v15  ;;  %2878 = vrot.lane.b32.xlu1 %v9730_v32, %s9251_s15  ;;  %v2831_v59 = vmul.f32 %v2826_v29, %v2811_v62  ;;  %v2840_v38 = vrot.slane %v6964_v52, %v9686_v10  ;;  %v9733_v43 = vld [vmem:[#allocation47_spill] sm:$0xff]  ;;  %v9735_v29 = vld [vmem:[#allocation26_spill] sm:$0xff] }
 0x2af   : > { %vm9731_vm7 = vcmask 916480   ;;  %v443_v27 = vmul.f32 %v440_v48, %v9732_v51  ;;  %v851_v16 = vmul.f32 %v9733_v43, %v9724_v23  ;;  %v889_v58 = vadd.f32 %v886_v39, %v852_v14 }
 0x2b0   : > { %v2855_v42 = vsel %vm9731_vm7, %v2850_v0, %v7148_v24  ;;  %v2344_v25 = vsub.f32 %v7031_v60, %v7146_v44  ;;  %v477_v49 = vmul.f32 %v474_v6, %v9734_v26  ;;  %v533_v62 = vrot.slane %v9715_v46, %v9657_v37  ;;  %2880 = vrot.lane.b32.xlu0 %v9735_v29, %s9251_s15  ;;  %v9736_v24 = vld [vmem:[#allocation20_spill] sm:$0xff]  ;;  %v9737_v6 = vld [vmem:[#allocation43_spill] sm:$0xff] }
 0x2b1   : > { %v2805_v52 = vadd.f32 %v2802_v54, %v2776_v9  ;;  %v2860_v35 = vmul.f32 %v2855_v42, %v2840_v38  ;;  %v888_v0 = vadd.f32 %v885_v19, %v851_v16  ;;  %v958_v48 = vmul.f32 %v7075_v36, %v9736_v24 }
 0x2b2   : > { %v924_v23 = vadd.f32 %v7089_v40, %v887_v21  ;;  %v2354_v39 = vmul.f32 1.442695, %v2344_v25  ;;  %v511_v14 = vrot.slane %v496_v4, %v9655_v15  ;;  %2882 = vrot.lane.b32.xlu1 %v9727_v30, %s9251_s15  ;;  %v922_v46 = vmul.f32 %v9737_v6, %v9713_v8  ;;  %v5254_v6 = vld [vmem:[%s9061_s2] sm:$0xf]  ;;  %s9805_s15 = smov 123  }
 0x2b3   : > { %v2834_v60 = vadd.f32 %v2831_v59, %v2805_v52  ;;  %v960_v54 = vmul.f32 %v7094_v2, %v9736_v24  ;;  %v926_v9 = vadd.f32 %v923_v11, %v889_v58  ;;  %v480_v19 = vadd.f32 %v477_v49, %v443_v27  ;;  %v9738_v59 = vld [vmem:[#allocation5_spill] sm:$0xff] }
 0x2b4   : > { %5200 = vpow2.f32 %v2354_v39  ;;  %v548_v36 = vrot.slane %v533_v62, %v9657_v37  ;;  %2907 = vrot.lane.b32.xlu0 %v9730_v32, %s9249_s17  ;;  %v959_v21 = vmul.f32 %v7085_v17, %v9736_v24  ;;  %v925_v52 = vadd.f32 %v922_v46, %v888_v0  ;;  %v9740_v27 = vld [vmem:[#allocation21_spill] sm:$0xff] }
 0x2b5   : > { %v7181_v40 = vadd.f32 %v2860_v35, %v2834_v60  ;;  %v961_v4 = vadd.f32 %v958_v48, %v924_v23  ;;  %v2347_v8 = vsub.f32 %v7052_v50, %v7146_v44  ;;  %v514_v2 = vmul.f32 %v511_v14, %v9738_v59  ;;  %v9739_v35 = vld [vmem:[#allocation9_spill] sm:$0xff]  ;;  %v9743_v48 = vld [vmem:[#allocation38_spill] sm:$0xff] }
 0x2b6   : > { %2909 = vrot.lane.b32.xlu1 %v9735_v29, %s9249_s17  ;;  %v963_v11 = vadd.f32 %v960_v54, %v926_v9  ;;  %v551_v42 = vmul.f32 %v548_v36, %v9739_v35  ;;  %v962_v51 = vadd.f32 %v959_v21, %v925_v52  ;;  %vm9742_vm15 = vcmask 1039360   ;;  %v9747_v9 = vld [vmem:[#allocation106_spill] sm:$0xff] }
 0x2b7   : > { %v517_v38 = vadd.f32 %v514_v2, %v480_v19  ;;  %v968_v17 = vadd.f32 %v9740_v27, %v961_v4  ;;  %v2360_v24 = vmul.f32 1.442695, %v2347_v8  ;;  %vm9744_vm6 = vcmask 1031168   ;;  %v9749_v19 = vld [vmem:[#allocation50_spill] sm:$0xff]  ;;  %v9753_v2 = vld [vmem:[#allocation51_spill] sm:$0xff] }
 0x2b8   : > { %2911 = vrot.lane.b32.xlu0 %v9727_v30, %s9249_s17  ;;  %v970_v50 = vadd.f32 %v9740_v27, %v963_v11  ;;  %v969_v58 = vadd.f32 %v9740_v27, %v962_v51  ;;  %v2450_v23 = vsel %vm9744_vm6, %v6553_v47, %v9743_v48  ;;  %vm9748_vm8 = vcmask 1022976   ;;  %v9751_v8 = vld [vmem:[#allocation46_spill] sm:$0xff]  ;;  %v9756_v51 = vld [vmem:[#allocation109_spill] sm:$0xff]  ;;  %s9808_s17 = smov 111  }
 0x2b9   : > { %v554_v16 = vadd.f32 %v551_v42, %v517_v38  ;;  %v2966_v25 = vrot.slane %v968_v17, 4  ;;  %5202 = vpow2.f32 %v2360_v24  ;;  %vm9750_vm13 = vcmask 1043456  }
 0x2ba   : > { %2936 = vrot.lane.b32.xlu1 %v9730_v32, %s9247_s18  ;;  %v2968_v62 = vrot.slane %v970_v50, 4  ;;  %v2967_v54 = vrot.slane %v969_v58, 4  ;;  %vm9752_vm9 = vcmask 1014784   ;;  %vm9754_vm12 = vcmask 998400   ;;  %vm9755_vm4 = vmmov %vm9750_vm13 }
 0x2bb   : > { %v2972_v47 = vsel %vm9750_vm13, %v9749_v19, %v2966_v25  ;;  %v2508_v59 = vsel %vm9752_vm9, %v6579_v20, %v9751_v8  ;;  %vm9757_vm3 = vcmask 1006592   ;;  %vm9758_vm11 = vmmov %vm9755_vm4  ;;  %v9759_v20 = vmov 0   ;;  %v9760_v25 = vld [vmem:[#allocation115_spill] sm:$0xff] }
 0x2bc   : > { %2938 = vrot.lane.b32.xlu0 %v9735_v29, %s9247_s18  ;;  %v9741_v29 = vld [vmem:[#allocation30_spill] sm:$0xff]  ;;  %v2537_v27 = vsel %vm9757_vm3, %v6616_v28, %v9756_v51  ;;  %v2973_v17 = vsel %vm9758_vm11, %v9512_v12, %v2967_v54  ;;  %vm9761_vm5 = vcmask 990208   ;;  %vm9763_vm1 = vcmask 982016  }
 0x2bd   : > { %v2424_v0 = vsel %vm9742_vm15, %v6551_v63, %v9741_v29  ;;  %v2479_v63 = vsel %vm9748_vm8, %v6577_v41, %v9747_v9  ;;  %v2566_v41 = vsel %vm9754_vm12, %v6618_v7, %v9753_v2  ;;  %v9762_v28 = vld [vmem:[#allocation118_spill] sm:$0xff]  ;;  %vm9765_vm14 = vcmask 973824  }
 0x2be   : > { %v7199_v43 = vpop.eup %5200  ;;  %2940 = vrot.lane.b32.xlu1 %v9727_v30, %s9247_s18  ;;  %v9745_v30 = vld [vmem:[#allocation7_spill] sm:$0xff]  ;;  %v2624_v12 = vsel %vm9763_vm1, %v9690_v3, %v9762_v28  ;;  %vm9766_vm0 = vcmask 965632   ;;  %vm9767_vm7 = vcmask 957440   ;;  %v2740_v19 = vsel %vm9253_vm10, %v6938_v45, %v6977_v31  ;;  %s9818_s18 = smov 110  }
 0x2bf   : > { %v2409_v26 = vrot.slane %v7199_v43, %v9651_v5  ;;  %v2438_v49 = vrot.slane %v7199_v43, %v9652_v33  ;;  %v2467_v32 = vrot.slane %v7199_v43, %v9655_v15  ;;  %v2496_v60 = vrot.slane %v7199_v43, %v9657_v37 }
 0x2c0   : > { %2957 = vperm.xlu0 %5171, %v5254_v6   ;;  %v7222_v46 = vadd.f32 %v9745_v30, %v554_v16  ;;  %v2525_v52 = vrot.slane %v7199_v43, %v9660_v57  ;;  %v2554_v4 = vrot.slane %v7199_v43, %v9662_v22  ;;  %v2583_v7 = vrot.slane %v7199_v43, %v9669_v34 }
 0x2c1   : > { %v2429_v39 = vmul.f32 %v2424_v0, %v2409_v26  ;;  %v2455_v14 = vmul.f32 %v2450_v23, %v2438_v49  ;;  %v2484_v21 = vmul.f32 %v2479_v63, %v2467_v32  ;;  %v2513_v35 = vmul.f32 %v2508_v59, %v2496_v60  ;;  %v9764_v49 = vld [vmem:[#allocation119_spill] sm:$0xff] }
 0x2c2   : > { %9746 = vst [vmem:[#allocation65_spill] sm:$0xff] %v7222_v46  ;;  %2978 = vrot.lane.b32.xlu1 %v2972_v47, %s5279_s16  ;;  %v2974_v11 = vsel %vm9755_vm4, %v7222_v46, %v2968_v62  ;;  %v2571_v42 = vmul.f32 %v2566_v41, %v2554_v4  ;;  %v2542_v50 = vmul.f32 %v2537_v27, %v2525_v52  ;;  %v9769_v52 = vld [vmem:[#allocation52_spill] sm:$0xff]  ;;  %vm9770_vm15 = vcmask 941056   ;;  %v9773_v27 = vld [vmem:[#allocation53_spill] sm:$0xff] }
 0x2c3   : > { %v2458_v36 = vadd.f32 %v2455_v14, %v2429_v39  ;;  %v7252_v16 = vpop.eup %5202  ;;  %v2595_v26 = vsel %vm9761_vm5, %v9670_v56, %v9760_v25  ;;  %v2653_v32 = vsel %vm9765_vm14, %v6880_v61, %v9764_v49  ;;  %v2612_v23 = vrot.slane %v7199_v43, %v9686_v10 }
 0x2c4   : > { %2982 = vrot.lane.b32.xlu0 %v2974_v11, %s5279_s16  ;;  %v2600_v0 = vmul.f32 %v2595_v26, %v2583_v7  ;;  %v2641_v39 = vrot.slane %v7252_v16, %v9651_v5  ;;  %v2682_v56 = vsel %vm9766_vm0, %v6882_v53, %v6909_v18  ;;  %v2670_v3 = vrot.slane %v7252_v16, %v9652_v33  ;;  %v9771_v11 = vld [vmem:[#allocation111_spill] sm:$0xff] }
 0x2c5   : > { %v2487_v38 = vadd.f32 %v2484_v21, %v2458_v36  ;;  %5173 = vset.pattern.permute.xlu0 %v9759_v20  ;;  %v2629_v60 = vmul.f32 %v2624_v12, %v2612_v23  ;;  %v2711_v61 = vsel %vm9767_vm7, %v6936_v1, %v6911_v13  ;;  %v2699_v63 = vrot.slane %v7252_v16, %v9655_v15  ;;  %v9768_v21 = vld [vmem:[#allocation124_spill] sm:$0xff] }
 0x2c6   : > { %2980 = vrot.lane.b32.xlu1 %v2973_v17, %s5279_s16  ;;  %v2658_v6 = vmul.f32 %v2653_v32, %v2641_v39  ;;  %v2687_v54 = vmul.f32 %v2682_v56, %v2670_v3  ;;  %v2728_v36 = vrot.slane %v7252_v16, %v9657_v37  ;;  %v2769_v4 = vsel %vm9770_vm15, %v9769_v52, %v9768_v21  ;;  %v9774_v17 = vld [vmem:[#allocation112_spill] sm:$0xff]  ;;  %v9778_v39 = vld [vmem:[#allocation69_spill] sm:$0xff]  ;;  %s9802_s16 = smov 124  }
 0x2c7   : > { %v2516_v24 = vadd.f32 %v2513_v35, %v2487_v38  ;;  %v2716_v47 = vmul.f32 %v2711_v61, %v2699_v63  ;;  %v2757_v41 = vrot.slane %v7252_v16, %v9660_v57  ;;  %vm9772_vm6 = vcmask 932864   ;;  %v9779_v61 = vld [vmem:[#allocation121_spill] sm:$0xff] }
 0x2c8   : > { %v2745_v1 = vmul.f32 %v2740_v19, %v2728_v36  ;;  %v2798_v38 = vsel %vm9772_vm6, %v7020_v55, %v9771_v11  ;;  %vm9775_vm8 = vcmask 924672   ;;  %v9777_v55 = vld [vmem:[#allocation27_spill] sm:$0xff]  ;;  %v2350_v56 = vsub.f32 %v9778_v39, %v7146_v44 }
 0x2c9   : > { %v2545_v58 = vadd.f32 %v2542_v50, %v2516_v24  ;;  %v2774_v45 = vmul.f32 %v2769_v4, %v2757_v41  ;;  %v2827_v24 = vsel %vm9775_vm8, %v9774_v17, %v9773_v27  ;;  %vm9781_vm13 = vcmask 1042432  }
 0x2ca   : > { %v2379_v19 = vadd.f32 %v7252_v16, %v7199_v43  ;;  %vm9782_vm9 = vmmov %vm9781_vm13  ;;  %vm9785_vm12 = vcmask 916480   ;;  %vm9786_vm4 = vcmask 908288   ;;  %vm9789_vm11 = vcmask 900096  }
 0x2cb   : > { %v2574_v62 = vadd.f32 %v2571_v42, %v2545_v58  ;;  %v2786_v42 = vrot.slane %v7252_v16, %v9662_v22  ;;  %v2815_v58 = vrot.slane %v7252_v16, %v9669_v34  ;;  %vm9788_vm3 = vmmov %vm9786_vm4  ;;  %vm9792_vm1 = vcmask 891904  }
 0x2cc   : > { %vm9791_vm5 = vmmov %vm9789_vm11  ;;  %vm9796_vm0 = vcmask 80896   ;;  %vm9801_vm6 = vcmask 605184  }
 0x2cd   : > { %v2603_v14 = vadd.f32 %v2600_v0, %v2574_v62  ;;  %v2803_v7 = vmul.f32 %v2798_v38, %v2786_v42  ;;  %v2832_v12 = vmul.f32 %v2827_v24, %v2815_v58  ;;  %v9776_v0 = vld [vmem:[#allocation116_spill] sm:$0xff]  ;;  %v2844_v24 = vrot.slane %v7252_v16, %v9686_v10  ;;  %vm9794_vm14 = vmmov %vm9792_vm1 }
 0x2ce   : > { %v2349_v23 = vsub.f32 %v9777_v55, %v9776_v0  ;;  %vm9798_vm7 = vmmov %vm9796_vm0 }
 0x2cf   : > { %v2632_v30 = vadd.f32 %v2629_v60, %v2603_v14  ;;  %v2366_v60 = vmul.f32 1.442695, %v2350_v56  ;;  %vm9800_vm15 = vmmov %vm9796_vm0 }
 0x2d0   : > { %v2364_v14 = vmul.f32 1.442695, %v2349_v23 }
 0x2d1   : > { %v2661_v53 = vadd.f32 %v2658_v6, %v2632_v30  ;;  %v9780_v30 = vld [vmem:[#allocation73_spill] sm:$0xff] }
 0x2d2   : > { %5204 = vpow2.f32 %v2364_v14 }
 0x2d3   : > { %v2690_v59 = vadd.f32 %v2687_v54, %v2661_v53  ;;  %5206 = vpow2.f32 %v2366_v60  ;;  %v2370_v54 = vadd.f32 %v9780_v30, %v9779_v61 }
 0x2d5   : > { %v2719_v35 = vadd.f32 %v2716_v47, %v2690_v59 }
 0x2d7   : > { %v2748_v50 = vadd.f32 %v2745_v1, %v2719_v35 }
 0x2d9   : > { %v2777_v26 = vadd.f32 %v2774_v45, %v2748_v50  ;;  %v9784_v50 = vld [vmem:[#allocation56_spill] sm:$0xff] }
 0x2db   : > { %v2806_v32 = vadd.f32 %v2803_v7, %v2777_v26 }
 0x2dc   : > { %v5205_v6 = vpop.eup %5204 }
 0x2dd   : > { %v2835_v62 = vadd.f32 %v2832_v12, %v2806_v32  ;;  %v5207_v3 = vpop.eup %5206  ;;  %v2371_v63 = vsel %vm9781_vm13, %v5205_v6, 0.0  ;;  %v2869_v23 = vrot.slane %v5205_v6, %v9651_v5 }
 0x2de   : > { %v2380_v53 = vsel %vm9782_vm9, %v5207_v3, 0.0  ;;  %v2372_v47 = vadd.f32 %v2371_v63, %v2370_v54  ;;  %v2873_v16 = vrot.slane %v5207_v3, %v9651_v5 }
 0x2df   : > { %v2381_v36 = vadd.f32 %v2380_v53, %v2379_v19 }
 0x2e0   : > { %v2373_v52 = vrot.slane %v2372_v47, 4 }
 0x2e1   : > { %v2382_v44 = vrot.slane %v2381_v36, 4 }
 0x2e2   : > { %v2374_v4 = vadd.f32 %v2373_v52, %v2372_v47 }
 0x2e3   : > { %v2383_v1 = vadd.f32 %v2382_v44, %v2381_v36  ;;  %v2898_v36 = vrot.slane %v5205_v6, %v9652_v33 }
 0x2e4   : > { %v2375_v38 = vrot.slane %v2374_v4, 2 }
 0x2e5   : > { %v2384_v45 = vrot.slane %v2383_v1, 2 }
 0x2e6   : > { %v2376_v17 = vadd.f32 %v2375_v38, %v2374_v4  ;;  %v2902_v4 = vrot.slane %v5207_v3, %v9652_v33 }
 0x2e7   : > { %v2385_v58 = vadd.f32 %v2384_v45, %v2383_v1 }
 0x2e8   : > { %v2377_v32 = vrot.slane %v2376_v17, 1 }
 0x2e9   : > { %v2386_v56 = vrot.slane %v2385_v58, 1 }
 0x2ea   : > { %v2378_v30 = vadd.f32 %v2377_v32, %v2376_v17  ;;  %v2931_v32 = vrot.slane %v5207_v3, %v9655_v15 }
 0x2ec   : > { %5208 = vrcp.f32 %v2378_v30 }
 0x316   : > { %v7307_v59 = vpop.permute.xlu0 %4529 }
 0x318   : > { %v7309_v41 = vpop.permute.xlu1 %4787 }
 0x31a   : > { %v7311_v35 = vpop.permute.xlu0 %4543 }
 0x31c   : > { %v7313_v42 = vpop.permute.xlu1 %4801 }
 0x31e   : > { %v7315_v43 = vpop.permute.xlu0 %2853 }
 0x31f   : > { %9783 = vst [vmem:[#allocation113_spill] sm:$0xff] %v7315_v43  ;;  %v2856_v7 = vsel %vm9785_vm12, %v9784_v50, %v7315_v43 }
 0x320   : > { %v2861_v26 = vmul.f32 %v2856_v7, %v2844_v24  ;;  %v2879_v12 = vpop.permute.xlu1 %2878  ;;  %v2927_v7 = vrot.slane %v5205_v6, %v9655_v15 }
 0x322   : > { %v2864_v0 = vadd.f32 %v2861_v26, %v2835_v62  ;;  %v2881_v55 = vpop.permute.xlu0 %2880  ;;  %v2387_v62 = vadd.f32 %v2386_v56, %v2385_v58 }
 0x323   : > { %v2884_v39 = vsel %vm9786_vm4, %v2879_v12, %v2881_v55  ;;  %vm9807_vm4 = vcmask 1039360  }
 0x324   : > { %v2889_v14 = vmul.f32 %v2884_v39, %v2869_v23  ;;  %v7324_v60 = vpop.permute.xlu1 %2882  ;;  %5210 = vrcp.f32 %v2387_v62  ;;  %v5209_v39 = vpop.eup %5208 }
 0x325   : > { %9787 = vst [vmem:[#allocation114_spill] sm:$0xff] %v7324_v60  ;;  %v2885_v61 = vsel %vm9788_vm3, %v2881_v55, %v7324_v60 }
 0x326   : > { %v2908_v54 = vpop.permute.xlu0 %2907  ;;  %v2892_v63 = vadd.f32 %v2889_v14, %v7181_v40  ;;  %v2890_v19 = vmul.f32 %v2885_v61, %v2873_v16 }
 0x328   : > { %v2893_v53 = vadd.f32 %v2890_v19, %v2864_v0  ;;  %v2910_v47 = vpop.permute.xlu1 %2909 }
 0x329   : > { %v2913_v52 = vsel %vm9789_vm11, %v2908_v54, %v2910_v47 }
 0x32a   : > { %v7332_v44 = vpop.permute.xlu0 %2911  ;;  %v2918_v1 = vmul.f32 %v2913_v52, %v2898_v36  ;;  %v9804_v52 = vld [vmem:[#allocation57_spill] sm:$0xff] }
 0x32b   : > { %9790 = vst [vmem:[#allocation117_spill] sm:$0xff] %v7332_v44  ;;  %v2914_v38 = vsel %vm9791_vm5, %v2910_v47, %v7332_v44  ;;  %v9803_v47 = vld [vmem:[#allocation36_spill] sm:$0xff] }
 0x32c   : > { %v2919_v45 = vmul.f32 %v2914_v38, %v2902_v4  ;;  %v2921_v40 = vadd.f32 %v2918_v1, %v2892_v63  ;;  %v2937_v17 = vpop.permute.xlu1 %2936  ;;  %v4776_v36 = vrot.slane %v9803_v47, %v9651_v5  ;;  %v4518_v4 = vrot.slane %v9804_v52, %v9651_v5  ;;  %v7387_v1 = vld [vmem:[%s9063_s4 + $0x4] sm:$0x7] }
 0x32d   : > { %v4790_v38 = vmul.f32 %v7387_v1, %v7309_v41  ;;  %v9811_v47 = vmov 0  ;;  %v9813_v52 = vld [vmem:[#allocation22_spill] sm:$0xff] }
 0x32e   : > { %v2939_v24 = vpop.permute.xlu0 %2938  ;;  %v2922_v50 = vadd.f32 %v2919_v45, %v2893_v53  ;;  %v5211_v61 = vpop.eup %5210  ;;  %v7395_v45 = vld [vmem:[%s9063_s4] sm:$0x7] }
 0x32f   : > { %v2942_v58 = vsel %vm9792_vm1, %v2937_v17, %v2939_v24  ;;  %v4804_v17 = vmul.f32 %v7387_v1, %v7313_v42  ;;  %v4546_v41 = vmul.f32 %v7395_v45, %v7311_v35 }
 0x330   : > { %v2947_v26 = vmul.f32 %v2942_v58, %v2927_v7  ;;  %v7339_v12 = vpop.permute.xlu1 %2940 }
 0x331   : > { %9793 = vst [vmem:[#allocation54_spill] sm:$0xff] %v7339_v12  ;;  %v2943_v0 = vsel %vm9794_vm14, %v2939_v24, %v7339_v12 }
 0x332   : > { %v2950_v55 = vadd.f32 %v2947_v26, %v2921_v40  ;;  %v2948_v23 = vmul.f32 %v2943_v0, %v2931_v32  ;;  %v4532_v40 = vmul.f32 %v7395_v45, %v7307_v59  ;;  %v9806_v59 = vld [vmem:[#allocation32_spill] sm:$0xff] }
 0x333   : > { %v1127_v35 = vadd.s32 256, %v9806_v59 }
 0x334   : > { %v7344_v56 = vmul.f32 %v5209_v39, %v2950_v55  ;;  %v2951_v14 = vadd.f32 %v2948_v23, %v2922_v50  ;;  %v2979_v16 = vpop.permute.xlu1 %2978 }
 0x335   : > { %v7347_v6 = vsel %vm9796_vm0, 0.0, %v2979_v16  ;;  %v1130_v42 = vcvt.s32.f32 %v1127_v35 }
 0x336   : > { %9795 = vst [vmem:[#allocation39_spill] sm:$0xff] %v7344_v56  ;;  %2992 = vrot.lane.b32.xlu1 %v7347_v6, %s5280_s19  ;;  %v7351_v30 = vmul.f32 %v5211_v61, %v2951_v14  ;;  %v7592_v12 = vrot.slane %v7347_v6, 4 }
 0x337   : > { %v1134_v24 = vmul.f32 0.1, %v1130_v42 }
 0x338   : > { %9797 = vst [vmem:[#allocation2_spill] sm:$0xff] %v7351_v30  ;;  %v2981_v3 = vpop.permute.xlu1 %2980 }
 0x339   : > { %v7354_v54 = vsel %vm9798_vm7, %v2979_v16, %v2981_v3  ;;  %v1137_v50 = vfloor.f32 %v1134_v24 }
 0x33a   : > { %2994 = vrot.lane.b32.xlu0 %v7354_v54, %s5280_s19 }
 0x33b   : > { %v1140_v7 = vmul.f32 10.0, %v1137_v50 }
 0x33d   : > { %v7477_v58 = vsub.f32 %v1130_v42, %v1140_v7  ;;  %v9824_v42 = vmov -1e+30  }
 0x33e   : > { %3033 = vrot.lane.b32.xlu0 %v7347_v6, %s5281_s20 }
 0x33f   : > { %v7360_v63 = vpop.permute.xlu0 %2957  ;;  %v1146_v26 = vadd.f32 -9.0, %v7477_v58  ;;  %v1161_v32 = vadd.f32 -8.0, %v7477_v58  ;;  %v1176_v0 = vadd.f32 -7.0, %v7477_v58  ;;  %v1191_v55 = vadd.f32 -6.0, %v7477_v58 }
 0x340   : > { %9799 = vst [vmem:[#allocation6_spill] sm:$0xff] %v7360_v63  ;;  %v1206_v23 = vadd.f32 -5.0, %v7477_v58  ;;  %v1221_v16 = vadd.f32 -4.0, %v7477_v58 }
 0x341   : > { %vm1149_vm8 = vcmp.gt.f32.partialorder %v1146_v26, -0.5  ;;  %vm1152_vm13 = vcmp.lt.f32.partialorder %v1146_v26, 9.5  ;;  %vm1164_vm9 = vcmp.gt.f32.partialorder %v1161_v32, -0.5  ;;  %vm1167_vm12 = vcmp.lt.f32.partialorder %v1161_v32, 9.5 }
 0x342   : > { %vm1179_vm3 = vcmp.gt.f32.partialorder %v1176_v0, -0.5  ;;  %vm1182_vm11 = vcmp.lt.f32.partialorder %v1176_v0, 9.5  ;;  %vm7499_vm5 = vmand %vm1149_vm8, %vm1152_vm13  ;;  %vm1194_vm1 = vcmp.gt.f32.partialorder %v1191_v55, -0.5  ;;  %vm1197_vm14 = vcmp.lt.f32.partialorder %v1191_v55, 9.5 }
 0x343   : > { %v2983_v19 = vpop.permute.xlu0 %2982  ;;  %vm7504_vm0 = vmand %vm1164_vm9, %vm1167_vm12  ;;  %vm1209_vm7 = vcmp.gt.f32.partialorder %v1206_v23, -0.5  ;;  %vm1224_vm8 = vcmp.gt.f32.partialorder %v1221_v16, -0.5  ;;  %vm1227_vm13 = vcmp.lt.f32.partialorder %v1221_v16, 9.5  ;;  %v7538_v24 = vsel %vm7499_vm5, 0.0, %v9824_v42 }
 0x344   : > { %v2985_v62 = vsel %vm9800_vm15, %v2981_v3, %v2983_v19  ;;  %v1236_v3 = vadd.f32 -3.0, %v7477_v58  ;;  %v9812_v47 = vsel %vm7504_vm0, 4294967295, %v9811_v47  ;;  %vm1212_vm15 = vcmp.lt.f32.partialorder %v1206_v23, 9.5  ;;  %vm1230_vm2 = vmand %vm1224_vm8, %vm1227_vm13  ;;  %9825 = vst [vmem:[#allocation42_spill] sm:$0xff] %v7538_v24  ;;  %v9836_v19 = vld [vmem:[#allocation24_spill] sm:$0xff] }
 0x345   : > { %v7364_v53 = vsel %vm9801_vm6, %v2985_v62, 0.0  ;;  %v1251_v62 = vadd.f32 -2.0, %v7477_v58  ;;  %vm7510_vm6 = vmand %vm1179_vm3, %vm1182_vm11  ;;  %v7561_v55 = vsel %vm1230_vm2, 0.0, %v9824_v42  ;;  %v1296_v23 = vadd.f32 1.0, %v7477_v58 }
 0x346   : > { %2996 = vrot.lane.b32.xlu1 %v7364_v53, %s5280_s19  ;;  %3037 = vrot.lane.b32.xlu0 %v7364_v53, %s5281_s20  ;;  %vm1239_vm9 = vcmp.gt.f32.partialorder %v1236_v3, -0.5  ;;  %vm1242_vm12 = vcmp.lt.f32.partialorder %v1236_v3, 9.5  ;;  %vm7522_vm10 = vmand %vm1209_vm7, %vm1212_vm15  ;;  %vm9826_vm7 = vnez %v9812_v47  ;;  %9833 = vst [vmem:[#allocation10_spill] sm:$0xff] %v7561_v55  ;;  %vm9835_vm5 = vcmask 1039360  }
 0x347   : > { %vm1254_vm3 = vcmp.gt.f32.partialorder %v1251_v62, -0.5  ;;  %vm1257_vm11 = vcmp.lt.f32.partialorder %v1251_v62, 9.5  ;;  %v7543_v50 = vsel %vm9826_vm7, 0.0, %v9824_v42  ;;  %v7558_v0 = vsel %vm7522_vm10, 0.0, %v9824_v42 }
 0x348   : > { %vm7527_vm0 = vmand %vm1254_vm3, %vm1257_vm11  ;;  %9827 = vst [vmem:[#allocation8_spill] sm:$0xff] %v7543_v50  ;;  %vm1284_vm10 = vcmp.gt.f32.partialorder %v7477_v58, -0.5  ;;  %vm9841_vm2 = vcmask 519168   ;;  %vm1287_vm13 = vcmp.lt.f32.partialorder %v7477_v58, 9.5  ;;  %vm1302_vm11 = vcmp.lt.f32.partialorder %v1296_v23, 9.5 }
 0x349   : > { %9832 = vst [vmem:[#allocation49_spill] sm:$0xff] %v7558_v0 }
 0x34a   : > { %3035 = vrot.lane.b32.xlu1 %v7354_v54, %s5281_s20  ;;  %3076 = vrot.lane.b32.xlu0 %v7354_v54, %s5282_s22 }
 0x34e   : > { %3074 = vrot.lane.b32.xlu1 %v7347_v6, %s5282_s22  ;;  %3115 = vrot.lane.b32.xlu0 %v7347_v6, %s9802_s16 }
 0x352   : > { %3078 = vrot.lane.b32.xlu1 %v7364_v53, %s5282_s22  ;;  %4778 = vrot.lane.b32.xlu0 %v4776_v36, %s5303_s23  ;;  %v1266_v36 = vadd.f32 -1.0, %v7477_v58 }
 0x356   : > { %4520 = vrot.lane.b32.xlu1 %v4518_v4, %s5303_s23  ;;  %4792 = vrot.lane.b32.xlu0 %v4790_v38, %s5280_s19  ;;  %v9814_v38 = vmov 0  ;;  %s9840_s23 = smov 109  }
 0x357   : > { %v9815_v38 = vsel %vm7510_vm6, 4294967295, %v9814_v38  ;;  %vm9821_vm6 = vcmask 1043456  }
 0x358   : > { %vm9828_vm15 = vnez %v9815_v38  ;;  %v9839_v38 = vld [vmem:[#allocation23_spill] sm:$0xff] }
 0x359   : > { %v7548_v7 = vsel %vm9828_vm15, 0.0, %v9824_v42 }
 0x35a   : > { %4534 = vrot.lane.b32.xlu1 %v4532_v40, %s5280_s19  ;;  %4806 = vrot.lane.b32.xlu0 %v4804_v17, %s5281_s20  ;;  %v9816_v40 = vmov 0  ;;  %9829 = vst [vmem:[#allocation44_spill] sm:$0xff] %v7548_v7 }
 0x35e   : > { %4548 = vrot.lane.b32.xlu1 %v4546_v41, %s5281_s20  ;;  %4810 = vrot.lane.b32.xlu0 %v7387_v1, %s9802_s16 }
 0x362   : > { %4552 = vrot.lane.b32.xlu1 %v7395_v45, %s9802_s16  ;;  %3119 = vrot.lane.b32.xlu0 %v7364_v53, %s9802_s16 }
 0x366   : > { %3117 = vrot.lane.b32.xlu1 %v7354_v54, %s9802_s16  ;;  %3158 = vrot.lane.b32.xlu0 %v7354_v54, %s9805_s15 }
 0x36a   : > { %3156 = vrot.lane.b32.xlu1 %v7347_v6, %s9805_s15  ;;  %3197 = vrot.lane.b32.xlu0 %v7347_v6, %s5285_s25 }
 0x36e   : > { %3160 = vrot.lane.b32.xlu1 %v7364_v53, %s9805_s15  ;;  %3201 = vrot.lane.b32.xlu0 %v7364_v53, %s5285_s25 }
 0x372   : > { %3199 = vrot.lane.b32.xlu1 %v7354_v54, %s5285_s25  ;;  %3240 = vrot.lane.b32.xlu0 %v7354_v54, %s5286_s26 }
 0x376   : > { %3238 = vrot.lane.b32.xlu1 %v7347_v6, %s5286_s26  ;;  %3279 = vrot.lane.b32.xlu0 %v7347_v6, %s5287_s27 }
 0x37a   : > { %3242 = vrot.lane.b32.xlu1 %v7364_v53, %s5286_s26  ;;  %3283 = vrot.lane.b32.xlu0 %v7364_v53, %s5287_s27 }
 0x37e   : > { %3281 = vrot.lane.b32.xlu1 %v7354_v54, %s5287_s27  ;;  %3322 = vrot.lane.b32.xlu0 %v7354_v54, %s5288_s28 }
 0x382   : > { %3320 = vrot.lane.b32.xlu1 %v7347_v6, %s5288_s28  ;;  %3361 = vrot.lane.b32.xlu0 %v7347_v6, %s5289_s30 }
 0x386   : > { %3324 = vrot.lane.b32.xlu1 %v7364_v53, %s5288_s28  ;;  %3365 = vrot.lane.b32.xlu0 %v7364_v53, %s5289_s30 }
 0x38a   : > { %3363 = vrot.lane.b32.xlu1 %v7354_v54, %s5289_s30  ;;  %3404 = vrot.lane.b32.xlu0 %v7354_v54, %s5290_s7 }
 0x38e   : > { %3402 = vrot.lane.b32.xlu1 %v7347_v6, %s5290_s7  ;;  %3443 = vrot.lane.b32.xlu0 %v7347_v6, %s5291_s9 }
 0x392   : > { %3406 = vrot.lane.b32.xlu1 %v7364_v53, %s5290_s7  ;;  %3447 = vrot.lane.b32.xlu0 %v7364_v53, %s5291_s9 }
 0x396   : > { %3445 = vrot.lane.b32.xlu1 %v7354_v54, %s5291_s9  ;;  %3486 = vrot.lane.b32.xlu0 %v7354_v54, %s5292_s10 }
 0x39a   : > { %3484 = vrot.lane.b32.xlu1 %v7347_v6, %s5292_s10  ;;  %3525 = vrot.lane.b32.xlu0 %v7347_v6, %s5293_s12 }
 0x39e   : > { %3488 = vrot.lane.b32.xlu1 %v7364_v53, %s5292_s10  ;;  %3529 = vrot.lane.b32.xlu0 %v7364_v53, %s5293_s12 }
 0x3a2   : > { %3527 = vrot.lane.b32.xlu1 %v7354_v54, %s5293_s12  ;;  %3568 = vrot.lane.b32.xlu0 %v7354_v54, %s5294_s13 }
 0x3a6   : > { %3566 = vrot.lane.b32.xlu1 %v7347_v6, %s5294_s13  ;;  %3607 = vrot.lane.b32.xlu0 %v7347_v6, %s5295_s14 }
 0x3a8   : > { %v2993_v39 = vpop.permute.xlu1 %2992 }
 0x3aa   : > { %3570 = vrot.lane.b32.xlu1 %v7364_v53, %s5294_s13  ;;  %3611 = vrot.lane.b32.xlu0 %v7364_v53, %s5295_s14 }
 0x3ac   : > { %v2995_v14 = vpop.permute.xlu0 %2994 }
 0x3ad   : > { %v2998_v61 = vsel %vm9807_vm4, %v2993_v39, %v2995_v14  ;;  %vm7514_vm4 = vmand %vm1194_vm1, %vm1197_vm14  ;;  %vm1269_vm1 = vcmp.gt.f32.partialorder %v1266_v36, -0.5  ;;  %vm1272_vm14 = vcmp.lt.f32.partialorder %v1266_v36, 9.5  ;;  %v7573_v36 = vsel %vm7527_vm0, 0.0, %v9824_v42 }
 0x3ae   : > { %3609 = vrot.lane.b32.xlu1 %v7354_v54, %s5295_s14  ;;  %3650 = vrot.lane.b32.xlu0 %v7354_v54, %s9808_s17  ;;  %v3003_v4 = vmul.f32 %v2998_v61, %v9813_v52  ;;  %v9817_v40 = vsel %vm7514_vm4, 4294967295, %v9816_v40  ;;  %vm1245_vm4 = vmand %vm1239_vm9, %vm1242_vm12  ;;  %9837 = vst [vmem:[#allocation48_spill] sm:$0xff] %v7573_v36  ;;  %vm9843_vm9 = vcmask 1043456   ;;  %vm9844_vm12 = vcmask 1031168  }
 0x3af   : > { %vm9830_vm8 = vnez %v9817_v40  ;;  %v7565_v61 = vsel %vm1245_vm4, 0.0, %v9824_v42  ;;  %vm9842_vm0 = vmmov %vm9841_vm2  ;;  %vm1299_vm4 = vcmp.gt.f32.partialorder %v1296_v23, -0.5 }
 0x3b0   : > { %v3034_v17 = vpop.permute.xlu0 %3033  ;;  %v3006_v59 = vsel %vm9821_vm6, %v3003_v4, 0.0  ;;  %vm1275_vm6 = vmand %vm1269_vm1, %vm1272_vm14  ;;  %v7553_v32 = vsel %vm9830_vm8, 0.0, %v9824_v42  ;;  %9834 = vst [vmem:[#allocation45_spill] sm:$0xff] %v7565_v61 }
 0x3b1   : > { %v3007_v26 = vrot.slane %v3006_v59, 4  ;;  %9831 = vst [vmem:[#allocation14_spill] sm:$0xff] %v7553_v32  ;;  %v7576_v4 = vsel %vm1275_vm6, 0.0, %v9824_v42  ;;  %vm9845_vm3 = vmmov %vm9844_vm12  ;;  %vm9848_vm6 = vcmask 1022976  }
 0x3b2   : > { %3648 = vrot.lane.b32.xlu1 %v7347_v6, %s9808_s17  ;;  %3689 = vrot.lane.b32.xlu0 %v7347_v6, %s9818_s18  ;;  %9838 = vst [vmem:[#allocation34_spill] sm:$0xff] %v7576_v4  ;;  %vm9846_vm7 = vmmov %vm9843_vm9 }
 0x3b3   : > { %v3008_v41 = vadd.f32 %v3007_v26, %v3006_v59  ;;  %v1326_v26 = vadd.f32 3.0, %v7477_v58  ;;  %vm9847_vm15 = vmmov %vm9846_vm7 }
 0x3b4   : > { %vm7618_vm8 = vmand %vm1284_vm10, %vm1287_vm13 }
 0x3b5   : > { %v3009_v27 = vrot.slane %v3008_v41, 2 }
 0x3b6   : > { %3652 = vrot.lane.b32.xlu1 %v7364_v53, %s9808_s17  ;;  %3693 = vrot.lane.b32.xlu0 %v7364_v53, %s9818_s18 }
 0x3b8   : > { %v2997_v39 = vpop.permute.xlu1 %2996  ;;  %v3038_v16 = vpop.permute.xlu0 %3037 }
 0x3b9   : > { %v2999_v3 = vsel %vm9835_vm5, %v2995_v14, %v2997_v39  ;;  %v3005_v62 = vmul.f32 %v2997_v39, %v9836_v19  ;;  %v3046_v47 = vmul.f32 %v3038_v16, %v9836_v19  ;;  %v1311_v14 = vadd.f32 2.0, %v7477_v58 }
 0x3ba   : > { %v3004_v40 = vmul.f32 %v2999_v3, %v9839_v38  ;;  %3691 = vrot.lane.b32.xlu1 %v7354_v54, %s9818_s18  ;;  %3732 = vrot.lane.b32.xlu0 %v7354_v54, %s9840_s23  ;;  %vm1329_vm5 = vcmp.gt.f32.partialorder %v1326_v26, -0.5 }
 0x3bb   : > { %v3020_v35 = vsel %vm9841_vm2, %v3005_v62, 0.0  ;;  %v3061_v39 = vsel %vm9842_vm0, %v3046_v47, 0.0  ;;  %vm1314_vm1 = vcmp.gt.f32.partialorder %v1311_v14, -0.5  ;;  %vm1317_vm14 = vcmp.lt.f32.partialorder %v1311_v14, 9.5  ;;  %vm7627_vm0 = vmand %vm1299_vm4, %vm1302_vm11 }
 0x3bc   : > { %v3013_v56 = vsel %vm9843_vm9, %v3004_v40, 0.0  ;;  %v3021_v63 = vrot.slane %v3020_v35, 4  ;;  %v3036_v3 = vpop.permute.xlu1 %3035  ;;  %v7589_v30 = vpop.permute.xlu0 %3076  ;;  %v3062_v44 = vrot.slane %v3061_v39, 4  ;;  %v1341_v40 = vadd.f32 4.0, %v7477_v58  ;;  %vm7640_vm13 = vmand %vm1314_vm1, %vm1317_vm14 }
 0x3bd   : > { %v3039_v60 = vsel %vm9844_vm12, %v3034_v17, %v3036_v3  ;;  %v3040_v59 = vsel %vm9845_vm3, %v3036_v3, %v3038_v16  ;;  %v3014_v62 = vrot.slane %v3013_v56, 4  ;;  %v1356_v17 = vadd.f32 5.0, %v7477_v58 }
 0x3be   : > { %v3044_v47 = vmul.f32 %v3039_v60, %v9813_v52  ;;  %v3045_v43 = vmul.f32 %v3040_v59, %v9839_v38  ;;  %3730 = vrot.lane.b32.xlu1 %v7347_v6, %s9840_s23  ;;  %3922 = vrot.lane.b32.xlu0 %v7592_v12, %s5280_s19  ;;  %v7606_v16 = vrot.slane %v7364_v53, 4  ;;  %v3022_v60 = vadd.f32 %v3021_v63, %v3020_v35 }
 0x3bf   : > { %v3063_v11 = vadd.f32 %v3062_v44, %v3061_v39  ;;  %vm1332_vm2 = vcmp.lt.f32.partialorder %v1326_v26, 9.5  ;;  %v1371_v63 = vadd.f32 6.0, %v7477_v58  ;;  %v3015_v44 = vadd.f32 %v3014_v62, %v3013_v56 }
 0x3c0   : > { %v3075_v3 = vpop.permute.xlu1 %3074  ;;  %v7608_v59 = vpop.permute.xlu0 %3115  ;;  %v3047_v6 = vsel %vm9846_vm7, %v3044_v47, 0.0  ;;  %v3054_v21 = vsel %vm9847_vm15, %v3045_v43, 0.0  ;;  %vm1344_vm9 = vcmp.gt.f32.partialorder %v1341_v40, -0.5  ;;  %v1386_v35 = vadd.f32 7.0, %v7477_v58  ;;  %vm7656_vm3 = vmand %vm1329_vm5, %vm1332_vm2 }
 0x3c1   : > { %v3080_v31 = vsel %vm9848_vm6, %v3075_v3, %v7589_v30  ;;  %v3010_v39 = vadd.f32 %v3009_v27, %v3008_v41  ;;  %vm1347_vm10 = vcmp.lt.f32.partialorder %v1341_v40, 9.5  ;;  %v7636_v56 = vrot.slane %v7354_v54, 4 }
 0x3c2   : > { %3734 = vrot.lane.b32.xlu1 %v7364_v53, %s9840_s23  ;;  %v3085_v47 = vmul.f32 %v3080_v31, %v9813_v52  ;;  %3926 = vrot.lane.b32.xlu0 %v7606_v16, %s5280_s19  ;;  %v3048_v53 = vrot.slane %v3047_v6, 4  ;;  %v3055_v62 = vrot.slane %v3054_v21, 4  ;;  %vm1359_vm4 = vcmp.gt.f32.partialorder %v1356_v17, -0.5  ;;  %vm7664_vm1 = vmand %vm1344_vm9, %vm1347_vm10 }
 0x3c3   : > { %vm1362_vm12 = vcmp.lt.f32.partialorder %v1356_v17, 9.5  ;;  %v3023_v31 = vrot.slane %v3022_v60, 2  ;;  %v3064_v27 = vrot.slane %v3063_v11, 2  ;;  %v7647_v41 = vsel %vm7618_vm8, 0.0, %v9824_v42 }
 0x3c4   : > { %v3079_v23 = vpop.permute.xlu1 %3078  ;;  %v4779_v3 = vpop.permute.xlu0 %4778  ;;  %9855 = vst [vmem:[#allocation25_spill] sm:$0xff] %v7647_v41  ;;  %v7652_v54 = vsel %vm7627_vm0, 0.0, %v9824_v42  ;;  %vm1374_vm11 = vcmp.gt.f32.partialorder %v1371_v63, -0.5  ;;  %v3016_v49 = vrot.slane %v3015_v44, 2  ;;  %vm1377_vm14 = vcmp.lt.f32.partialorder %v1371_v63, 9.5  ;;  %vm7673_vm6 = vmand %vm1359_vm4, %vm1362_vm12 }
 0x3c5   : > { %vm1389_vm7 = vcmp.gt.f32.partialorder %v1386_v35, -0.5  ;;  %v3011_v43 = vrot.slane %v3010_v39, 1  ;;  %v3088_v26 = vsel %vm9847_vm15, %v3085_v47, 0.0  ;;  %v3049_v25 = vadd.f32 %v3048_v53, %v3047_v6  ;;  %vm1380_vm2 = vmand %vm1374_vm11, %vm1377_vm14 }
 0x3c6   : > { %3924 = vrot.lane.b32.xlu1 %v7636_v56, %s5280_s19  ;;  %3950 = vrot.lane.b32.xlu0 %v7636_v56, %s5281_s20  ;;  %v3056_v40 = vadd.f32 %v3055_v62, %v3054_v21  ;;  %vm9862_vm8 = vcmask 1022976   ;;  %v3087_v51 = vmul.f32 %v3079_v23, %v9836_v19  ;;  %vm1392_vm5 = vcmp.lt.f32.partialorder %v1386_v35, 9.5  ;;  %vm9868_vm4 = vmmov %vm9847_vm15 }
 0x3c7   : > { %v3081_v2 = vsel %vm9862_vm8, %v7589_v30, %v3079_v23  ;;  %v1401_v47 = vadd.f32 8.0, %v7477_v58  ;;  %v3024_v48 = vadd.f32 %v3023_v31, %v3022_v60  ;;  %v3065_v29 = vadd.f32 %v3064_v27, %v3063_v11  ;;  %vm7710_vm0 = vmand %vm1389_vm7, %vm1392_vm5 }
 0x3c8   : > { %v4521_v8 = vpop.permute.xlu1 %4520  ;;  %v4793_v9 = vpop.permute.xlu0 %4792  ;;  %v7684_v17 = vsel %vm7640_vm13, 0.0, %v9824_v42  ;;  %v7689_v21 = vsel %vm7656_vm3, 0.0, %v9824_v42  ;;  %v3017_v30 = vadd.f32 %v3016_v49, %v3015_v44  ;;  %v3089_v6 = vrot.slane %v3088_v26, 4  ;;  %vm9877_vm7 = vmmov %vm9868_vm4 }
 0x3c9   : > { %v7696_v60 = vsel %vm7664_vm1, 0.0, %v9824_v42  ;;  %v7701_v18 = vsel %vm7673_vm6, 0.0, %v9824_v42  ;;  %v3012_v11 = vadd.f32 %v3011_v43, %v3010_v39  ;;  %v3086_v49 = vmul.f32 %v3081_v2, %v9839_v38  ;;  %vm9878_vm15 = vmmov %vm9868_vm4 }
 0x3ca   : > { %3948 = vrot.lane.b32.xlu1 %v7592_v12, %s5281_s20  ;;  %9863 = vst [vmem:[#allocation3_spill] sm:$0xff] %v7701_v18  ;;  %3977 = vrot.lane.b32.xlu0 %v7592_v12, %s5282_s22  ;;  %v3050_v53 = vrot.slane %v3049_v25, 2  ;;  %v3057_v62 = vrot.slane %v3056_v40, 2  ;;  %vm9866_vm9 = vcmask 519168   ;;  %v4781_v23 = vmul.f32 %v7387_v1, %v4779_v3  ;;  %vm9880_vm8 = vmmov %vm9868_vm4 }
 0x3cb   : > { %v3102_v28 = vsel %vm9866_vm9, %v3087_v51, 0.0  ;;  %vm1404_vm10 = vcmp.gt.f32.partialorder %v1401_v47, -0.5  ;;  %vm1407_vm13 = vcmp.lt.f32.partialorder %v1401_v47, 9.5  ;;  %v3025_v2 = vrot.slane %v3024_v48, 1  ;;  %vm9874_vm11 = vmmov %vm9866_vm9 }
 0x3cc   : > { %v4535_v63 = vpop.permute.xlu1 %4534  ;;  %v4807_v31 = vpop.permute.xlu0 %4806  ;;  %v3066_v39 = vrot.slane %v3065_v29, 1  ;;  %v7717_v27 = vsel %vm1380_vm2, 0.0, %v9824_v42  ;;  %v3018_v35 = vrot.slane %v3017_v30, 1  ;;  %v3090_v14 = vadd.f32 %v3089_v6, %v3088_v26  ;;  %vm7730_vm12 = vmand %vm1404_vm10, %vm1407_vm13 }
 0x3cd   : > { %9867 = vst [vmem:[#allocation47_spill] sm:$0xff] %v7717_v27  ;;  %v4795_v13 = vadd.f32 %v4793_v9, %v4781_v23  ;;  %v7724_v51 = vsel %vm7710_vm0, 0.0, %v9824_v42  ;;  %v3095_v1 = vsel %vm9868_vm4, %v3086_v49, 0.0  ;;  %v3103_v3 = vrot.slane %v3102_v28, 4  ;;  %vm9882_vm2 = vmmov %vm9866_vm9 }
 0x3ce   : > { %3952 = vrot.lane.b32.xlu1 %v7606_v16, %s5281_s20  ;;  %v4523_v43 = vmul.f32 %v7395_v45, %v4521_v8  ;;  %3981 = vrot.lane.b32.xlu0 %v7606_v16, %s5282_s22  ;;  %v3027_v9 = vmul.f32 0.5, %v3012_v11  ;;  %v3051_v26 = vadd.f32 %v3050_v53, %v3049_v25  ;;  %v3058_v6 = vadd.f32 %v3057_v62, %v3056_v40  ;;  %vm9883_vm0 = vmmov %vm9868_vm4 }
 0x3cf   : > { %v4809_v23 = vadd.f32 %v4807_v31, %v4795_v13  ;;  %v3026_v10 = vadd.f32 %v3025_v2, %v3024_v48  ;;  %v3067_v34 = vadd.f32 %v3066_v39, %v3065_v29  ;;  %vm4556_vm3 = vcmask 34848   ;;  %vm9889_vm10 = vmmov %vm9882_vm2 }
 0x3d0   : > { %v4549_v20 = vpop.permute.xlu1 %4548  ;;  %v4811_v44 = vpop.permute.xlu0 %4810  ;;  %v4537_v22 = vadd.f32 %v4535_v63, %v4523_v43  ;;  %v3019_v49 = vadd.f32 %v3018_v35, %v3017_v30  ;;  %v3091_v57 = vrot.slane %v3090_v14, 2  ;;  %v3096_v8 = vrot.slane %v3095_v1, 4  ;;  %v9873_v30 = vld [vmem:[#allocation55_spill] sm:$0xff] }
 0x3d1   : > { %v7734_v45 = vadd.f32 %v4811_v44, %v4809_v23  ;;  %v7741_v25 = vsel %vm7730_vm12, 0.0, %v9824_v42  ;;  %v7744_v40 = vadd.f32 9.0, %v7477_v58  ;;  %v3104_v48 = vadd.f32 %v3103_v3, %v3102_v28 }
 0x3d2   : > { %3979 = vrot.lane.b32.xlu1 %v7636_v56, %s5282_s22  ;;  %9871 = vst [vmem:[#allocation4_spill] sm:$0xff] %v7741_v25  ;;  %v4551_v29 = vadd.f32 %v4549_v20, %v4537_v22  ;;  %4008 = vrot.lane.b32.xlu0 %v7636_v56, %s9802_s16  ;;  %v7749_v11 = vadd.f32 %v3027_v9, %v9873_v30  ;;  %v3052_v53 = vrot.slane %v3051_v26, 1  ;;  %v3059_v62 = vrot.slane %v3058_v6, 1 }
 0x3d3   : > { %9872 = vst [vmem:[#allocation26_spill] sm:$0xff] %v7744_v40  ;;  %v4814_v63 = vsel %vm4556_vm3, %v7734_v45, -inf  ;;  %v3029_v39 = vmul.f32 0.5, %v3026_v10  ;;  %v7756_v22 = vmul.f32 0.5, %v3019_v49  ;;  %v7758_v20 = vmul.f32 0.5, %v3067_v34 }
 0x3d4   : > { %v4553_v31 = vpop.permute.xlu1 %4552  ;;  %v3120_v2 = vpop.permute.xlu0 %3119  ;;  %v4815_v35 = vrot.slane %v4814_v63, 4  ;;  %v3092_v28 = vadd.f32 %v3091_v57, %v3090_v14  ;;  %v3097_v3 = vadd.f32 %v3096_v8, %v3095_v1  ;;  %v3105_v43 = vrot.slane %v3104_v48, 2 }
 0x3d5   : > { %v7753_v13 = vadd.f32 %v4553_v31, %v4551_v29  ;;  %v3128_v58 = vmul.f32 %v3120_v2, %v9836_v19  ;;  %v3053_v23 = vadd.f32 %v3052_v53, %v3051_v26  ;;  %v3060_v44 = vadd.f32 %v3059_v62, %v3058_v6 }
 0x3d6   : > { %4006 = vrot.lane.b32.xlu1 %v7592_v12, %s9802_s16  ;;  %v4816_v47 = vmax.f32 %v4814_v63, %v4815_v35  ;;  %4035 = vrot.lane.b32.xlu0 %v7592_v12, %s9805_s15  ;;  %v7768_v14 = vadd.f32 %v3029_v39, %v7538_v24  ;;  %vm9875_vm1 = vcmask 1014784   ;;  %v3093_v63 = vrot.slane %v3092_v28, 1 }
 0x3d7   : > { %v4557_v9 = vsel %vm4556_vm3, %v7753_v13, -inf  ;;  %v3143_v10 = vsel %vm9874_vm11, %v3128_v58, 0.0  ;;  %vm9876_vm14 = vmmov %vm9875_vm1  ;;  %v3098_v31 = vrot.slane %v3097_v3, 2  ;;  %v3106_v26 = vadd.f32 %v3105_v43, %v3104_v48 }
 0x3d8   : > { %v4558_v49 = vrot.slane %v4557_v9, 4  ;;  %v3144_v34 = vrot.slane %v3143_v10, 4  ;;  %v3118_v29 = vpop.permute.xlu1 %3117  ;;  %v3159_v57 = vpop.permute.xlu0 %3158  ;;  %v4817_v1 = vrot.slane %v4816_v47, 2  ;;  %v3068_v39 = vmul.f32 0.5, %v3053_v23 }
 0x3d9   : > { %v3121_v8 = vsel %vm9875_vm1, %v7608_v59, %v3118_v29  ;;  %v3122_v30 = vsel %vm9876_vm14, %v3118_v29, %v3120_v2  ;;  %v3069_v59 = vmul.f32 0.5, %v3060_v44  ;;  %vm9879_vm6 = vcmask 1006592   ;;  %vm9894_vm1 = vmmov %vm9883_vm0 }
 0x3da   : > { %v4559_v35 = vmax.f32 %v4557_v9, %v4558_v49  ;;  %v3145_v58 = vadd.f32 %v3144_v34, %v3143_v10  ;;  %4010 = vrot.lane.b32.xlu1 %v7606_v16, %s9802_s16  ;;  %v4818_v6 = vmax.f32 %v4816_v47, %v4817_v1  ;;  %v3126_v53 = vmul.f32 %v3121_v8, %v9813_v52  ;;  %vm9881_vm5 = vmmov %vm9879_vm6 }
 0x3db   : > { %v3127_v62 = vmul.f32 %v3122_v30, %v9839_v38  ;;  %4039 = vrot.lane.b32.xlu0 %v7606_v16, %s9805_s15  ;;  %v3099_v47 = vadd.f32 %v3098_v31, %v3097_v3  ;;  %v3094_v23 = vadd.f32 %v3093_v63, %v3092_v28  ;;  %v3107_v44 = vrot.slane %v3106_v26, 1 }
 0x3dc   : > { %v4560_v24 = vrot.slane %v4559_v35, 2  ;;  %v3146_v2 = vrot.slane %v3145_v58, 2  ;;  %v3157_v29 = vpop.permute.xlu1 %3156  ;;  %v7779_v37 = vpop.permute.xlu0 %3197  ;;  %v4819_v9 = vrot.slane %v4818_v6, 1  ;;  %v3129_v10 = vsel %vm9877_vm7, %v3126_v53, 0.0  ;;  %vm9897_vm7 = vmmov %vm9883_vm0 }
 0x3dd   : > { %v3136_v48 = vsel %vm9878_vm15, %v3127_v62, 0.0  ;;  %v3162_v43 = vsel %vm9879_vm6, %v3157_v29, %v3159_v57  ;;  %v3130_v34 = vrot.slane %v3129_v10, 4  ;;  %vm9888_vm9 = vcmask 998400  }
 0x3de   : > { %v4561_v49 = vmax.f32 %v4559_v35, %v4560_v24  ;;  %v3137_v1 = vrot.slane %v3136_v48, 4  ;;  %4037 = vrot.lane.b32.xlu1 %v7636_v56, %s9805_s15  ;;  %v4820_v8 = vmax.f32 %v4818_v6, %v4819_v9  ;;  %v3167_v30 = vmul.f32 %v3162_v43, %v9813_v52  ;;  %vm9890_vm13 = vmmov %vm9888_vm9 }
 0x3df   : > { %v3147_v33 = vadd.f32 %v3146_v2, %v3145_v58  ;;  %v3131_v5 = vadd.f32 %v3130_v34, %v3129_v10  ;;  %v3100_v35 = vrot.slane %v3099_v47, 1  ;;  %v3109_v10 = vmul.f32 0.5, %v3094_v23 }
 0x3e0   : > { %v4562_v15 = vrot.slane %v4561_v49, 1  ;;  %v3138_v53 = vadd.f32 %v3137_v1, %v3136_v48  ;;  %v3161_v46 = vpop.permute.xlu1 %3160  ;;  %v3202_v62 = vpop.permute.xlu0 %3201  ;;  %v4821_v29 = vsub.f32 %v7734_v45, %v4820_v8  ;;  %v3170_v24 = vsel %vm9880_vm8, %v3167_v30, 0.0 }
 0x3e1   : > { %v3163_v3 = vsel %vm9881_vm5, %v3159_v57, %v3161_v46  ;;  %v3169_v31 = vmul.f32 %v3161_v46, %v9836_v19  ;;  %v3132_v63 = vrot.slane %v3131_v5, 2  ;;  %v3171_v43 = vrot.slane %v3170_v24, 4 }
 0x3e2   : > { %v4563_v28 = vmax.f32 %v4561_v49, %v4562_v15  ;;  %v3139_v6 = vrot.slane %v3138_v53, 2  ;;  %v4822_v9 = vmul.f32 1.442695, %v4821_v29  ;;  %v3168_v58 = vmul.f32 %v3163_v3, %v9839_v38 }
 0x3e3   : > { %v3184_v2 = vsel %vm9882_vm2, %v3169_v31, 0.0  ;;  %v3133_v45 = vadd.f32 %v3132_v63, %v3131_v5  ;;  %v3108_v57 = vadd.f32 %v3107_v44, %v3106_v26  ;;  %v3148_v46 = vrot.slane %v3147_v33, 1  ;;  %vm9904_vm2 = vmmov %vm9883_vm0 }
 0x3e4   : > { %v4564_v48 = vsub.f32 %v7753_v13, %v4563_v28  ;;  %v3140_v34 = vadd.f32 %v3139_v6, %v3138_v53  ;;  %v3200_v1 = vpop.permute.xlu1 %3199  ;;  %v7794_v8 = vpop.permute.xlu0 %3240  ;;  %5212 = vpow2.f32 %v4822_v9  ;;  %v3177_v15 = vsel %vm9883_vm0, %v3168_v58, 0.0  ;;  %v9884_v13 = vld [vmem:[#allocation84_spill] sm:$0xff]  ;;  %v9885_v28 = vld [vmem:[#allocation58_spill] sm:$0xff] }
 0x3e5   : > { %v3101_v49 = vadd.f32 %v3100_v35, %v3099_v47  ;;  %v3172_v29 = vadd.f32 %v3171_v43, %v3170_v24  ;;  %v3185_v42 = vrot.slane %v3184_v2, 4  ;;  %v3073_v3 = vadd.f32 %v7758_v20, %v7543_v50  ;;  %v9886_v47 = vld [vmem:[#allocation85_spill] sm:$0xff]  ;;  %v9887_v35 = vld [vmem:[#allocation59_spill] sm:$0xff] }
 0x3e6   : > { %v4565_v30 = vmul.f32 1.442695, %v4564_v48  ;;  %v3134_v23 = vrot.slane %v3133_v45, 1  ;;  %v3141_v31 = vrot.slane %v3140_v34, 1  ;;  %v3210_v5 = vmul.f32 %v3202_v62, %v9836_v19 }
 0x3e7   : > { %v3031_v53 = vadd.f32 %v7756_v22, %v9884_v13  ;;  %v3071_v26 = vadd.f32 %v3068_v39, %v9885_v28  ;;  %v3178_v44 = vrot.slane %v3177_v15, 4  ;;  %v3072_v24 = vadd.f32 %v3069_v59, %v9886_v47 }
 0x3e8   : > { %5214 = vpow2.f32 %v4565_v30  ;;  %v3239_v63 = vpop.permute.xlu1 %3238  ;;  %v7803_v6 = vpop.permute.xlu0 %3279  ;;  %v3112_v9 = vadd.f32 %v3109_v10, %v9887_v35  ;;  %v3111_v43 = vmul.f32 0.5, %v3108_v57  ;;  %v3149_v20 = vadd.f32 %v3148_v46, %v3147_v33 }
 0x3e9   : > { %v3110_v58 = vmul.f32 0.5, %v3101_v49  ;;  %v3173_v48 = vrot.slane %v3172_v29, 2  ;;  %v3186_v50 = vadd.f32 %v3185_v42, %v3184_v2  ;;  %v3203_v36 = vsel %vm9888_vm9, %v7779_v37, %v3200_v1 }
 0x3ea   : > { %v3135_v22 = vadd.f32 %v3134_v23, %v3133_v45  ;;  %v3142_v13 = vadd.f32 %v3141_v31, %v3140_v34  ;;  %v3225_v39 = vsel %vm9889_vm10, %v3210_v5, 0.0  ;;  %v3204_v30 = vsel %vm9890_vm13, %v3200_v1, %v3202_v62  ;;  %vm9908_vm10 = vmmov %vm9894_vm1 }
 0x3eb   : > { %vm9891_vm4 = vcmask 1040384   ;;  %v3179_v10 = vadd.f32 %v3178_v44, %v3177_v15  ;;  %v3208_v33 = vmul.f32 %v3203_v36, %v9813_v52  ;;  %v3114_v2 = vadd.f32 %v3111_v43, %v7548_v7  ;;  %v9896_v15 = vld [vmem:[#allocation88_spill] sm:$0xff] }
 0x3ec   : > { %v3773_v28 = vsel %vm9891_vm4, %v7768_v14, %v3073_v3  ;;  %vm9892_vm12 = vmmov %vm9891_vm4  ;;  %v7816_v57 = vpop.permute.xlu1 %3242  ;;  %v7818_v42 = vpop.permute.xlu0 %3283  ;;  %v3152_v45 = vmul.f32 0.5, %v3149_v20  ;;  %v3209_v62 = vmul.f32 %v3204_v30, %v9839_v38  ;;  %v3174_v34 = vadd.f32 %v3173_v48, %v3172_v29  ;;  %v9900_v30 = vld [vmem:[#allocation60_spill] sm:$0xff] }
 0x3ed   : > { %v3771_v59 = vsel %vm9892_vm12, %v7749_v11, %v3071_v26  ;;  %vm9893_vm11 = vmmov %vm9891_vm4  ;;  %v3187_v1 = vrot.slane %v3186_v50, 2  ;;  %v3226_v14 = vrot.slane %v3225_v39, 4  ;;  %v3211_v46 = vsel %vm9894_vm1, %v3208_v33, 0.0 }
 0x3ee   : > { %v3772_v37 = vsel %vm9893_vm11, %v3031_v53, %v3072_v24  ;;  %v7824_v11 = vpop.eup %5212  ;;  %vm9895_vm14 = vcmask 1041408   ;;  %v3113_v49 = vadd.f32 %v3110_v58, %v9896_v15  ;;  %v3150_v3 = vmul.f32 0.5, %v3135_v22 }
 0x3ef   : > { %v3774_v36 = vsel %vm9895_vm14, %v3771_v59, %v3112_v9  ;;  %v3151_v23 = vmul.f32 0.5, %v3142_v13  ;;  %v4824_v31 = vsel %vm4556_vm3, %v7824_v11, 0.0  ;;  %v3180_v5 = vrot.slane %v3179_v10, 2  ;;  %vm9899_vm6 = vmmov %vm9895_vm14 }
 0x3f0   : > { %v3218_v53 = vsel %vm9897_vm7, %v3209_v62, 0.0  ;;  %vm9898_vm15 = vcmask 990208   ;;  %v7833_v26 = vpop.permute.xlu1 %3281  ;;  %v7835_v44 = vpop.permute.xlu0 %3322  ;;  %v3776_v47 = vsel %vm9899_vm6, %v3773_v28, %v3114_v2  ;;  %v4825_v24 = vrot.slane %v4824_v31, 4  ;;  %vm9901_vm8 = vmmov %vm9899_vm6  ;;  %v9902_v62 = vld [vmem:[#allocation89_spill] sm:$0xff] }
 0x3f1   : > { %v3244_v29 = vsel %vm9898_vm15, %v3239_v63, %v7794_v8  ;;  %v3155_v35 = vadd.f32 %v3152_v45, %v7553_v32  ;;  %v3212_v9 = vrot.slane %v3211_v46, 4  ;;  %v3175_v20 = vrot.slane %v3174_v34, 1  ;;  %vm9907_vm9 = vmmov %vm9898_vm15 }
 0x3f2   : > { %v7839_v43 = vpop.eup %5214  ;;  %v3188_v58 = vadd.f32 %v3187_v1, %v3186_v50  ;;  %v3227_v48 = vadd.f32 %v3226_v14, %v3225_v39  ;;  %v3249_v22 = vmul.f32 %v3244_v29, %v9813_v52  ;;  %v4826_v13 = vadd.f32 %v4825_v24, %v4824_v31  ;;  %vm9915_vm14 = vmmov %vm9904_vm2 }
 0x3f3   : > { %v4567_v63 = vsel %vm4556_vm3, %v7839_v43, 0.0  ;;  %v3153_v59 = vadd.f32 %v3150_v3, %v9900_v30  ;;  %v3219_v33 = vrot.slane %v3218_v53, 4  ;;  %v3775_v28 = vsel %vm9901_vm8, %v3772_v37, %v3113_v49  ;;  %vm9916_vm7 = vmmov %vm9904_vm2 }
 0x3f4   : > { %v4568_v2 = vrot.slane %v4567_v63, 4  ;;  %v3154_v45 = vadd.f32 %v3151_v23, %v9902_v62  ;;  %v3181_v15 = vadd.f32 %v3180_v5, %v3179_v10  ;;  %v7847_v32 = vpop.permute.xlu1 %3320  ;;  %v7849_v7 = vpop.permute.xlu0 %3361  ;;  %v4827_v50 = vrot.slane %v4826_v13, 2  ;;  %vm9919_vm15 = vmmov %vm9904_vm2 }
 0x3f5   : > { %vm9903_vm5 = vcmask 1042432   ;;  %v3213_v1 = vadd.f32 %v3212_v9, %v3211_v46  ;;  %v3252_v14 = vsel %vm9904_vm2, %v3249_v22, 0.0  ;;  %v3176_v3 = vadd.f32 %v3175_v20, %v3174_v34  ;;  %vm9921_vm8 = vmmov %vm9904_vm2 }
 0x3f6   : > { %v7852_v39 = vsel %vm9903_vm5, %v3776_v47, %v3155_v35  ;;  %v4569_v31 = vadd.f32 %v4568_v2, %v4567_v63  ;;  %v3189_v29 = vrot.slane %v3188_v58, 1  ;;  %v3228_v24 = vrot.slane %v3227_v48, 2  ;;  %vm9905_vm3 = vmmov %vm9903_vm5 }
 0x3f7   : > { %v4828_v37 = vadd.f32 %v4827_v50, %v4826_v13  ;;  %v7856_v49 = vsel %vm9905_vm3, %v3774_v36, %v3153_v59  ;;  %v3220_v10 = vadd.f32 %v3219_v33, %v3218_v53  ;;  %v3253_v23 = vrot.slane %v3252_v14, 4  ;;  %vm9906_vm0 = vmmov %vm9905_vm3 }
 0x3f8   : > { %v4570_v5 = vrot.slane %v4569_v31, 2  ;;  %v7859_v30 = vsel %vm9906_vm0, %v3775_v28, %v3154_v45  ;;  %v3182_v62 = vrot.slane %v3181_v15, 1  ;;  %v3245_v46 = vsel %vm9907_vm9, %v7794_v8, %v7816_v57  ;;  %v7864_v47 = vpop.permute.xlu1 %3324  ;;  %v7866_v34 = vpop.permute.xlu0 %3365  ;;  %vm9923_vm5 = vmmov %vm9904_vm2 }
 0x3f9   : > { %v4829_v35 = vrot.slane %v4828_v37, 1  ;;  %v3214_v9 = vrot.slane %v3213_v1, 2  ;;  %v3254_v20 = vadd.f32 %v3253_v23, %v3252_v14  ;;  %v3250_v36 = vmul.f32 %v3245_v46, %v9839_v38  ;;  %vm9926_vm3 = vmmov %vm9904_vm2 }
 0x3fa   : > { %v4571_v53 = vadd.f32 %v4570_v5, %v4569_v31  ;;  %v3190_v22 = vadd.f32 %v3189_v29, %v3188_v58  ;;  %v3229_v13 = vadd.f32 %v3228_v24, %v3227_v48  ;;  %v3251_v63 = vmul.f32 %v7816_v57, %v9836_v19 }
 0x3fb   : > { %v4830_v59 = vadd.f32 %v4829_v35, %v4828_v37  ;;  %v3191_v33 = vmul.f32 0.5, %v3176_v3  ;;  %v3221_v28 = vrot.slane %v3220_v10, 2  ;;  %v3259_v8 = vsel %vm9908_vm10, %v3250_v36, 0.0  ;;  %v9911_v35 = vld [vmem:[#allocation61_spill] sm:$0xff] }
 0x3fc   : > { %v4572_v2 = vrot.slane %v4571_v53, 1  ;;  %v3255_v45 = vrot.slane %v3254_v20, 2  ;;  %v3260_v50 = vrot.slane %v3259_v8, 4  ;;  %vm9909_vm13 = vcmask 519168   ;;  %v7873_v40 = vpop.permute.xlu1 %3363  ;;  %v7875_v14 = vpop.permute.xlu0 %3404 }
 0x3fd   : > { %v3266_v25 = vsel %vm9909_vm13, %v3251_v63, 0.0  ;;  %5216 = vrcp.f32 %v4830_v59  ;;  %v3183_v58 = vadd.f32 %v3182_v62, %v3181_v15  ;;  %v3215_v48 = vadd.f32 %v3214_v9, %v3213_v1  ;;  %vm9912_vm12 = vmmov %vm9909_vm13 }
 0x3fe   : > { %v3267_v31 = vrot.slane %v3266_v25, 4  ;;  %v4573_v29 = vadd.f32 %v4572_v2, %v4571_v53  ;;  %v3193_v57 = vmul.f32 0.5, %v3190_v22  ;;  %v3230_v24 = vrot.slane %v3229_v13, 1  ;;  %vm9929_vm0 = vmmov %vm9912_vm12 }
 0x3ff   : > { %v3292_v3 = vmul.f32 %v7818_v42, %v9836_v19  ;;  %v3222_v37 = vadd.f32 %v3221_v28, %v3220_v10  ;;  %v3261_v23 = vadd.f32 %v3260_v50, %v3259_v8  ;;  %vm9910_vm4 = vcmask 982016   ;;  %vm9934_vm9 = vmmov %vm9929_vm0 }
 0x400   : > { %v3268_v5 = vadd.f32 %v3267_v31, %v3266_v25  ;;  %v3285_v46 = vsel %vm9910_vm4, %v7803_v6, %v7833_v26  ;;  %5218 = vrcp.f32 %v4573_v29  ;;  %v3194_v36 = vadd.f32 %v3191_v33, %v9911_v35  ;;  %v7884_v1 = vpop.permute.xlu1 %3402  ;;  %v7886_v62 = vpop.permute.xlu0 %3443  ;;  %vm9914_vm1 = vmmov %vm9910_vm4 }
 0x401   : > { %v3256_v63 = vadd.f32 %v3255_v45, %v3254_v20  ;;  %v3307_v15 = vsel %vm9912_vm12, %v3292_v3, 0.0  ;;  %v3192_v9 = vmul.f32 0.5, %v3183_v58  ;;  %v3216_v53 = vrot.slane %v3215_v48, 1  ;;  %vm9938_vm4 = vmmov %vm9904_vm2 }
 0x402   : > { %v3269_v22 = vrot.slane %v3268_v5, 2  ;;  %v3308_v10 = vrot.slane %v3307_v15, 4  ;;  %v3196_v25 = vadd.f32 %v3193_v57, %v7558_v0  ;;  %v3231_v59 = vadd.f32 %v3230_v24, %v3229_v13  ;;  %v9918_v57 = vld [vmem:[#allocation90_spill] sm:$0xff]  ;;  %vm9939_vm12 = vmmov %vm9904_vm2 }
 0x403   : > { %v3290_v28 = vmul.f32 %v3285_v46, %v9813_v52  ;;  %vm9913_vm11 = vcmask 973824   ;;  %v3223_v20 = vrot.slane %v3222_v37, 1  ;;  %v3262_v33 = vrot.slane %v3261_v23, 2 }
 0x404   : > { %v3326_v6 = vsel %vm9913_vm11, %v7847_v32, %v7835_v44  ;;  %v3309_v8 = vadd.f32 %v3308_v10, %v3307_v15  ;;  %v3286_v2 = vsel %vm9914_vm1, %v7833_v26, %v7818_v42  ;;  %v3257_v45 = vrot.slane %v3256_v63, 1  ;;  %v7898_v13 = vpop.permute.xlu1 %3406  ;;  %v7900_v29 = vpop.permute.xlu0 %3447  ;;  %vm9920_vm6 = vmmov %vm9913_vm11 }
 0x405   : > { %v3270_v50 = vadd.f32 %v3269_v22, %v3268_v5  ;;  %v3293_v58 = vsel %vm9915_vm14, %v3290_v28, 0.0  ;;  %v3331_v31 = vmul.f32 %v3326_v6, %v9813_v52  ;;  %v7904_v32 = vsel %vm9916_vm7, %v7856_v49, %v3194_v36  ;;  %vm9944_vm14 = vmmov %vm9904_vm2 }
 0x406   : > { %9917 = vst [vmem:[#allocation20_spill] sm:$0xff] %v7904_v32  ;;  %v3195_v24 = vadd.f32 %v3192_v9, %v9918_v57  ;;  %v3217_v3 = vadd.f32 %v3216_v53, %v3215_v48  ;;  %v3310_v46 = vrot.slane %v3309_v8, 2  ;;  %v3291_v42 = vmul.f32 %v3286_v2, %v9839_v38  ;;  %vm9945_vm7 = vmmov %vm9929_vm0 }
 0x407   : > { %v3294_v26 = vrot.slane %v3293_v58, 4  ;;  %v3334_v5 = vsel %vm9919_vm15, %v3331_v31, 0.0  ;;  %v3327_v35 = vsel %vm9920_vm6, %v7835_v44, %v7864_v47  ;;  %v5217_v15 = vpop.eup %5216  ;;  %v7914_v22 = vsel %vm9921_vm8, %v7852_v39, %v3196_v25  ;;  %vm9946_vm15 = vmmov %vm9904_vm2 }
 0x408   : > { %v3234_v49 = vmul.f32 0.5, %v3231_v59  ;;  %v3224_v36 = vadd.f32 %v3223_v20, %v3222_v37  ;;  %v3263_v10 = vadd.f32 %v3262_v33, %v3261_v23  ;;  %v7917_v48 = vmul.f32 %v5217_v15, %v7824_v11  ;;  %v7919_v6 = vpop.permute.xlu1 %3445  ;;  %v7921_v2 = vpop.permute.xlu0 %3486  ;;  %vm9947_vm6 = vmmov %vm9929_vm0 }
 0x409   : > { %v3258_v9 = vadd.f32 %v3257_v45, %v3256_v63  ;;  %v3271_v53 = vrot.slane %v3270_v50, 1  ;;  %v3335_v28 = vrot.slane %v3334_v5, 4  ;;  %v7925_v44 = vsel %vm9923_vm5, %v7859_v30, %v3195_v24 }
 0x40a   : > { %9922 = vst [vmem:[#allocation43_spill] sm:$0xff] %v7917_v48  ;;  %9924 = vst [vmem:[#allocation5_spill] sm:$0xff] %v7925_v44  ;;  %v3232_v31 = vmul.f32 0.5, %v3217_v3  ;;  %v3311_v39 = vadd.f32 %v3310_v46, %v3309_v8  ;;  %v3332_v25 = vmul.f32 %v3327_v35, %v9839_v38  ;;  %v5219_v37 = vpop.eup %5218  ;;  %v3295_v23 = vadd.f32 %v3294_v26, %v3293_v58 }
 0x40b   : > { %v3300_v11 = vsel %vm9904_vm2, %v3291_v42, 0.0  ;;  %v3336_v59 = vadd.f32 %v3335_v28, %v3334_v5  ;;  %v3333_v63 = vmul.f32 %v7864_v47, %v9836_v19  ;;  %4834 = vrot.lane.b32.xlu1 %v7917_v48, %s9802_s16  ;;  %v7934_v20 = vmul.f32 %v5219_v37, %v7839_v43  ;;  %v9927_v47 = vld [vmem:[#allocation62_spill] sm:$0xff] }
 0x40c   : > { %v7937_v30 = vadd.f32 %v3234_v49, %v7561_v55  ;;  %v3233_v33 = vmul.f32 0.5, %v3224_v36  ;;  %v3264_v8 = vrot.slane %v3263_v10, 1  ;;  %v3273_v45 = vmul.f32 0.5, %v3258_v9  ;;  %v7940_v3 = vpop.permute.xlu1 %3484  ;;  %v7942_v46 = vpop.permute.xlu0 %3525  ;;  %v9930_v36 = vld [vmem:[#allocation91_spill] sm:$0xff] }
 0x40d   : > { %9925 = vst [vmem:[#allocation9_spill] sm:$0xff] %v7934_v20  ;;  %v3272_v57 = vadd.f32 %v3271_v53, %v3270_v50  ;;  %v3337_v58 = vrot.slane %v3336_v59, 2  ;;  %v3341_v24 = vsel %vm9926_vm3, %v3332_v25, 0.0  ;;  %v7945_v42 = vadd.f32 %v3232_v31, %v9927_v47  ;;  %4577 = vrot.lane.b32.xlu0 %v7934_v20, %s9802_s16  ;;  %v9932_v25 = vld [vmem:[#allocation63_spill] sm:$0xff] }
 0x40e   : > { %v3312_v26 = vrot.slane %v3311_v39, 1  ;;  %v3301_v43 = vrot.slane %v3300_v11, 4  ;;  %v3342_v5 = vrot.slane %v3341_v24, 4  ;;  %v3296_v35 = vrot.slane %v3295_v23, 2 }
 0x40f   : > { %9928 = vst [vmem:[#allocation21_spill] sm:$0xff] %v7945_v42  ;;  %v3338_v15 = vadd.f32 %v3337_v58, %v3336_v59  ;;  %v3348_v50 = vsel %vm9929_vm0, %v3333_v63, 0.0  ;;  %v3374_v49 = vmul.f32 %v7866_v34, %v9836_v19  ;;  %v7953_v9 = vadd.f32 %v3233_v33, %v9930_v36 }
 0x410   : > { %v3265_v53 = vadd.f32 %v3264_v8, %v3263_v10  ;;  %v3343_v28 = vadd.f32 %v3342_v5, %v3341_v24  ;;  %v3349_v31 = vrot.slane %v3348_v50, 4  ;;  %v7956_v37 = vadd.f32 %v3273_v45, %v9932_v25  ;;  %v7959_v44 = vpop.permute.xlu1 %3488  ;;  %v7968_v5 = vpop.permute.xlu0 %3529 }
 0x411   : > { %9931 = vst [vmem:[#allocation7_spill] sm:$0xff] %v7953_v9  ;;  %v3275_v47 = vmul.f32 0.5, %v3272_v57  ;;  %v3339_v55 = vrot.slane %v3338_v15, 1  ;;  %v3389_v0 = vsel %vm9934_vm9, %v3374_v49, 0.0  ;;  %v7961_v59 = vadd.f32 %v3301_v43, %v3300_v11 }
 0x412   : > { %9933 = vst [vmem:[#allocation50_spill] sm:$0xff] %v7956_v37  ;;  %v3344_v63 = vrot.slane %v3343_v28, 2  ;;  %v3350_v58 = vadd.f32 %v3349_v31, %v3348_v50  ;;  %vm9935_vm10 = vcmask 965632   ;;  %v3313_v10 = vadd.f32 %v3312_v26, %v3311_v39 }
 0x413   : > { %v3367_v33 = vsel %vm9935_vm10, %v7849_v7, %v7873_v40  ;;  %v7966_v8 = vadd.f32 %v3296_v35, %v3295_v23  ;;  %v3340_v24 = vadd.f32 %v3339_v55, %v3338_v15  ;;  %v3390_v45 = vrot.slane %v3389_v0, 4  ;;  %vm9936_vm13 = vmmov %vm9935_vm10 }
 0x414   : > { %v7970_v57 = vmul.f32 0.5, %v3265_v53  ;;  %v3345_v49 = vadd.f32 %v3344_v63, %v3343_v28  ;;  %v3351_v36 = vrot.slane %v3350_v58, 2  ;;  %v3368_v11 = vsel %vm9936_vm13, %v7873_v40, %v7866_v34  ;;  %v7979_v23 = vpop.permute.xlu1 %3527  ;;  %v9940_v63 = vld [vmem:[#allocation66_spill] sm:$0xff]  ;;  %vm9955_vm10 = vmmov %vm9926_vm3 }
 0x415   : > { %v7976_v43 = vadd.f32 %v3275_v47, %v7565_v61  ;;  %v3355_v50 = vmul.f32 0.5, %v3340_v24  ;;  %v3391_v7 = vadd.f32 %v3390_v45, %v3389_v0  ;;  %v3372_v39 = vmul.f32 %v3367_v33, %v9813_v52 }
 0x416   : > { %v3346_v26 = vrot.slane %v3345_v49, 1  ;;  %v3352_v35 = vadd.f32 %v3351_v36, %v3350_v58  ;;  %v3373_v15 = vmul.f32 %v3368_v11, %v9839_v38  ;;  %v7983_v53 = vmul.f32 0.5, %v3313_v10  ;;  %v7994_v10 = vpop.permute.xlu0 %3568 }
 0x417   : > { %9937 = vst [vmem:[#allocation52_spill] sm:$0xff] %v7976_v43  ;;  %v3392_v40 = vrot.slane %v3391_v7, 2  ;;  %v3375_v34 = vsel %vm9938_vm4, %v3372_v39, 0.0  ;;  %v7989_v33 = vadd.f32 %v3355_v50, %v9940_v63  ;;  %vm9941_vm11 = vcmask 957440  }
 0x418   : > { %v3347_v31 = vadd.f32 %v3346_v26, %v3345_v49  ;;  %v3353_v25 = vrot.slane %v3352_v35, 1  ;;  %v3376_v0 = vrot.slane %v3375_v34, 4  ;;  %v3382_v47 = vsel %vm9939_vm12, %v3373_v15, 0.0  ;;  %v7996_v36 = vpop.permute.xlu1 %3566  ;;  %vm9942_vm1 = vmmov %vm9941_vm11 }
 0x419   : > { %v3393_v24 = vadd.f32 %v3392_v40, %v3391_v7  ;;  %v3383_v45 = vrot.slane %v3382_v47, 4  ;;  %v3408_v58 = vsel %vm9941_vm11, %v7884_v1, %v7875_v14  ;;  %v3409_v50 = vsel %vm9942_vm1, %v7875_v14, %v7898_v13  ;;  %v9943_v1 = vld [vmem:[#allocation105_spill] sm:$0xff]  ;;  %vm9961_vm11 = vmmov %vm9926_vm3 }
 0x41a   : > { %v3354_v11 = vadd.f32 %v3353_v25, %v3352_v35  ;;  %v3356_v39 = vmul.f32 0.5, %v3347_v31  ;;  %v3377_v49 = vadd.f32 %v3376_v0, %v3375_v34  ;;  %v3413_v26 = vmul.f32 %v3408_v58, %v9813_v52 }
 0x41b   : > { %v3394_v28 = vrot.slane %v3393_v24, 1  ;;  %v3384_v15 = vadd.f32 %v3383_v45, %v3382_v47  ;;  %v3415_v7 = vmul.f32 %v7898_v13, %v9836_v19  ;;  %v3414_v25 = vmul.f32 %v3409_v50, %v9839_v38 }
 0x41c   : > { %v3357_v40 = vmul.f32 0.5, %v3354_v11  ;;  %v3359_v63 = vadd.f32 %v3356_v39, %v9943_v1  ;;  %v3378_v55 = vrot.slane %v3377_v49, 2  ;;  %v3416_v61 = vsel %vm9944_vm14, %v3413_v26, 0.0  ;;  %v8007_v0 = vpop.permute.xlu1 %3570 }
 0x41d   : > { %v3395_v35 = vadd.f32 %v3394_v28, %v3393_v24  ;;  %v3385_v31 = vrot.slane %v3384_v15, 2  ;;  %v3417_v34 = vrot.slane %v3416_v61, 4  ;;  %v3430_v14 = vsel %vm9945_vm7, %v3415_v7, 0.0  ;;  %v8014_v28 = vpop.permute.xlu0 %3607 }
 0x41e   : > { %v3360_v47 = vadd.f32 %v3357_v40, %v7576_v4  ;;  %v3379_v45 = vadd.f32 %v3378_v55, %v3377_v49  ;;  %v3456_v13 = vmul.f32 %v7900_v29, %v9836_v19  ;;  %v3423_v26 = vsel %vm9946_vm15, %v3414_v25, 0.0  ;;  %vm9965_vm15 = vmmov %vm9926_vm3 }
 0x41f   : > { %v3398_v58 = vmul.f32 0.5, %v3395_v35  ;;  %v3386_v11 = vadd.f32 %v3385_v31, %v3384_v15  ;;  %v3418_v39 = vadd.f32 %v3417_v34, %v3416_v61  ;;  %v3424_v1 = vrot.slane %v3423_v26, 4 }
 0x420   : > { %v3380_v24 = vrot.slane %v3379_v45, 1  ;;  %v3431_v50 = vrot.slane %v3430_v14, 4  ;;  %v3471_v37 = vsel %vm9947_vm6, %v3456_v13, 0.0  ;;  %v8018_v4 = vpop.permute.xlu1 %3609  ;;  %vm9948_vm8 = vcmask 949248  }
 0x421   : > { %v3401_v40 = vadd.f32 %v3398_v58, %v7647_v41  ;;  %v3387_v55 = vrot.slane %v3386_v11, 1  ;;  %v3419_v49 = vrot.slane %v3418_v39, 2  ;;  %v3472_v7 = vrot.slane %v3471_v37, 4  ;;  %vm9950_vm2 = vmmov %vm9948_vm8 }
 0x422   : > { %v3381_v43 = vadd.f32 %v3380_v24, %v3379_v45  ;;  %v3425_v35 = vadd.f32 %v3424_v1, %v3423_v26  ;;  %v3432_v15 = vadd.f32 %v3431_v50, %v3430_v14  ;;  %v3449_v61 = vsel %vm9948_vm8, %v7886_v62, %v7919_v6  ;;  %v8028_v24 = vpop.permute.xlu0 %3611  ;;  %v9951_v62 = vld [vmem:[#allocation67_spill] sm:$0xff]  ;;  %vm9966_vm8 = vmmov %vm9947_vm6 }
 0x423   : > { %vm9949_vm5 = vcmask 1040384   ;;  %v3388_v34 = vadd.f32 %v3387_v55, %v3386_v11  ;;  %v3420_v25 = vadd.f32 %v3419_v49, %v3418_v39  ;;  %v3473_v9 = vadd.f32 %v3472_v7, %v3471_v37 }
 0x424   : > { %v3794_v31 = vsel %vm9949_vm5, %v3360_v47, %v3401_v40  ;;  %v3396_v13 = vmul.f32 0.5, %v3381_v43  ;;  %v3426_v32 = vrot.slane %v3425_v35, 2  ;;  %v3433_v58 = vrot.slane %v3432_v15, 2  ;;  %v9952_v43 = vld [vmem:[#allocation41_spill] sm:$0xff]  ;;  %vm9953_vm0 = vmmov %vm9949_vm5 }
 0x425   : > { %v3450_v41 = vsel %vm9950_vm2, %v7919_v6, %v7900_v29  ;;  %v3397_v42 = vmul.f32 0.5, %v3388_v34  ;;  %v3421_v45 = vrot.slane %v3420_v25, 1  ;;  %v3474_v26 = vrot.slane %v3473_v9, 2  ;;  %v8034_v29 = vpop.permute.xlu1 %3648  ;;  %vm9954_vm9 = vmmov %vm9953_vm0 }
 0x426   : > { %v3454_v14 = vmul.f32 %v3449_v61, %v9813_v52  ;;  %v3399_v1 = vadd.f32 %v3396_v13, %v9951_v62  ;;  %v3427_v47 = vadd.f32 %v3426_v32, %v3425_v35  ;;  %v3434_v11 = vadd.f32 %v3433_v58, %v3432_v15  ;;  %v9956_v13 = vld [vmem:[#allocation68_spill] sm:$0xff] }
 0x427   : > { %v3455_v37 = vmul.f32 %v3450_v41, %v9839_v38  ;;  %v3400_v39 = vadd.f32 %v3397_v42, %v9952_v43  ;;  %v3422_v50 = vadd.f32 %v3421_v45, %v3420_v25  ;;  %v3475_v40 = vadd.f32 %v3474_v26, %v3473_v9 }
 0x428   : > { %v3457_v55 = vsel %vm9926_vm3, %v3454_v14, 0.0  ;;  %v3792_v6 = vsel %vm9953_vm0, %v7989_v33, %v3399_v1  ;;  %v3428_v49 = vrot.slane %v3427_v47, 1  ;;  %v3435_v7 = vrot.slane %v3434_v11, 1  ;;  %v8045_v14 = vpop.permute.xlu0 %3650  ;;  %vm9972_vm0 = vmmov %vm9955_vm10 }
 0x429   : > { %v3458_v61 = vrot.slane %v3457_v55, 4  ;;  %v3793_v34 = vsel %vm9954_vm9, %v3359_v63, %v3400_v39  ;;  %v3437_v32 = vmul.f32 0.5, %v3422_v50  ;;  %v3476_v35 = vrot.slane %v3475_v40, 1  ;;  %v9960_v50 = vld [vmem:[#allocation31_spill] sm:$0xff]  ;;  %vm9973_vm9 = vmmov %vm9972_vm0 }
 0x42a   : > { %v3464_v41 = vsel %vm9955_vm10, %v3455_v37, 0.0  ;;  %v3429_v15 = vadd.f32 %v3428_v49, %v3427_v47  ;;  %v3436_v42 = vadd.f32 %v3435_v7, %v3434_v11  ;;  %vm9957_vm13 = vcmask 941056  }
 0x42b   : > { %v3459_v25 = vadd.f32 %v3458_v61, %v3457_v55  ;;  %v3465_v9 = vrot.slane %v3464_v41, 4  ;;  %v3440_v58 = vadd.f32 %v3437_v32, %v9956_v13  ;;  %v3477_v45 = vadd.f32 %v3476_v35, %v3475_v40  ;;  %vm9959_vm12 = vmmov %vm9957_vm13 }
 0x42c   : > { %v3490_v33 = vsel %vm9957_vm13, %v7940_v3, %v7921_v2  ;;  %v4591_v26 = vrot.slane %v7934_v20, 1  ;;  %v3438_v63 = vmul.f32 0.5, %v3429_v15  ;;  %v3439_v62 = vmul.f32 0.5, %v3436_v42  ;;  %v8053_v3 = vpop.permute.xlu1 %3652 }
 0x42d   : > { %v3460_v1 = vrot.slane %v3459_v25, 2  ;;  %v3466_v43 = vadd.f32 %v3465_v9, %v3464_v41  ;;  %vm9958_vm4 = vcmask 1041408   ;;  %v3480_v11 = vmul.f32 0.5, %v3477_v45  ;;  %v8069_v45 = vpop.permute.xlu0 %3689 }
 0x42e   : > { %v3795_v47 = vsel %vm9958_vm4, %v3792_v6, %v3440_v58  ;;  %v3495_v37 = vmul.f32 %v3490_v33, %v9813_v52  ;;  %4592 = vrot.lane.b32.xlu1 %v4591_v26, %s9802_s16  ;;  %v3491_v39 = vsel %vm9959_vm12, %v7921_v2, %v7959_v44  ;;  %v3441_v40 = vadd.f32 %v3438_v63, %v9960_v50  ;;  %vm9962_vm1 = vmmov %vm9958_vm4 }
 0x42f   : > { %v3442_v55 = vadd.f32 %v3439_v62, %v7652_v54  ;;  %v3461_v49 = vadd.f32 %v3460_v1, %v3459_v25  ;;  %v3467_v7 = vrot.slane %v3466_v43, 2  ;;  %v3483_v61 = vadd.f32 %v3480_v11, %v7684_v17  ;;  %vm9963_vm14 = vmmov %vm9962_vm1 }
 0x430   : > { %v3498_v6 = vsel %vm9961_vm11, %v3495_v37, 0.0  ;;  %v3496_v32 = vmul.f32 %v3491_v39, %v9839_v38  ;;  %v3497_v35 = vmul.f32 %v7959_v44, %v9836_v19  ;;  %v3796_v41 = vsel %vm9962_vm1, %v3793_v34, %v3441_v40  ;;  %vm9978_vm12 = vmmov %vm9972_vm0 }
 0x431   : > { %v3797_v2 = vsel %vm9963_vm14, %v3794_v31, %v3442_v55  ;;  %v3462_v15 = vrot.slane %v3461_v49, 1  ;;  %v3468_v42 = vadd.f32 %v3467_v7, %v3466_v43  ;;  %vm9964_vm7 = vcmask 1042432   ;;  %v8075_v43 = vpop.permute.xlu1 %3691  ;;  %vm9980_vm11 = vmmov %vm9972_vm0 }
 0x432   : > { %v8065_v9 = vsel %vm9964_vm7, %v3797_v2, %v3483_v61  ;;  %v3499_v25 = vrot.slane %v3498_v6, 4  ;;  %v3505_v13 = vsel %vm9965_vm15, %v3496_v32, 0.0  ;;  %v3512_v58 = vsel %vm9947_vm6, %v3497_v35, 0.0  ;;  %vm9971_vm3 = vmmov %vm9964_vm7 }
 0x433   : > { %v3463_v33 = vadd.f32 %v3462_v15, %v3461_v49  ;;  %v3469_v26 = vrot.slane %v3468_v42, 1  ;;  %v3506_v63 = vrot.slane %v3505_v13, 4  ;;  %v3513_v44 = vrot.slane %v3512_v58, 4  ;;  %vm9974_vm10 = vmmov %vm9971_vm3 }
 0x434   : > { %v3500_v62 = vadd.f32 %v3499_v25, %v3498_v6  ;;  %v4608_v34 = vrot.slane %v7934_v20, 2  ;;  %v3538_v31 = vmul.f32 %v7968_v5, %v9836_v19  ;;  %v4865_v1 = vrot.slane %v7917_v48, 2  ;;  %v9969_v6 = vld [vmem:[#allocation70_spill] sm:$0xff]  ;;  %vm9981_vm1 = vmmov %vm9972_vm0 }
 0x435   : > { %v3470_v11 = vadd.f32 %v3469_v26, %v3468_v42  ;;  %v3478_v37 = vmul.f32 0.5, %v3463_v33  ;;  %v3507_v39 = vadd.f32 %v3506_v63, %v3505_v13  ;;  %v3514_v50 = vadd.f32 %v3513_v44, %v3512_v58  ;;  %v8089_v58 = vpop.permute.xlu0 %3693  ;;  %v9970_v33 = vld [vmem:[#allocation107_spill] sm:$0xff]  ;;  %vm9982_vm14 = vmmov %vm9972_vm0 }
 0x436   : > { %v3501_v40 = vrot.slane %v3500_v62, 2  ;;  %4609 = vrot.lane.b32.xlu0 %v4608_v34, %s9802_s16  ;;  %v3553_v55 = vsel %vm9966_vm8, %v3538_v31, 0.0  ;;  %4866 = vrot.lane.b32.xlu1 %v4865_v1, %s9802_s16  ;;  %vm9967_vm5 = vcmask 932864   ;;  %vm9975_vm13 = vcmask 924672   ;;  %vm9983_vm7 = vmmov %vm9972_vm0 }
 0x437   : > { %v3531_v49 = vsel %vm9967_vm5, %v7942_v46, %v7979_v23  ;;  %vm9968_vm2 = vmmov %vm9967_vm5  ;;  %v3479_v61 = vmul.f32 0.5, %v3470_v11  ;;  %v3481_v32 = vadd.f32 %v3478_v37, %v9969_v6  ;;  %v3508_v35 = vrot.slane %v3507_v39, 2 }
 0x438   : > { %v3532_v7 = vsel %vm9968_vm2, %v7979_v23, %v7968_v5  ;;  %v3515_v2 = vrot.slane %v3514_v50, 2  ;;  %v3502_v15 = vadd.f32 %v3501_v40, %v3500_v62  ;;  %v3554_v42 = vrot.slane %v3553_v55, 4  ;;  %v8097_v62 = vpop.permute.xlu1 %3730  ;;  %vm9976_vm4 = vmmov %vm9975_vm13 }
 0x439   : > { %v3536_v25 = vmul.f32 %v3531_v49, %v9813_v52  ;;  %v3537_v13 = vmul.f32 %v3532_v7, %v9839_v38  ;;  %v3482_v26 = vadd.f32 %v3479_v61, %v9970_v33  ;;  %v3798_v46 = vsel %vm9971_vm3, %v3795_v47, %v3481_v32  ;;  %vm9984_vm15 = vmmov %vm9947_vm6 }
 0x43a   : > { %v3509_v63 = vadd.f32 %v3508_v35, %v3507_v39  ;;  %v3516_v44 = vadd.f32 %v3515_v2, %v3514_v50  ;;  %v3503_v5 = vrot.slane %v3502_v15, 1  ;;  %v3555_v23 = vadd.f32 %v3554_v42, %v3553_v55  ;;  %4064 = vrot.lane.b32.xlu1 %v7592_v12, %s5285_s25  ;;  %vm9987_vm5 = vmmov %vm9984_vm15 }
 0x43b   : > { %v3539_v34 = vsel %vm9972_vm0, %v3536_v25, 0.0  ;;  %v3546_v31 = vsel %vm9973_vm9, %v3537_v13, 0.0  ;;  %v3799_v1 = vsel %vm9974_vm10, %v3796_v41, %v3482_v26  ;;  %v4848_v50 = vrot.slane %v7917_v48, 1  ;;  %vm9993_vm9 = vmmov %vm9981_vm1 }
 0x43c   : > { %v3510_v11 = vrot.slane %v3509_v63, 1  ;;  %v3517_v37 = vrot.slane %v3516_v44, 1  ;;  %v3540_v40 = vrot.slane %v3539_v34, 4  ;;  %v3504_v49 = vadd.f32 %v3503_v5, %v3502_v15  ;;  %v8108_v15 = vpop.permute.xlu0 %3732  ;;  %vm9994_vm10 = vmmov %vm9981_vm1 }
 0x43d   : > { %v3556_v47 = vrot.slane %v3555_v23, 2  ;;  %v3547_v39 = vrot.slane %v3546_v31, 4  ;;  %v3572_v6 = vsel %vm9975_vm13, %v7996_v36, %v7994_v10  ;;  %4849 = vrot.lane.b32.xlu0 %v4848_v50, %s9802_s16  ;;  %v3573_v33 = vsel %vm9976_vm4, %v7994_v10, %v8007_v0  ;;  %v9977_v36 = vld [vmem:[#allocation71_spill] sm:$0xff] }
 0x43e   : > { %v3511_v55 = vadd.f32 %v3510_v11, %v3509_v63  ;;  %v3518_v7 = vadd.f32 %v3517_v37, %v3516_v44  ;;  %v3541_v61 = vadd.f32 %v3540_v40, %v3539_v34  ;;  %v3519_v32 = vmul.f32 0.5, %v3504_v49  ;;  %4068 = vrot.lane.b32.xlu1 %v7606_v16, %s5285_s25  ;;  %v9979_v34 = vld [vmem:[#allocation108_spill] sm:$0xff] }
 0x43f   : > { %v3557_v35 = vadd.f32 %v3556_v47, %v3555_v23  ;;  %v3548_v2 = vadd.f32 %v3547_v39, %v3546_v31  ;;  %v3577_v41 = vmul.f32 %v3572_v6, %v9813_v52  ;;  %v8115_v23 = vpop.permute.xlu1 %3734  ;;  %v3578_v10 = vmul.f32 %v3573_v33, %v9839_v38 }
 0x440   : > { %v3520_v42 = vmul.f32 0.5, %v3511_v55  ;;  %v3521_v25 = vmul.f32 0.5, %v3518_v7  ;;  %v3542_v13 = vrot.slane %v3541_v61, 2  ;;  %v3522_v26 = vadd.f32 %v3519_v32, %v9977_v36 }
 0x441   : > { %v3558_v63 = vrot.slane %v3557_v35, 1  ;;  %v3549_v44 = vrot.slane %v3548_v2, 2  ;;  %v3580_v5 = vsel %vm9978_vm12, %v3577_v41, 0.0  ;;  %4066 = vrot.lane.b32.xlu0 %v7636_v56, %s5285_s25  ;;  %vm9985_vm6 = vcmask 916480  }
 0x442   : > { %v3523_v31 = vadd.f32 %v3520_v42, %v9979_v34  ;;  %v3524_v11 = vadd.f32 %v3521_v25, %v7689_v21  ;;  %v3543_v37 = vadd.f32 %v3542_v13, %v3541_v61  ;;  %v3581_v40 = vrot.slane %v3580_v5, 4  ;;  %4095 = vrot.lane.b32.xlu1 %v7636_v56, %s5286_s26  ;;  %vm9988_vm2 = vmmov %vm9985_vm6 }
 0x443   : > { %v3801_v49 = vsel %vm9980_vm11, %v3798_v46, %v3522_v26  ;;  %v3559_v47 = vadd.f32 %v3558_v63, %v3557_v35  ;;  %v3550_v39 = vadd.f32 %v3549_v44, %v3548_v2  ;;  %v3579_v46 = vmul.f32 %v8007_v0, %v9836_v19  ;;  %v8131_v2 = vpop.permute.xlu0 %3922  ;;  %v8142_v36 = vpop.permute.xlu1 %3924  ;;  %vm9999_vm11 = vmmov %vm9981_vm1 }
 0x444   : > { %v3802_v50 = vsel %vm9981_vm1, %v3799_v1, %v3523_v31  ;;  %v3803_v55 = vsel %vm9982_vm14, %v8065_v9, %v3524_v11  ;;  %v3544_v7 = vrot.slane %v3543_v37, 1  ;;  %v3582_v6 = vadd.f32 %v3581_v40, %v3580_v5  ;;  %vm10001_vm14 = vmmov %vm9987_vm5 }
 0x445   : > { %v3562_v61 = vmul.f32 0.5, %v3559_v47  ;;  %v3551_v32 = vrot.slane %v3550_v39, 1  ;;  %v3587_v35 = vsel %vm9983_vm7, %v3578_v10, 0.0  ;;  %v3620_v9 = vmul.f32 %v8028_v24, %v9836_v19  ;;  %4093 = vrot.lane.b32.xlu0 %v7592_v12, %s5286_s26 }
 0x446   : > { %v3545_v41 = vadd.f32 %v3544_v7, %v3543_v37  ;;  %v3583_v42 = vrot.slane %v3582_v6, 2  ;;  %v3588_v1 = vrot.slane %v3587_v35, 4  ;;  %v3594_v33 = vsel %vm9984_vm15, %v3579_v46, 0.0  ;;  %4122 = vrot.lane.b32.xlu1 %v7592_v12, %s5287_s27  ;;  %v9990_v7 = vld [vmem:[#allocation110_spill] sm:$0xff] }
 0x447   : > { %v3565_v25 = vadd.f32 %v3562_v61, %v7696_v60  ;;  %v3552_v13 = vadd.f32 %v3551_v32, %v3550_v39  ;;  %v3613_v0 = vsel %vm9985_vm6, %v8014_v28, %v8018_v4  ;;  %v3595_v5 = vrot.slane %v3594_v33, 4  ;;  %v9989_v28 = vld [vmem:[#allocation76_spill] sm:$0xff]  ;;  %v8159_v46 = vpop.permute.xlu0 %3926  ;;  %vm10004_vm6 = vmmov %vm9987_vm5 }
 0x448   : > { %v3560_v26 = vmul.f32 0.5, %v3545_v41  ;;  %v3584_v63 = vadd.f32 %v3583_v42, %v3582_v6  ;;  %v3589_v44 = vadd.f32 %v3588_v1, %v3587_v35  ;;  %vm9986_vm8 = vcmask 1044480  }
 0x449   : > { %v8147_v34 = vsel %vm9986_vm8, %v3803_v55, %v3565_v25  ;;  %v3561_v31 = vmul.f32 0.5, %v3552_v13  ;;  %v3635_v11 = vsel %vm9987_vm5, %v3620_v9, 0.0  ;;  %v3614_v37 = vsel %vm9988_vm2, %v8018_v4, %v8028_v24  ;;  %4097 = vrot.lane.b32.xlu0 %v7606_v16, %s5286_s26  ;;  %vm9991_vm3 = vmmov %vm9986_vm8  ;;  %v8167_v13 = vpop.permute.xlu1 %3948 }
 0x44a   : > { %v3563_v40 = vadd.f32 %v3560_v26, %v9989_v28  ;;  %v3585_v47 = vrot.slane %v3584_v63, 1  ;;  %v3590_v39 = vrot.slane %v3589_v44, 2  ;;  %v3596_v10 = vadd.f32 %v3595_v5, %v3594_v33  ;;  %4126 = vrot.lane.b32.xlu1 %v7606_v16, %s5287_s27  ;;  %vm9992_vm0 = vmmov %vm9991_vm3 }
 0x44b   : > { %v3564_v6 = vadd.f32 %v3561_v31, %v9990_v7  ;;  %v3636_v61 = vrot.slane %v3635_v11, 4  ;;  %v3618_v32 = vmul.f32 %v3613_v0, %v9813_v52  ;;  %v3619_v55 = vmul.f32 %v3614_v37, %v9839_v38  ;;  %v9997_v31 = vld [vmem:[#allocation79_spill] sm:$0xff]  ;;  %v8182_v7 = vpop.permute.xlu0 %3950 }
 0x44c   : > { %v3804_v35 = vsel %vm9991_vm3, %v3801_v49, %v3563_v40  ;;  %v3586_v4 = vadd.f32 %v3585_v47, %v3584_v63  ;;  %v3591_v24 = vadd.f32 %v3590_v39, %v3589_v44  ;;  %v3597_v41 = vrot.slane %v3596_v10, 2 }
 0x44d   : > { %v3805_v42 = vsel %vm9992_vm0, %v3802_v50, %v3564_v6  ;;  %v3637_v1 = vadd.f32 %v3636_v61, %v3635_v11  ;;  %v3621_v9 = vsel %vm9993_vm9, %v3618_v32, 0.0  ;;  %v3628_v25 = vsel %vm9994_vm10, %v3619_v55, 0.0  ;;  %4124 = vrot.lane.b32.xlu0 %v7636_v56, %s5287_s27  ;;  %vm10013_vm9 = vmmov %vm9981_vm1 }
 0x44e   : > { %v3601_v33 = vmul.f32 0.5, %v3586_v4  ;;  %v3592_v0 = vrot.slane %v3591_v24, 1  ;;  %v3598_v26 = vadd.f32 %v3597_v41, %v3596_v10  ;;  %v3622_v5 = vrot.slane %v3621_v9, 4  ;;  %4153 = vrot.lane.b32.xlu1 %v7636_v56, %s5288_s28 }
 0x44f   : > { %v3638_v49 = vrot.slane %v3637_v1, 2  ;;  %v3629_v63 = vrot.slane %v3628_v25, 4  ;;  %vm9995_vm13 = vcmask 908288   ;;  %vm9998_vm12 = vcmask 1045504  }
 0x450   : > { %v3654_v44 = vsel %vm9995_vm13, %v8034_v29, %v8045_v14  ;;  %vm9996_vm4 = vmmov %vm9995_vm13  ;;  %v3604_v11 = vadd.f32 %v3601_v33, %v9997_v31  ;;  %v3593_v37 = vadd.f32 %v3592_v0, %v3591_v24  ;;  %v3599_v28 = vrot.slane %v3598_v26, 1 }
 0x451   : > { %v3655_v50 = vsel %vm9996_vm4, %v8045_v14, %v8053_v3  ;;  %v3623_v40 = vadd.f32 %v3622_v5, %v3621_v9  ;;  %v3639_v47 = vadd.f32 %v3638_v49, %v3637_v1  ;;  %v3630_v39 = vadd.f32 %v3629_v63, %v3628_v25  ;;  %4151 = vrot.lane.b32.xlu0 %v7592_v12, %s5288_s28  ;;  %v8190_v1 = vpop.permute.xlu1 %3952  ;;  %v10000_v25 = vld [vmem:[#allocation33_spill] sm:$0xff]  ;;  %vm10002_vm7 = vmmov %vm9998_vm12 }
 0x452   : > { %v3659_v10 = vmul.f32 %v3654_v44, %v9813_v52  ;;  %v3660_v29 = vmul.f32 %v3655_v50, %v9839_v38  ;;  %v3807_v6 = vsel %vm9998_vm12, %v3804_v35, %v3604_v11  ;;  %v3600_v61 = vadd.f32 %v3599_v28, %v3598_v26  ;;  %4180 = vrot.lane.b32.xlu1 %v7592_v12, %s5289_s30  ;;  %vm10003_vm15 = vmmov %vm10002_vm7 }
 0x453   : > { %v3602_v14 = vmul.f32 0.5, %v3593_v37  ;;  %v3624_v32 = vrot.slane %v3623_v40, 2  ;;  %v3640_v55 = vrot.slane %v3639_v47, 1  ;;  %v3631_v4 = vrot.slane %v3630_v39, 2  ;;  %vm10015_vm13 = vmmov %vm9981_vm1 }
 0x454   : > { %v3662_v24 = vsel %vm9999_vm11, %v3659_v10, 0.0  ;;  %v3661_v41 = vmul.f32 %v8053_v3, %v9836_v19  ;;  %v3603_v9 = vmul.f32 0.5, %v3600_v61  ;;  %v3669_v49 = vsel %vm9981_vm1, %v3660_v29, 0.0  ;;  %v8201_v10 = vpop.permute.xlu0 %3977  ;;  %vm10018_vm12 = vmmov %vm9981_vm1 }
 0x455   : > { %v3605_v33 = vadd.f32 %v3602_v14, %v10000_v25  ;;  %v3625_v0 = vadd.f32 %v3624_v32, %v3623_v40  ;;  %v3663_v35 = vrot.slane %v3662_v24, 4  ;;  %v3641_v26 = vadd.f32 %v3640_v55, %v3639_v47  ;;  %4155 = vrot.lane.b32.xlu0 %v7606_v16, %s5288_s28  ;;  %vm10020_vm11 = vmmov %vm9981_vm1 }
 0x456   : > { %v3632_v5 = vadd.f32 %v3631_v4, %v3630_v39  ;;  %v3676_v63 = vsel %vm10001_vm14, %v3661_v41, 0.0  ;;  %v3606_v3 = vadd.f32 %v3603_v9, %v7701_v18  ;;  %v3670_v28 = vrot.slane %v3669_v49, 4 }
 0x457   : > { %v3808_v44 = vsel %vm10002_vm7, %v3805_v42, %v3605_v33  ;;  %v3626_v50 = vrot.slane %v3625_v0, 1  ;;  %v3664_v31 = vadd.f32 %v3663_v35, %v3662_v24  ;;  %v3644_v11 = vmul.f32 0.5, %v3641_v26  ;;  %v8210_v42 = vld [vmem:[%s9061_s2] sm:$0xf]  ;;  %v8215_v24 = vpop.permute.xlu1 %3979 }
 0x458   : > { %v3633_v37 = vrot.slane %v3632_v5, 1  ;;  %v3677_v40 = vrot.slane %v3676_v63, 4  ;;  %v3809_v47 = vsel %vm10003_vm15, %v8147_v34, %v3606_v3  ;;  %v3702_v61 = vmul.f32 %v8089_v58, %v9836_v19  ;;  %4587 = vrot.lane.b32.xlu1 %v8210_v42, %s5285_s25  ;;  %vm10023_vm15 = vmmov %vm10004_vm6 }
 0x459   : > { %v3627_v39 = vadd.f32 %v3626_v50, %v3625_v0  ;;  %v3665_v29 = vrot.slane %v3664_v31, 2  ;;  %v3647_v14 = vadd.f32 %v3644_v11, %v7717_v27  ;;  %v3671_v55 = vadd.f32 %v3670_v28, %v3669_v49  ;;  %4182 = vrot.lane.b32.xlu0 %v7636_v56, %s5289_s30 }
 0x45a   : > { %v3634_v32 = vadd.f32 %v3633_v37, %v3632_v5  ;;  %v3678_v4 = vadd.f32 %v3677_v40, %v3676_v63  ;;  %v3717_v9 = vsel %vm10004_vm6, %v3702_v61, 0.0  ;;  %vm10005_vm8 = vcmask 900096   ;;  %v10008_v63 = vld [vmem:[#allocation80_spill] sm:$0xff] }
 0x45b   : > { %v3642_v34 = vmul.f32 0.5, %v3627_v39  ;;  %v3666_v41 = vadd.f32 %v3665_v29, %v3664_v31  ;;  %v3695_v25 = vsel %vm10005_vm8, %v8069_v45, %v8075_v43  ;;  %vm10006_vm5 = vcmask 1046528   ;;  %v10009_v45 = vld [vmem:[#allocation35_spill] sm:$0xff]  ;;  %vm10010_vm2 = vmmov %vm10005_vm8 }
 0x45c   : > { %v8222_v33 = vsel %vm10006_vm5, %v3809_v47, %v3647_v14  ;;  %v3643_v0 = vmul.f32 0.5, %v3634_v32  ;;  %v3672_v35 = vrot.slane %v3671_v55, 2  ;;  %v3679_v26 = vrot.slane %v3678_v4, 2  ;;  %4844 = vrot.lane.b32.xlu1 %v8210_v42, %s5288_s28  ;;  %v8238_v47 = vpop.permute.xlu0 %3981  ;;  %vm10011_vm3 = vmmov %vm10006_vm5 }
 0x45d   : > { %v10007_v5 = vrot.slane %v7961_v59, 2  ;;  %v3645_v3 = vadd.f32 %v3642_v34, %v10008_v63  ;;  %v3667_v50 = vrot.slane %v3666_v41, 1  ;;  %v3718_v31 = vrot.slane %v3717_v9, 4  ;;  %vm10012_vm0 = vmmov %vm10011_vm3  ;;  %4603 = vrot.lane.b32.xlu0 %v8210_v42, %s5286_s26 }
 0x45e   : > { %v3646_v11 = vadd.f32 %v3643_v0, %v10009_v45  ;;  %v3673_v37 = vadd.f32 %v3672_v35, %v3671_v55  ;;  %v3680_v28 = vadd.f32 %v3679_v26, %v3678_v4  ;;  %v3696_v40 = vsel %vm10010_vm2, %v8075_v43, %v8089_v58  ;;  %v8250_v43 = vpop.permute.xlu1 %4006  ;;  %v10016_v35 = vld [vmem:[#allocation81_spill] sm:$0xff] }
 0x45f   : > { %v8229_v49 = vadd.f32 %v10007_v5, %v7961_v59  ;;  %v8241_v59 = vsel %vm10011_vm3, %v3807_v6, %v3645_v3  ;;  %v3668_v39 = vadd.f32 %v3667_v50, %v3666_v41  ;;  %v3719_v29 = vadd.f32 %v3718_v31, %v3717_v9 }
 0x460   : > { %v3700_v61 = vmul.f32 %v3695_v25, %v9813_v52  ;;  %v8245_v14 = vsel %vm10012_vm0, %v3808_v44, %v3646_v11  ;;  %v3674_v32 = vrot.slane %v3673_v37, 1  ;;  %v3681_v34 = vrot.slane %v3680_v28, 1  ;;  %4620 = vrot.lane.b32.xlu1 %v8210_v42, %s5287_s27  ;;  %v8268_v11 = vpop.permute.xlu0 %4008  ;;  %s279_s27 = scalar_lea.vmem %s9064_s5, %s5370_s29 }
 0x461   : > { %v3701_v55 = vmul.f32 %v3696_v40, %v9839_v38  ;;  %v3683_v58 = vmul.f32 0.5, %v3668_v39  ;;  %v3720_v4 = vrot.slane %v3719_v29, 2  ;;  %vm10014_vm10 = vcmask 891904   ;;  %4860 = vrot.lane.b32.xlu0 %v8210_v42, %s5289_s30 }
 0x462   : > { %v3703_v6 = vsel %vm10013_vm9, %v3700_v61, 0.0  ;;  %v3736_v41 = vsel %vm10014_vm10, %v8097_v62, %v8108_v15  ;;  %v3675_v44 = vadd.f32 %v3674_v32, %v3673_v37  ;;  %v3682_v9 = vadd.f32 %v3681_v34, %v3680_v28  ;;  %vm10017_vm4 = vmmov %vm10014_vm10  ;;  %v8278_v34 = vpop.permute.xlu1 %4010 }
 0x463   : > { %v3704_v25 = vrot.slane %v3703_v6, 4  ;;  %v3710_v0 = vsel %vm10015_vm13, %v3701_v55, 0.0  ;;  %v8260_v26 = vadd.f32 %v3683_v58, %v10016_v35  ;;  %v3721_v5 = vadd.f32 %v3720_v4, %v3719_v29 }
 0x464   : > { %v3711_v63 = vrot.slane %v3710_v0, 4  ;;  %v3741_v3 = vmul.f32 %v3736_v41, %v9813_v52  ;;  %v3684_v50 = vmul.f32 0.5, %v3675_v44  ;;  %v3685_v31 = vmul.f32 0.5, %v3682_v9  ;;  %4184 = vrot.lane.b32.xlu1 %v7606_v16, %s5289_s30  ;;  %v10019_v52 = vld [vmem:[#allocation122_spill] sm:$0xff] }
 0x465   : > { %v3705_v45 = vadd.f32 %v3704_v25, %v3703_v6  ;;  %v3737_v62 = vsel %vm10017_vm4, %v8108_v15, %v8115_v23  ;;  %v3722_v37 = vrot.slane %v3721_v5, 1  ;;  %v3743_v4 = vmul.f32 %v8115_v23, %v9836_v19  ;;  %4877 = vrot.lane.b32.xlu0 %v8210_v42, %s5290_s7  ;;  %v10022_v25 = vld [vmem:[#allocation26_spill] sm:$0xff] }
 0x466   : > { %v3712_v28 = vadd.f32 %v3711_v63, %v3710_v0  ;;  %v3744_v40 = vsel %vm10018_vm12, %v3741_v3, 0.0  ;;  %v3742_v39 = vmul.f32 %v3737_v62, %v9839_v38  ;;  %v8275_v29 = vadd.f32 %v3684_v50, %v10019_v52  ;;  %v4036_v50 = vpop.permute.xlu0 %4035  ;;  %v10025_v62 = vld [vmem:[#allocation4_spill] sm:$0xff] }
 0x467   : > { %v3688_v61 = vadd.f32 %v3685_v31, %v7724_v51  ;;  %v3706_v15 = vrot.slane %v3705_v45, 2  ;;  %v3745_v32 = vrot.slane %v3744_v40, 4  ;;  %v3723_v55 = vadd.f32 %v3722_v37, %v3721_v5 }
 0x468   : > { %v3713_v58 = vrot.slane %v3712_v28, 2  ;;  %v3751_v6 = vsel %vm10020_vm11, %v3742_v39, 0.0  ;;  %vm10021_vm1 = vcmask 1039360   ;;  %vm1419_vm14 = vcmp.gt.f32.partialorder %v10022_v25, -0.5  ;;  %4211 = vrot.lane.b32.xlu1 %v7636_v56, %s5290_s7 }
 0x469   : > { %v3707_v38 = vadd.f32 %v3706_v15, %v3705_v45  ;;  %v3746_v41 = vadd.f32 %v3745_v32, %v3744_v40  ;;  %v3752_v44 = vrot.slane %v3751_v6, 4  ;;  %v8286_v9 = vsel %vm10021_vm1, %v8131_v2, %v8142_v36  ;;  %4209 = vrot.lane.b32.xlu0 %v7592_v12, %s5290_s7 }
 0x46a   : > { %vm1422_vm7 = vcmp.lt.f32.partialorder %v10022_v25, 9.5  ;;  %v3305_v0 = vrot.slane %v8229_v49, 1  ;;  %v3726_v19 = vmul.f32 0.5, %v3723_v55  ;;  %v3714_v23 = vadd.f32 %v3713_v58, %v3712_v28  ;;  %v4038_v55 = vpop.permute.xlu1 %4037  ;;  %v10047_v25 = vld [vmem:[#allocation52_spill] sm:$0xff] }
 0x46b   : > { %v3758_v35 = vsel %vm10023_vm15, %v3743_v4, 0.0  ;;  %v3708_v5 = vrot.slane %v3707_v38, 1  ;;  %v3747_v63 = vrot.slane %v3746_v41, 2  ;;  %v3753_v2 = vadd.f32 %v3752_v44, %v3751_v6  ;;  %vm1425_vm4 = vmand %vm1419_vm14, %vm1422_vm7 }
 0x46c   : > { %v3759_v3 = vrot.slane %v3758_v35, 4  ;;  %v10024_v31 = vrot.slane %v7966_v8, 1  ;;  %v3729_v37 = vadd.f32 %v3726_v19, %v10025_v62  ;;  %v3715_v40 = vrot.slane %v3714_v23, 1  ;;  %4238 = vrot.lane.b32.xlu1 %v7592_v12, %s5291_s9 }
 0x46d   : > { %vm10026_vm6 = vcmask 1031168   ;;  %v3709_v39 = vadd.f32 %v3708_v5, %v3707_v38  ;;  %v3748_v52 = vadd.f32 %v3747_v63, %v3746_v41  ;;  %v3754_v15 = vrot.slane %v3753_v2, 2  ;;  %4213 = vrot.lane.b32.xlu0 %v7606_v16, %s5290_s7 }
 0x46e   : > { %v3299_v45 = vadd.f32 %v10024_v31, %v7966_v8  ;;  %v8303_v28 = vsel %vm10026_vm6, %v8167_v13, %v8182_v7  ;;  %v3760_v32 = vadd.f32 %v3759_v3, %v3758_v35  ;;  %v3306_v58 = vadd.f32 %v3305_v0, %v8229_v49  ;;  %v10031_v0 = vld [vmem:[#allocation82_spill] sm:$0xff]  ;;  %v10032_v31 = vld [vmem:[#allocation28_spill] sm:$0xff] }
 0x46f   : > { %vm10027_vm8 = vcmask 1040384   ;;  %v3716_v4 = vadd.f32 %v3715_v40, %v3714_v23  ;;  %vm10028_vm5 = vcmask 1022976   ;;  %v3724_v13 = vmul.f32 0.5, %v3709_v39 }
 0x470   : > { %v8309_v8 = vsel %vm10027_vm8, %v3688_v61, %v3729_v37  ;;  %v8314_v6 = vsel %vm10028_vm5, %v8201_v10, %v8215_v24  ;;  %v3749_v38 = vrot.slane %v3748_v52, 1  ;;  %v3755_v41 = vadd.f32 %v3754_v15, %v3753_v2  ;;  %v8329_v2 = vpop.permute.xlu0 %4039  ;;  %4242 = vrot.lane.b32.xlu1 %v7606_v16, %s5291_s9  ;;  %vm10034_vm9 = vmmov %vm10027_vm8 }
 0x471   : > { %v3761_v44 = vrot.slane %v3760_v32, 2  ;;  %v3314_v19 = vmul.f32 0.5, %v3299_v45  ;;  %v3725_v35 = vmul.f32 0.5, %v3716_v4  ;;  %vm10029_vm2 = vcmask 1014784   ;;  %v10037_v4 = vld [vmem:[#allocation64_spill] sm:$0xff]  ;;  %vm10038_vm13 = vmmov %vm10027_vm8  ;;  %4240 = vrot.lane.b32.xlu0 %v7636_v56, %s5291_s9 }
 0x472   : > { %v8321_v49 = vsel %vm10029_vm2, %v8250_v43, %v8268_v11  ;;  %vm10030_vm3 = vcmask 1006592   ;;  %v3727_v10 = vadd.f32 %v3724_v13, %v10031_v0  ;;  %v3750_v23 = vadd.f32 %v3749_v38, %v3748_v52  ;;  %v10045_v0 = vld [vmem:[#allocation5_spill] sm:$0xff] }
 0x473   : > { %v8324_v61 = vsel %vm10030_vm3, %v4036_v50, %v4038_v55  ;;  %v3756_v5 = vrot.slane %v3755_v41, 1  ;;  %v3762_v63 = vadd.f32 %v3761_v44, %v3760_v32  ;;  %v3315_v3 = vmul.f32 0.5, %v3306_v58  ;;  %vm10033_vm0 = vmmov %vm10030_vm3  ;;  %v10036_v32 = vld [vmem:[#allocation92_spill] sm:$0xff] }
 0x474   : > { %v3728_v45 = vadd.f32 %v3725_v35, %v10032_v31  ;;  %v8336_v43 = vsel %vm10033_vm0, %v4038_v55, %v8329_v2  ;;  %v3813_v50 = vsel %vm10034_vm9, %v8260_v26, %v3727_v10  ;;  %v3765_v37 = vmul.f32 0.5, %v3750_v23  ;;  %v10039_v26 = vld [vmem:[#allocation48_spill] sm:$0xff]  ;;  %4269 = vrot.lane.b32.xlu1 %v7636_v56, %s5292_s10 }
 0x475   : > { %v3757_v40 = vadd.f32 %v3756_v5, %v3755_v41  ;;  %v3763_v39 = vrot.slane %v3762_v63, 1  ;;  %v5304_v52 = vmov 9   ;;  %vm10035_vm10 = vcmask 1044480   ;;  %v10040_v41 = vld [vmem:[#allocation83_spill] sm:$0xff]  ;;  %v10049_v5 = vld [vmem:[#allocation104_spill] sm:$0xff]  ;;  %4267 = vrot.lane.b32.xlu0 %v7592_v12, %s5292_s10 }
 0x476   : > { %5172 = vset.pattern.permute.xlu1 %v5304_v52  ;;  %v3785_v15 = vsel %vm10035_vm10, %v7914_v22, %v7937_v30  ;;  %v3277_v58 = vadd.f32 %v7970_v57, %v10036_v32  ;;  %v3317_v13 = vadd.f32 %v3314_v19, %v10037_v4  ;;  %v3814_v55 = vsel %vm10038_vm13, %v8275_v29, %v3728_v45  ;;  %v10041_v30 = vld [vmem:[#allocation21_spill] sm:$0xff]  ;;  %v10042_v57 = vld [vmem:[#allocation20_spill] sm:$0xff]  ;;  %vm10043_vm12 = vmmov %vm10035_vm10 }
 0x477   : > { %v3319_v38 = vadd.f32 %v7983_v53, %v10039_v26  ;;  %v3768_v44 = vadd.f32 %v3765_v37, %v10040_v41  ;;  %v3764_v35 = vadd.f32 %v3763_v39, %v3762_v63  ;;  %v3766_v22 = vmul.f32 0.5, %v3757_v40  ;;  %v10044_v29 = vld [vmem:[#allocation7_spill] sm:$0xff]  ;;  %vm10046_vm11 = vmmov %vm10035_vm10  ;;  %v10050_v63 = vld [vmem:[#allocation50_spill] sm:$0xff] }
 0x478   : > { %v3783_v19 = vsel %vm10043_vm12, %v10042_v57, %v10041_v30  ;;  %v3784_v10 = vsel %vm10046_vm11, %v10045_v0, %v10044_v29  ;;  %vm10048_vm1 = vcmask 1045504   ;;  %v3318_v53 = vadd.f32 %v3315_v3, %v10049_v5  ;;  %v10053_v40 = vld [vmem:[#allocation29_spill] sm:$0xff]  ;;  %4296 = vrot.lane.b32.xlu1 %v7592_v12, %s5293_s12  ;;  %v10065_v29 = vld [vmem:[#allocation75_spill] sm:$0xff] }
 0x479   : > { %v3788_v23 = vsel %vm10048_vm1, %v3785_v15, %v10047_v25  ;;  %vm10051_vm14 = vmmov %vm10048_vm1  ;;  %vm10052_vm7 = vcmask 1041408   ;;  %v3767_v37 = vmul.f32 0.5, %v3764_v35  ;;  %v3769_v39 = vadd.f32 %v3766_v22, %v10053_v40  ;;  %v10061_v22 = vld [vmem:[#allocation74_spill] sm:$0xff]  ;;  %4271 = vrot.lane.b32.xlu0 %v7606_v16, %s5292_s10 }
 0x47a   : > { %v3786_v31 = vsel %vm10051_vm14, %v3783_v19, %v10050_v63  ;;  %v8371_v45 = vsel %vm10052_vm7, %v3813_v50, %v3768_v44  ;;  %v10054_v52 = vmov -1e+30   ;;  %vm10055_vm15 = vmmov %vm10048_vm1  ;;  %vm10056_vm6 = vcmask 1046528  }
 0x47b   : > { %v8375_v32 = vsel %vm1425_vm4, 0.0, %v10054_v52  ;;  %v3787_v4 = vsel %vm10055_vm15, %v3784_v10, %v3277_v58  ;;  %v8379_v15 = vsel %vm10056_vm6, %v3786_v31, %v3317_v13  ;;  %vm10057_vm8 = vcmask 1042432   ;;  %vm10058_vm5 = vmmov %vm10056_vm6  ;;  %v10060_v58 = vld [vmem:[#allocation65_spill] sm:$0xff] }
 0x47c   : > { %v3819_v3 = vsel %vm10057_vm8, %v8371_v45, -inf  ;;  %v8384_v41 = vsel %vm10058_vm5, %v3788_v23, %v3319_v38  ;;  %v3770_v44 = vadd.f32 %v3767_v37, %v8375_v32  ;;  %vm10059_vm2 = vmmov %vm10052_vm7  ;;  %v1474_v13 = vmul.f32 %v10061_v22, %v10060_v58  ;;  %v10066_v23 = vld [vmem:[#allocation77_spill] sm:$0xff]  ;;  %4300 = vrot.lane.b32.xlu1 %v7606_v16, %s5293_s12 }
 0x47d   : > { %v3820_v50 = vmax.f32 %v8379_v15, %v3819_v3  ;;  %v8389_v35 = vsel %vm10059_vm2, %v3814_v55, %v3769_v39  ;;  %vm2330_vm3 = vcmask 523264   ;;  %vm10062_vm0 = vmmov %vm10058_vm5  ;;  %vm2333_vm10 = vcmask 518144   ;;  %4298 = vrot.lane.b32.xlu0 %v7636_v56, %s5293_s12 }
 0x47e   : > { %v8396_v30 = vsel %vm10062_vm0, %v3787_v4, %v3318_v53  ;;  %vm10063_vm9 = vmmov %vm10057_vm8  ;;  %v1516_v0 = vmul.f32 %v10065_v29, %v10060_v58  ;;  %v3837_v10 = vsel %vm2330_vm3, %v8384_v41, -inf  ;;  %v1558_v5 = vmul.f32 %v10066_v23, %v10060_v58 }
 0x47f   : > { %v3828_v38 = vsel %vm10063_vm9, %v8389_v35, -inf  ;;  %v3821_v55 = vmax.f32 %v3820_v50, %v8241_v59  ;;  %vm10064_vm13 = vmmov %vm10059_vm2  ;;  %vm10067_vm4 = vcmask 519168   ;;  %vm10077_vm15 = vcmask 1039360  }
 0x480   : > { %v8405_v57 = vsel %vm10064_vm13, %v8309_v8, %v3770_v44  ;;  %v3829_v19 = vmax.f32 %v8396_v30, %v3828_v38  ;;  %v3838_v8 = vsel %vm2330_vm3, %v8222_v33, -inf  ;;  %v1489_v37 = vsel %vm10067_vm4, %v1474_v13, 0.0  ;;  %vm10068_vm12 = vmmov %vm10067_vm4  ;;  %4327 = vrot.lane.b32.xlu1 %v7636_v56, %s5294_s13 }
 0x481   : > { %v3839_v25 = vsel %vm2333_vm10, %v8405_v57, -inf  ;;  %v3822_v53 = vrot.slane %v3821_v55, 4  ;;  %v1531_v4 = vsel %vm10068_vm12, %v1516_v0, 0.0  ;;  %vm10069_vm11 = vmmov %vm10067_vm4  ;;  %v1490_v38 = vrot.slane %v1489_v37, 4  ;;  %4325 = vrot.lane.b32.xlu0 %v7592_v12, %s5294_s13 }
 0x482   : > { %v3830_v63 = vmax.f32 %v3829_v19, %v8245_v14  ;;  %v3840_v31 = vmax.f32 %v3837_v10, %v3839_v25  ;;  %v1573_v3 = vsel %vm10069_vm11, %v1558_v5, 0.0  ;;  %v1532_v19 = vrot.slane %v1531_v4, 4  ;;  %v4578_v25 = vpop.permute.xlu0 %4577  ;;  %vm10072_vm1 = vmmov %vm10067_vm4 }
 0x483   : > { %v3823_v40 = vmax.f32 %v3821_v55, %v3822_v53  ;;  %v1574_v10 = vrot.slane %v1573_v3, 4  ;;  %5096 = vpush %v4578_v25  ;;  %v1491_v5 = vadd.f32 %v1490_v38, %v1489_v37  ;;  %vm10073_vm14 = vmmov %vm10072_vm1  ;;  %vm10078_vm6 = vcmask 1031168  }
 0x484   : > { %v3831_v39 = vrot.slane %v3830_v63, 4  ;;  %v3841_v52 = vmax.f32 %v3840_v31, %v3838_v8  ;;  %v10071_v8 = vld [vmem:[#allocation86_spill] sm:$0xff]  ;;  %4354 = vrot.lane.b32.xlu1 %v7592_v12, %s5295_s14  ;;  %vm10075_vm7 = vmmov %vm10072_vm1  ;;  %vm10079_vm8 = vcmask 1022976   ;;  %vm10080_vm5 = vcmask 1014784  }
 0x485   : > { %v3824_v50 = vrot.slane %v3823_v40, 2  ;;  %4329 = vrot.lane.b32.xlu0 %v7606_v16, %s5294_s13  ;;  %vm10088_vm2 = vmmov %vm10072_vm1  ;;  %vm10101_vm4 = vcmask 1042432  }
 0x486   : > { %v3832_v44 = vmax.f32 %v3830_v63, %v3831_v39  ;;  %v3842_v22 = vrot.slane %v3841_v52, 4  ;;  %v10070_v63 = vld [vmem:[#allocation78_spill] sm:$0xff]  ;;  %v1642_v39 = vmul.f32 %v10071_v8, %v10060_v58  ;;  %vm10091_vm0 = vmmov %vm10072_vm1 }
 0x487   : > { %v3825_v29 = vmax.f32 %v3823_v40, %v3824_v50  ;;  %v1600_v31 = vmul.f32 %v10070_v63, %v10060_v58  ;;  %v1533_v40 = vadd.f32 %v1532_v19, %v1531_v4  ;;  %v1492_v4 = vrot.slane %v1491_v5, 2  ;;  %vm10097_vm9 = vmmov %vm10091_vm0 }
 0x488   : > { %v3833_v13 = vrot.slane %v3832_v44, 2  ;;  %v3843_v55 = vmax.f32 %v3841_v52, %v3842_v22  ;;  %v1657_v63 = vsel %vm10073_vm14, %v1642_v39, 0.0  ;;  %4358 = vrot.lane.b32.xlu1 %v7606_v16, %s5295_s14  ;;  %vm10098_vm13 = vmmov %vm10091_vm0  ;;  %vm10114_vm14 = vcmask 1041408  }
 0x489   : > { %v3826_v23 = vrot.slane %v3825_v29, 1  ;;  %v1615_v25 = vsel %vm10072_vm1, %v1600_v31, 0.0  ;;  %4356 = vrot.lane.b32.xlu0 %v7636_v56, %s5295_s14  ;;  %vm10102_vm12 = vmmov %vm10101_vm4  ;;  %vm10112_vm1 = vcmask 1040384  }
 0x48a   : > { %v3834_v0 = vmax.f32 %v3832_v44, %v3833_v13  ;;  %v3844_v53 = vrot.slane %v3843_v55, 2  ;;  %v1575_v44 = vadd.f32 %v1574_v10, %v1573_v3  ;;  %v1534_v3 = vrot.slane %v1533_v40, 2  ;;  %vm10110_vm11 = vmmov %vm10091_vm0 }
 0x48b   : > { %v3827_v52 = vmax.f32 %v3825_v29, %v3826_v23  ;;  %v1616_v10 = vrot.slane %v1615_v25, 4  ;;  %v1658_v23 = vrot.slane %v1657_v63, 4 }
 0x48c   : > { %v3835_v50 = vrot.slane %v3834_v0, 1  ;;  %v3845_v22 = vmax.f32 %v3843_v55, %v3844_v53  ;;  %4385 = vrot.lane.b32.xlu1 %v7636_v56, %s9808_s17 }
 0x48d   : > { %v3848_v13 = vsub.f32 %v8379_v15, %v3827_v52  ;;  %v3851_v20 = vsub.f32 %v8241_v59, %v3827_v52  ;;  %v3854_v37 = vsub.f32 %v8371_v45, %v3827_v52  ;;  %v1576_v59 = vrot.slane %v1575_v44, 2  ;;  %4383 = vrot.lane.b32.xlu0 %v7592_v12, %s9808_s17 }
 0x48e   : > { %v3836_v38 = vmax.f32 %v3834_v0, %v3835_v50  ;;  %v3846_v8 = vrot.slane %v3845_v22, 1  ;;  %v8463_v50 = vadd.f32 %v1616_v10, %v1615_v25  ;;  %v10082_v10 = vld [vmem:[#allocation15_spill] sm:$0xff] }
 0x48f   : > { %v3857_v19 = vmul.f32 1.442695, %v3848_v13 }
 0x490   : > { %v3849_v15 = vsub.f32 %v8396_v30, %v3836_v38  ;;  %v3847_v29 = vmax.f32 %v3845_v22, %v3846_v8  ;;  %v3852_v45 = vsub.f32 %v8245_v14, %v3836_v38  ;;  %v3855_v55 = vsub.f32 %v8389_v35, %v3836_v38  ;;  %4412 = vrot.lane.b32.xlu1 %v7592_v12, %s9818_s18 }
 0x491   : > { %5220 = vpow2.f32 %v3857_v19  ;;  %v8457_v30 = vadd.f32 %v1492_v4, %v1491_v5  ;;  %v8459_v14 = vadd.f32 %v1534_v3, %v1533_v40  ;;  %v8461_v35 = vadd.f32 %v1576_v59, %v1575_v44  ;;  %4387 = vrot.lane.b32.xlu0 %v7606_v16, %s9808_s17  ;;  %v8540_v44 = vpop.permute.xlu1 %4834 }
 0x492   : > { %v3859_v0 = vmul.f32 1.442695, %v3849_v15  ;;  %v3850_v53 = vsub.f32 %v8384_v41, %v3847_v29  ;;  %v3853_v31 = vsub.f32 %v8222_v33, %v3847_v29  ;;  %v3856_v39 = vsub.f32 %v8405_v57, %v3847_v29  ;;  %v10074_v41 = vld [vmem:[#allocation87_spill] sm:$0xff] }
 0x493   : > { %v8465_v22 = vadd.f32 %v1658_v23, %v1657_v63  ;;  %v1684_v33 = vmul.f32 %v10074_v41, %v10060_v58  ;;  %v3863_v57 = vmul.f32 1.442695, %v3851_v20  ;;  %v3869_v5 = vmul.f32 1.442695, %v3854_v37  ;;  %v10076_v20 = vld [vmem:[#allocation93_spill] sm:$0xff]  ;;  %v10083_v23 = vld [vmem:[#allocation18_spill] sm:$0xff] }
 0x494   : > { %5222 = vpow2.f32 %v3859_v0  ;;  %v3861_v52 = vmul.f32 1.442695, %v3850_v53  ;;  %v1618_v38 = vrot.slane %v8463_v50, 2  ;;  %v3865_v8 = vmul.f32 1.442695, %v3852_v45  ;;  %4416 = vrot.lane.b32.xlu1 %v7606_v16, %s9818_s18  ;;  %v10084_v53 = vld [vmem:[#allocation13_spill] sm:$0xff] }
 0x495   : > { %v8479_v63 = vsel %vm10075_vm7, %v1684_v33, 0.0  ;;  %v1726_v37 = vmul.f32 %v10076_v20, %v10060_v58  ;;  %v3929_v4 = vsel %vm10077_vm15, %v8142_v36, %v8159_v46  ;;  %v3955_v3 = vsel %vm10078_vm6, %v8182_v7, %v8190_v1  ;;  %v10081_v36 = vld [vmem:[#allocation11_spill] sm:$0xff]  ;;  %4414 = vrot.lane.b32.xlu0 %v7636_v56, %s9818_s18  ;;  %vm10118_vm7 = vmmov %vm10091_vm0 }
 0x496   : > { %5224 = vpow2.f32 %v3861_v52  ;;  %v3867_v15 = vmul.f32 1.442695, %v3853_v31  ;;  %v3984_v59 = vsel %vm10079_vm8, %v8215_v24, %v8238_v47  ;;  %v4013_v29 = vsel %vm10080_vm5, %v8268_v11, %v8278_v34  ;;  %v10085_v24 = vld [vmem:[#allocation12_spill] sm:$0xff]  ;;  %vm10121_vm8 = vmmov %vm10091_vm0 }
 0x497   : > { %5226 = vpow2.f32 %v3863_v57  ;;  %v3871_v52 = vmul.f32 1.442695, %v3855_v55  ;;  %v3873_v41 = vmul.f32 1.442695, %v3856_v39  ;;  %vm10119_vm15 = vcmask 998400  }
 0x498   : > { %5228 = vpow2.f32 %v3869_v5  ;;  %4443 = vrot.lane.b32.xlu1 %v7636_v56, %s9840_s23  ;;  %vm10120_vm6 = vmmov %vm10119_vm15  ;;  %vm10125_vm5 = vcmask 990208  }
 0x499   : > { %5230 = vpow2.f32 %v3865_v8  ;;  %4441 = vrot.lane.b32.xlu0 %v7592_v12, %s9840_s23  ;;  %v10086_v12 = vld [vmem:[#allocation37_spill] sm:$0xff] }
 0x49a   : > { %5232 = vpow2.f32 %v3867_v15  ;;  %v1810_v40 = vmul.f32 %v10086_v12, %v10060_v58 }
 0x49b   : > { %v8493_v19 = vpop.eup %5220  ;;  %5234 = vpow2.f32 %v3871_v52 }
 0x49c   : > { %v3910_v45 = vrot.slane %v8493_v19, %v10081_v36  ;;  %v3939_v7 = vrot.slane %v8493_v19, %v10082_v10  ;;  %v3968_v0 = vrot.slane %v8493_v19, %v10083_v23  ;;  %v3997_v31 = vrot.slane %v8493_v19, %v10084_v53  ;;  %4462 = vperm.xlu1 %5172, %v8210_v42  }
 0x49d   : > { %v4026_v33 = vrot.slane %v8493_v19, %v10085_v24  ;;  %4445 = vrot.lane.b32.xlu0 %v7606_v16, %s9840_s23  ;;  %5236 = vpow2.f32 %v3873_v41 }
 0x49e   : > { %v8513_v11 = vpop.eup %5222  ;;  %v3933_v57 = vmul.f32 %v8286_v9, %v3910_v45  ;;  %v3959_v5 = vmul.f32 %v8303_v28, %v3939_v7  ;;  %v3988_v20 = vmul.f32 %v8314_v6, %v3968_v0  ;;  %v4017_v13 = vmul.f32 %v8321_v49, %v3997_v31 }
 0x49f   : > { %v3914_v55 = vrot.slane %v8513_v11, %v10081_v36  ;;  %v3943_v39 = vrot.slane %v8513_v11, %v10082_v10  ;;  %v3972_v8 = vrot.slane %v8513_v11, %v10083_v23  ;;  %v4001_v9 = vrot.slane %v8513_v11, %v10084_v53 }
 0x4a0   : > { %v8529_v28 = vpop.eup %5224  ;;  %v3962_v6 = vadd.f32 %v3959_v5, %v3933_v57  ;;  %v4030_v49 = vrot.slane %v8513_v11, %v10085_v24  ;;  %v4046_v56 = vmul.f32 %v8324_v61, %v4026_v33  ;;  %v4593_v16 = vpop.permute.xlu1 %4592 }
 0x4a1   : > { %v3918_v45 = vrot.slane %v8529_v28, %v10081_v36  ;;  %v3934_v7 = vmul.f32 %v3929_v4, %v3914_v55  ;;  %v3947_v0 = vrot.slane %v8529_v28, %v10082_v10  ;;  %v3960_v31 = vmul.f32 %v3955_v3, %v3943_v39  ;;  %v8549_v39 = vpop.eup %5226  ;;  %5098 = vpush %v4593_v16 }
 0x4a2   : > { %v3976_v15 = vrot.slane %v8529_v28, %v10083_v23  ;;  %v3989_v57 = vmul.f32 %v3984_v59, %v3972_v8  ;;  %v3991_v5 = vadd.f32 %v3988_v20, %v3962_v6  ;;  %v4005_v61 = vrot.slane %v8529_v28, %v10084_v53  ;;  %v8555_v20 = vpop.eup %5228 }
 0x4a3   : > { %v3935_v4 = vmul.f32 %v8159_v46, %v3918_v45  ;;  %v3961_v33 = vmul.f32 %v8190_v1, %v3947_v0  ;;  %v3963_v3 = vadd.f32 %v3960_v31, %v3934_v7  ;;  %v4018_v55 = vmul.f32 %v4013_v29, %v4001_v9  ;;  %10087 = vst [vmem:[#allocation112_spill] sm:$0xff] %v8555_v20  ;;  %v8569_v45 = vpop.eup %5230 }
 0x4a4   : > { %v4020_v25 = vadd.f32 %v4017_v13, %v3991_v5  ;;  %v4034_v59 = vrot.slane %v8529_v28, %v10085_v24  ;;  %v3990_v42 = vmul.f32 %v8238_v47, %v3976_v15  ;;  %v4047_v1 = vmul.f32 %v8336_v43, %v4030_v49 }
 0x4a5   : > { %v3964_v8 = vadd.f32 %v3961_v33, %v3935_v4  ;;  %v3992_v46 = vadd.f32 %v3989_v57, %v3963_v3  ;;  %v1619_v29 = vadd.f32 %v1618_v38, %v8463_v50  ;;  %v1741_v13 = vsel %vm10088_vm2, %v1726_v37, 0.0  ;;  %vm10127_vm2 = vmmov %vm10091_vm0 }
 0x4a6   : > { %v4048_v52 = vmul.f32 %v8329_v2, %v4034_v59  ;;  %v8566_v9 = vadd.f32 %v4046_v56, %v4020_v25  ;;  %v10089_v6 = vmov 1   ;;  %v4019_v43 = vmul.f32 %v8278_v34, %v4005_v61  ;;  %v10092_v25 = vld [vmem:[#allocation94_spill] sm:$0xff]  ;;  %v10093_v56 = vld [vmem:[#allocation40_spill] sm:$0xff]  ;;  %v8583_v34 = vpop.eup %5232 }
 0x4a7   : > { %5174 = vset.pattern.permute.xlu1 %v10089_v6  ;;  %v3993_v47 = vadd.f32 %v3990_v42, %v3964_v8  ;;  %v4021_v49 = vadd.f32 %v4018_v55, %v3992_v46  ;;  %v10090_v7 = vrot.slane %v8465_v22, 2  ;;  %v1700_v38 = vrot.slane %v8479_v63, 4  ;;  %v8599_v42 = vpop.eup %5234 }
 0x4a8   : > { %v1825_v2 = vsel %vm10091_vm0, %v1810_v40, 0.0  ;;  %v1768_v37 = vmul.f32 %v10092_v25, %v10060_v58  ;;  %v1852_v41 = vmul.f32 %v10093_v56, %v10060_v58  ;;  %v10094_v15 = vrot.slane %v8457_v30, 1  ;;  %10099 = vst [vmem:[#allocation116_spill] sm:$0xff] %v8599_v42  ;;  %v4867_v16 = vpop.permute.xlu1 %4866 }
 0x4a9   : > { %v1661_v50 = vadd.f32 %v10090_v7, %v8465_v22  ;;  %v4022_v0 = vadd.f32 %v4019_v43, %v3993_v47  ;;  %v8581_v31 = vadd.f32 %v4047_v1, %v4021_v49  ;;  %v10095_v57 = vrot.slane %v8459_v14, 1 }
 0x4aa   : > { %v1495_v22 = vadd.f32 %v10094_v15, %v8457_v30  ;;  %v1742_v5 = vrot.slane %v1741_v13, 4  ;;  %v10096_v61 = vrot.slane %v8461_v35, 1  ;;  %v1620_v33 = vrot.slane %v1619_v29, 1 }
 0x4ab   : > { %v1537_v40 = vadd.f32 %v10095_v57, %v8459_v14  ;;  %v1826_v3 = vrot.slane %v1825_v2, 4  ;;  %v8594_v55 = vadd.f32 %v4048_v52, %v4022_v0  ;;  %v1662_v12 = vrot.slane %v1661_v50, 1 }
 0x4ac   : > { %v1579_v4 = vadd.f32 %v10096_v61, %v8461_v35  ;;  %v1701_v59 = vadd.f32 %v1700_v38, %v8479_v63  ;;  %v1783_v8 = vsel %vm10097_vm9, %v1768_v37, 0.0  ;;  %v1867_v30 = vsel %vm10098_vm13, %v1852_v41, 0.0  ;;  %v4610_v35 = vpop.permute.xlu0 %4609  ;;  %v8601_v63 = vpop.eup %5236  ;;  %v10103_v37 = vld [vmem:[#allocation95_spill] sm:$0xff]  ;;  %v10106_v61 = vld [vmem:[#allocation42_spill] sm:$0xff]  ;;  %vm10131_vm9 = vmmov %vm10125_vm5 }
 0x4ad   : > { %v1498_v46 = vmul.f32 0.5, %v1495_v22  ;;  %v1743_v14 = vadd.f32 %v1742_v5, %v1741_v13  ;;  %v1540_v1 = vmul.f32 0.5, %v1537_v40  ;;  %v1621_v43 = vadd.f32 %v1620_v33, %v1619_v29  ;;  %5100 = vpush %v4610_v35  ;;  %10100 = vst [vmem:[#allocation27_spill] sm:$0xff] %v8601_v63  ;;  %v4065_v22 = vpop.permute.xlu1 %4064  ;;  %v10107_v33 = vld [vmem:[#allocation8_spill] sm:$0xff] }
 0x4ae   : > { %v1582_v47 = vmul.f32 0.5, %v1579_v4  ;;  %v1827_v49 = vadd.f32 %v1826_v3, %v1825_v2  ;;  %v1663_v7 = vadd.f32 %v1662_v12, %v1661_v50  ;;  %v1702_v52 = vrot.slane %v1701_v59, 2  ;;  %5102 = vpush %v8540_v44  ;;  %vm10132_vm13 = vmmov %vm10091_vm0 }
 0x4af   : > { %v1784_v25 = vrot.slane %v1783_v8, 4  ;;  %v1868_v56 = vrot.slane %v1867_v30, 4  ;;  %v3875_v38 = vadd.f32 %v8549_v39, %v8493_v19  ;;  %v3876_v13 = vsel %vm10101_vm4, %v8555_v20, 0.0  ;;  %vm10133_vm4 = vmmov %vm10091_vm0 }
 0x4b0   : > { %v3884_v29 = vadd.f32 %v8569_v45, %v8513_v11  ;;  %v3885_v50 = vsel %vm10102_vm12, %v8599_v42, 0.0  ;;  %v1744_v2 = vrot.slane %v1743_v14, 2  ;;  %v1894_v41 = vmul.f32 %v10103_v37, %v10060_v58  ;;  %v10108_v37 = vld [vmem:[#allocation44_spill] sm:$0xff]  ;;  %vm10135_vm12 = vmmov %vm10091_vm0 }
 0x4b1   : > { %v3893_v0 = vsel %vm2330_vm3, %v8529_v28, 0.0  ;;  %v3894_v44 = vsel %vm2330_vm3, %v8583_v34, 0.0  ;;  %v1828_v15 = vrot.slane %v1827_v49, 2  ;;  %v8618_v57 = vadd.f32 %v3876_v13, %v3875_v38 }
 0x4b2   : > { %v8620_v40 = vadd.f32 %v3885_v50, %v3884_v29  ;;  %v3895_v5 = vadd.f32 %v3894_v44, %v3893_v0  ;;  %v1501_v4 = vadd.f32 %v1498_v46, %v10106_v61  ;;  %v1543_v3 = vadd.f32 %v1540_v1, %v10107_v33  ;;  %v10111_v29 = vld [vmem:[#allocation16_spill] sm:$0xff]  ;;  %v4850_v1 = vpop.permute.xlu0 %4849  ;;  %v10117_v61 = vld [vmem:[#allocation49_spill] sm:$0xff] }
 0x4b3   : > { %10104 = vst [vmem:[#allocation69_spill] sm:$0xff] %v8618_v57  ;;  %v1869_v12 = vadd.f32 %v1868_v56, %v1867_v30  ;;  %v3896_v35 = vsel %vm2333_vm10, %v8601_v63, 0.0  ;;  %v1585_v42 = vadd.f32 %v1582_v47, %v10108_v37  ;;  %v1624_v20 = vmul.f32 0.5, %v1621_v43  ;;  %v4069_v30 = vpop.permute.xlu1 %4068  ;;  %v10113_v47 = vld [vmem:[#allocation96_spill] sm:$0xff]  ;;  %5104 = vpush %v4850_v1  ;;  %v10130_v63 = vld [vmem:[#allocation17_spill] sm:$0xff] }
 0x4b4   : > { %10105 = vst [vmem:[#allocation121_spill] sm:$0xff] %v8620_v40  ;;  %v1703_v48 = vadd.f32 %v1702_v52, %v1701_v59  ;;  %v8627_v24 = vadd.f32 %v3896_v35, %v3895_v5  ;;  %v1745_v27 = vadd.f32 %v1744_v2, %v1743_v14  ;;  %v1785_v38 = vadd.f32 %v1784_v25, %v1783_v8  ;;  %v10115_v8 = vld [vmem:[#allocation14_spill] sm:$0xff]  ;;  %s8735_s22 = spop %5096 }
 0x4b5   : > { %v1909_v13 = vsel %vm10110_vm11, %v1894_v41, 0.0  ;;  %v4063_v50 = vrot.slane %v8529_v28, %v10111_v29  ;;  %v1666_v46 = vmul.f32 0.5, %v1663_v7  ;;  %v1829_v0 = vadd.f32 %v1828_v15, %v1827_v49  ;;  %v10116_v7 = vld [vmem:[#allocation97_spill] sm:$0xff]  ;;  %5106 = vpush %v4867_v16 }
 0x4b6   : > { %10109 = vst [vmem:[#allocation73_spill] sm:$0xff] %v8627_v24  ;;  %v2261_v56 = vsel %vm10112_vm1, %v1501_v4, %v1543_v3  ;;  %v1870_v44 = vrot.slane %v1869_v12, 2  ;;  %v1936_v43 = vmul.f32 %v10113_v47, %v10060_v58  ;;  %v8639_v52 = vadd.f32 %v1624_v20, %v10115_v8  ;;  %v4067_v3 = vpop.permute.xlu0 %4066 }
 0x4b7   : > { %v4077_v59 = vmul.f32 %v4069_v30, %v4063_v50  ;;  %v8636_v14 = vsel %vm10114_vm14, %v2261_v56, %v1585_v42  ;;  %v1910_v25 = vrot.slane %v1909_v13, 4  ;;  %v1978_v49 = vmul.f32 %v10116_v7, %v10060_v58  ;;  %vm10138_vm14 = vmmov %vm10091_vm0 }
 0x4b8   : > { %v1704_v2 = vrot.slane %v1703_v48, 1  ;;  %v1746_v41 = vrot.slane %v1745_v27, 1  ;;  %v1786_v15 = vrot.slane %v1785_v38, 2  ;;  %v8645_v4 = vadd.f32 %v1666_v46, %v10117_v61 }
 0x4b9   : > { %v4080_v5 = vadd.f32 %v4077_v59, %v8594_v55  ;;  %v1830_v33 = vrot.slane %v1829_v0, 1  ;;  %v4055_v42 = vrot.slane %v8493_v19, %v10111_v29  ;;  %v4059_v20 = vrot.slane %v8513_v11, %v10111_v29  ;;  %v4096_v55 = vpop.permute.xlu1 %4095 }
 0x4ba   : > { %v8651_v35 = vadd.f32 %v1870_v44, %v1869_v12  ;;  %v1951_v16 = vsel %vm10118_vm7, %v1936_v43, 0.0  ;;  %v4070_v37 = vsel %vm10119_vm15, %v4065_v22, %v4067_v3  ;;  %v4071_v50 = vsel %vm10120_vm6, %v4067_v3, %v4069_v30  ;;  %v10122_v12 = vld [vmem:[#allocation98_spill] sm:$0xff]  ;;  %v4094_v61 = vpop.permute.xlu0 %4093 }
 0x4bb   : > { %v1911_v1 = vadd.f32 %v1910_v25, %v1909_v13  ;;  %v1993_v46 = vsel %vm10121_vm8, %v1978_v49, 0.0  ;;  %v4075_v56 = vmul.f32 %v4070_v37, %v4055_v42  ;;  %v4076_v47 = vmul.f32 %v4071_v50, %v4059_v20  ;;  %v10123_v13 = vld [vmem:[#allocation19_spill] sm:$0xff]  ;;  %v10126_v42 = vld [vmem:[#allocation102_spill] sm:$0xff] }
 0x4bc   : > { %v8657_v59 = vadd.f32 %v1704_v2, %v1703_v48  ;;  %v8659_v8 = vadd.f32 %v1746_v41, %v1745_v27  ;;  %v8661_v7 = vadd.f32 %v1786_v15, %v1785_v38  ;;  %v2020_v44 = vmul.f32 %v10122_v12, %v10060_v58  ;;  %v10124_v48 = vld [vmem:[#allocation101_spill] sm:$0xff]  ;;  %v10128_v37 = vld [vmem:[#allocation99_spill] sm:$0xff] }
 0x4bd   : > { %v1952_v43 = vrot.slane %v1951_v16, 4  ;;  %v4078_v22 = vadd.f32 %v4075_v56, %v8566_v9  ;;  %v4079_v30 = vadd.f32 %v4076_v47, %v8581_v31  ;;  %v4084_v25 = vrot.slane %v8493_v19, %v10123_v13  ;;  %v4123_v2 = vpop.permute.xlu1 %4122 }
 0x4be   : > { %v1831_v49 = vadd.f32 %v1830_v33, %v1829_v0  ;;  %v1994_v3 = vrot.slane %v1993_v46, 4  ;;  %v2146_v27 = vmul.f32 %v10124_v48, %v10060_v58  ;;  %v4099_v38 = vsel %vm10125_vm5, %v4094_v61, %v4096_v55  ;;  %v10129_v0 = vld [vmem:[#allocation103_spill] sm:$0xff]  ;;  %v4098_v61 = vpop.permute.xlu0 %4097 }
 0x4bf   : > { %v1872_v41 = vrot.slane %v8651_v35, 1  ;;  %v1912_v15 = vrot.slane %v1911_v1, 2  ;;  %v2188_v9 = vmul.f32 %v10126_v42, %v10060_v58  ;;  %v4104_v20 = vmul.f32 %v4099_v38, %v4084_v25 }
 0x4c0   : > { %v2035_v31 = vsel %vm10127_vm2, %v2020_v44, 0.0  ;;  %v2062_v50 = vmul.f32 %v10128_v37, %v10060_v58  ;;  %v2230_v33 = vmul.f32 %v10129_v0, %v10060_v58  ;;  %v4092_v56 = vrot.slane %v8529_v28, %v10123_v13 }
 0x4c1   : > { %v1953_v47 = vadd.f32 %v1952_v43, %v1951_v16  ;;  %v4107_v12 = vadd.f32 %v4104_v20, %v4078_v22  ;;  %v4088_v48 = vrot.slane %v8513_v11, %v10123_v13  ;;  %v4121_v25 = vrot.slane %v8529_v28, %v10130_v63  ;;  %v4127_v40 = vpop.permute.xlu1 %4126  ;;  %v10134_v22 = vld [vmem:[#allocation100_spill] sm:$0xff] }
 0x4c2   : > { %v1995_v38 = vadd.f32 %v1994_v3, %v1993_v46  ;;  %v2161_v44 = vsel %vm10091_vm0, %v2146_v27, 0.0  ;;  %v4100_v42 = vsel %vm10131_vm9, %v4096_v55, %v4098_v61  ;;  %v4106_v37 = vmul.f32 %v4098_v61, %v4092_v56  ;;  %v4125_v27 = vpop.permute.xlu0 %4124 }
 0x4c3   : > { %v2036_v0 = vrot.slane %v2035_v31, 4  ;;  %v2203_v24 = vsel %vm10132_vm13, %v2188_v9, 0.0  ;;  %v4105_v57 = vmul.f32 %v4100_v42, %v4088_v48  ;;  %v4135_v16 = vmul.f32 %v4127_v40, %v4121_v25 }
 0x4c4   : > { %v2077_v43 = vsel %vm10133_vm4, %v2062_v50, 0.0  ;;  %v2104_v20 = vmul.f32 %v10134_v22, %v10060_v58  ;;  %v2245_v13 = vsel %vm10135_vm12, %v2230_v33, 0.0  ;;  %v4109_v28 = vadd.f32 %v4106_v37, %v4080_v5 }
 0x4c5   : > { %v2162_v46 = vrot.slane %v2161_v44, 4  ;;  %v4108_v3 = vadd.f32 %v4105_v57, %v4079_v30  ;;  %v4113_v55 = vrot.slane %v8493_v19, %v10130_v63  ;;  %v4117_v56 = vrot.slane %v8513_v11, %v10130_v63  ;;  %v4154_v25 = vpop.permute.xlu1 %4153 }
 0x4c6   : > { %v2204_v9 = vrot.slane %v2203_v24, 4  ;;  %vm10136_vm11 = vcmask 982016   ;;  %v4138_v48 = vadd.f32 %v4135_v16, %v4109_v28  ;;  %v1913_v58 = vadd.f32 %v1912_v15, %v1911_v1  ;;  %v4152_v18 = vpop.permute.xlu0 %4151 }
 0x4c7   : > { %v4128_v61 = vsel %vm10136_vm11, %v4123_v2, %v4125_v27  ;;  %vm10137_vm1 = vmmov %vm10136_vm11  ;;  %v2246_v42 = vrot.slane %v2245_v13, 4  ;;  %v1834_v37 = vmul.f32 0.5, %v1831_v49  ;;  %v1954_v57 = vrot.slane %v1953_v47, 2 }
 0x4c8   : > { %v4129_v50 = vsel %vm10137_vm1, %v4125_v27, %v4127_v40  ;;  %v4133_v33 = vmul.f32 %v4128_v61, %v4113_v55  ;;  %v1996_v30 = vrot.slane %v1995_v38, 2  ;;  %v2037_v22 = vadd.f32 %v2036_v0, %v2035_v31 }
 0x4c9   : > { %v4134_v5 = vmul.f32 %v4129_v50, %v4117_v56  ;;  %v2078_v29 = vrot.slane %v2077_v43, 4  ;;  %v4142_v11 = vrot.slane %v8549_v39, %v10081_v36  ;;  %v2119_v2 = vsel %vm10138_vm14, %v2104_v20, 0.0  ;;  %v4181_v15 = vpop.permute.xlu1 %4180 }
 0x4ca   : > { %v4136_v19 = vadd.f32 %v4133_v33, %v4107_v12  ;;  %v2163_v40 = vadd.f32 %v2162_v46, %v2161_v44  ;;  %v2205_v16 = vadd.f32 %v2204_v9, %v2203_v24  ;;  %vm10139_vm7 = vcmask 973824   ;;  %v4156_v20 = vpop.permute.xlu0 %4155 }
 0x4cb   : > { %v4137_v6 = vadd.f32 %v4134_v5, %v4108_v3  ;;  %v4157_v1 = vsel %vm10139_vm7, %v4152_v18, %v4154_v25  ;;  %v1873_v28 = vadd.f32 %v1872_v41, %v8651_v35  ;;  %v1914_v49 = vrot.slane %v1913_v58, 1  ;;  %vm10140_vm15 = vmmov %vm10139_vm7 }
 0x4cc   : > { %v2247_v27 = vadd.f32 %v2246_v42, %v2245_v13  ;;  %v4162_v55 = vmul.f32 %v4157_v1, %v4142_v11  ;;  %v1955_v31 = vadd.f32 %v1954_v57, %v1953_v47  ;;  %v1997_v0 = vadd.f32 %v1996_v30, %v1995_v38 }
 0x4cd   : > { %v2038_v12 = vrot.slane %v2037_v22, 2  ;;  %v4150_v3 = vrot.slane %v8583_v34, %v10081_v36  ;;  %v2079_v56 = vadd.f32 %v2078_v29, %v2077_v43  ;;  %v2120_v61 = vrot.slane %v2119_v2, 4  ;;  %v8709_v13 = vpop.permute.xlu1 %4587 }
 0x4ce   : > { %v4165_v50 = vadd.f32 %v4162_v55, %v4136_v19  ;;  %v4146_v24 = vrot.slane %v8569_v45, %v10081_v36  ;;  %v2164_v18 = vrot.slane %v2163_v40, 2  ;;  %v2206_v44 = vrot.slane %v2205_v16, 2  ;;  %v4183_v19 = vpop.permute.xlu0 %4182  ;;  %v10142_v55 = vld [vmem:[#allocation34_spill] sm:$0xff] }
 0x4cf   : > { %v4158_v35 = vsel %vm10140_vm15, %v4154_v25, %v4156_v20  ;;  %v4164_v41 = vmul.f32 %v4156_v20, %v4150_v3  ;;  %v1876_v47 = vmul.f32 0.5, %v1873_v28  ;;  %v1915_v38 = vadd.f32 %v1914_v49, %v1913_v58 }
 0x4d0   : > { %v2248_v46 = vrot.slane %v2247_v27, 2  ;;  %v4163_v9 = vmul.f32 %v4158_v35, %v4146_v24  ;;  %v1956_v42 = vrot.slane %v1955_v31, 1  ;;  %v1998_v33 = vrot.slane %v1997_v0, 1 }
 0x4d1   : > { %v2039_v29 = vadd.f32 %v2038_v12, %v2037_v22  ;;  %v8711_v43 = vadd.f32 %v4164_v41, %v4138_v48  ;;  %v2080_v5 = vrot.slane %v2079_v56, 2  ;;  %v2121_v57 = vadd.f32 %v2120_v61, %v2119_v2  ;;  %v8719_v49 = vpop.permute.xlu1 %4844  ;;  %v10143_v48 = vld [vmem:[#allocation25_spill] sm:$0xff] }
 0x4d2   : > { %v8713_v30 = vadd.f32 %v4163_v9, %v4137_v6  ;;  %v4171_v25 = vrot.slane %v8549_v39, %v10082_v10  ;;  %v1788_v11 = vrot.slane %v8661_v7, 1  ;;  %v2165_v1 = vadd.f32 %v2164_v18, %v2163_v40  ;;  %s5099_s25 = spop %5098 }
 0x4d3   : > { %v2207_v28 = vadd.f32 %v2206_v44, %v2205_v16  ;;  %vm10141_vm6 = vcmask 965632   ;;  %v1837_v22 = vadd.f32 %v1834_v37, %v10142_v55  ;;  %v1879_v12 = vadd.f32 %v1876_v47, %v10143_v48 }
 0x4d4   : > { %v4186_v58 = vsel %vm10141_vm6, %v4181_v15, %v4183_v19  ;;  %v2249_v3 = vadd.f32 %v2248_v46, %v2247_v27  ;;  %vm10144_vm8 = vcmask 1042432   ;;  %v1918_v61 = vmul.f32 0.5, %v1915_v38  ;;  %v8728_v15 = vpop.permute.xlu0 %4603  ;;  %vm10147_vm0 = vmmov %vm10141_vm6 }
 0x4d5   : > { %v4191_v2 = vmul.f32 %v4186_v58, %v4171_v25  ;;  %v2269_v6 = vsel %vm10144_vm8, %v8636_v14, %v8639_v52  ;;  %v1957_v20 = vadd.f32 %v1956_v42, %v1955_v31  ;;  %v2040_v24 = vrot.slane %v2039_v29, 1  ;;  %v8733_v47 = vpop.permute.xlu1 %4620  ;;  %vm10151_vm13 = vmmov %vm10144_vm8 }
 0x4d6   : > { %v1999_v35 = vadd.f32 %v1998_v33, %v1997_v0  ;;  %v2081_v40 = vadd.f32 %v2080_v5, %v2079_v56  ;;  %v2122_v16 = vrot.slane %v2121_v57, 2  ;;  %vm10145_vm5 = vcmask 1043456  }
 0x4d7   : > { %v8726_v18 = vadd.f32 %v4191_v2, %v4165_v50  ;;  %v2272_v37 = vsel %vm10145_vm5, %v2269_v6, %v8645_v4  ;;  %v1708_v27 = vmul.f32 0.5, %v8657_v59  ;;  %v2166_v44 = vrot.slane %v2165_v1, 1  ;;  %v295_v59 = vld [vmem:[%s9062_s3 + $0x14] sm:$0xf]  ;;  %vm10152_vm4 = vmmov %vm10145_vm5 }
 0x4d8   : > { %v2208_v41 = vrot.slane %v2207_v28, 1  ;;  %v1750_v14 = vmul.f32 0.5, %v8659_v8  ;;  %v1789_v52 = vadd.f32 %v1788_v11, %v8661_v7  ;;  %vm10146_vm2 = vcmask 1040384   ;;  %v8744_v8 = vpop.permute.xlu0 %4860 }
 0x4d9   : > { %v2287_v31 = vsel %vm10146_vm2, %v1837_v22, %v1879_v12  ;;  %v2250_v0 = vrot.slane %v2249_v3, 1  ;;  %v1921_v56 = vadd.f32 %v1918_v61, %v7652_v54  ;;  %v1960_v4 = vmul.f32 0.5, %v1957_v20  ;;  %v294_v54 = vld [vmem:[%s9062_s3 + $0x10] sm:$0xf]  ;;  %v4185_v11 = vpop.permute.xlu1 %4184  ;;  %vm10157_vm7 = vmmov %vm10146_vm2 }
 0x4da   : > { %v2041_v50 = vadd.f32 %v2040_v24, %v2039_v29  ;;  %v4595_v38 = vstv %s5099_s25  ;;  %v2002_v46 = vmul.f32 0.5, %v1999_v35  ;;  %v2082_v9 = vrot.slane %v2081_v40, 1  ;;  %v10149_v35 = vld [vmem:[#allocation10_spill] sm:$0xff] }
 0x4db   : > { %v2123_v42 = vadd.f32 %v2122_v16, %v2121_v57  ;;  %v4179_v7 = vrot.slane %v8583_v34, %v10082_v10  ;;  %v2167_v33 = vadd.f32 %v2166_v44, %v2165_v1  ;;  %v2209_v5 = vadd.f32 %v2208_v41, %v2207_v28 }
 0x4dc   : > { %v4580_v29 = vstv %s8735_s22  ;;  %v4175_v25 = vrot.slane %v8569_v45, %v10082_v10  ;;  %v2251_v58 = vadd.f32 %v2250_v0, %v2249_v3  ;;  %v4187_v55 = vsel %vm10147_vm0, %v4183_v19, %v4185_v11  ;;  %v8758_v61 = vpop.permute.xlu0 %4877  ;;  %s284_s22 = scalar_lea.vmem %s9065_s6, %s5370_s29 }
 0x4dd   : > { %v4193_v57 = vmul.f32 %v4185_v11, %v4179_v7  ;;  %v4597_v22 = vmul.f32 %v4595_v38, %v295_v59  ;;  %vm10148_vm9 = vcmask 1041408   ;;  %v1963_v12 = vadd.f32 %v1960_v4, %v7684_v17  ;;  %v296_v17 = vld [vmem:[%s9062_s3 + $0x18] sm:$0xf]  ;;  %v4212_v41 = vpop.permute.xlu1 %4211 }
 0x4de   : > { %v2290_v48 = vsel %vm10148_vm9, %v2287_v31, %v1921_v56  ;;  %v2044_v1 = vmul.f32 0.5, %v2041_v50  ;;  %v4192_v28 = vmul.f32 %v4187_v55, %v4175_v25  ;;  %v2005_v2 = vadd.f32 %v2002_v46, %v7689_v21  ;;  %v10150_v31 = vld [vmem:[#allocation45_spill] sm:$0xff]  ;;  %s5101_s10 = spop %5100  ;;  %vm10160_vm6 = vmmov %vm10148_vm9 }
 0x4df   : > { %v2124_v6 = vrot.slane %v2123_v42, 1  ;;  %v4582_v20 = vmul.f32 %v4580_v29, %v294_v54  ;;  %v4196_v24 = vadd.f32 %v4193_v57, %v8711_v43  ;;  %v1711_v3 = vadd.f32 %v1708_v27, %v10149_v35  ;;  %s8779_s12 = spop %5102 }
 0x4e0   : > { %v2170_v16 = vmul.f32 0.5, %v2167_v33  ;;  %v2212_v19 = vmul.f32 0.5, %v2209_v5  ;;  %v4195_v44 = vadd.f32 %v4192_v28, %v8713_v30  ;;  %v1753_v0 = vadd.f32 %v1750_v14, %v10150_v31  ;;  %v4210_v46 = vpop.permute.xlu0 %4209 }
 0x4e1   : > { %v2083_v21 = vadd.f32 %v2082_v9, %v2081_v40  ;;  %v2254_v56 = vmul.f32 0.5, %v2251_v58  ;;  %v4598_v4 = vadd.f32 %v4597_v22, %v4582_v20  ;;  %v1792_v50 = vmul.f32 0.5, %v1789_v52  ;;  %v4239_v5 = vpop.permute.xlu1 %4238  ;;  %v297_v22 = vld [vmem:[%s9062_s3 + $0x1c] sm:$0xf] }
 0x4e2   : > { %v2293_v43 = vsel %vm10151_vm13, %v2290_v48, %v1963_v12  ;;  %v2047_v27 = vadd.f32 %v2044_v1, %v7696_v60  ;;  %v4612_v59 = vstv %s5101_s10  ;;  %v2125_v30 = vadd.f32 %v2124_v6, %v2123_v42  ;;  %v298_v1 = vld [vmem:[%s9062_s3 + $0x20] sm:$0xf] }
 0x4e3   : > { %v2296_v38 = vsel %vm10152_vm4, %v2293_v43, %v2005_v2  ;;  %v4614_v7 = vmul.f32 %v4612_v59, %v296_v17  ;;  %v4200_v33 = vrot.slane %v8549_v39, %v10083_v23  ;;  %vm10153_vm12 = vcmask 1044480   ;;  %v10159_v2 = vld [vmem:[#allocation3_spill] sm:$0xff]  ;;  %v299_v17 = vld [vmem:[%s9062_s3 + $0x24] sm:$0xf] }
 0x4e4   : > { %v2276_v14 = vsel %vm10153_vm12, %v2272_v37, %v1711_v3  ;;  %v2173_v40 = vadd.f32 %v2170_v16, %v7724_v51  ;;  %v2215_v9 = vadd.f32 %v2212_v19, %v10025_v62  ;;  %vm10154_vm11 = vcmask 957440   ;;  %vm10156_vm14 = vmmov %vm10153_vm12  ;;  %v4214_v55 = vpop.permute.xlu0 %4213  ;;  %s5105_s15 = spop %5104 }
 0x4e5   : > { %v4215_v52 = vsel %vm10154_vm11, %v4210_v46, %v4212_v41  ;;  %v2086_v54 = vmul.f32 0.5, %v2083_v21  ;;  %v2257_v60 = vadd.f32 %v2254_v56, %v8375_v32  ;;  %v8777_v29 = vadd.f32 %v4614_v7, %v4598_v4  ;;  %vm10158_vm15 = vmmov %vm10154_vm11  ;;  %v4243_v28 = vpop.permute.xlu1 %4242 }
 0x4e6   : > { %v4220_v42 = vmul.f32 %v4215_v52, %v4200_v33  ;;  %vm10155_vm1 = vcmask 1045504   ;;  %v1795_v37 = vadd.f32 %v1792_v50, %v10039_v26  ;;  %v2299_v51 = vsel %vm10156_vm14, %v2296_v38, %v2047_v27  ;;  %s5107_s23 = spop %5106  ;;  %v10163_v27 = vld [vmem:[#allocation47_spill] sm:$0xff] }
 0x4e7   : > { %v2280_v25 = vsel %vm10155_vm1, %v2276_v14, %v1753_v0  ;;  %v4208_v62 = vrot.slane %v8583_v34, %v10083_v23  ;;  %v2128_v11 = vmul.f32 0.5, %v2125_v30  ;;  %v4204_v32 = vrot.slane %v8569_v45, %v10083_v23  ;;  %4646 = vperm.xlu1 %5174, %v8777_v29   ;;  %4627 = vperm.xlu0 %5173, %v8777_v29   ;;  %vm10167_vm0 = vmmov %vm10155_vm1 }
 0x4e8   : > { %v4223_v58 = vadd.f32 %v4220_v42, %v8726_v18  ;;  %v4237_v57 = vrot.slane %v8583_v34, %v10084_v53  ;;  %v2308_v26 = vsel %vm10157_vm7, %v2173_v40, %v2215_v9  ;;  %v4837_v48 = vstv %s8779_s12  ;;  %v4241_v50 = vpop.permute.xlu0 %4240 }
 0x4e9   : > { %v4216_v18 = vsel %vm10158_vm15, %v4212_v41, %v4214_v55  ;;  %v4222_v12 = vmul.f32 %v4214_v55, %v4208_v62  ;;  %v2089_v6 = vadd.f32 %v2086_v54, %v10159_v2  ;;  %v8804_v20 = vsel %vm10160_vm6, %v2308_v26, %v2257_v60  ;;  %v4270_v7 = vpop.permute.xlu1 %4269 }
 0x4ea   : > { %v4221_v35 = vmul.f32 %v4216_v18, %v4204_v32  ;;  %v4251_v3 = vmul.f32 %v4243_v28, %v4237_v57  ;;  %v4852_v19 = vstv %s5105_s15  ;;  %v4229_v41 = vrot.slane %v8549_v39, %v10084_v53 }
 0x4eb   : > { %v4225_v16 = vadd.f32 %v4222_v12, %v4196_v24  ;;  %v4233_v31 = vrot.slane %v8569_v45, %v10084_v53  ;;  %v4839_v0 = vmul.f32 %v4837_v48, %v297_v22  ;;  %v4854_v56 = vmul.f32 %v4852_v19, %v298_v1 }
 0x4ec   : > { %v4224_v21 = vadd.f32 %v4221_v35, %v4195_v44  ;;  %v4869_v4 = vstv %s5107_s23  ;;  %v10161_v43 = vmov 0   ;;  %v10162_v24 = vmov 1   ;;  %v4268_v62 = vpop.permute.xlu0 %4267  ;;  %v10172_v35 = vld [vmem:[#allocation16_spill] sm:$0xff] }
 0x4ed   : > { %5175 = vset.pattern.permute.xlu1 %v10161_v43  ;;  %5176 = vset.pattern.permute.xlu0 %v10162_v24  ;;  %v2131_v59 = vadd.f32 %v2128_v11, %v10163_v27  ;;  %vm10164_vm8 = vcmask 949248   ;;  %v4254_v46 = vadd.f32 %v4251_v3, %v4225_v16  ;;  %v4855_v33 = vadd.f32 %v4854_v56, %v4839_v0  ;;  %v10168_v11 = vld [vmem:[#allocation12_spill] sm:$0xff]  ;;  %v4297_v57 = vpop.permute.xlu1 %4296 }
 0x4ee   : > { %v4244_v38 = vsel %vm10164_vm8, %v4239_v5, %v4241_v50  ;;  %vm10165_vm5 = vmmov %vm10164_vm8  ;;  %v4871_v14 = vmul.f32 %v4869_v4, %v299_v17  ;;  %vm10166_vm2 = vcmask 1046528   ;;  %v2302_v52 = vsel %vm10167_vm0, %v2299_v51, %v2089_v6  ;;  %v10171_v51 = vld [vmem:[#allocation43_spill] sm:$0xff] }
 0x4ef   : > { %v4245_v30 = vsel %vm10165_vm5, %v4241_v50, %v4243_v28  ;;  %v4249_v40 = vmul.f32 %v4244_v38, %v4229_v41  ;;  %v8819_v44 = vsel %vm10166_vm2, %v2280_v25, %v1795_v37  ;;  %v2334_v54 = vsel %vm2333_vm10, %v8804_v20, -inf  ;;  %vm10170_vm13 = vmmov %vm10166_vm2 }
 0x4f0   : > { %v4250_v9 = vmul.f32 %v4245_v30, %v4233_v31  ;;  %v8824_v60 = vadd.f32 %v4871_v14, %v4855_v33  ;;  %v4258_v55 = vrot.slane %v8549_v39, %v10168_v11  ;;  %vm10169_vm9 = vcmask 941056   ;;  %v4272_v2 = vpop.permute.xlu0 %4271 }
 0x4f1   : > { %v4252_v42 = vadd.f32 %v4249_v40, %v4223_v58  ;;  %v4273_v32 = vsel %vm10169_vm9, %v4268_v62, %v4270_v7  ;;  %v2331_v25 = vsel %vm2330_vm3, %v8819_v44, -inf  ;;  %v8832_v37 = vsel %vm10170_vm13, %v2302_v52, %v2131_v59  ;;  %vm10173_vm4 = vmmov %vm10169_vm9  ;;  %v4301_v41 = vpop.permute.xlu1 %4300  ;;  %v10179_v52 = vld [vmem:[#allocation73_spill] sm:$0xff] }
 0x4f2   : > { %v4253_v5 = vadd.f32 %v4250_v9, %v4224_v21  ;;  %v4859_v26 = vrot.slane %v10171_v51, %v10082_v10  ;;  %4903 = vperm.xlu0 %5176, %v8824_v60   ;;  %4884 = vperm.xlu1 %5175, %v8824_v60   ;;  %v4278_v58 = vmul.f32 %v4273_v32, %v4258_v55  ;;  %v2332_v31 = vsel %vm2330_vm3, %v8832_v37, -inf  ;;  %v10182_v32 = vld [vmem:[#allocation121_spill] sm:$0xff] }
 0x4f3   : > { %v2335_v22 = vmax.f32 %v2331_v25, %v2334_v54  ;;  %v4843_v48 = vrot.slane %v10171_v51, %v10081_v36  ;;  %v4876_v18 = vrot.slane %v10171_v51, %v10083_v23  ;;  %v4266_v12 = vrot.slane %v8583_v34, %v10168_v11 }
 0x4f4   : > { %v4863_v1 = vmul.f32 %v8744_v8, %v4859_v26  ;;  %v4281_v28 = vadd.f32 %v4278_v58, %v4252_v42  ;;  %v4262_v6 = vrot.slane %v8569_v45, %v10168_v11  ;;  %v4295_v3 = vrot.slane %v8583_v34, %v10172_v35  ;;  %v4299_v38 = vpop.permute.xlu0 %4298  ;;  %v10180_v42 = vld [vmem:[#allocation9_spill] sm:$0xff] }
 0x4f5   : > { %v4847_v16 = vmul.f32 %v8719_v49, %v4843_v48  ;;  %v4274_v19 = vsel %vm10173_vm4, %v4270_v7, %v4272_v2  ;;  %v4280_v17 = vmul.f32 %v4272_v2, %v4266_v12  ;;  %v4880_v0 = vmul.f32 %v8758_v61, %v4876_v18  ;;  %v10176_v49 = vld [vmem:[#allocation69_spill] sm:$0xff]  ;;  %v4328_v14 = vpop.permute.xlu1 %4327 }
 0x4f6   : > { %v4279_v8 = vmul.f32 %v4274_v19, %v4262_v6  ;;  %v10174_v21 = vmov 3   ;;  %v10175_v56 = vmov 2   ;;  %v4309_v4 = vmul.f32 %v4301_v41, %v4295_v3 }
 0x4f7   : > { %5178 = vset.pattern.permute.xlu0 %v10174_v21  ;;  %5177 = vset.pattern.permute.xlu1 %v10175_v56  ;;  %v2336_v50 = vmax.f32 %v2335_v22, %v2332_v31  ;;  %v4283_v43 = vadd.f32 %v4280_v17, %v4254_v46  ;;  %v3878_v24 = vrot.slane %v10176_v49, 4  ;;  %v4864_v27 = vadd.f32 %v4863_v1, %v4847_v16  ;;  %v10183_v22 = vld [vmem:[#allocation19_spill] sm:$0xff] }
 0x4f8   : > { %4690 = vperm.xlu0 %5178, %v8777_v29   ;;  %4668 = vperm.xlu1 %5177, %v8777_v29   ;;  %v4282_v59 = vadd.f32 %v4279_v8, %v4253_v5  ;;  %v4287_v61 = vrot.slane %v8549_v39, %v10172_v35  ;;  %v4291_v30 = vrot.slane %v8569_v45, %v10172_v35  ;;  %vm10177_vm12 = vcmask 932864   ;;  %v4326_v58 = vpop.permute.xlu0 %4325 }
 0x4f9   : > { %v4302_v7 = vsel %vm10177_vm12, %v4297_v57, %v4299_v38  ;;  %vm10178_vm11 = vmmov %vm10177_vm12  ;;  %v4312_v46 = vadd.f32 %v4309_v4, %v4283_v43  ;;  %v4881_v40 = vadd.f32 %v4880_v0, %v4864_v27  ;;  %v3898_v54 = vrot.slane %v10179_v52, 4  ;;  %v4355_v6 = vpop.permute.xlu1 %4354 }
 0x4fa   : > { %v4303_v33 = vsel %vm10178_vm11, %v4299_v38, %v4301_v41  ;;  %v4307_v9 = vmul.f32 %v4302_v7, %v4287_v61  ;;  %v4602_v5 = vrot.slane %v10180_v42, %v10082_v10  ;;  %v10181_v62 = vmov 4  }
 0x4fb   : > { %v4308_v29 = vmul.f32 %v4303_v33, %v4291_v30  ;;  %v3879_v55 = vadd.f32 %v3878_v24, %v10176_v49  ;;  %v3887_v57 = vrot.slane %v10182_v32, 4  ;;  %v2337_v25 = vrot.slane %v2336_v50, 4 }
 0x4fc   : > { %5181 = vset.pattern.permute.xlu0 %v10181_v62  ;;  %4925 = vperm.xlu1 %5177, %v8824_v60   ;;  %v4310_v51 = vadd.f32 %v4307_v9, %v4281_v28  ;;  %v4316_v48 = vrot.slane %v8549_v39, %v10183_v22  ;;  %v4586_v18 = vrot.slane %v10180_v42, %v10081_v36  ;;  %vm10184_vm1 = vcmask 924672   ;;  %v4330_v8 = vpop.permute.xlu0 %4329 }
 0x4fd   : > { %v4311_v26 = vadd.f32 %v4308_v29, %v4282_v59  ;;  %4970 = vperm.xlu0 %5181, %v4881_v40   ;;  %v4606_v12 = vmul.f32 %v8728_v15, %v4602_v5  ;;  %v4619_v1 = vrot.slane %v10180_v42, %v10083_v23  ;;  %v4331_v2 = vsel %vm10184_vm1, %v4326_v58, %v4328_v14  ;;  %vm10185_vm14 = vmmov %vm10184_vm1  ;;  %v4359_v49 = vpop.permute.xlu1 %4358 }
 0x4fe   : > { %v4336_v3 = vmul.f32 %v4331_v2, %v4316_v48  ;;  %v4324_v28 = vrot.slane %v8583_v34, %v10183_v22  ;;  %v3899_v16 = vadd.f32 %v3898_v54, %v10179_v52  ;;  %v4590_v19 = vmul.f32 %v8709_v13, %v4586_v18  ;;  %v10190_v48 = vld [vmem:[#allocation27_spill] sm:$0xff] }
 0x4ff   : > { %v4623_v17 = vmul.f32 %v8733_v47, %v4619_v1  ;;  %v3880_v41 = vrot.slane %v3879_v55, 2  ;;  %v3888_v15 = vadd.f32 %v3887_v57, %v10182_v32  ;;  %v2338_v31 = vmax.f32 %v2336_v50, %v2337_v25 }
 0x500   : > { %5179 = vset.pattern.permute.xlu1 %v10174_v21  ;;  %v4339_v0 = vadd.f32 %v4336_v3, %v4310_v51  ;;  %v4320_v56 = vrot.slane %v8569_v45, %v10183_v22  ;;  %v4353_v4 = vrot.slane %v8583_v34, %v10130_v63  ;;  %v4607_v43 = vadd.f32 %v4606_v12, %v4590_v19  ;;  %v4357_v33 = vpop.permute.xlu0 %4356 }
 0x501   : > { %4947 = vperm.xlu1 %5179, %v8824_v60   ;;  %v4332_v13 = vsel %vm10185_vm14, %v4328_v14, %v4330_v8  ;;  %v4338_v47 = vmul.f32 %v4330_v8, %v4324_v28  ;;  %v3900_v27 = vrot.slane %v3899_v16, 2  ;;  %v3881_v38 = vadd.f32 %v3880_v41, %v3879_v55  ;;  %v10191_v28 = vld [vmem:[#allocation116_spill] sm:$0xff] }
 0x502   : > { %v4337_v21 = vmul.f32 %v4332_v13, %v4320_v56  ;;  %v4367_v24 = vmul.f32 %v4359_v49, %v4353_v4  ;;  %v4624_v59 = vadd.f32 %v4623_v17, %v4607_v43  ;;  %v3889_v61 = vrot.slane %v3888_v15, 2 }
 0x503   : > { %v4341_v50 = vadd.f32 %v4338_v47, %v4312_v46  ;;  %v2339_v30 = vrot.slane %v2338_v31, 2  ;;  %v4345_v60 = vrot.slane %v8549_v39, %v10130_v63  ;;  %v4349_v34 = vrot.slane %v8569_v45, %v10130_v63  ;;  %v4386_v46 = vpop.permute.xlu1 %4385 }
 0x504   : > { %v4340_v7 = vadd.f32 %v4337_v21, %v4311_v26  ;;  %vm10186_vm7 = vcmask 916480   ;;  %v3901_v54 = vadd.f32 %v3900_v27, %v3899_v16  ;;  %v3882_v42 = vrot.slane %v3881_v38, 1  ;;  %v4384_v57 = vpop.permute.xlu0 %4383 }
 0x505   : > { %5180 = vset.pattern.permute.xlu1 %v10181_v62  ;;  %v4360_v14 = vsel %vm10186_vm7, %v4355_v6, %v4357_v33  ;;  %vm10187_vm15 = vmmov %vm10186_vm7  ;;  %v4370_v9 = vadd.f32 %v4367_v24, %v4341_v50  ;;  %v3890_v5 = vadd.f32 %v3889_v61, %v3888_v15  ;;  %v2340_v55 = vmax.f32 %v2338_v31, %v2339_v30  ;;  %v10188_v62 = vld [vmem:[#allocation112_spill] sm:$0xff] }
 0x506   : > { %4713 = vperm.xlu1 %5180, %v4624_v59   ;;  %v4361_v40 = vsel %vm10187_vm15, %v4357_v33, %v4359_v49  ;;  %v4365_v29 = vmul.f32 %v4360_v14, %v4345_v60  ;;  %v4374_v25 = vrot.slane %v10188_v62, %v10081_v36  ;;  %vm10189_vm6 = vcmask 908288  }
 0x507   : > { %v4366_v52 = vmul.f32 %v4361_v40, %v4349_v34  ;;  %v4389_v45 = vsel %vm10189_vm6, %v4384_v57, %v4386_v46  ;;  %v4413_v51 = vpop.permute.xlu1 %4412  ;;  %v3902_v58 = vrot.slane %v3901_v54, 1  ;;  %v4382_v18 = vrot.slane %v10190_v48, %v10081_v36  ;;  %vm10192_vm8 = vmmov %vm10189_vm6 }
 0x508   : > { %v4368_v32 = vadd.f32 %v4365_v29, %v4339_v0  ;;  %v4394_v26 = vmul.f32 %v4389_v45, %v4374_v25  ;;  %v3883_v12 = vadd.f32 %v3882_v42, %v3881_v38  ;;  %v3891_v1 = vrot.slane %v3890_v5, 1  ;;  %v4388_v3 = vpop.permute.xlu0 %4387 }
 0x509   : > { %v4369_v39 = vadd.f32 %v4366_v52, %v4340_v7  ;;  %v2341_v2 = vrot.slane %v2340_v55, 1  ;;  %v4378_v16 = vrot.slane %v10191_v28, %v10081_v36  ;;  %v4411_v19 = vrot.slane %v10190_v48, %v10082_v10 }
 0x50a   : > { %v4397_v6 = vadd.f32 %v4394_v26, %v4368_v32  ;;  %v4390_v17 = vsel %vm10192_vm8, %v4386_v46, %v4388_v3  ;;  %v4396_v41 = vmul.f32 %v4388_v3, %v4382_v18  ;;  %v3903_v8 = vadd.f32 %v3902_v58, %v3901_v54 }
 0x50b   : > { %v4417_v15 = vpop.permute.xlu1 %4416  ;;  %v4395_v31 = vmul.f32 %v4390_v17, %v4378_v16  ;;  %v3892_v4 = vadd.f32 %v3891_v1, %v3890_v5  ;;  %5238 = vrcp.f32 %v3883_v12  ;;  %v2342_v43 = vmax.f32 %v2340_v55, %v2341_v2  ;;  %v10197_v12 = vld [vmem:[#allocation30_spill] sm:$0xff] }
 0x50c   : > { %v4425_v0 = vmul.f32 %v4417_v15, %v4411_v19  ;;  %v4399_v56 = vadd.f32 %v4396_v41, %v4370_v9  ;;  %v4415_v47 = vpop.permute.xlu0 %4414  ;;  %v4403_v49 = vrot.slane %v10188_v62, %v10082_v10  ;;  %v4407_v21 = vrot.slane %v10191_v28, %v10082_v10  ;;  %v10198_v2 = vld [vmem:[#allocation38_spill] sm:$0xff] }
 0x50d   : > { %v4398_v13 = vadd.f32 %v4395_v31, %v4369_v39  ;;  %vm10193_vm5 = vcmask 900096   ;;  %5240 = vrcp.f32 %v3903_v8  ;;  %v2345_v30 = vsub.f32 %v8819_v44, %v2342_v43  ;;  %v10199_v17 = vld [vmem:[#allocation106_spill] sm:$0xff] }
 0x50e   : > { %v4418_v24 = vsel %vm10193_vm5, %v4413_v51, %v4415_v47  ;;  %vm10194_vm2 = vmmov %vm10193_vm5  ;;  %v4428_v59 = vadd.f32 %v4425_v0, %v4399_v56  ;;  %5242 = vrcp.f32 %v3892_v4  ;;  %v4432_v34 = vrot.slane %v10188_v62, %v10083_v23  ;;  %v10200_v8 = vld [vmem:[#allocation46_spill] sm:$0xff] }
 0x50f   : > { %v4419_v27 = vsel %vm10194_vm2, %v4415_v47, %v4417_v15  ;;  %v4423_v50 = vmul.f32 %v4418_v24, %v4403_v49  ;;  %v4444_v61 = vpop.permute.xlu1 %4443  ;;  %vm10195_vm0 = vcmask 891904   ;;  %v4440_v9 = vrot.slane %v10190_v48, %v10083_v23 }
 0x510   : > { %v4424_v38 = vmul.f32 %v4419_v27, %v4407_v21  ;;  %v4442_v60 = vpop.permute.xlu0 %4441  ;;  %v2356_v46 = vmul.f32 1.442695, %v2345_v30  ;;  %v4436_v54 = vrot.slane %v10191_v28, %v10083_v23  ;;  %vm10196_vm9 = vmmov %vm10195_vm0  ;;  %v2348_v18 = vsub.f32 %v8832_v37, %v2342_v43 }
 0x511   : > { %v4426_v7 = vadd.f32 %v4423_v50, %v4397_v6  ;;  %v4447_v14 = vsel %vm10195_vm0, %v4442_v60, %v4444_v61  ;;  %v2351_v16 = vsub.f32 %v8804_v20, %v2342_v43  ;;  %v10202_v43 = vld [vmem:[#allocation51_spill] sm:$0xff] }
 0x512   : > { %v4427_v33 = vadd.f32 %v4424_v38, %v4398_v13  ;;  %v4452_v40 = vmul.f32 %v4447_v14, %v4432_v34  ;;  %5244 = vpow2.f32 %v2356_v46  ;;  %v2362_v3 = vmul.f32 1.442695, %v2348_v18  ;;  %v10201_v13 = vld [vmem:[#allocation109_spill] sm:$0xff] }
 0x513   : > { %v2368_v31 = vmul.f32 1.442695, %v2351_v16 }
 0x514   : > { %v4455_v29 = vadd.f32 %v4452_v40, %v4426_v7  ;;  %v4446_v52 = vpop.permute.xlu0 %4445  ;;  %5246 = vpow2.f32 %v2362_v3  ;;  %v10203_v7 = vld [vmem:[#allocation115_spill] sm:$0xff] }
 0x515   : > { %v5239_v42 = vpop.eup %5238  ;;  %v4448_v44 = vsel %vm10196_vm9, %v4444_v61, %v4446_v52  ;;  %v4454_v5 = vmul.f32 %v4446_v52, %v4440_v9  ;;  %5248 = vpow2.f32 %v2368_v31  ;;  %v10204_v9 = vld [vmem:[#allocation118_spill] sm:$0xff] }
 0x516   : > { %v4453_v55 = vmul.f32 %v4448_v44, %v4436_v54  ;;  %v8925_v32 = vmul.f32 %v5239_v42, %v4455_v29  ;;  %v10205_v44 = vld [vmem:[#allocation119_spill] sm:$0xff] }
 0x517   : > { %v4457_v39 = vadd.f32 %v4454_v5, %v4428_v59  ;;  %v5241_v57 = vpop.eup %5240 }
 0x518   : > { %v4456_v62 = vadd.f32 %v4453_v55, %v4427_v33  ;;  %v5243_v25 = vpop.eup %5242  ;;  %v10206_v55 = vld [vmem:[#allocation72_spill] sm:$0xff] }
 0x519   : > { %v8927_v45 = vmul.f32 %v5241_v57, %v4457_v39 }
 0x51a   : > { %v8929_v51 = vmul.f32 %v5243_v25, %v4456_v62 }
 0x51c   : > { %v5245_v26 = vpop.eup %5244 }
 0x51d   : > { %v2413_v58 = vrot.slane %v5245_v26, %v10081_v36  ;;  %v2442_v48 = vrot.slane %v5245_v26, %v10082_v10  ;;  %v2471_v28 = vrot.slane %v5245_v26, %v10083_v23  ;;  %v2500_v15 = vrot.slane %v5245_v26, %v10084_v53 }
 0x51e   : > { %v2529_v37 = vrot.slane %v5245_v26, %v10168_v11  ;;  %v2558_v49 = vrot.slane %v5245_v26, %v10172_v35  ;;  %v5247_v21 = vpop.eup %5246  ;;  %v2587_v27 = vrot.slane %v5245_v26, %v10183_v22  ;;  %v2388_v59 = vsel %vm2330_vm3, %v5245_v26, 0.0 }
 0x51f   : > { %v2430_v1 = vmul.f32 %v10197_v12, %v2413_v58  ;;  %v2456_v6 = vmul.f32 %v10198_v2, %v2442_v48  ;;  %v2485_v41 = vmul.f32 %v10199_v17, %v2471_v28  ;;  %v2514_v56 = vmul.f32 %v10200_v8, %v2500_v15  ;;  %v5249_v61 = vpop.eup %5248  ;;  %v10207_v48 = vld [vmem:[#allocation120_spill] sm:$0xff]  ;;  %v10208_v12 = vld [vmem:[#allocation123_spill] sm:$0xff] }
 0x520   : > { %v2543_v47 = vmul.f32 %v10201_v13, %v2529_v37  ;;  %v2572_v24 = vmul.f32 %v10202_v43, %v2558_v49  ;;  %v2389_v50 = vsel %vm2330_vm3, %v5247_v21, 0.0  ;;  %v2601_v33 = vmul.f32 %v10203_v7, %v2587_v27  ;;  %v10209_v17 = vld [vmem:[#allocation124_spill] sm:$0xff]  ;;  %v10210_v15 = vld [vmem:[#allocation111_spill] sm:$0xff]  ;;  %v10211_v13 = vld [vmem:[#allocation53_spill] sm:$0xff] }
 0x521   : > { %v2459_v19 = vadd.f32 %v2456_v6, %v2430_v1  ;;  %v2390_v30 = vadd.f32 %v2389_v50, %v2388_v59  ;;  %v2616_v34 = vrot.slane %v5245_v26, %v10130_v63  ;;  %v2391_v14 = vsel %vm2333_vm10, %v5249_v61, 0.0  ;;  %v10212_v49 = vld [vmem:[#allocation113_spill] sm:$0xff] }
 0x522   : > { %v2645_v52 = vrot.slane %v5247_v21, %v10081_v36  ;;  %v2674_v54 = vrot.slane %v5247_v21, %v10082_v10  ;;  %v2703_v26 = vrot.slane %v5247_v21, %v10083_v23  ;;  %v2732_v58 = vrot.slane %v5247_v21, %v10084_v53 }
 0x523   : > { %v2488_v0 = vadd.f32 %v2485_v41, %v2459_v19  ;;  %v2392_v40 = vadd.f32 %v2391_v14, %v2390_v30  ;;  %v2630_v46 = vmul.f32 %v10204_v9, %v2616_v34  ;;  %v2761_v28 = vrot.slane %v5247_v21, %v10168_v11  ;;  %v4463_v34 = vpop.permute.xlu1 %4462 }
 0x524   : > { %v2659_v5 = vmul.f32 %v10205_v44, %v2645_v52  ;;  %v2688_v39 = vmul.f32 %v10206_v55, %v2674_v54  ;;  %v2717_v18 = vmul.f32 %v10207_v48, %v2703_v26  ;;  %v2746_v1 = vmul.f32 %v10208_v12, %v2732_v58  ;;  %v10218_v54 = vld [vmem:[#allocation39_spill] sm:$0xff] }
 0x525   : > { %v2517_v4 = vadd.f32 %v2514_v56, %v2488_v0  ;;  %v2393_v42 = vrot.slane %v2392_v40, 4  ;;  %v2790_v16 = vrot.slane %v5247_v21, %v10172_v35  ;;  %v2775_v41 = vmul.f32 %v10209_v17, %v2761_v28 }
 0x526   : > { %v2819_v37 = vrot.slane %v5247_v21, %v10183_v22  ;;  %v2877_v11 = vrot.slane %v5249_v61, %v10081_v36  ;;  %v2906_v50 = vrot.slane %v5249_v61, %v10082_v10  ;;  %v2935_v30 = vrot.slane %v5249_v61, %v10083_v23  ;;  %v10214_v22 = vld [vmem:[#allocation117_spill] sm:$0xff] }
 0x527   : > { %v2546_v20 = vadd.f32 %v2543_v47, %v2517_v4  ;;  %v2394_v62 = vadd.f32 %v2393_v42, %v2392_v40  ;;  %v2804_v31 = vmul.f32 %v10210_v15, %v2790_v16  ;;  %v2848_v4 = vrot.slane %v5247_v21, %v10130_v63  ;;  %v10215_v63 = vld [vmem:[#allocation54_spill] sm:$0xff] }
 0x528   : > { %v2833_v47 = vmul.f32 %v10211_v13, %v2819_v37  ;;  %v2920_v7 = vmul.f32 %v10214_v22, %v2906_v50  ;;  %v2949_v21 = vmul.f32 %v10215_v63, %v2935_v30  ;;  %v8986_v44 = vmul.f32 %v4463_v34, %v8925_v32 }
 0x529   : > { %v2575_v38 = vadd.f32 %v2572_v24, %v2546_v20  ;;  %v2395_v2 = vrot.slane %v2394_v62, 2  ;;  %v2862_v20 = vmul.f32 %v10212_v49, %v2848_v4  ;;  %v10213_v24 = vld [vmem:[#allocation114_spill] sm:$0xff]  ;;  %vm10219_vm3 = vcmask 519168  }
 0x52a   : > { %v2891_v27 = vmul.f32 %v10213_v24, %v2877_v11  ;;  %v4909_v12 = vrot.slane %v8986_v44, %v10082_v10  ;;  %v4890_v16 = vrot.slane %v8986_v44, %v10081_v36  ;;  %v4953_v63 = vrot.slane %v8986_v44, %v10084_v53  ;;  %vm10220_vm10 = vmmov %vm10219_vm3 }
 0x52b   : > { %v2604_v60 = vadd.f32 %v2601_v33, %v2575_v38  ;;  %v2396_v19 = vadd.f32 %v2395_v2, %v2394_v62 }
 0x52d   : > { %v2633_v29 = vadd.f32 %v2630_v46, %v2604_v60  ;;  %v2397_v8 = vrot.slane %v2396_v19, 1  ;;  %v10216_v46 = vld [vmem:[#allocation2_spill] sm:$0xff] }
 0x52f   : > { %v2662_v57 = vadd.f32 %v2659_v5, %v2633_v29  ;;  %v2398_v43 = vadd.f32 %v2397_v8, %v2396_v19  ;;  %v10217_v29 = vld [vmem:[#allocation6_spill] sm:$0xff]  ;;  %v8989_v5 = vmul.f32 %v4463_v34, %v8929_v51 }
 0x530   : > { %v8976_v52 = vmul.f32 %v10217_v29, %v10216_v46  ;;  %v8980_v42 = vmul.f32 %v10217_v29, %v10218_v54 }
 0x531   : > { %v2691_v25 = vadd.f32 %v2688_v39, %v2662_v57  ;;  %5250 = vrcp.f32 %v2398_v43  ;;  %v8992_v39 = vmul.f32 %v4463_v34, %v8927_v45  ;;  %v4894_v19 = vrot.slane %v8989_v5, %v10081_v36 }
 0x532   : > { %v4637_v57 = vrot.slane %v8976_v52, %v10081_v36  ;;  %v4633_v26 = vrot.slane %v8980_v42, %v10081_v36  ;;  %v4656_v32 = vrot.slane %v8976_v52, %v10082_v10  ;;  %v4652_v45 = vrot.slane %v8980_v42, %v10082_v10 }
 0x533   : > { %v2720_v6 = vadd.f32 %v2717_v18, %v2691_v25  ;;  %v4700_v58 = vrot.slane %v8976_v52, %v10084_v53  ;;  %v4678_v18 = vrot.slane %v8976_v52, %v10083_v23  ;;  %v4917_v28 = vrot.slane %v8992_v39, %v10082_v10 }
 0x534   : > { %v4898_v17 = vrot.slane %v8992_v39, %v10081_v36  ;;  %v4935_v8 = vrot.slane %v8989_v5, %v10083_v23  ;;  %v4696_v22 = vrot.slane %v8980_v42, %v10084_v53  ;;  %v4961_v46 = vrot.slane %v8992_v39, %v10084_v53 }
 0x535   : > { %v2749_v3 = vadd.f32 %v2746_v1, %v2720_v6  ;;  %v4913_v1 = vrot.slane %v8989_v5, %v10082_v10  ;;  %v4674_v6 = vrot.slane %v8980_v42, %v10083_v23 }
 0x537   : > { %v2778_v0 = vadd.f32 %v2775_v41, %v2749_v3 }
 0x539   : > { %v2807_v56 = vadd.f32 %v2804_v31, %v2778_v0  ;;  %v4931_v0 = vrot.slane %v8986_v44, %v10083_v23 }
 0x53b   : > { %v2836_v35 = vadd.f32 %v2833_v47, %v2807_v56  ;;  %v5251_v14 = vpop.eup %5250 }
 0x53d   : > { %v2865_v59 = vadd.f32 %v2862_v20, %v2836_v35  ;;  %v4939_v35 = vrot.slane %v8992_v39, %v10083_v23 }
 0x53f   : > { %v2894_v38 = vadd.f32 %v2891_v27, %v2865_v59 }
 0x541   : > { %v2923_v33 = vadd.f32 %v2920_v7, %v2894_v38 }
 0x543   : > { %v2952_v60 = vadd.f32 %v2949_v21, %v2923_v33 }
 0x545   : > { %v2955_v40 = vmul.f32 %v5251_v14, %v2952_v60 }
 0x547   : > { %v8983_v61 = vmul.f32 %v10217_v29, %v2955_v40 }
 0x549   : > { %v4641_v25 = vrot.slane %v8983_v61, %v10081_v36  ;;  %v4660_v51 = vrot.slane %v8983_v61, %v10082_v10  ;;  %v4704_v48 = vrot.slane %v8983_v61, %v10084_v53  ;;  %v4682_v2 = vrot.slane %v8983_v61, %v10083_v23 }
 0x566   : > { %v4647_v9 = vpop.permute.xlu1 %4646  ;;  %v4628_v62 = vpop.permute.xlu0 %4627 }
 0x567   : > { %v4642_v15 = vmul.f32 %v4633_v26, %v4628_v62  ;;  %v4643_v31 = vmul.f32 %v4637_v57, %v4628_v62  ;;  %v4644_v56 = vmul.f32 %v4641_v25, %v4628_v62  ;;  %v4661_v10 = vmul.f32 %v4652_v45, %v4647_v9 }
 0x568   : > { %v4662_v37 = vmul.f32 %v4656_v32, %v4647_v9  ;;  %v4663_v4 = vmul.f32 %v4660_v51, %v4647_v9  ;;  %v4957_v9 = vrot.slane %v8989_v5, %v10084_v53 }
 0x569   : > { %v4664_v30 = vadd.f32 %v4661_v10, %v4642_v15  ;;  %v5259_v15 = vld [vmem:[%s5376_s8 + $0x8] sm:$0xf] }
 0x56a   : > { %v4665_v21 = vadd.f32 %v4662_v37, %v4643_v31  ;;  %v4666_v33 = vadd.f32 %v4663_v4, %v4644_v56  ;;  %v5261_v56 = vld [vmem:[%s5376_s8] sm:$0xff] }
 0x571   : > { %v4885_v55 = vpop.permute.xlu1 %4884  ;;  %v4904_v3 = vpop.permute.xlu0 %4903 }
 0x572   : > { %v4918_v13 = vmul.f32 %v4909_v12, %v4904_v3  ;;  %v4919_v47 = vmul.f32 %v4913_v1, %v4904_v3  ;;  %v4899_v49 = vmul.f32 %v4890_v16, %v4885_v55  ;;  %v4900_v20 = vmul.f32 %v4894_v19, %v4885_v55  ;;  %v5258_v19 = vld [vmem:[%s5385_s11 + $0x8] sm:$0xf] }
 0x573   : > { %v4920_v11 = vmul.f32 %v4917_v28, %v4904_v3  ;;  %v4901_v43 = vmul.f32 %v4898_v17, %v4885_v55 }
 0x574   : > { %v4921_v60 = vadd.f32 %v4918_v13, %v4899_v49  ;;  %v4922_v34 = vadd.f32 %v4919_v47, %v4900_v20 }
 0x575   : > { %v4923_v40 = vadd.f32 %v4920_v11, %v4901_v43 }
 0x577   : > { %v4669_v41 = vpop.permute.xlu1 %4668  ;;  %v4691_v14 = vpop.permute.xlu0 %4690 }
 0x578   : > { %v4683_v36 = vmul.f32 %v4674_v6, %v4669_v41  ;;  %v4684_v27 = vmul.f32 %v4678_v18, %v4669_v41  ;;  %v4685_v59 = vmul.f32 %v4682_v2, %v4669_v41  ;;  %v4705_v25 = vmul.f32 %v4696_v22, %v4691_v14 }
 0x579   : > { %v4706_v26 = vmul.f32 %v4700_v58, %v4691_v14  ;;  %v4707_v32 = vmul.f32 %v4704_v48, %v4691_v14 }
 0x57a   : > { %v4686_v23 = vadd.f32 %v4683_v36, %v4664_v30  ;;  %v4687_v29 = vadd.f32 %v4684_v27, %v4665_v21  ;;  %v4688_v52 = vadd.f32 %v4685_v59, %v4666_v33 }
 0x57b   : > { %v4926_v24 = vpop.permute.xlu1 %4925 }
 0x57c   : > { %v4940_v50 = vmul.f32 %v4931_v0, %v4926_v24  ;;  %v4941_v38 = vmul.f32 %v4935_v8, %v4926_v24  ;;  %v4942_v7 = vmul.f32 %v4939_v35, %v4926_v24  ;;  %v4971_v18 = vpop.permute.xlu0 %4970  ;;  %v4709_v53 = vadd.f32 %v4706_v26, %v4687_v29  ;;  %v5260_v0 = vld [vmem:[%s5385_s11] sm:$0xff] }
 0x57d   : > { %v4710_v39 = vadd.f32 %v4707_v32, %v4688_v52  ;;  %v4708_v12 = vadd.f32 %v4705_v25, %v4686_v23 }
 0x57e   : > { %v4943_v54 = vadd.f32 %v4940_v50, %v4921_v60  ;;  %v4944_v42 = vadd.f32 %v4941_v38, %v4922_v34  ;;  %v4945_v55 = vadd.f32 %v4942_v7, %v4923_v40 }
 0x580   : > { %v4948_v61 = vpop.permute.xlu1 %4947 }
 0x581   : > { %v4962_v44 = vmul.f32 %v4953_v63, %v4948_v61  ;;  %v4963_v57 = vmul.f32 %v4957_v9, %v4948_v61  ;;  %v4964_v62 = vmul.f32 %v4961_v46, %v4948_v61 }
 0x583   : > { %v4965_v51 = vadd.f32 %v4962_v44, %v4943_v54  ;;  %v4966_v45 = vadd.f32 %v4963_v57, %v4944_v42  ;;  %v4967_v5 = vadd.f32 %v4964_v62, %v4945_v55 }
 0x585   : > { %v4973_v1 = vadd.f32 %v4971_v18, %v4965_v51  ;;  %v4974_v2 = vadd.f32 %v4971_v18, %v4966_v45  ;;  %v4975_v6 = vadd.f32 %v4971_v18, %v4967_v5  ;;  %v4714_v3 = vpop.permute.xlu1 %4713 }
 0x586   : > { %v4716_v58 = vadd.f32 %v4714_v3, %v4708_v12  ;;  %v4717_v48 = vadd.f32 %v4714_v3, %v4709_v53  ;;  %v4718_v28 = vadd.f32 %v4714_v3, %v4710_v39 }
 0x587   : > { %v4978_v16 = vcombine.low %v4973_v1, %v4974_v2  ;;  %v4981_v17 = vadd.f32 %v5258_v19, %v4975_v6 }
 0x588   : > { %v4721_v41 = vcombine.low %v4716_v58, %v4717_v48  ;;  %v4724_v31 = vadd.f32 %v5259_v15, %v4718_v28 }
 0x589   : > { %v4980_v8 = vadd.f32 %v5260_v0, %v4978_v16  ;;  %4983 = vst.msk [vmem:[%s284_s22 + $0x8] sm:$0xf] %vm10219_vm3, %v4981_v17 }
 0x58a   : > { %v4723_v10 = vadd.f32 %v5261_v56, %v4721_v41  ;;  %4726 = vst.msk [vmem:[%s279_s27 + $0x8] sm:$0xf] %vm10220_vm10, %v4724_v31 }
 0x58b   : > { %4982 = vst [vmem:[%s284_s22] sm:$0xff] %v4980_v8 }
 0x58c   : > { %4725 = vst [vmem:[%s279_s27] sm:$0xff] %v4723_v10 }
 0x58d PF: > { %s17_s21 = sadd.s32 1, %s5268_s21  }
 0x58e   : > { %p14_p4 = scmp.ge.s32.totalorder %s17_s21, 4  }
 0x590   :  { %16 = sbr.rel (!%p14_p4) target bundleno = 1 (0x1), region = 85 }

</bundles_post_ra>
